<compile_context>
chip_gen: v7x
topology: tpu7x:2x2x1
jax: 0.10.0
libtpu: 0.0.40
codegen_flags: <defaults>
</compile_context>

<pallas_src>
import functools

import jax
import jax.numpy as jnp
from jax.experimental import pallas as pl
from jax.experimental.pallas import tpu as pltpu


# ---------------------------------------------------------------------------
# The single fused kernel (runs once per batch sample via the grid)
# ---------------------------------------------------------------------------
def _lenet_kernel(col1_ref, w1_ref, b1_ref, w2_ref, b2_ref, w3_ref, b3_ref,
                  w4_ref, b4_ref, w5_ref, b5_ref, out_ref, pool1_ref, col2_ref):
    f32 = jnp.float32

    # ---- conv1: one im2col matmul + bias + ReLU, then 2x2 max-pool -----------
    # col1 rows are ordered (quadrant k = 2*(oh%2)+(ow%2), ph, pw), so the
    # pooled (14,14) map is the elementwise max of four contiguous 196-row
    # slices of the conv1 output -- pure VPU work after a single MXU matmul.
    w1 = w1_ref[...]                                   # (128, 128) K/Cout zero-padded
    b1 = b1_ref[...]                                   # (1, 128)
    y = jnp.maximum(jnp.dot(col1_ref[0], w1, preferred_element_type=f32) + b1,
                    0.0)                                                # (784, 128)
    q = jnp.maximum(jnp.maximum(y[0:196, :], y[196:392, :]),
                    jnp.maximum(y[392:588, :], y[588:784, :]))          # (196, 128)
    for ph in range(14):
        pool1_ref[ph, :, :] = q[ph * 14:ph * 14 + 14, 0:8]             # ch 6,7 are 0

    # ---- conv2 im2col, entirely in VMEM (25 shifted 3-D copies) --------------
    # col2[oh2, ow2, 8*t + c] = pool1[oh2 + i2, ow2 + j2, c],  t = 5*i2 + j2
    for i2 in range(5):
        for j2 in range(5):
            t = 5 * i2 + j2
            col2_ref[:, :, pl.ds(8 * t, 8)] = \
                pool1_ref[pl.ds(i2, 10), pl.ds(j2, 10), :]

    # ---- conv2 + bias + ReLU + 2x2 max-pool + fc1 accumulation ---------------
    # The flatten is folded into fc1: each pooled (ph2, pw2) position's 16
    # channels hit the matching 16-row block of the (reordered) fc1 weight.
    w2 = w2_ref[...]                                   # (200, 128)
    b2 = b2_ref[...]                                   # (1, 128)
    acc = jnp.zeros((1, 256), f32)
    for ph2 in range(5):
        ya = jnp.dot(col2_ref[2 * ph2, :, :], w2, preferred_element_type=f32) + b2
        yb = jnp.dot(col2_ref[2 * ph2 + 1, :, :], w2, preferred_element_type=f32) + b2
        yr = jnp.maximum(jnp.maximum(ya, 0.0), jnp.maximum(yb, 0.0))    # (10, 128)
        for pw2 in range(5):
            pr = jnp.maximum(yr[2 * pw2:2 * pw2 + 1, :],
                             yr[2 * pw2 + 1:2 * pw2 + 2, :])            # (1, 128)
            blk = w3_ref[pl.ds((ph2 * 5 + pw2) * 16, 16), :]            # (16, 256)
            acc = acc + jnp.dot(pr[:, 0:16], blk, preferred_element_type=f32)

    # ---- fc1 bias/ReLU -> fc2 -> ReLU -> fc3 ---------------------------------
    h = jnp.maximum(acc + b3_ref[...], 0.0)                                         # (1, 256)
    h = jnp.maximum(jnp.dot(h, w4_ref[...], preferred_element_type=f32)
                    + b4_ref[...], 0.0)                                             # (1, 128)
    logits = jnp.dot(h, w5_ref[...], preferred_element_type=f32) + b5_ref[...]      # (1, 128)
    out_ref[0, :, :] = logits                          # lane-dense (128) store


# ---------------------------------------------------------------------------
# One-time weight layout prep (done at parameter-load time, not per forward)
# ---------------------------------------------------------------------------
def prepare_params(params, num_classes=100):
    assert num_classes <= 128
    f32 = jnp.float32
    # conv1 (6,3,5,5) -> (75,6) -> zero-pad to (128,128); rows = (i*5+j)*3 + c
    w1 = jnp.transpose(params["conv1_w"], (2, 3, 1, 0)).reshape(75, 6)
    w1p = jnp.zeros((128, 128), f32).at[:75, :6].set(w1)
    b1p = jnp.zeros((1, 128), f32).at[0, :6].set(params["conv1_b"])

    # conv2 (16,6,5,5) -> (5,5,6,16), pad cin 6->8 so each tap owns an 8-wide
    # column slot -> (200,16) -> zero-pad Cout to (200,128)
    w2 = jnp.transpose(params["conv2_w"], (2, 3, 1, 0))
    w2 = jnp.pad(w2, ((0, 0), (0, 0), (0, 2), (0, 0))).reshape(200, 16)
    w2p = jnp.zeros((200, 128), f32).at[:, :16].set(w2)
    b2p = jnp.zeros((1, 128), f32).at[0, :16].set(params["conv2_b"])

    # fc1: reorder input features from NCHW-flatten (c, ph, pw) to kernel order
    # (ph, pw, c) so the in-kernel "flatten" is just per-position 16-row blocks.
    w3 = params["fc1_w"].reshape(256, 16, 5, 5)
    w3p = jnp.transpose(w3, (2, 3, 1, 0)).reshape(400, 256).astype(f32)
    b3p = params["fc1_b"].reshape(1, 256).astype(f32)

    w4p = params["fc2_w"].T.astype(f32)                                 # (256, 128)
    b4p = params["fc2_b"].reshape(1, 128).astype(f32)

    w5p = jnp.zeros((128, 128), f32).at[:, :num_classes].set(params["fc3_w"].T)
    b5p = jnp.zeros((1, 128), f32).at[0, :num_classes].set(params["fc3_b"])

    return dict(w1p=w1p, b1p=b1p, w2p=w2p, b2p=b2p, w3p=w3p, b3p=b3p,
                w4p=w4p, b4p=b4p, w5p=w5p, b5p=b5p)


# ---------------------------------------------------------------------------
# One-time XLA prep of the raw input: conv1 im2col with pool-friendly row order
# ---------------------------------------------------------------------------
def build_col1(x_nchw):
    n, c, h, w = x_nchw.shape
    assert (c, h, w) == (3, 32, 32), "LeNet expects 3x32x32 inputs"
    x = jnp.transpose(x_nchw, (0, 2, 3, 1)).astype(jnp.float32)         # NHWC
    patches = [x[:, i:i + 28, j:j + 28, :] for i in range(5) for j in range(5)]
    p = jnp.concatenate(patches, axis=-1)                               # (n,28,28,75)
    # reorder rows to (quadrant, ph, pw): quadrant k = 2*(oh%2) + (ow%2), so the
    # in-kernel 2x2 pool is a 4-way max of contiguous 196-row slices.
    p = p.reshape(n, 14, 2, 14, 2, 75)                                  # (n,ph,r,pw,s,f)
    p = jnp.transpose(p, (0, 2, 4, 1, 3, 5))                            # (n,r,s,ph,pw,f)
    col1 = p.reshape(n, 28 * 28, 75)
    return jnp.pad(col1, ((0, 0), (0, 0), (0, 128 - 75)))               # K 75 -> 128


# ---------------------------------------------------------------------------
# pallas_call wrapper
# ---------------------------------------------------------------------------
def _lenet_pallas(col1, pp):
    n = col1.shape[0]

    def cmap(b):
        return (0, 0)

    return pl.pallas_call(
        _lenet_kernel,
        out_shape=jax.ShapeDtypeStruct((n, 1, 128), jnp.float32),       # lane-dense
        grid_spec=pltpu.PrefetchScalarGridSpec(
            num_scalar_prefetch=0,
            grid=(n,),
            in_specs=[
                pl.BlockSpec((1, 784, 128), lambda b: (b, 0, 0)),   # conv1 im2col
                pl.BlockSpec((128, 128), cmap),                     # w1
                pl.BlockSpec((1, 128), cmap),                       # b1
                pl.BlockSpec((200, 128), cmap),                     # w2
                pl.BlockSpec((1, 128), cmap),                       # b2
                pl.BlockSpec((400, 256), cmap),                     # fc1 w
                pl.BlockSpec((1, 256), cmap),                       # fc1 b
                pl.BlockSpec((256, 128), cmap),                     # fc2 w
                pl.BlockSpec((1, 128), cmap),                       # fc2 b
                pl.BlockSpec((128, 128), cmap),                     # fc3 w (N padded)
                pl.BlockSpec((1, 128), cmap),                       # fc3 b (padded)
            ],
            out_specs=pl.BlockSpec((1, 1, 128), lambda b: (b, 0, 0)),
            scratch_shapes=[
                pltpu.VMEM((14, 14, 8), jnp.float32),     # pool1 output (ph, pw, 6+pad)
                pltpu.VMEM((10, 10, 200), jnp.float32),   # conv2 im2col (oh2, ow2, 25*8)
            ],
        ),
        compiler_params=pltpu.CompilerParams(
            dimension_semantics=("parallel",),            # batch split across TCs (v7x)
        ),
    )(col1, pp["w1p"], pp["b1p"], pp["w2p"], pp["b2p"], pp["w3p"], pp["b3p"],
      pp["w4p"], pp["b4p"], pp["w5p"], pp["b5p"])


@functools.partial(jax.jit, static_argnames=("num_classes",))
def _lenet_logits(x_nchw, prepped_params, num_classes):
    col1 = build_col1(x_nchw)
    out = _lenet_pallas(col1, prepped_params)
    n = x_nchw.shape[0]
    return out.reshape(n, 128)[:, :num_classes]


def lenet_forward(x_nchw, prepped_params, num_classes=100):
    out = _lenet_logits(x_nchw, prepped_params, num_classes)
    n = x_nchw.shape[0]
    shape_dict = {1: (n, 6, 14, 14), 2: (n, 16, 5, 5), 3: (n, 400),
                  4: (n, 256), 5: (n, 128), 6: (n, num_classes)}
    return out, shape_dict


# ---------------------------------------------------------------------------
# Parameters + plain-JAX reference (for a numerical self-check)
# ---------------------------------------------------------------------------
def init_params(key, num_classes=100):
    ks = jax.random.split(key, 10)
    s = 0.1
    return {
        "conv1_w": s * jax.random.normal(ks[0], (6, 3, 5, 5), jnp.float32),
        "conv1_b": s * jax.random.normal(ks[1], (6,), jnp.float32),
        "conv2_w": s * jax.random.normal(ks[2], (16, 6, 5, 5), jnp.float32),
        "conv2_b": s * jax.random.normal(ks[3], (16,), jnp.float32),
        "fc1_w": s * jax.random.normal(ks[4], (256, 16 * 5 * 5), jnp.float32),
        "fc1_b": s * jax.random.normal(ks[5], (256,), jnp.float32),
        "fc2_w": s * jax.random.normal(ks[6], (128, 256), jnp.float32),
        "fc2_b": s * jax.random.normal(ks[7], (128,), jnp.float32),
        "fc3_w": s * jax.random.normal(ks[8], (num_classes, 128), jnp.float32),
        "fc3_b": s * jax.random.normal(ks[9], (num_classes,), jnp.float32),
    }


def lenet_reference(x_nchw, params):
    hp = jax.lax.Precision.HIGHEST
    dn = ("NCHW", "OIHW", "NCHW")
    y = jax.lax.conv_general_dilated(x_nchw, params["conv1_w"], (1, 1), "VALID",
                                     dimension_numbers=dn, precision=hp)
    y = jax.nn.relu(y + params["conv1_b"][None, :, None, None])
    n, c, h, w = y.shape
    y = y.reshape(n, c, h // 2, 2, w // 2, 2).max(axis=(3, 5))
    y = jax.lax.conv_general_dilated(y, params["conv2_w"], (1, 1), "VALID",
                                     dimension_numbers=dn, precision=hp)
    y = jax.nn.relu(y + params["conv2_b"][None, :, None, None])
    n, c, h, w = y.shape
    y = y.reshape(n, c, h // 2, 2, w // 2, 2).max(axis=(3, 5))
    y = y.reshape(n, -1)
    y = jax.nn.relu(jnp.dot(y, params["fc1_w"].T, precision=hp) + params["fc1_b"])
    y = jax.nn.relu(jnp.dot(y, params["fc2_w"].T, precision=hp) + params["fc2_b"])
    return jnp.dot(y, params["fc3_w"].T, precision=hp) + params["fc3_b"]


if __name__ == "__main__":
    key = jax.random.PRNGKey(0)
    k_x, k_p = jax.random.split(key)

    batch, num_classes = 2, 100
    x = jax.random.normal(k_x, (batch, 3, 32, 32), jnp.float32)   # NCHW like PyTorch
    params = init_params(k_p, num_classes=num_classes)
    prepped = prepare_params(params, num_classes=num_classes)     # one-time layout prep

    out, shape_dict = lenet_forward(x, prepped, num_classes=num_classes)
    out = jax.block_until_ready(out)

    assert out.shape == (batch, num_classes)
    assert shape_dict == {
        1: (batch, 6, 14, 14),
        2: (batch, 16, 5, 5),
        3: (batch, 400),
        4: (batch, 256),
        5: (batch, 128),
        6: (batch, num_classes),
    }

    ref = lenet_reference(x, params)
    assert float(jnp.max(jnp.abs(out - ref))) < 5e-2, "numerical mismatch vs reference"

    print("KERNEL_OK")
</pallas_src>

<mosaic_0001>
module attributes {stable_mosaic.version = 11 : i64} {
  func.func @_lenet_kernel(%arg0: i32, %arg1: memref<1x784x128xf32, #tpu.memory_space<vmem>>, %arg2: memref<128x128xf32, #tpu.memory_space<vmem>>, %arg3: memref<1x128xf32, #tpu.memory_space<vmem>>, %arg4: memref<200x128xf32, #tpu.memory_space<vmem>>, %arg5: memref<1x128xf32, #tpu.memory_space<vmem>>, %arg6: memref<400x256xf32, #tpu.memory_space<vmem>>, %arg7: memref<1x256xf32, #tpu.memory_space<vmem>>, %arg8: memref<256x128xf32, #tpu.memory_space<vmem>>, %arg9: memref<1x128xf32, #tpu.memory_space<vmem>>, %arg10: memref<128x128xf32, #tpu.memory_space<vmem>>, %arg11: memref<1x128xf32, #tpu.memory_space<vmem>>, %arg12: memref<1x1x128xf32, #tpu.memory_space<vmem>>, %arg13: memref<14x14x8xf32, #tpu.memory_space<vmem>>, %arg14: memref<10x10x200xf32, #tpu.memory_space<vmem>>) attributes {dimension_semantics = [#tpu.dimension_semantics<parallel>], iteration_bounds = array<i64: 2>, scalar_prefetch = 0 : i64, scratch_operands = 2 : i64, tpu.core_type = #tpu.core_type<tc>, window_params = [{transform_indices = @transform_0, window_bounds = array<i64: 1, 784, 128>}, {pipeline_mode = #tpu.pipeline_mode<synchronous>, transform_indices = @transform_1, window_bounds = array<i64: 128, 128>}, {pipeline_mode = #tpu.pipeline_mode<synchronous>, transform_indices = @transform_2, window_bounds = array<i64: 1, 128>}, {pipeline_mode = #tpu.pipeline_mode<synchronous>, transform_indices = @transform_3, window_bounds = array<i64: 200, 128>}, {pipeline_mode = #tpu.pipeline_mode<synchronous>, transform_indices = @transform_4, window_bounds = array<i64: 1, 128>}, {pipeline_mode = #tpu.pipeline_mode<synchronous>, transform_indices = @transform_5, window_bounds = array<i64: 400, 256>}, {pipeline_mode = #tpu.pipeline_mode<synchronous>, transform_indices = @transform_6, window_bounds = array<i64: 1, 256>}, {pipeline_mode = #tpu.pipeline_mode<synchronous>, transform_indices = @transform_7, window_bounds = array<i64: 256, 128>}, {pipeline_mode = #tpu.pipeline_mode<synchronous>, transform_indices = @transform_8, window_bounds = array<i64: 1, 128>}, {pipeline_mode = #tpu.pipeline_mode<synchronous>, transform_indices = @transform_9, window_bounds = array<i64: 128, 128>}, {pipeline_mode = #tpu.pipeline_mode<synchronous>, transform_indices = @transform_10, window_bounds = array<i64: 1, 128>}, {transform_indices = @transform_11, window_bounds = array<i64: 1, 1, 128>}]} {
    %c0 = arith.constant 0 : index
    %c0_0 = arith.constant 0 : index
    %0 = vector.load %arg2[%c0, %c0_0] : memref<128x128xf32, #tpu.memory_space<vmem>>, vector<128x128xf32>
    %c0_1 = arith.constant 0 : index
    %c0_2 = arith.constant 0 : index
    %1 = vector.load %arg3[%c0_1, %c0_2] : memref<1x128xf32, #tpu.memory_space<vmem>>, vector<1x128xf32>
    %c0_3 = arith.constant 0 : index
    %c0_4 = arith.constant 0 : index
    %c0_5 = arith.constant 0 : index
    %2 = vector.load %arg1[%c0_3, %c0_4, %c0_5] : memref<1x784x128xf32, #tpu.memory_space<vmem>>, vector<1x784x128xf32>
    %3 = vector.shape_cast %2 : vector<1x784x128xf32> to vector<784x128xf32>
    %cst = arith.constant dense<0.000000e+00> : vector<784x128xf32>
    %4 = tpu.matmul %3, %0, %cst {dimension_numbers = #tpu.dot_dimension_numbers<[1], [0], [0], [1], [0, 0, 1, 1], [], []>} : vector<784x128xf32>, vector<128x128xf32>, vector<784x128xf32> -> vector<784x128xf32>
    %5 = vector.broadcast %1 : vector<1x128xf32> to vector<784x128xf32>
    %6 = arith.addf %4, %5 : vector<784x128xf32>
    %cst_6 = arith.constant 0.000000e+00 : f32
    %7 = vector.broadcast %cst_6 : f32 to vector<784x128xf32>
    %8 = arith.maximumf %6, %7 : vector<784x128xf32>
    %9 = vector.extract_strided_slice %8 {offsets = [0, 0], sizes = [196, 128], strides = [1, 1]} : vector<784x128xf32> to vector<196x128xf32>
    %10 = vector.extract_strided_slice %8 {offsets = [196, 0], sizes = [196, 128], strides = [1, 1]} : vector<784x128xf32> to vector<196x128xf32>
    %11 = arith.maximumf %9, %10 : vector<196x128xf32>
    %12 = vector.extract_strided_slice %8 {offsets = [392, 0], sizes = [196, 128], strides = [1, 1]} : vector<784x128xf32> to vector<196x128xf32>
    %13 = vector.extract_strided_slice %8 {offsets = [588, 0], sizes = [196, 128], strides = [1, 1]} : vector<784x128xf32> to vector<196x128xf32>
    %14 = arith.maximumf %12, %13 : vector<196x128xf32>
    %15 = arith.maximumf %11, %14 : vector<196x128xf32>
    %16 = vector.extract_strided_slice %15 {offsets = [0, 0], sizes = [14, 8], strides = [1, 1]} : vector<196x128xf32> to vector<14x8xf32>
    %c0_7 = arith.constant 0 : index
    %c0_8 = arith.constant 0 : index
    %c0_9 = arith.constant 0 : index
    %17 = vector.load %arg13[%c0_7, %c0_8, %c0_9] : memref<14x14x8xf32, #tpu.memory_space<vmem>>, vector<1x14x8xf32>
    %18 = vector.shape_cast %17 : vector<1x14x8xf32> to vector<14x8xf32>
    %19 = vector.shape_cast %16 : vector<14x8xf32> to vector<1x14x8xf32>
    tpu.vector_store %arg13[%c0_7, %c0_8, %c0_9], %19 {strides = array<i32>} : memref<14x14x8xf32, #tpu.memory_space<vmem>>, vector<1x14x8xf32>,
    %20 = vector.extract_strided_slice %15 {offsets = [14, 0], sizes = [14, 8], strides = [1, 1]} : vector<196x128xf32> to vector<14x8xf32>
    %c1 = arith.constant 1 : index
    %c0_10 = arith.constant 0 : index
    %c0_11 = arith.constant 0 : index
    %21 = vector.load %arg13[%c1, %c0_10, %c0_11] : memref<14x14x8xf32, #tpu.memory_space<vmem>>, vector<1x14x8xf32>
    %22 = vector.shape_cast %21 : vector<1x14x8xf32> to vector<14x8xf32>
    %23 = vector.shape_cast %20 : vector<14x8xf32> to vector<1x14x8xf32>
    tpu.vector_store %arg13[%c1, %c0_10, %c0_11], %23 {strides = array<i32>} : memref<14x14x8xf32, #tpu.memory_space<vmem>>, vector<1x14x8xf32>,
    %24 = vector.extract_strided_slice %15 {offsets = [28, 0], sizes = [14, 8], strides = [1, 1]} : vector<196x128xf32> to vector<14x8xf32>
    %c2 = arith.constant 2 : index
    %c0_12 = arith.constant 0 : index
    %c0_13 = arith.constant 0 : index
    %25 = vector.load %arg13[%c2, %c0_12, %c0_13] : memref<14x14x8xf32, #tpu.memory_space<vmem>>, vector<1x14x8xf32>
    %26 = vector.shape_cast %25 : vector<1x14x8xf32> to vector<14x8xf32>
    %27 = vector.shape_cast %24 : vector<14x8xf32> to vector<1x14x8xf32>
    tpu.vector_store %arg13[%c2, %c0_12, %c0_13], %27 {strides = array<i32>} : memref<14x14x8xf32, #tpu.memory_space<vmem>>, vector<1x14x8xf32>,
    %28 = vector.extract_strided_slice %15 {offsets = [42, 0], sizes = [14, 8], strides = [1, 1]} : vector<196x128xf32> to vector<14x8xf32>
    %c3 = arith.constant 3 : index
    %c0_14 = arith.constant 0 : index
    %c0_15 = arith.constant 0 : index
    %29 = vector.load %arg13[%c3, %c0_14, %c0_15] : memref<14x14x8xf32, #tpu.memory_space<vmem>>, vector<1x14x8xf32>
    %30 = vector.shape_cast %29 : vector<1x14x8xf32> to vector<14x8xf32>
    %31 = vector.shape_cast %28 : vector<14x8xf32> to vector<1x14x8xf32>
    tpu.vector_store %arg13[%c3, %c0_14, %c0_15], %31 {strides = array<i32>} : memref<14x14x8xf32, #tpu.memory_space<vmem>>, vector<1x14x8xf32>,
    %32 = vector.extract_strided_slice %15 {offsets = [56, 0], sizes = [14, 8], strides = [1, 1]} : vector<196x128xf32> to vector<14x8xf32>
    %c4 = arith.constant 4 : index
    %c0_16 = arith.constant 0 : index
    %c0_17 = arith.constant 0 : index
    %33 = vector.load %arg13[%c4, %c0_16, %c0_17] : memref<14x14x8xf32, #tpu.memory_space<vmem>>, vector<1x14x8xf32>
    %34 = vector.shape_cast %33 : vector<1x14x8xf32> to vector<14x8xf32>
    %35 = vector.shape_cast %32 : vector<14x8xf32> to vector<1x14x8xf32>
    tpu.vector_store %arg13[%c4, %c0_16, %c0_17], %35 {strides = array<i32>} : memref<14x14x8xf32, #tpu.memory_space<vmem>>, vector<1x14x8xf32>,
    %36 = vector.extract_strided_slice %15 {offsets = [70, 0], sizes = [14, 8], strides = [1, 1]} : vector<196x128xf32> to vector<14x8xf32>
    %c5 = arith.constant 5 : index
    %c0_18 = arith.constant 0 : index
    %c0_19 = arith.constant 0 : index
    %37 = vector.load %arg13[%c5, %c0_18, %c0_19] : memref<14x14x8xf32, #tpu.memory_space<vmem>>, vector<1x14x8xf32>
    %38 = vector.shape_cast %37 : vector<1x14x8xf32> to vector<14x8xf32>
    %39 = vector.shape_cast %36 : vector<14x8xf32> to vector<1x14x8xf32>
    tpu.vector_store %arg13[%c5, %c0_18, %c0_19], %39 {strides = array<i32>} : memref<14x14x8xf32, #tpu.memory_space<vmem>>, vector<1x14x8xf32>,
    %40 = vector.extract_strided_slice %15 {offsets = [84, 0], sizes = [14, 8], strides = [1, 1]} : vector<196x128xf32> to vector<14x8xf32>
    %c6 = arith.constant 6 : index
    %c0_20 = arith.constant 0 : index
    %c0_21 = arith.constant 0 : index
    %41 = vector.load %arg13[%c6, %c0_20, %c0_21] : memref<14x14x8xf32, #tpu.memory_space<vmem>>, vector<1x14x8xf32>
    %42 = vector.shape_cast %41 : vector<1x14x8xf32> to vector<14x8xf32>
    %43 = vector.shape_cast %40 : vector<14x8xf32> to vector<1x14x8xf32>
    tpu.vector_store %arg13[%c6, %c0_20, %c0_21], %43 {strides = array<i32>} : memref<14x14x8xf32, #tpu.memory_space<vmem>>, vector<1x14x8xf32>,
    %44 = vector.extract_strided_slice %15 {offsets = [98, 0], sizes = [14, 8], strides = [1, 1]} : vector<196x128xf32> to vector<14x8xf32>
    %c7 = arith.constant 7 : index
    %c0_22 = arith.constant 0 : index
    %c0_23 = arith.constant 0 : index
    %45 = vector.load %arg13[%c7, %c0_22, %c0_23] : memref<14x14x8xf32, #tpu.memory_space<vmem>>, vector<1x14x8xf32>
    %46 = vector.shape_cast %45 : vector<1x14x8xf32> to vector<14x8xf32>
    %47 = vector.shape_cast %44 : vector<14x8xf32> to vector<1x14x8xf32>
    tpu.vector_store %arg13[%c7, %c0_22, %c0_23], %47 {strides = array<i32>} : memref<14x14x8xf32, #tpu.memory_space<vmem>>, vector<1x14x8xf32>,
    %48 = vector.extract_strided_slice %15 {offsets = [112, 0], sizes = [14, 8], strides = [1, 1]} : vector<196x128xf32> to vector<14x8xf32>
    %c8 = arith.constant 8 : index
    %c0_24 = arith.constant 0 : index
    %c0_25 = arith.constant 0 : index
    %49 = vector.load %arg13[%c8, %c0_24, %c0_25] : memref<14x14x8xf32, #tpu.memory_space<vmem>>, vector<1x14x8xf32>
    %50 = vector.shape_cast %49 : vector<1x14x8xf32> to vector<14x8xf32>
    %51 = vector.shape_cast %48 : vector<14x8xf32> to vector<1x14x8xf32>
    tpu.vector_store %arg13[%c8, %c0_24, %c0_25], %51 {strides = array<i32>} : memref<14x14x8xf32, #tpu.memory_space<vmem>>, vector<1x14x8xf32>,
    %52 = vector.extract_strided_slice %15 {offsets = [126, 0], sizes = [14, 8], strides = [1, 1]} : vector<196x128xf32> to vector<14x8xf32>
    %c9 = arith.constant 9 : index
    %c0_26 = arith.constant 0 : index
    %c0_27 = arith.constant 0 : index
    %53 = vector.load %arg13[%c9, %c0_26, %c0_27] : memref<14x14x8xf32, #tpu.memory_space<vmem>>, vector<1x14x8xf32>
    %54 = vector.shape_cast %53 : vector<1x14x8xf32> to vector<14x8xf32>
    %55 = vector.shape_cast %52 : vector<14x8xf32> to vector<1x14x8xf32>
    tpu.vector_store %arg13[%c9, %c0_26, %c0_27], %55 {strides = array<i32>} : memref<14x14x8xf32, #tpu.memory_space<vmem>>, vector<1x14x8xf32>,
    %56 = vector.extract_strided_slice %15 {offsets = [140, 0], sizes = [14, 8], strides = [1, 1]} : vector<196x128xf32> to vector<14x8xf32>
    %c10 = arith.constant 10 : index
    %c0_28 = arith.constant 0 : index
    %c0_29 = arith.constant 0 : index
    %57 = vector.load %arg13[%c10, %c0_28, %c0_29] : memref<14x14x8xf32, #tpu.memory_space<vmem>>, vector<1x14x8xf32>
    %58 = vector.shape_cast %57 : vector<1x14x8xf32> to vector<14x8xf32>
    %59 = vector.shape_cast %56 : vector<14x8xf32> to vector<1x14x8xf32>
    tpu.vector_store %arg13[%c10, %c0_28, %c0_29], %59 {strides = array<i32>} : memref<14x14x8xf32, #tpu.memory_space<vmem>>, vector<1x14x8xf32>,
    %60 = vector.extract_strided_slice %15 {offsets = [154, 0], sizes = [14, 8], strides = [1, 1]} : vector<196x128xf32> to vector<14x8xf32>
    %c11 = arith.constant 11 : index
    %c0_30 = arith.constant 0 : index
    %c0_31 = arith.constant 0 : index
    %61 = vector.load %arg13[%c11, %c0_30, %c0_31] : memref<14x14x8xf32, #tpu.memory_space<vmem>>, vector<1x14x8xf32>
    %62 = vector.shape_cast %61 : vector<1x14x8xf32> to vector<14x8xf32>
    %63 = vector.shape_cast %60 : vector<14x8xf32> to vector<1x14x8xf32>
    tpu.vector_store %arg13[%c11, %c0_30, %c0_31], %63 {strides = array<i32>} : memref<14x14x8xf32, #tpu.memory_space<vmem>>, vector<1x14x8xf32>,
    %64 = vector.extract_strided_slice %15 {offsets = [168, 0], sizes = [14, 8], strides = [1, 1]} : vector<196x128xf32> to vector<14x8xf32>
    %c12 = arith.constant 12 : index
    %c0_32 = arith.constant 0 : index
    %c0_33 = arith.constant 0 : index
    %65 = vector.load %arg13[%c12, %c0_32, %c0_33] : memref<14x14x8xf32, #tpu.memory_space<vmem>>, vector<1x14x8xf32>
    %66 = vector.shape_cast %65 : vector<1x14x8xf32> to vector<14x8xf32>
    %67 = vector.shape_cast %64 : vector<14x8xf32> to vector<1x14x8xf32>
    tpu.vector_store %arg13[%c12, %c0_32, %c0_33], %67 {strides = array<i32>} : memref<14x14x8xf32, #tpu.memory_space<vmem>>, vector<1x14x8xf32>,
    %68 = vector.extract_strided_slice %15 {offsets = [182, 0], sizes = [14, 8], strides = [1, 1]} : vector<196x128xf32> to vector<14x8xf32>
    %c13 = arith.constant 13 : index
    %c0_34 = arith.constant 0 : index
    %c0_35 = arith.constant 0 : index
    %69 = vector.load %arg13[%c13, %c0_34, %c0_35] : memref<14x14x8xf32, #tpu.memory_space<vmem>>, vector<1x14x8xf32>
    %70 = vector.shape_cast %69 : vector<1x14x8xf32> to vector<14x8xf32>
    %71 = vector.shape_cast %68 : vector<14x8xf32> to vector<1x14x8xf32>
    tpu.vector_store %arg13[%c13, %c0_34, %c0_35], %71 {strides = array<i32>} : memref<14x14x8xf32, #tpu.memory_space<vmem>>, vector<1x14x8xf32>,
    %c0_36 = arith.constant 0 : index
    %c0_37 = arith.constant 0 : index
    %c0_38 = arith.constant 0 : index
    %72 = vector.load %arg13[%c0_36, %c0_37, %c0_38] : memref<14x14x8xf32, #tpu.memory_space<vmem>>, vector<10x10x8xf32>
    %c0_39 = arith.constant 0 : index
    %c0_40 = arith.constant 0 : index
    %c0_41 = arith.constant 0 : index
    %73 = vector.load %arg14[%c0_39, %c0_40, %c0_41] : memref<10x10x200xf32, #tpu.memory_space<vmem>>, vector<10x10x8xf32>
    tpu.vector_store %arg14[%c0_39, %c0_40, %c0_41], %72 {strides = array<i32>} : memref<10x10x200xf32, #tpu.memory_space<vmem>>, vector<10x10x8xf32>,
    %c0_42 = arith.constant 0 : index
    %c1_43 = arith.constant 1 : index
    %c0_44 = arith.constant 0 : index
    %74 = vector.load %arg13[%c0_42, %c1_43, %c0_44] : memref<14x14x8xf32, #tpu.memory_space<vmem>>, vector<10x10x8xf32>
    %c0_45 = arith.constant 0 : index
    %c0_46 = arith.constant 0 : index
    %c8_47 = arith.constant 8 : index
    %75 = vector.load %arg14[%c0_45, %c0_46, %c8_47] : memref<10x10x200xf32, #tpu.memory_space<vmem>>, vector<10x10x8xf32>
    tpu.vector_store %arg14[%c0_45, %c0_46, %c8_47], %74 {strides = array<i32>} : memref<10x10x200xf32, #tpu.memory_space<vmem>>, vector<10x10x8xf32>,
    %c0_48 = arith.constant 0 : index
    %c2_49 = arith.constant 2 : index
    %c0_50 = arith.constant 0 : index
    %76 = vector.load %arg13[%c0_48, %c2_49, %c0_50] : memref<14x14x8xf32, #tpu.memory_space<vmem>>, vector<10x10x8xf32>
    %c0_51 = arith.constant 0 : index
    %c0_52 = arith.constant 0 : index
    %c16 = arith.constant 16 : index
    %77 = vector.load %arg14[%c0_51, %c0_52, %c16] : memref<10x10x200xf32, #tpu.memory_space<vmem>>, vector<10x10x8xf32>
    tpu.vector_store %arg14[%c0_51, %c0_52, %c16], %76 {strides = array<i32>} : memref<10x10x200xf32, #tpu.memory_space<vmem>>, vector<10x10x8xf32>,
    %c0_53 = arith.constant 0 : index
    %c3_54 = arith.constant 3 : index
    %c0_55 = arith.constant 0 : index
    %78 = vector.load %arg13[%c0_53, %c3_54, %c0_55] : memref<14x14x8xf32, #tpu.memory_space<vmem>>, vector<10x10x8xf32>
    %c0_56 = arith.constant 0 : index
    %c0_57 = arith.constant 0 : index
    %c24 = arith.constant 24 : index
    %79 = vector.load %arg14[%c0_56, %c0_57, %c24] : memref<10x10x200xf32, #tpu.memory_space<vmem>>, vector<10x10x8xf32>
    tpu.vector_store %arg14[%c0_56, %c0_57, %c24], %78 {strides = array<i32>} : memref<10x10x200xf32, #tpu.memory_space<vmem>>, vector<10x10x8xf32>,
    %c0_58 = arith.constant 0 : index
    %c4_59 = arith.constant 4 : index
    %c0_60 = arith.constant 0 : index
    %80 = vector.load %arg13[%c0_58, %c4_59, %c0_60] : memref<14x14x8xf32, #tpu.memory_space<vmem>>, vector<10x10x8xf32>
    %c0_61 = arith.constant 0 : index
    %c0_62 = arith.constant 0 : index
    %c32 = arith.constant 32 : index
    %81 = vector.load %arg14[%c0_61, %c0_62, %c32] : memref<10x10x200xf32, #tpu.memory_space<vmem>>, vector<10x10x8xf32>
    tpu.vector_store %arg14[%c0_61, %c0_62, %c32], %80 {strides = array<i32>} : memref<10x10x200xf32, #tpu.memory_space<vmem>>, vector<10x10x8xf32>,
    %c1_63 = arith.constant 1 : index
    %c0_64 = arith.constant 0 : index
    %c0_65 = arith.constant 0 : index
    %82 = vector.load %arg13[%c1_63, %c0_64, %c0_65] : memref<14x14x8xf32, #tpu.memory_space<vmem>>, vector<10x10x8xf32>
    %c0_66 = arith.constant 0 : index
    %c0_67 = arith.constant 0 : index
    %c40 = arith.constant 40 : index
    %83 = vector.load %arg14[%c0_66, %c0_67, %c40] : memref<10x10x200xf32, #tpu.memory_space<vmem>>, vector<10x10x8xf32>
    tpu.vector_store %arg14[%c0_66, %c0_67, %c40], %82 {strides = array<i32>} : memref<10x10x200xf32, #tpu.memory_space<vmem>>, vector<10x10x8xf32>,
    %c1_68 = arith.constant 1 : index
    %c1_69 = arith.constant 1 : index
    %c0_70 = arith.constant 0 : index
    %84 = vector.load %arg13[%c1_68, %c1_69, %c0_70] : memref<14x14x8xf32, #tpu.memory_space<vmem>>, vector<10x10x8xf32>
    %c0_71 = arith.constant 0 : index
    %c0_72 = arith.constant 0 : index
    %c48 = arith.constant 48 : index
    %85 = vector.load %arg14[%c0_71, %c0_72, %c48] : memref<10x10x200xf32, #tpu.memory_space<vmem>>, vector<10x10x8xf32>
    tpu.vector_store %arg14[%c0_71, %c0_72, %c48], %84 {strides = array<i32>} : memref<10x10x200xf32, #tpu.memory_space<vmem>>, vector<10x10x8xf32>,
    %c1_73 = arith.constant 1 : index
    %c2_74 = arith.constant 2 : index
    %c0_75 = arith.constant 0 : index
    %86 = vector.load %arg13[%c1_73, %c2_74, %c0_75] : memref<14x14x8xf32, #tpu.memory_space<vmem>>, vector<10x10x8xf32>
    %c0_76 = arith.constant 0 : index
    %c0_77 = arith.constant 0 : index
    %c56 = arith.constant 56 : index
    %87 = vector.load %arg14[%c0_76, %c0_77, %c56] : memref<10x10x200xf32, #tpu.memory_space<vmem>>, vector<10x10x8xf32>
    tpu.vector_store %arg14[%c0_76, %c0_77, %c56], %86 {strides = array<i32>} : memref<10x10x200xf32, #tpu.memory_space<vmem>>, vector<10x10x8xf32>,
    %c1_78 = arith.constant 1 : index
    %c3_79 = arith.constant 3 : index
    %c0_80 = arith.constant 0 : index
    %88 = vector.load %arg13[%c1_78, %c3_79, %c0_80] : memref<14x14x8xf32, #tpu.memory_space<vmem>>, vector<10x10x8xf32>
    %c0_81 = arith.constant 0 : index
    %c0_82 = arith.constant 0 : index
    %c64 = arith.constant 64 : index
    %89 = vector.load %arg14[%c0_81, %c0_82, %c64] : memref<10x10x200xf32, #tpu.memory_space<vmem>>, vector<10x10x8xf32>
    tpu.vector_store %arg14[%c0_81, %c0_82, %c64], %88 {strides = array<i32>} : memref<10x10x200xf32, #tpu.memory_space<vmem>>, vector<10x10x8xf32>,
    %c1_83 = arith.constant 1 : index
    %c4_84 = arith.constant 4 : index
    %c0_85 = arith.constant 0 : index
    %90 = vector.load %arg13[%c1_83, %c4_84, %c0_85] : memref<14x14x8xf32, #tpu.memory_space<vmem>>, vector<10x10x8xf32>
    %c0_86 = arith.constant 0 : index
    %c0_87 = arith.constant 0 : index
    %c72 = arith.constant 72 : index
    %91 = vector.load %arg14[%c0_86, %c0_87, %c72] : memref<10x10x200xf32, #tpu.memory_space<vmem>>, vector<10x10x8xf32>
    tpu.vector_store %arg14[%c0_86, %c0_87, %c72], %90 {strides = array<i32>} : memref<10x10x200xf32, #tpu.memory_space<vmem>>, vector<10x10x8xf32>,
    %c2_88 = arith.constant 2 : index
    %c0_89 = arith.constant 0 : index
    %c0_90 = arith.constant 0 : index
    %92 = vector.load %arg13[%c2_88, %c0_89, %c0_90] : memref<14x14x8xf32, #tpu.memory_space<vmem>>, vector<10x10x8xf32>
    %c0_91 = arith.constant 0 : index
    %c0_92 = arith.constant 0 : index
    %c80 = arith.constant 80 : index
    %93 = vector.load %arg14[%c0_91, %c0_92, %c80] : memref<10x10x200xf32, #tpu.memory_space<vmem>>, vector<10x10x8xf32>
    tpu.vector_store %arg14[%c0_91, %c0_92, %c80], %92 {strides = array<i32>} : memref<10x10x200xf32, #tpu.memory_space<vmem>>, vector<10x10x8xf32>,
    %c2_93 = arith.constant 2 : index
    %c1_94 = arith.constant 1 : index
    %c0_95 = arith.constant 0 : index
    %94 = vector.load %arg13[%c2_93, %c1_94, %c0_95] : memref<14x14x8xf32, #tpu.memory_space<vmem>>, vector<10x10x8xf32>
    %c0_96 = arith.constant 0 : index
    %c0_97 = arith.constant 0 : index
    %c88 = arith.constant 88 : index
    %95 = vector.load %arg14[%c0_96, %c0_97, %c88] : memref<10x10x200xf32, #tpu.memory_space<vmem>>, vector<10x10x8xf32>
    tpu.vector_store %arg14[%c0_96, %c0_97, %c88], %94 {strides = array<i32>} : memref<10x10x200xf32, #tpu.memory_space<vmem>>, vector<10x10x8xf32>,
    %c2_98 = arith.constant 2 : index
    %c2_99 = arith.constant 2 : index
    %c0_100 = arith.constant 0 : index
    %96 = vector.load %arg13[%c2_98, %c2_99, %c0_100] : memref<14x14x8xf32, #tpu.memory_space<vmem>>, vector<10x10x8xf32>
    %c0_101 = arith.constant 0 : index
    %c0_102 = arith.constant 0 : index
    %c96 = arith.constant 96 : index
    %97 = vector.load %arg14[%c0_101, %c0_102, %c96] : memref<10x10x200xf32, #tpu.memory_space<vmem>>, vector<10x10x8xf32>
    tpu.vector_store %arg14[%c0_101, %c0_102, %c96], %96 {strides = array<i32>} : memref<10x10x200xf32, #tpu.memory_space<vmem>>, vector<10x10x8xf32>,
    %c2_103 = arith.constant 2 : index
    %c3_104 = arith.constant 3 : index
    %c0_105 = arith.constant 0 : index
    %98 = vector.load %arg13[%c2_103, %c3_104, %c0_105] : memref<14x14x8xf32, #tpu.memory_space<vmem>>, vector<10x10x8xf32>
    %c0_106 = arith.constant 0 : index
    %c0_107 = arith.constant 0 : index
    %c104 = arith.constant 104 : index
    %99 = vector.load %arg14[%c0_106, %c0_107, %c104] : memref<10x10x200xf32, #tpu.memory_space<vmem>>, vector<10x10x8xf32>
    tpu.vector_store %arg14[%c0_106, %c0_107, %c104], %98 {strides = array<i32>} : memref<10x10x200xf32, #tpu.memory_space<vmem>>, vector<10x10x8xf32>,
    %c2_108 = arith.constant 2 : index
    %c4_109 = arith.constant 4 : index
    %c0_110 = arith.constant 0 : index
    %100 = vector.load %arg13[%c2_108, %c4_109, %c0_110] : memref<14x14x8xf32, #tpu.memory_space<vmem>>, vector<10x10x8xf32>
    %c0_111 = arith.constant 0 : index
    %c0_112 = arith.constant 0 : index
    %c112 = arith.constant 112 : index
    %101 = vector.load %arg14[%c0_111, %c0_112, %c112] : memref<10x10x200xf32, #tpu.memory_space<vmem>>, vector<10x10x8xf32>
    tpu.vector_store %arg14[%c0_111, %c0_112, %c112], %100 {strides = array<i32>} : memref<10x10x200xf32, #tpu.memory_space<vmem>>, vector<10x10x8xf32>,
    %c3_113 = arith.constant 3 : index
    %c0_114 = arith.constant 0 : index
    %c0_115 = arith.constant 0 : index
    %102 = vector.load %arg13[%c3_113, %c0_114, %c0_115] : memref<14x14x8xf32, #tpu.memory_space<vmem>>, vector<10x10x8xf32>
    %c0_116 = arith.constant 0 : index
    %c0_117 = arith.constant 0 : index
    %c120 = arith.constant 120 : index
    %103 = vector.load %arg14[%c0_116, %c0_117, %c120] : memref<10x10x200xf32, #tpu.memory_space<vmem>>, vector<10x10x8xf32>
    tpu.vector_store %arg14[%c0_116, %c0_117, %c120], %102 {strides = array<i32>} : memref<10x10x200xf32, #tpu.memory_space<vmem>>, vector<10x10x8xf32>,
    %c3_118 = arith.constant 3 : index
    %c1_119 = arith.constant 1 : index
    %c0_120 = arith.constant 0 : index
    %104 = vector.load %arg13[%c3_118, %c1_119, %c0_120] : memref<14x14x8xf32, #tpu.memory_space<vmem>>, vector<10x10x8xf32>
    %c0_121 = arith.constant 0 : index
    %c0_122 = arith.constant 0 : index
    %c128 = arith.constant 128 : index
    %105 = vector.load %arg14[%c0_121, %c0_122, %c128] : memref<10x10x200xf32, #tpu.memory_space<vmem>>, vector<10x10x8xf32>
    tpu.vector_store %arg14[%c0_121, %c0_122, %c128], %104 {strides = array<i32>} : memref<10x10x200xf32, #tpu.memory_space<vmem>>, vector<10x10x8xf32>,
    %c3_123 = arith.constant 3 : index
    %c2_124 = arith.constant 2 : index
    %c0_125 = arith.constant 0 : index
    %106 = vector.load %arg13[%c3_123, %c2_124, %c0_125] : memref<14x14x8xf32, #tpu.memory_space<vmem>>, vector<10x10x8xf32>
    %c0_126 = arith.constant 0 : index
    %c0_127 = arith.constant 0 : index
    %c136 = arith.constant 136 : index
    %107 = vector.load %arg14[%c0_126, %c0_127, %c136] : memref<10x10x200xf32, #tpu.memory_space<vmem>>, vector<10x10x8xf32>
    tpu.vector_store %arg14[%c0_126, %c0_127, %c136], %106 {strides = array<i32>} : memref<10x10x200xf32, #tpu.memory_space<vmem>>, vector<10x10x8xf32>,
    %c3_128 = arith.constant 3 : index
    %c3_129 = arith.constant 3 : index
    %c0_130 = arith.constant 0 : index
    %108 = vector.load %arg13[%c3_128, %c3_129, %c0_130] : memref<14x14x8xf32, #tpu.memory_space<vmem>>, vector<10x10x8xf32>
    %c0_131 = arith.constant 0 : index
    %c0_132 = arith.constant 0 : index
    %c144 = arith.constant 144 : index
    %109 = vector.load %arg14[%c0_131, %c0_132, %c144] : memref<10x10x200xf32, #tpu.memory_space<vmem>>, vector<10x10x8xf32>
    tpu.vector_store %arg14[%c0_131, %c0_132, %c144], %108 {strides = array<i32>} : memref<10x10x200xf32, #tpu.memory_space<vmem>>, vector<10x10x8xf32>,
    %c3_133 = arith.constant 3 : index
    %c4_134 = arith.constant 4 : index
    %c0_135 = arith.constant 0 : index
    %110 = vector.load %arg13[%c3_133, %c4_134, %c0_135] : memref<14x14x8xf32, #tpu.memory_space<vmem>>, vector<10x10x8xf32>
    %c0_136 = arith.constant 0 : index
    %c0_137 = arith.constant 0 : index
    %c152 = arith.constant 152 : index
    %111 = vector.load %arg14[%c0_136, %c0_137, %c152] : memref<10x10x200xf32, #tpu.memory_space<vmem>>, vector<10x10x8xf32>
    tpu.vector_store %arg14[%c0_136, %c0_137, %c152], %110 {strides = array<i32>} : memref<10x10x200xf32, #tpu.memory_space<vmem>>, vector<10x10x8xf32>,
    %c4_138 = arith.constant 4 : index
    %c0_139 = arith.constant 0 : index
    %c0_140 = arith.constant 0 : index
    %112 = vector.load %arg13[%c4_138, %c0_139, %c0_140] : memref<14x14x8xf32, #tpu.memory_space<vmem>>, vector<10x10x8xf32>
    %c0_141 = arith.constant 0 : index
    %c0_142 = arith.constant 0 : index
    %c160 = arith.constant 160 : index
    %113 = vector.load %arg14[%c0_141, %c0_142, %c160] : memref<10x10x200xf32, #tpu.memory_space<vmem>>, vector<10x10x8xf32>
    tpu.vector_store %arg14[%c0_141, %c0_142, %c160], %112 {strides = array<i32>} : memref<10x10x200xf32, #tpu.memory_space<vmem>>, vector<10x10x8xf32>,
    %c4_143 = arith.constant 4 : index
    %c1_144 = arith.constant 1 : index
    %c0_145 = arith.constant 0 : index
    %114 = vector.load %arg13[%c4_143, %c1_144, %c0_145] : memref<14x14x8xf32, #tpu.memory_space<vmem>>, vector<10x10x8xf32>
    %c0_146 = arith.constant 0 : index
    %c0_147 = arith.constant 0 : index
    %c168 = arith.constant 168 : index
    %115 = vector.load %arg14[%c0_146, %c0_147, %c168] : memref<10x10x200xf32, #tpu.memory_space<vmem>>, vector<10x10x8xf32>
    tpu.vector_store %arg14[%c0_146, %c0_147, %c168], %114 {strides = array<i32>} : memref<10x10x200xf32, #tpu.memory_space<vmem>>, vector<10x10x8xf32>,
    %c4_148 = arith.constant 4 : index
    %c2_149 = arith.constant 2 : index
    %c0_150 = arith.constant 0 : index
    %116 = vector.load %arg13[%c4_148, %c2_149, %c0_150] : memref<14x14x8xf32, #tpu.memory_space<vmem>>, vector<10x10x8xf32>
    %c0_151 = arith.constant 0 : index
    %c0_152 = arith.constant 0 : index
    %c176 = arith.constant 176 : index
    %117 = vector.load %arg14[%c0_151, %c0_152, %c176] : memref<10x10x200xf32, #tpu.memory_space<vmem>>, vector<10x10x8xf32>
    tpu.vector_store %arg14[%c0_151, %c0_152, %c176], %116 {strides = array<i32>} : memref<10x10x200xf32, #tpu.memory_space<vmem>>, vector<10x10x8xf32>,
    %c4_153 = arith.constant 4 : index
    %c3_154 = arith.constant 3 : index
    %c0_155 = arith.constant 0 : index
    %118 = vector.load %arg13[%c4_153, %c3_154, %c0_155] : memref<14x14x8xf32, #tpu.memory_space<vmem>>, vector<10x10x8xf32>
    %c0_156 = arith.constant 0 : index
    %c0_157 = arith.constant 0 : index
    %c184 = arith.constant 184 : index
    %119 = vector.load %arg14[%c0_156, %c0_157, %c184] : memref<10x10x200xf32, #tpu.memory_space<vmem>>, vector<10x10x8xf32>
    tpu.vector_store %arg14[%c0_156, %c0_157, %c184], %118 {strides = array<i32>} : memref<10x10x200xf32, #tpu.memory_space<vmem>>, vector<10x10x8xf32>,
    %c4_158 = arith.constant 4 : index
    %c4_159 = arith.constant 4 : index
    %c0_160 = arith.constant 0 : index
    %120 = vector.load %arg13[%c4_158, %c4_159, %c0_160] : memref<14x14x8xf32, #tpu.memory_space<vmem>>, vector<10x10x8xf32>
    %c0_161 = arith.constant 0 : index
    %c0_162 = arith.constant 0 : index
    %c192 = arith.constant 192 : index
    %121 = vector.load %arg14[%c0_161, %c0_162, %c192] : memref<10x10x200xf32, #tpu.memory_space<vmem>>, vector<10x10x8xf32>
    tpu.vector_store %arg14[%c0_161, %c0_162, %c192], %120 {strides = array<i32>} : memref<10x10x200xf32, #tpu.memory_space<vmem>>, vector<10x10x8xf32>,
    %c0_163 = arith.constant 0 : index
    %c0_164 = arith.constant 0 : index
    %122 = vector.load %arg4[%c0_163, %c0_164] : memref<200x128xf32, #tpu.memory_space<vmem>>, vector<200x128xf32>
    %c0_165 = arith.constant 0 : index
    %c0_166 = arith.constant 0 : index
    %123 = vector.load %arg5[%c0_165, %c0_166] : memref<1x128xf32, #tpu.memory_space<vmem>>, vector<1x128xf32>
    %cst_167 = arith.constant 0.000000e+00 : f32
    %124 = vector.broadcast %cst_167 : f32 to vector<1x256xf32>
    %c0_168 = arith.constant 0 : index
    %c0_169 = arith.constant 0 : index
    %c0_170 = arith.constant 0 : index
    %125 = vector.load %arg14[%c0_168, %c0_169, %c0_170] : memref<10x10x200xf32, #tpu.memory_space<vmem>>, vector<1x10x200xf32>
    %126 = vector.shape_cast %125 : vector<1x10x200xf32> to vector<10x200xf32>
    %cst_171 = arith.constant dense<0.000000e+00> : vector<10x128xf32>
    %127 = tpu.matmul %126, %122, %cst_171 {dimension_numbers = #tpu.dot_dimension_numbers<[1], [0], [0], [1], [0, 0, 1, 1], [], []>} : vector<10x200xf32>, vector<200x128xf32>, vector<10x128xf32> -> vector<10x128xf32>
    %128 = vector.broadcast %123 : vector<1x128xf32> to vector<10x128xf32>
    %129 = arith.addf %127, %128 : vector<10x128xf32>
    %c1_172 = arith.constant 1 : index
    %c0_173 = arith.constant 0 : index
    %c0_174 = arith.constant 0 : index
    %130 = vector.load %arg14[%c1_172, %c0_173, %c0_174] : memref<10x10x200xf32, #tpu.memory_space<vmem>>, vector<1x10x200xf32>
    %131 = vector.shape_cast %130 : vector<1x10x200xf32> to vector<10x200xf32>
    %cst_175 = arith.constant dense<0.000000e+00> : vector<10x128xf32>
    %132 = tpu.matmul %131, %122, %cst_175 {dimension_numbers = #tpu.dot_dimension_numbers<[1], [0], [0], [1], [0, 0, 1, 1], [], []>} : vector<10x200xf32>, vector<200x128xf32>, vector<10x128xf32> -> vector<10x128xf32>
    %133 = vector.broadcast %123 : vector<1x128xf32> to vector<10x128xf32>
    %134 = arith.addf %132, %133 : vector<10x128xf32>
    %cst_176 = arith.constant 0.000000e+00 : f32
    %135 = vector.broadcast %cst_176 : f32 to vector<10x128xf32>
    %136 = arith.maximumf %129, %135 : vector<10x128xf32>
    %cst_177 = arith.constant 0.000000e+00 : f32
    %137 = vector.broadcast %cst_177 : f32 to vector<10x128xf32>
    %138 = arith.maximumf %134, %137 : vector<10x128xf32>
    %139 = arith.maximumf %136, %138 : vector<10x128xf32>
    %140 = vector.extract_strided_slice %139 {offsets = [0, 0], sizes = [1, 128], strides = [1, 1]} : vector<10x128xf32> to vector<1x128xf32>
    %141 = vector.extract_strided_slice %139 {offsets = [1, 0], sizes = [1, 128], strides = [1, 1]} : vector<10x128xf32> to vector<1x128xf32>
    %142 = arith.maximumf %140, %141 : vector<1x128xf32>
    %c0_178 = arith.constant 0 : index
    %c0_179 = arith.constant 0 : index
    %143 = vector.load %arg6[%c0_178, %c0_179] : memref<400x256xf32, #tpu.memory_space<vmem>>, vector<16x256xf32>
    %144 = vector.extract_strided_slice %142 {offsets = [0, 0], sizes = [1, 16], strides = [1, 1]} : vector<1x128xf32> to vector<1x16xf32>
    %cst_180 = arith.constant dense<0.000000e+00> : vector<1x256xf32>
    %145 = tpu.matmul %144, %143, %cst_180 {dimension_numbers = #tpu.dot_dimension_numbers<[1], [0], [0], [1], [0, 0, 1, 1], [], []>} : vector<1x16xf32>, vector<16x256xf32>, vector<1x256xf32> -> vector<1x256xf32>
    %146 = arith.addf %124, %145 : vector<1x256xf32>
    %147 = vector.extract_strided_slice %139 {offsets = [2, 0], sizes = [1, 128], strides = [1, 1]} : vector<10x128xf32> to vector<1x128xf32>
    %148 = vector.extract_strided_slice %139 {offsets = [3, 0], sizes = [1, 128], strides = [1, 1]} : vector<10x128xf32> to vector<1x128xf32>
    %149 = arith.maximumf %147, %148 : vector<1x128xf32>
    %c16_181 = arith.constant 16 : index
    %c0_182 = arith.constant 0 : index
    %150 = vector.load %arg6[%c16_181, %c0_182] : memref<400x256xf32, #tpu.memory_space<vmem>>, vector<16x256xf32>
    %151 = vector.extract_strided_slice %149 {offsets = [0, 0], sizes = [1, 16], strides = [1, 1]} : vector<1x128xf32> to vector<1x16xf32>
    %cst_183 = arith.constant dense<0.000000e+00> : vector<1x256xf32>
    %152 = tpu.matmul %151, %150, %cst_183 {dimension_numbers = #tpu.dot_dimension_numbers<[1], [0], [0], [1], [0, 0, 1, 1], [], []>} : vector<1x16xf32>, vector<16x256xf32>, vector<1x256xf32> -> vector<1x256xf32>
    %153 = arith.addf %146, %152 : vector<1x256xf32>
    %154 = vector.extract_strided_slice %139 {offsets = [4, 0], sizes = [1, 128], strides = [1, 1]} : vector<10x128xf32> to vector<1x128xf32>
    %155 = vector.extract_strided_slice %139 {offsets = [5, 0], sizes = [1, 128], strides = [1, 1]} : vector<10x128xf32> to vector<1x128xf32>
    %156 = arith.maximumf %154, %155 : vector<1x128xf32>
    %c32_184 = arith.constant 32 : index
    %c0_185 = arith.constant 0 : index
    %157 = vector.load %arg6[%c32_184, %c0_185] : memref<400x256xf32, #tpu.memory_space<vmem>>, vector<16x256xf32>
    %158 = vector.extract_strided_slice %156 {offsets = [0, 0], sizes = [1, 16], strides = [1, 1]} : vector<1x128xf32> to vector<1x16xf32>
    %cst_186 = arith.constant dense<0.000000e+00> : vector<1x256xf32>
    %159 = tpu.matmul %158, %157, %cst_186 {dimension_numbers = #tpu.dot_dimension_numbers<[1], [0], [0], [1], [0, 0, 1, 1], [], []>} : vector<1x16xf32>, vector<16x256xf32>, vector<1x256xf32> -> vector<1x256xf32>
    %160 = arith.addf %153, %159 : vector<1x256xf32>
    %161 = vector.extract_strided_slice %139 {offsets = [6, 0], sizes = [1, 128], strides = [1, 1]} : vector<10x128xf32> to vector<1x128xf32>
    %162 = vector.extract_strided_slice %139 {offsets = [7, 0], sizes = [1, 128], strides = [1, 1]} : vector<10x128xf32> to vector<1x128xf32>
    %163 = arith.maximumf %161, %162 : vector<1x128xf32>
    %c48_187 = arith.constant 48 : index
    %c0_188 = arith.constant 0 : index
    %164 = vector.load %arg6[%c48_187, %c0_188] : memref<400x256xf32, #tpu.memory_space<vmem>>, vector<16x256xf32>
    %165 = vector.extract_strided_slice %163 {offsets = [0, 0], sizes = [1, 16], strides = [1, 1]} : vector<1x128xf32> to vector<1x16xf32>
    %cst_189 = arith.constant dense<0.000000e+00> : vector<1x256xf32>
    %166 = tpu.matmul %165, %164, %cst_189 {dimension_numbers = #tpu.dot_dimension_numbers<[1], [0], [0], [1], [0, 0, 1, 1], [], []>} : vector<1x16xf32>, vector<16x256xf32>, vector<1x256xf32> -> vector<1x256xf32>
    %167 = arith.addf %160, %166 : vector<1x256xf32>
    %168 = vector.extract_strided_slice %139 {offsets = [8, 0], sizes = [1, 128], strides = [1, 1]} : vector<10x128xf32> to vector<1x128xf32>
    %169 = vector.extract_strided_slice %139 {offsets = [9, 0], sizes = [1, 128], strides = [1, 1]} : vector<10x128xf32> to vector<1x128xf32>
    %170 = arith.maximumf %168, %169 : vector<1x128xf32>
    %c64_190 = arith.constant 64 : index
    %c0_191 = arith.constant 0 : index
    %171 = vector.load %arg6[%c64_190, %c0_191] : memref<400x256xf32, #tpu.memory_space<vmem>>, vector<16x256xf32>
    %172 = vector.extract_strided_slice %170 {offsets = [0, 0], sizes = [1, 16], strides = [1, 1]} : vector<1x128xf32> to vector<1x16xf32>
    %cst_192 = arith.constant dense<0.000000e+00> : vector<1x256xf32>
    %173 = tpu.matmul %172, %171, %cst_192 {dimension_numbers = #tpu.dot_dimension_numbers<[1], [0], [0], [1], [0, 0, 1, 1], [], []>} : vector<1x16xf32>, vector<16x256xf32>, vector<1x256xf32> -> vector<1x256xf32>
    %174 = arith.addf %167, %173 : vector<1x256xf32>
    %c2_193 = arith.constant 2 : index
    %c0_194 = arith.constant 0 : index
    %c0_195 = arith.constant 0 : index
    %175 = vector.load %arg14[%c2_193, %c0_194, %c0_195] : memref<10x10x200xf32, #tpu.memory_space<vmem>>, vector<1x10x200xf32>
    %176 = vector.shape_cast %175 : vector<1x10x200xf32> to vector<10x200xf32>
    %cst_196 = arith.constant dense<0.000000e+00> : vector<10x128xf32>
    %177 = tpu.matmul %176, %122, %cst_196 {dimension_numbers = #tpu.dot_dimension_numbers<[1], [0], [0], [1], [0, 0, 1, 1], [], []>} : vector<10x200xf32>, vector<200x128xf32>, vector<10x128xf32> -> vector<10x128xf32>
    %178 = vector.broadcast %123 : vector<1x128xf32> to vector<10x128xf32>
    %179 = arith.addf %177, %178 : vector<10x128xf32>
    %c3_197 = arith.constant 3 : index
    %c0_198 = arith.constant 0 : index
    %c0_199 = arith.constant 0 : index
    %180 = vector.load %arg14[%c3_197, %c0_198, %c0_199] : memref<10x10x200xf32, #tpu.memory_space<vmem>>, vector<1x10x200xf32>
    %181 = vector.shape_cast %180 : vector<1x10x200xf32> to vector<10x200xf32>
    %cst_200 = arith.constant dense<0.000000e+00> : vector<10x128xf32>
    %182 = tpu.matmul %181, %122, %cst_200 {dimension_numbers = #tpu.dot_dimension_numbers<[1], [0], [0], [1], [0, 0, 1, 1], [], []>} : vector<10x200xf32>, vector<200x128xf32>, vector<10x128xf32> -> vector<10x128xf32>
    %183 = vector.broadcast %123 : vector<1x128xf32> to vector<10x128xf32>
    %184 = arith.addf %182, %183 : vector<10x128xf32>
    %cst_201 = arith.constant 0.000000e+00 : f32
    %185 = vector.broadcast %cst_201 : f32 to vector<10x128xf32>
    %186 = arith.maximumf %179, %185 : vector<10x128xf32>
    %cst_202 = arith.constant 0.000000e+00 : f32
    %187 = vector.broadcast %cst_202 : f32 to vector<10x128xf32>
    %188 = arith.maximumf %184, %187 : vector<10x128xf32>
    %189 = arith.maximumf %186, %188 : vector<10x128xf32>
    %190 = vector.extract_strided_slice %189 {offsets = [0, 0], sizes = [1, 128], strides = [1, 1]} : vector<10x128xf32> to vector<1x128xf32>
    %191 = vector.extract_strided_slice %189 {offsets = [1, 0], sizes = [1, 128], strides = [1, 1]} : vector<10x128xf32> to vector<1x128xf32>
    %192 = arith.maximumf %190, %191 : vector<1x128xf32>
    %c80_203 = arith.constant 80 : index
    %c0_204 = arith.constant 0 : index
    %193 = vector.load %arg6[%c80_203, %c0_204] : memref<400x256xf32, #tpu.memory_space<vmem>>, vector<16x256xf32>
    %194 = vector.extract_strided_slice %192 {offsets = [0, 0], sizes = [1, 16], strides = [1, 1]} : vector<1x128xf32> to vector<1x16xf32>
    %cst_205 = arith.constant dense<0.000000e+00> : vector<1x256xf32>
    %195 = tpu.matmul %194, %193, %cst_205 {dimension_numbers = #tpu.dot_dimension_numbers<[1], [0], [0], [1], [0, 0, 1, 1], [], []>} : vector<1x16xf32>, vector<16x256xf32>, vector<1x256xf32> -> vector<1x256xf32>
    %196 = arith.addf %174, %195 : vector<1x256xf32>
    %197 = vector.extract_strided_slice %189 {offsets = [2, 0], sizes = [1, 128], strides = [1, 1]} : vector<10x128xf32> to vector<1x128xf32>
    %198 = vector.extract_strided_slice %189 {offsets = [3, 0], sizes = [1, 128], strides = [1, 1]} : vector<10x128xf32> to vector<1x128xf32>
    %199 = arith.maximumf %197, %198 : vector<1x128xf32>
    %c96_206 = arith.constant 96 : index
    %c0_207 = arith.constant 0 : index
    %200 = vector.load %arg6[%c96_206, %c0_207] : memref<400x256xf32, #tpu.memory_space<vmem>>, vector<16x256xf32>
    %201 = vector.extract_strided_slice %199 {offsets = [0, 0], sizes = [1, 16], strides = [1, 1]} : vector<1x128xf32> to vector<1x16xf32>
    %cst_208 = arith.constant dense<0.000000e+00> : vector<1x256xf32>
    %202 = tpu.matmul %201, %200, %cst_208 {dimension_numbers = #tpu.dot_dimension_numbers<[1], [0], [0], [1], [0, 0, 1, 1], [], []>} : vector<1x16xf32>, vector<16x256xf32>, vector<1x256xf32> -> vector<1x256xf32>
    %203 = arith.addf %196, %202 : vector<1x256xf32>
    %204 = vector.extract_strided_slice %189 {offsets = [4, 0], sizes = [1, 128], strides = [1, 1]} : vector<10x128xf32> to vector<1x128xf32>
    %205 = vector.extract_strided_slice %189 {offsets = [5, 0], sizes = [1, 128], strides = [1, 1]} : vector<10x128xf32> to vector<1x128xf32>
    %206 = arith.maximumf %204, %205 : vector<1x128xf32>
    %c112_209 = arith.constant 112 : index
    %c0_210 = arith.constant 0 : index
    %207 = vector.load %arg6[%c112_209, %c0_210] : memref<400x256xf32, #tpu.memory_space<vmem>>, vector<16x256xf32>
    %208 = vector.extract_strided_slice %206 {offsets = [0, 0], sizes = [1, 16], strides = [1, 1]} : vector<1x128xf32> to vector<1x16xf32>
    %cst_211 = arith.constant dense<0.000000e+00> : vector<1x256xf32>
    %209 = tpu.matmul %208, %207, %cst_211 {dimension_numbers = #tpu.dot_dimension_numbers<[1], [0], [0], [1], [0, 0, 1, 1], [], []>} : vector<1x16xf32>, vector<16x256xf32>, vector<1x256xf32> -> vector<1x256xf32>
    %210 = arith.addf %203, %209 : vector<1x256xf32>
    %211 = vector.extract_strided_slice %189 {offsets = [6, 0], sizes = [1, 128], strides = [1, 1]} : vector<10x128xf32> to vector<1x128xf32>
    %212 = vector.extract_strided_slice %189 {offsets = [7, 0], sizes = [1, 128], strides = [1, 1]} : vector<10x128xf32> to vector<1x128xf32>
    %213 = arith.maximumf %211, %212 : vector<1x128xf32>
    %c128_212 = arith.constant 128 : index
    %c0_213 = arith.constant 0 : index
    %214 = vector.load %arg6[%c128_212, %c0_213] : memref<400x256xf32, #tpu.memory_space<vmem>>, vector<16x256xf32>
    %215 = vector.extract_strided_slice %213 {offsets = [0, 0], sizes = [1, 16], strides = [1, 1]} : vector<1x128xf32> to vector<1x16xf32>
    %cst_214 = arith.constant dense<0.000000e+00> : vector<1x256xf32>
    %216 = tpu.matmul %215, %214, %cst_214 {dimension_numbers = #tpu.dot_dimension_numbers<[1], [0], [0], [1], [0, 0, 1, 1], [], []>} : vector<1x16xf32>, vector<16x256xf32>, vector<1x256xf32> -> vector<1x256xf32>
    %217 = arith.addf %210, %216 : vector<1x256xf32>
    %218 = vector.extract_strided_slice %189 {offsets = [8, 0], sizes = [1, 128], strides = [1, 1]} : vector<10x128xf32> to vector<1x128xf32>
    %219 = vector.extract_strided_slice %189 {offsets = [9, 0], sizes = [1, 128], strides = [1, 1]} : vector<10x128xf32> to vector<1x128xf32>
    %220 = arith.maximumf %218, %219 : vector<1x128xf32>
    %c144_215 = arith.constant 144 : index
    %c0_216 = arith.constant 0 : index
    %221 = vector.load %arg6[%c144_215, %c0_216] : memref<400x256xf32, #tpu.memory_space<vmem>>, vector<16x256xf32>
    %222 = vector.extract_strided_slice %220 {offsets = [0, 0], sizes = [1, 16], strides = [1, 1]} : vector<1x128xf32> to vector<1x16xf32>
    %cst_217 = arith.constant dense<0.000000e+00> : vector<1x256xf32>
    %223 = tpu.matmul %222, %221, %cst_217 {dimension_numbers = #tpu.dot_dimension_numbers<[1], [0], [0], [1], [0, 0, 1, 1], [], []>} : vector<1x16xf32>, vector<16x256xf32>, vector<1x256xf32> -> vector<1x256xf32>
    %224 = arith.addf %217, %223 : vector<1x256xf32>
    %c4_218 = arith.constant 4 : index
    %c0_219 = arith.constant 0 : index
    %c0_220 = arith.constant 0 : index
    %225 = vector.load %arg14[%c4_218, %c0_219, %c0_220] : memref<10x10x200xf32, #tpu.memory_space<vmem>>, vector<1x10x200xf32>
    %226 = vector.shape_cast %225 : vector<1x10x200xf32> to vector<10x200xf32>
    %cst_221 = arith.constant dense<0.000000e+00> : vector<10x128xf32>
    %227 = tpu.matmul %226, %122, %cst_221 {dimension_numbers = #tpu.dot_dimension_numbers<[1], [0], [0], [1], [0, 0, 1, 1], [], []>} : vector<10x200xf32>, vector<200x128xf32>, vector<10x128xf32> -> vector<10x128xf32>
    %228 = vector.broadcast %123 : vector<1x128xf32> to vector<10x128xf32>
    %229 = arith.addf %227, %228 : vector<10x128xf32>
    %c5_222 = arith.constant 5 : index
    %c0_223 = arith.constant 0 : index
    %c0_224 = arith.constant 0 : index
    %230 = vector.load %arg14[%c5_222, %c0_223, %c0_224] : memref<10x10x200xf32, #tpu.memory_space<vmem>>, vector<1x10x200xf32>
    %231 = vector.shape_cast %230 : vector<1x10x200xf32> to vector<10x200xf32>
    %cst_225 = arith.constant dense<0.000000e+00> : vector<10x128xf32>
    %232 = tpu.matmul %231, %122, %cst_225 {dimension_numbers = #tpu.dot_dimension_numbers<[1], [0], [0], [1], [0, 0, 1, 1], [], []>} : vector<10x200xf32>, vector<200x128xf32>, vector<10x128xf32> -> vector<10x128xf32>
    %233 = vector.broadcast %123 : vector<1x128xf32> to vector<10x128xf32>
    %234 = arith.addf %232, %233 : vector<10x128xf32>
    %cst_226 = arith.constant 0.000000e+00 : f32
    %235 = vector.broadcast %cst_226 : f32 to vector<10x128xf32>
    %236 = arith.maximumf %229, %235 : vector<10x128xf32>
    %cst_227 = arith.constant 0.000000e+00 : f32
    %237 = vector.broadcast %cst_227 : f32 to vector<10x128xf32>
    %238 = arith.maximumf %234, %237 : vector<10x128xf32>
    %239 = arith.maximumf %236, %238 : vector<10x128xf32>
    %240 = vector.extract_strided_slice %239 {offsets = [0, 0], sizes = [1, 128], strides = [1, 1]} : vector<10x128xf32> to vector<1x128xf32>
    %241 = vector.extract_strided_slice %239 {offsets = [1, 0], sizes = [1, 128], strides = [1, 1]} : vector<10x128xf32> to vector<1x128xf32>
    %242 = arith.maximumf %240, %241 : vector<1x128xf32>
    %c160_228 = arith.constant 160 : index
    %c0_229 = arith.constant 0 : index
    %243 = vector.load %arg6[%c160_228, %c0_229] : memref<400x256xf32, #tpu.memory_space<vmem>>, vector<16x256xf32>
    %244 = vector.extract_strided_slice %242 {offsets = [0, 0], sizes = [1, 16], strides = [1, 1]} : vector<1x128xf32> to vector<1x16xf32>
    %cst_230 = arith.constant dense<0.000000e+00> : vector<1x256xf32>
    %245 = tpu.matmul %244, %243, %cst_230 {dimension_numbers = #tpu.dot_dimension_numbers<[1], [0], [0], [1], [0, 0, 1, 1], [], []>} : vector<1x16xf32>, vector<16x256xf32>, vector<1x256xf32> -> vector<1x256xf32>
    %246 = arith.addf %224, %245 : vector<1x256xf32>
    %247 = vector.extract_strided_slice %239 {offsets = [2, 0], sizes = [1, 128], strides = [1, 1]} : vector<10x128xf32> to vector<1x128xf32>
    %248 = vector.extract_strided_slice %239 {offsets = [3, 0], sizes = [1, 128], strides = [1, 1]} : vector<10x128xf32> to vector<1x128xf32>
    %249 = arith.maximumf %247, %248 : vector<1x128xf32>
    %c176_231 = arith.constant 176 : index
    %c0_232 = arith.constant 0 : index
    %250 = vector.load %arg6[%c176_231, %c0_232] : memref<400x256xf32, #tpu.memory_space<vmem>>, vector<16x256xf32>
    %251 = vector.extract_strided_slice %249 {offsets = [0, 0], sizes = [1, 16], strides = [1, 1]} : vector<1x128xf32> to vector<1x16xf32>
    %cst_233 = arith.constant dense<0.000000e+00> : vector<1x256xf32>
    %252 = tpu.matmul %251, %250, %cst_233 {dimension_numbers = #tpu.dot_dimension_numbers<[1], [0], [0], [1], [0, 0, 1, 1], [], []>} : vector<1x16xf32>, vector<16x256xf32>, vector<1x256xf32> -> vector<1x256xf32>
    %253 = arith.addf %246, %252 : vector<1x256xf32>
    %254 = vector.extract_strided_slice %239 {offsets = [4, 0], sizes = [1, 128], strides = [1, 1]} : vector<10x128xf32> to vector<1x128xf32>
    %255 = vector.extract_strided_slice %239 {offsets = [5, 0], sizes = [1, 128], strides = [1, 1]} : vector<10x128xf32> to vector<1x128xf32>
    %256 = arith.maximumf %254, %255 : vector<1x128xf32>
    %c192_234 = arith.constant 192 : index
    %c0_235 = arith.constant 0 : index
    %257 = vector.load %arg6[%c192_234, %c0_235] : memref<400x256xf32, #tpu.memory_space<vmem>>, vector<16x256xf32>
    %258 = vector.extract_strided_slice %256 {offsets = [0, 0], sizes = [1, 16], strides = [1, 1]} : vector<1x128xf32> to vector<1x16xf32>
    %cst_236 = arith.constant dense<0.000000e+00> : vector<1x256xf32>
    %259 = tpu.matmul %258, %257, %cst_236 {dimension_numbers = #tpu.dot_dimension_numbers<[1], [0], [0], [1], [0, 0, 1, 1], [], []>} : vector<1x16xf32>, vector<16x256xf32>, vector<1x256xf32> -> vector<1x256xf32>
    %260 = arith.addf %253, %259 : vector<1x256xf32>
    %261 = vector.extract_strided_slice %239 {offsets = [6, 0], sizes = [1, 128], strides = [1, 1]} : vector<10x128xf32> to vector<1x128xf32>
    %262 = vector.extract_strided_slice %239 {offsets = [7, 0], sizes = [1, 128], strides = [1, 1]} : vector<10x128xf32> to vector<1x128xf32>
    %263 = arith.maximumf %261, %262 : vector<1x128xf32>
    %c208 = arith.constant 208 : index
    %c0_237 = arith.constant 0 : index
    %264 = vector.load %arg6[%c208, %c0_237] : memref<400x256xf32, #tpu.memory_space<vmem>>, vector<16x256xf32>
    %265 = vector.extract_strided_slice %263 {offsets = [0, 0], sizes = [1, 16], strides = [1, 1]} : vector<1x128xf32> to vector<1x16xf32>
    %cst_238 = arith.constant dense<0.000000e+00> : vector<1x256xf32>
    %266 = tpu.matmul %265, %264, %cst_238 {dimension_numbers = #tpu.dot_dimension_numbers<[1], [0], [0], [1], [0, 0, 1, 1], [], []>} : vector<1x16xf32>, vector<16x256xf32>, vector<1x256xf32> -> vector<1x256xf32>
    %267 = arith.addf %260, %266 : vector<1x256xf32>
    %268 = vector.extract_strided_slice %239 {offsets = [8, 0], sizes = [1, 128], strides = [1, 1]} : vector<10x128xf32> to vector<1x128xf32>
    %269 = vector.extract_strided_slice %239 {offsets = [9, 0], sizes = [1, 128], strides = [1, 1]} : vector<10x128xf32> to vector<1x128xf32>
    %270 = arith.maximumf %268, %269 : vector<1x128xf32>
    %c224 = arith.constant 224 : index
    %c0_239 = arith.constant 0 : index
    %271 = vector.load %arg6[%c224, %c0_239] : memref<400x256xf32, #tpu.memory_space<vmem>>, vector<16x256xf32>
    %272 = vector.extract_strided_slice %270 {offsets = [0, 0], sizes = [1, 16], strides = [1, 1]} : vector<1x128xf32> to vector<1x16xf32>
    %cst_240 = arith.constant dense<0.000000e+00> : vector<1x256xf32>
    %273 = tpu.matmul %272, %271, %cst_240 {dimension_numbers = #tpu.dot_dimension_numbers<[1], [0], [0], [1], [0, 0, 1, 1], [], []>} : vector<1x16xf32>, vector<16x256xf32>, vector<1x256xf32> -> vector<1x256xf32>
    %274 = arith.addf %267, %273 : vector<1x256xf32>
    %c6_241 = arith.constant 6 : index
    %c0_242 = arith.constant 0 : index
    %c0_243 = arith.constant 0 : index
    %275 = vector.load %arg14[%c6_241, %c0_242, %c0_243] : memref<10x10x200xf32, #tpu.memory_space<vmem>>, vector<1x10x200xf32>
    %276 = vector.shape_cast %275 : vector<1x10x200xf32> to vector<10x200xf32>
    %cst_244 = arith.constant dense<0.000000e+00> : vector<10x128xf32>
    %277 = tpu.matmul %276, %122, %cst_244 {dimension_numbers = #tpu.dot_dimension_numbers<[1], [0], [0], [1], [0, 0, 1, 1], [], []>} : vector<10x200xf32>, vector<200x128xf32>, vector<10x128xf32> -> vector<10x128xf32>
    %278 = vector.broadcast %123 : vector<1x128xf32> to vector<10x128xf32>
    %279 = arith.addf %277, %278 : vector<10x128xf32>
    %c7_245 = arith.constant 7 : index
    %c0_246 = arith.constant 0 : index
    %c0_247 = arith.constant 0 : index
    %280 = vector.load %arg14[%c7_245, %c0_246, %c0_247] : memref<10x10x200xf32, #tpu.memory_space<vmem>>, vector<1x10x200xf32>
    %281 = vector.shape_cast %280 : vector<1x10x200xf32> to vector<10x200xf32>
    %cst_248 = arith.constant dense<0.000000e+00> : vector<10x128xf32>
    %282 = tpu.matmul %281, %122, %cst_248 {dimension_numbers = #tpu.dot_dimension_numbers<[1], [0], [0], [1], [0, 0, 1, 1], [], []>} : vector<10x200xf32>, vector<200x128xf32>, vector<10x128xf32> -> vector<10x128xf32>
    %283 = vector.broadcast %123 : vector<1x128xf32> to vector<10x128xf32>
    %284 = arith.addf %282, %283 : vector<10x128xf32>
    %cst_249 = arith.constant 0.000000e+00 : f32
    %285 = vector.broadcast %cst_249 : f32 to vector<10x128xf32>
    %286 = arith.maximumf %279, %285 : vector<10x128xf32>
    %cst_250 = arith.constant 0.000000e+00 : f32
    %287 = vector.broadcast %cst_250 : f32 to vector<10x128xf32>
    %288 = arith.maximumf %284, %287 : vector<10x128xf32>
    %289 = arith.maximumf %286, %288 : vector<10x128xf32>
    %290 = vector.extract_strided_slice %289 {offsets = [0, 0], sizes = [1, 128], strides = [1, 1]} : vector<10x128xf32> to vector<1x128xf32>
    %291 = vector.extract_strided_slice %289 {offsets = [1, 0], sizes = [1, 128], strides = [1, 1]} : vector<10x128xf32> to vector<1x128xf32>
    %292 = arith.maximumf %290, %291 : vector<1x128xf32>
    %c240 = arith.constant 240 : index
    %c0_251 = arith.constant 0 : index
    %293 = vector.load %arg6[%c240, %c0_251] : memref<400x256xf32, #tpu.memory_space<vmem>>, vector<16x256xf32>
    %294 = vector.extract_strided_slice %292 {offsets = [0, 0], sizes = [1, 16], strides = [1, 1]} : vector<1x128xf32> to vector<1x16xf32>
    %cst_252 = arith.constant dense<0.000000e+00> : vector<1x256xf32>
    %295 = tpu.matmul %294, %293, %cst_252 {dimension_numbers = #tpu.dot_dimension_numbers<[1], [0], [0], [1], [0, 0, 1, 1], [], []>} : vector<1x16xf32>, vector<16x256xf32>, vector<1x256xf32> -> vector<1x256xf32>
    %296 = arith.addf %274, %295 : vector<1x256xf32>
    %297 = vector.extract_strided_slice %289 {offsets = [2, 0], sizes = [1, 128], strides = [1, 1]} : vector<10x128xf32> to vector<1x128xf32>
    %298 = vector.extract_strided_slice %289 {offsets = [3, 0], sizes = [1, 128], strides = [1, 1]} : vector<10x128xf32> to vector<1x128xf32>
    %299 = arith.maximumf %297, %298 : vector<1x128xf32>
    %c256 = arith.constant 256 : index
    %c0_253 = arith.constant 0 : index
    %300 = vector.load %arg6[%c256, %c0_253] : memref<400x256xf32, #tpu.memory_space<vmem>>, vector<16x256xf32>
    %301 = vector.extract_strided_slice %299 {offsets = [0, 0], sizes = [1, 16], strides = [1, 1]} : vector<1x128xf32> to vector<1x16xf32>
    %cst_254 = arith.constant dense<0.000000e+00> : vector<1x256xf32>
    %302 = tpu.matmul %301, %300, %cst_254 {dimension_numbers = #tpu.dot_dimension_numbers<[1], [0], [0], [1], [0, 0, 1, 1], [], []>} : vector<1x16xf32>, vector<16x256xf32>, vector<1x256xf32> -> vector<1x256xf32>
    %303 = arith.addf %296, %302 : vector<1x256xf32>
    %304 = vector.extract_strided_slice %289 {offsets = [4, 0], sizes = [1, 128], strides = [1, 1]} : vector<10x128xf32> to vector<1x128xf32>
    %305 = vector.extract_strided_slice %289 {offsets = [5, 0], sizes = [1, 128], strides = [1, 1]} : vector<10x128xf32> to vector<1x128xf32>
    %306 = arith.maximumf %304, %305 : vector<1x128xf32>
    %c272 = arith.constant 272 : index
    %c0_255 = arith.constant 0 : index
    %307 = vector.load %arg6[%c272, %c0_255] : memref<400x256xf32, #tpu.memory_space<vmem>>, vector<16x256xf32>
    %308 = vector.extract_strided_slice %306 {offsets = [0, 0], sizes = [1, 16], strides = [1, 1]} : vector<1x128xf32> to vector<1x16xf32>
    %cst_256 = arith.constant dense<0.000000e+00> : vector<1x256xf32>
    %309 = tpu.matmul %308, %307, %cst_256 {dimension_numbers = #tpu.dot_dimension_numbers<[1], [0], [0], [1], [0, 0, 1, 1], [], []>} : vector<1x16xf32>, vector<16x256xf32>, vector<1x256xf32> -> vector<1x256xf32>
    %310 = arith.addf %303, %309 : vector<1x256xf32>
    %311 = vector.extract_strided_slice %289 {offsets = [6, 0], sizes = [1, 128], strides = [1, 1]} : vector<10x128xf32> to vector<1x128xf32>
    %312 = vector.extract_strided_slice %289 {offsets = [7, 0], sizes = [1, 128], strides = [1, 1]} : vector<10x128xf32> to vector<1x128xf32>
    %313 = arith.maximumf %311, %312 : vector<1x128xf32>
    %c288 = arith.constant 288 : index
    %c0_257 = arith.constant 0 : index
    %314 = vector.load %arg6[%c288, %c0_257] : memref<400x256xf32, #tpu.memory_space<vmem>>, vector<16x256xf32>
    %315 = vector.extract_strided_slice %313 {offsets = [0, 0], sizes = [1, 16], strides = [1, 1]} : vector<1x128xf32> to vector<1x16xf32>
    %cst_258 = arith.constant dense<0.000000e+00> : vector<1x256xf32>
    %316 = tpu.matmul %315, %314, %cst_258 {dimension_numbers = #tpu.dot_dimension_numbers<[1], [0], [0], [1], [0, 0, 1, 1], [], []>} : vector<1x16xf32>, vector<16x256xf32>, vector<1x256xf32> -> vector<1x256xf32>
    %317 = arith.addf %310, %316 : vector<1x256xf32>
    %318 = vector.extract_strided_slice %289 {offsets = [8, 0], sizes = [1, 128], strides = [1, 1]} : vector<10x128xf32> to vector<1x128xf32>
    %319 = vector.extract_strided_slice %289 {offsets = [9, 0], sizes = [1, 128], strides = [1, 1]} : vector<10x128xf32> to vector<1x128xf32>
    %320 = arith.maximumf %318, %319 : vector<1x128xf32>
    %c304 = arith.constant 304 : index
    %c0_259 = arith.constant 0 : index
    %321 = vector.load %arg6[%c304, %c0_259] : memref<400x256xf32, #tpu.memory_space<vmem>>, vector<16x256xf32>
    %322 = vector.extract_strided_slice %320 {offsets = [0, 0], sizes = [1, 16], strides = [1, 1]} : vector<1x128xf32> to vector<1x16xf32>
    %cst_260 = arith.constant dense<0.000000e+00> : vector<1x256xf32>
    %323 = tpu.matmul %322, %321, %cst_260 {dimension_numbers = #tpu.dot_dimension_numbers<[1], [0], [0], [1], [0, 0, 1, 1], [], []>} : vector<1x16xf32>, vector<16x256xf32>, vector<1x256xf32> -> vector<1x256xf32>
    %324 = arith.addf %317, %323 : vector<1x256xf32>
    %c8_261 = arith.constant 8 : index
    %c0_262 = arith.constant 0 : index
    %c0_263 = arith.constant 0 : index
    %325 = vector.load %arg14[%c8_261, %c0_262, %c0_263] : memref<10x10x200xf32, #tpu.memory_space<vmem>>, vector<1x10x200xf32>
    %326 = vector.shape_cast %325 : vector<1x10x200xf32> to vector<10x200xf32>
    %cst_264 = arith.constant dense<0.000000e+00> : vector<10x128xf32>
    %327 = tpu.matmul %326, %122, %cst_264 {dimension_numbers = #tpu.dot_dimension_numbers<[1], [0], [0], [1], [0, 0, 1, 1], [], []>} : vector<10x200xf32>, vector<200x128xf32>, vector<10x128xf32> -> vector<10x128xf32>
    %328 = vector.broadcast %123 : vector<1x128xf32> to vector<10x128xf32>
    %329 = arith.addf %327, %328 : vector<10x128xf32>
    %c9_265 = arith.constant 9 : index
    %c0_266 = arith.constant 0 : index
    %c0_267 = arith.constant 0 : index
    %330 = vector.load %arg14[%c9_265, %c0_266, %c0_267] : memref<10x10x200xf32, #tpu.memory_space<vmem>>, vector<1x10x200xf32>
    %331 = vector.shape_cast %330 : vector<1x10x200xf32> to vector<10x200xf32>
    %cst_268 = arith.constant dense<0.000000e+00> : vector<10x128xf32>
    %332 = tpu.matmul %331, %122, %cst_268 {dimension_numbers = #tpu.dot_dimension_numbers<[1], [0], [0], [1], [0, 0, 1, 1], [], []>} : vector<10x200xf32>, vector<200x128xf32>, vector<10x128xf32> -> vector<10x128xf32>
    %333 = vector.broadcast %123 : vector<1x128xf32> to vector<10x128xf32>
    %334 = arith.addf %332, %333 : vector<10x128xf32>
    %cst_269 = arith.constant 0.000000e+00 : f32
    %335 = vector.broadcast %cst_269 : f32 to vector<10x128xf32>
    %336 = arith.maximumf %329, %335 : vector<10x128xf32>
    %cst_270 = arith.constant 0.000000e+00 : f32
    %337 = vector.broadcast %cst_270 : f32 to vector<10x128xf32>
    %338 = arith.maximumf %334, %337 : vector<10x128xf32>
    %339 = arith.maximumf %336, %338 : vector<10x128xf32>
    %340 = vector.extract_strided_slice %339 {offsets = [0, 0], sizes = [1, 128], strides = [1, 1]} : vector<10x128xf32> to vector<1x128xf32>
    %341 = vector.extract_strided_slice %339 {offsets = [1, 0], sizes = [1, 128], strides = [1, 1]} : vector<10x128xf32> to vector<1x128xf32>
    %342 = arith.maximumf %340, %341 : vector<1x128xf32>
    %c320 = arith.constant 320 : index
    %c0_271 = arith.constant 0 : index
    %343 = vector.load %arg6[%c320, %c0_271] : memref<400x256xf32, #tpu.memory_space<vmem>>, vector<16x256xf32>
    %344 = vector.extract_strided_slice %342 {offsets = [0, 0], sizes = [1, 16], strides = [1, 1]} : vector<1x128xf32> to vector<1x16xf32>
    %cst_272 = arith.constant dense<0.000000e+00> : vector<1x256xf32>
    %345 = tpu.matmul %344, %343, %cst_272 {dimension_numbers = #tpu.dot_dimension_numbers<[1], [0], [0], [1], [0, 0, 1, 1], [], []>} : vector<1x16xf32>, vector<16x256xf32>, vector<1x256xf32> -> vector<1x256xf32>
    %346 = arith.addf %324, %345 : vector<1x256xf32>
    %347 = vector.extract_strided_slice %339 {offsets = [2, 0], sizes = [1, 128], strides = [1, 1]} : vector<10x128xf32> to vector<1x128xf32>
    %348 = vector.extract_strided_slice %339 {offsets = [3, 0], sizes = [1, 128], strides = [1, 1]} : vector<10x128xf32> to vector<1x128xf32>
    %349 = arith.maximumf %347, %348 : vector<1x128xf32>
    %c336 = arith.constant 336 : index
    %c0_273 = arith.constant 0 : index
    %350 = vector.load %arg6[%c336, %c0_273] : memref<400x256xf32, #tpu.memory_space<vmem>>, vector<16x256xf32>
    %351 = vector.extract_strided_slice %349 {offsets = [0, 0], sizes = [1, 16], strides = [1, 1]} : vector<1x128xf32> to vector<1x16xf32>
    %cst_274 = arith.constant dense<0.000000e+00> : vector<1x256xf32>
    %352 = tpu.matmul %351, %350, %cst_274 {dimension_numbers = #tpu.dot_dimension_numbers<[1], [0], [0], [1], [0, 0, 1, 1], [], []>} : vector<1x16xf32>, vector<16x256xf32>, vector<1x256xf32> -> vector<1x256xf32>
    %353 = arith.addf %346, %352 : vector<1x256xf32>
    %354 = vector.extract_strided_slice %339 {offsets = [4, 0], sizes = [1, 128], strides = [1, 1]} : vector<10x128xf32> to vector<1x128xf32>
    %355 = vector.extract_strided_slice %339 {offsets = [5, 0], sizes = [1, 128], strides = [1, 1]} : vector<10x128xf32> to vector<1x128xf32>
    %356 = arith.maximumf %354, %355 : vector<1x128xf32>
    %c352 = arith.constant 352 : index
    %c0_275 = arith.constant 0 : index
    %357 = vector.load %arg6[%c352, %c0_275] : memref<400x256xf32, #tpu.memory_space<vmem>>, vector<16x256xf32>
    %358 = vector.extract_strided_slice %356 {offsets = [0, 0], sizes = [1, 16], strides = [1, 1]} : vector<1x128xf32> to vector<1x16xf32>
    %cst_276 = arith.constant dense<0.000000e+00> : vector<1x256xf32>
    %359 = tpu.matmul %358, %357, %cst_276 {dimension_numbers = #tpu.dot_dimension_numbers<[1], [0], [0], [1], [0, 0, 1, 1], [], []>} : vector<1x16xf32>, vector<16x256xf32>, vector<1x256xf32> -> vector<1x256xf32>
    %360 = arith.addf %353, %359 : vector<1x256xf32>
    %361 = vector.extract_strided_slice %339 {offsets = [6, 0], sizes = [1, 128], strides = [1, 1]} : vector<10x128xf32> to vector<1x128xf32>
    %362 = vector.extract_strided_slice %339 {offsets = [7, 0], sizes = [1, 128], strides = [1, 1]} : vector<10x128xf32> to vector<1x128xf32>
    %363 = arith.maximumf %361, %362 : vector<1x128xf32>
    %c368 = arith.constant 368 : index
    %c0_277 = arith.constant 0 : index
    %364 = vector.load %arg6[%c368, %c0_277] : memref<400x256xf32, #tpu.memory_space<vmem>>, vector<16x256xf32>
    %365 = vector.extract_strided_slice %363 {offsets = [0, 0], sizes = [1, 16], strides = [1, 1]} : vector<1x128xf32> to vector<1x16xf32>
    %cst_278 = arith.constant dense<0.000000e+00> : vector<1x256xf32>
    %366 = tpu.matmul %365, %364, %cst_278 {dimension_numbers = #tpu.dot_dimension_numbers<[1], [0], [0], [1], [0, 0, 1, 1], [], []>} : vector<1x16xf32>, vector<16x256xf32>, vector<1x256xf32> -> vector<1x256xf32>
    %367 = arith.addf %360, %366 : vector<1x256xf32>
    %368 = vector.extract_strided_slice %339 {offsets = [8, 0], sizes = [1, 128], strides = [1, 1]} : vector<10x128xf32> to vector<1x128xf32>
    %369 = vector.extract_strided_slice %339 {offsets = [9, 0], sizes = [1, 128], strides = [1, 1]} : vector<10x128xf32> to vector<1x128xf32>
    %370 = arith.maximumf %368, %369 : vector<1x128xf32>
    %c384 = arith.constant 384 : index
    %c0_279 = arith.constant 0 : index
    %371 = vector.load %arg6[%c384, %c0_279] : memref<400x256xf32, #tpu.memory_space<vmem>>, vector<16x256xf32>
    %372 = vector.extract_strided_slice %370 {offsets = [0, 0], sizes = [1, 16], strides = [1, 1]} : vector<1x128xf32> to vector<1x16xf32>
    %cst_280 = arith.constant dense<0.000000e+00> : vector<1x256xf32>
    %373 = tpu.matmul %372, %371, %cst_280 {dimension_numbers = #tpu.dot_dimension_numbers<[1], [0], [0], [1], [0, 0, 1, 1], [], []>} : vector<1x16xf32>, vector<16x256xf32>, vector<1x256xf32> -> vector<1x256xf32>
    %374 = arith.addf %367, %373 : vector<1x256xf32>
    %c0_281 = arith.constant 0 : index
    %c0_282 = arith.constant 0 : index
    %375 = vector.load %arg7[%c0_281, %c0_282] : memref<1x256xf32, #tpu.memory_space<vmem>>, vector<1x256xf32>
    %376 = arith.addf %374, %375 : vector<1x256xf32>
    %cst_283 = arith.constant 0.000000e+00 : f32
    %377 = vector.broadcast %cst_283 : f32 to vector<1x256xf32>
    %378 = arith.maximumf %376, %377 : vector<1x256xf32>
    %c0_284 = arith.constant 0 : index
    %c0_285 = arith.constant 0 : index
    %379 = vector.load %arg8[%c0_284, %c0_285] : memref<256x128xf32, #tpu.memory_space<vmem>>, vector<256x128xf32>
    %cst_286 = arith.constant dense<0.000000e+00> : vector<1x128xf32>
    %380 = tpu.matmul %378, %379, %cst_286 {dimension_numbers = #tpu.dot_dimension_numbers<[1], [0], [0], [1], [0, 0, 1, 1], [], []>} : vector<1x256xf32>, vector<256x128xf32>, vector<1x128xf32> -> vector<1x128xf32>
    %c0_287 = arith.constant 0 : index
    %c0_288 = arith.constant 0 : index
    %381 = vector.load %arg9[%c0_287, %c0_288] : memref<1x128xf32, #tpu.memory_space<vmem>>, vector<1x128xf32>
    %382 = arith.addf %380, %381 : vector<1x128xf32>
    %cst_289 = arith.constant 0.000000e+00 : f32
    %383 = vector.broadcast %cst_289 : f32 to vector<1x128xf32>
    %384 = arith.maximumf %382, %383 : vector<1x128xf32>
    %c0_290 = arith.constant 0 : index
    %c0_291 = arith.constant 0 : index
    %385 = vector.load %arg10[%c0_290, %c0_291] : memref<128x128xf32, #tpu.memory_space<vmem>>, vector<128x128xf32>
    %cst_292 = arith.constant dense<0.000000e+00> : vector<1x128xf32>
    %386 = tpu.matmul %384, %385, %cst_292 {dimension_numbers = #tpu.dot_dimension_numbers<[1], [0], [0], [1], [0, 0, 1, 1], [], []>} : vector<1x128xf32>, vector<128x128xf32>, vector<1x128xf32> -> vector<1x128xf32>
    %c0_293 = arith.constant 0 : index
    %c0_294 = arith.constant 0 : index
    %387 = vector.load %arg11[%c0_293, %c0_294] : memref<1x128xf32, #tpu.memory_space<vmem>>, vector<1x128xf32>
    %388 = arith.addf %386, %387 : vector<1x128xf32>
    %c0_295 = arith.constant 0 : index
    %c0_296 = arith.constant 0 : index
    %c0_297 = arith.constant 0 : index
    %389 = vector.load %arg12[%c0_295, %c0_296, %c0_297] : memref<1x1x128xf32, #tpu.memory_space<vmem>>, vector<1x1x128xf32>
    %390 = vector.shape_cast %389 : vector<1x1x128xf32> to vector<1x128xf32>
    %391 = vector.shape_cast %388 : vector<1x128xf32> to vector<1x1x128xf32>
    tpu.vector_store %arg12[%c0_295, %c0_296, %c0_297], %391 {strides = array<i32>} : memref<1x1x128xf32, #tpu.memory_space<vmem>>, vector<1x1x128xf32>,
    return
  }
  func.func @transform_0(%arg0: i32) -> (i32, i32, i32) {
    %c0_i32 = arith.constant 0 : i32
    %c0_i32_0 = arith.constant 0 : i32
    %c0_i32_1 = arith.constant 0 : i32
    return %arg0, %c0_i32, %c0_i32_0 : i32, i32, i32
  }
  func.func @transform_1(%arg0: i32) -> (i32, i32) {
    %c0_i32 = arith.constant 0 : i32
    %c0_i32_0 = arith.constant 0 : i32
    %c0_i32_1 = arith.constant 0 : i32
    return %c0_i32, %c0_i32_0 : i32, i32
  }
  func.func @transform_2(%arg0: i32) -> (i32, i32) {
    %c0_i32 = arith.constant 0 : i32
    %c0_i32_0 = arith.constant 0 : i32
    %c0_i32_1 = arith.constant 0 : i32
    return %c0_i32, %c0_i32_0 : i32, i32
  }
  func.func @transform_3(%arg0: i32) -> (i32, i32) {
    %c0_i32 = arith.constant 0 : i32
    %c0_i32_0 = arith.constant 0 : i32
    %c0_i32_1 = arith.constant 0 : i32
    return %c0_i32, %c0_i32_0 : i32, i32
  }
  func.func @transform_4(%arg0: i32) -> (i32, i32) {
    %c0_i32 = arith.constant 0 : i32
    %c0_i32_0 = arith.constant 0 : i32
    %c0_i32_1 = arith.constant 0 : i32
    return %c0_i32, %c0_i32_0 : i32, i32
  }
  func.func @transform_5(%arg0: i32) -> (i32, i32) {
    %c0_i32 = arith.constant 0 : i32
    %c0_i32_0 = arith.constant 0 : i32
    %c0_i32_1 = arith.constant 0 : i32
    return %c0_i32, %c0_i32_0 : i32, i32
  }
  func.func @transform_6(%arg0: i32) -> (i32, i32) {
    %c0_i32 = arith.constant 0 : i32
    %c0_i32_0 = arith.constant 0 : i32
    %c0_i32_1 = arith.constant 0 : i32
    return %c0_i32, %c0_i32_0 : i32, i32
  }
  func.func @transform_7(%arg0: i32) -> (i32, i32) {
    %c0_i32 = arith.constant 0 : i32
    %c0_i32_0 = arith.constant 0 : i32
    %c0_i32_1 = arith.constant 0 : i32
    return %c0_i32, %c0_i32_0 : i32, i32
  }
  func.func @transform_8(%arg0: i32) -> (i32, i32) {
    %c0_i32 = arith.constant 0 : i32
    %c0_i32_0 = arith.constant 0 : i32
    %c0_i32_1 = arith.constant 0 : i32
    return %c0_i32, %c0_i32_0 : i32, i32
  }
  func.func @transform_9(%arg0: i32) -> (i32, i32) {
    %c0_i32 = arith.constant 0 : i32
    %c0_i32_0 = arith.constant 0 : i32
    %c0_i32_1 = arith.constant 0 : i32
    return %c0_i32, %c0_i32_0 : i32, i32
  }
  func.func @transform_10(%arg0: i32) -> (i32, i32) {
    %c0_i32 = arith.constant 0 : i32
    %c0_i32_0 = arith.constant 0 : i32
    %c0_i32_1 = arith.constant 0 : i32
    return %c0_i32, %c0_i32_0 : i32, i32
  }
  func.func @transform_11(%arg0: i32) -> (i32, i32, i32) {
    %c0_i32 = arith.constant 0 : i32
    %c0_i32_0 = arith.constant 0 : i32
    %c0_i32_1 = arith.constant 0 : i32
    return %arg0, %c0_i32, %c0_i32_0 : i32, i32, i32
  }
}

</mosaic_0001>

<bundles_post_ra>
// kernel: _lenet_logits.1
= control target key start
LH: loop header
LB: loop body
LE: loop exit
PB: predicated region body
PF: predicated region fallthrough
CT: control target
= control target key end

     0   :  { %s11753_s0 = inlined_call_operand.vmem [shape: f32[2,784,128], index: 0, kind: input, shape index: {}]   ;;  %s11754_s1 = inlined_call_operand.vmem [shape: f32[128,128], index: 1, kind: input, shape index: {}]   ;;  %s11755_s2 = inlined_call_operand.vmem [shape: f32[1,128], index: 2, kind: input, shape index: {}]   ;;  %s11756_s3 = inlined_call_operand.vmem [shape: f32[200,128], index: 3, kind: input, shape index: {}]   ;;  %s11757_s4 = inlined_call_operand.vmem [shape: f32[1,128], index: 4, kind: input, shape index: {}]   ;;  %s11758_s5 = inlined_call_operand.vmem [shape: f32[400,256], index: 5, kind: input, shape index: {}]   ;;  %s11759_s6 = inlined_call_operand.vmem [shape: f32[1,256], index: 6, kind: input, shape index: {}]   ;;  %s11760_s7 = inlined_call_operand.vmem [shape: f32[256,128], index: 7, kind: input, shape index: {}]   ;;  %s11761_s8 = inlined_call_operand.vmem [shape: f32[1,128], index: 8, kind: input, shape index: {}]   ;;  %s11762_s9 = inlined_call_operand.vmem [shape: f32[128,128], index: 9, kind: input, shape index: {}]   ;;  %s11763_s10 = inlined_call_operand.vmem [shape: f32[1,128], index: 10, kind: input, shape index: {}]   ;;  %s11764_s11 = inlined_call_operand.hbm [shape: f32[2,1,128], index: 11, kind: output, shape index: {}]  }
   0x1   :  { %11826 = sst [smem:[#allocation21_spill]] %s11753_s0 }
   0x2   :  { %11827 = sst [smem:[#allocation22_spill]] %s11754_s1 }
   0x3   :  { %11828 = sst [smem:[#allocation23_spill]] %s11755_s2 }
   0x4   :  { %11829 = sst [smem:[#allocation24_spill]] %s11761_s8 }
   0x5   :  { %11830 = sst [smem:[#allocation25_spill]] %s11763_s10 }
   0x6   :  { %11831 = sst [smem:[#allocation26_spill]] %s11764_s11 }
   0x7   :  { %16 = vsyncpa [#allocation5], 0 }
   0x8   :  { %18 = vsyncpa [#allocation5 + $0x1], 0  ;;  %s8829_s17 = smov 0   ;;  %s8831_s18 = smov 0  }
   0x9   :  { %s8833_s19 = smov 0   ;;  %s8835_s20 = smov 0  }
   0xa LB: > { %11832 = sst [smem:[#allocation7_spill]] %s8736_s17  ;;  %s8850_s21 = sadd.s32 4294967295, %s8748_s20   ;;  %s8748_s20 = sphi %s8835_s20, %s12144_s20   ;;  %s8744_s19 = sphi %s8833_s19, %s12146_s19   ;;  %s8740_s18 = sphi %s8831_s18, %s12148_s18   ;;  %s8736_s17 = sphi %s8829_s17, %s12147_s17  }
   0xb   : > { %11833 = sst [smem:[#allocation8_spill]] %s8744_s19  ;;  %s7592_s22 = sadd.s32 4294967294, %s8748_s20  }
   0xc   : > { %11834 = sst [smem:[#allocation9_spill]] %s8748_s20  ;;  %s8854_s23 = sadd.s32 1, %s8748_s20  }
   0xd   : > { %11835 = sst [smem:[#allocation10_spill]] %s8854_s23  ;;  %s267_s24 = sadd.s32 1, %s8744_s19 }
   0xe   : > { %s264_s25 = ssub.s32 %s8748_s20, %s8854_s23  ;;  %p277_p0 = scmp.ne.s32.totalorder %s8744_s19, %s8740_s18 }
   0xf   : > { %p265_p1 = scmp.eq.s32.totalorder %s264_s25, 0  ;;  %p278_p2 = scmp.eq.s32.totalorder %s8850_s21, 1 }
  0x10   : > { %p283_p3 = scmp.ne.s32.totalorder %s8740_s18, %s8736_s17  ;;  %p284_p4 = scmp.eq.s32.totalorder %s7592_s22, 1 }
  0x11   : > { %s8865_s26 = scalar_select %p265_p1, %s8744_s19, %s267_s24  }
  0x12   : > { %p8867_p5 = por %p278_p2, %p277_p0  ;;  %p8871_p6 = por %p284_p4, %p283_p3 }
  0x13   : > { %11836 = sst [smem:[#allocation11_spill]] %s8865_s26  ;;  %p7595_p7 = scmp.ge.s32.totalorder %s8748_s20, 1 }
  0x14   : > { %s11837_s27 = scalar_select %p8867_p5, 1, 0 }
  0x15   : > { %s11839_s28 = scalar_select %p8871_p6, 1, 0 }
  0x16   : > { %11838 = sst [smem:[#allocation12_spill]] %s11837_s27  ;;  %p340_p8 = scmp.lt.s32.totalorder %s8748_s20, 3 }
  0x17   : > { %11840 = sst [smem:[#allocation13_spill]] %s11839_s28 }
  0x18   : > { %p341_p9 = pnand %p7595_p7, %p340_p8 }
  0x1a   : > { %344 = sbr.rel (%p341_p9) target bundleno = 2650 (0xa5a), region = 64 }
  0x21   : > { %s11841_s1 = sld [smem:[#allocation22_spill]]  ;;  %p379_p10 = scmp.lt.s32.totalorder %s8850_s21, 1  ;;  %vm1183_vm0 = vcmask 1043456   ;;  %vm1432_vm1 = vcmask 64512   ;;  %vm1434_vm2 = vcmask 62464   ;;  %vm1437_vm3 = vcmask 64518  }
  0x22   : > { %s11842_s0 = sld [smem:[#allocation21_spill]]  ;;  %s11843_s2 = sld [smem:[#allocation23_spill]]  ;;  %vm1440_vm4 = vcmask 60416   ;;  %vm1443_vm5 = vcmask 64516   ;;  %vm1446_vm6 = vcmask 58368   ;;  %vm1449_vm7 = vcmask 64514  }
  0x23   : > { %s380_s12 = scalar_select %p379_p10, %s8850_s21, 1  ;;  %vm1627_vm8 = vcmask 130112   ;;  %vm11804_vm9 = vcmask 195712   ;;  %vm11806_vm10 = vcmask 261312   ;;  %vm11805_vm11 = vcmask 326912  }
  0x24   : > { %s11766_s22 = smov 24   ;;  %s11770_s24 = smov 8   ;;  %vm1629_vm12 = vcmask 123968   ;;  %vm1751_vm13 = vcmask 189568   ;;  %vm1873_vm14 = vcmask 255168   ;;  %vm11796_vm15 = vcmask 320768  }
  0x25   : > { %s8623_s13 = smul.u32 784, %s380_s12  ;;  %s11786_s25 = smov 32  }
  0x26   : > { %s11768_s29 = smov 16   ;;  %s11792_s30 = smov 48  }
  0x27   : > { %v384_v0 = vld [vmem:[%s11841_s1] sm:$0xff]  ;;  %v385_v1 = vld [vmem:[%s11841_s1 + $0x8] sm:$0xff]  ;;  %v386_v2 = vld [vmem:[%s11841_s1 + $0x10] sm:$0xff]  ;;  %s11778_s12 = smov 40   ;;  %s11776_s14 = smov 56  }
  0x28   : > { %v8027_v3 = vpack.c.bf16 %v385_v1, %v384_v0  ;;  %v387_v4 = vld [vmem:[%s11841_s1 + $0x18] sm:$0xff]  ;;  %v388_v6 = vld [vmem:[%s11841_s1 + $0x20] sm:$0xff]  ;;  %v389_v7 = vld [vmem:[%s11841_s1 + $0x28] sm:$0xff]  ;;  %s8906_s26 = scalar_lea.vmem %s11842_s0, %s8623_s13  ;;  %s11774_s15 = smov 64  }
  0x29   : > { %v8031_v5 = vpack.c.bf16 %v387_v4, %v386_v2  ;;  %v8035_v8 = vpack.c.bf16 %v389_v7, %v388_v6  ;;  %v390_v9 = vld [vmem:[%s11841_s1 + $0x30] sm:$0xff]  ;;  %v391_v10 = vld [vmem:[%s11841_s1 + $0x38] sm:$0xff]  ;;  %v401_v11 = vld [vmem:[%s8906_s26] sm:$0xff]  ;;  %s11772_s13 = smov 72   ;;  %s11863_s16 = smov 80  }
  0x2a   : > { %8028 = vmatprep.subr.bf16.mxu0 %v8027_v3  ;;  %7845 = vmatprep.mubr.f32.mxu0 %v401_v11  ;;  %v8039_v12 = vpack.c.bf16 %v391_v10, %v390_v9  ;;  %v392_v13 = vld [vmem:[%s11841_s1 + $0x40] sm:$0xff]  ;;  %v393_v14 = vld [vmem:[%s11841_s1 + $0x48] sm:$0xff]  ;;  %v394_v16 = vld [vmem:[%s11841_s1 + $0x50] sm:$0xff]  ;;  %s11869_s0 = smov 56   ;;  %s11874_s19 = smov 120  }
  0x2b   : > { %8030 = vmatpush3.bf16.msra.mxu0 %v8027_v3  ;;  %v8043_v15 = vpack.c.bf16 %v393_v14, %v392_v13  ;;  %v395_v17 = vld [vmem:[%s11841_s1 + $0x58] sm:$0xff]  ;;  %v396_v19 = vld [vmem:[%s11841_s1 + $0x60] sm:$0xff]  ;;  %v397_v20 = vld [vmem:[%s11841_s1 + $0x68] sm:$0xff]  ;;  %s12139_s20 = sld [smem:[#allocation25_spill]]  ;;  %s7644_s8 = sshll.u32 %s8850_s21, 4 }
  0x2c   : > { %8032 = vmatprep.subr.bf16.mxu0 %v8031_v5  ;;  %v8047_v18 = vpack.c.bf16 %v395_v17, %v394_v16  ;;  %v8051_v21 = vpack.c.bf16 %v397_v20, %v396_v19  ;;  %v398_v22 = vld [vmem:[%s11841_s1 + $0x70] sm:$0xff]  ;;  %v399_v23 = vld [vmem:[%s11841_s1 + $0x78] sm:$0xff]  ;;  %v402_v25 = vld [vmem:[%s8906_s26 + $0x8] sm:$0xff]  ;;  %s11794_s1 = smov 120   ;;  %s8768_s21 = smov [#allocation4]  }
  0x2d   : > { %v8055_v24 = vpack.c.bf16 %v399_v23, %v398_v22  ;;  %v403_v26 = vld [vmem:[%s8906_s26 + $0x10] sm:$0xff]  ;;  %v404_v27 = vld [vmem:[%s8906_s26 + $0x18] sm:$0xff]  ;;  %v405_v28 = vld [vmem:[%s8906_s26 + $0x20] sm:$0xff] }
  0x2e   : > { %v406_v29 = vld [vmem:[%s8906_s26 + $0x28] sm:$0xff]  ;;  %v407_v30 = vld [vmem:[%s8906_s26 + $0x30] sm:$0xff]  ;;  %v408_v31 = vld [vmem:[%s8906_s26 + $0x38] sm:$0xff] }
  0x2f   : > { %8034 = vmatpush3.bf16.msra.mxu0 %v8031_v5  ;;  %v409_v32 = vld [vmem:[%s8906_s26 + $0x40] sm:$0xff]  ;;  %v410_v33 = vld [vmem:[%s8906_s26 + $0x48] sm:$0xff]  ;;  %v411_v34 = vld [vmem:[%s8906_s26 + $0x50] sm:$0xff] }
  0x30   : > { %8036 = vmatprep.subr.bf16.mxu0 %v8035_v8  ;;  %v412_v35 = vld [vmem:[%s8906_s26 + $0x58] sm:$0xff]  ;;  %v413_v36 = vld [vmem:[%s8906_s26 + $0x60] sm:$0xff]  ;;  %v414_v37 = vld [vmem:[%s8906_s26 + $0x68] sm:$0xff] }
  0x31   : > { %v415_v38 = vld [vmem:[%s8906_s26 + $0x70] sm:$0xff]  ;;  %v416_v39 = vld [vmem:[%s8906_s26 + $0x78] sm:$0xff]  ;;  %v417_v40 = vld [vmem:[%s8906_s26 + $0x80] sm:$0xff] }
  0x32   : > { %v418_v41 = vld [vmem:[%s8906_s26 + $0x88] sm:$0xff]  ;;  %v419_v42 = vld [vmem:[%s8906_s26 + $0x90] sm:$0xff]  ;;  %v420_v43 = vld [vmem:[%s8906_s26 + $0x98] sm:$0xff] }
  0x33   : > { %8038 = vmatpush3.bf16.msra.mxu0 %v8035_v8  ;;  %v421_v44 = vld [vmem:[%s8906_s26 + $0xa0] sm:$0xff]  ;;  %v422_v45 = vld [vmem:[%s8906_s26 + $0xa8] sm:$0xff]  ;;  %v423_v46 = vld [vmem:[%s8906_s26 + $0xb0] sm:$0xff] }
  0x34   : > { %8040 = vmatprep.subr.bf16.mxu0 %v8039_v12  ;;  %v424_v47 = vld [vmem:[%s8906_s26 + $0xb8] sm:$0xff]  ;;  %v425_v48 = vld [vmem:[%s8906_s26 + $0xc0] sm:$0xff]  ;;  %v426_v49 = vld [vmem:[%s8906_s26 + $0xc8] sm:$0xff] }
  0x35   : > { %v427_v50 = vld [vmem:[%s8906_s26 + $0xd0] sm:$0xff]  ;;  %v428_v51 = vld [vmem:[%s8906_s26 + $0xd8] sm:$0xff]  ;;  %v429_v52 = vld [vmem:[%s8906_s26 + $0xe0] sm:$0xff] }
  0x36   : > { %v430_v53 = vld [vmem:[%s8906_s26 + $0xe8] sm:$0xff]  ;;  %v431_v54 = vld [vmem:[%s8906_s26 + $0xf0] sm:$0xff]  ;;  %v432_v55 = vld [vmem:[%s8906_s26 + $0xf8] sm:$0xff] }
  0x37   : > { %8042 = vmatpush3.bf16.msra.mxu0 %v8039_v12  ;;  %v433_v56 = vld [vmem:[%s8906_s26 + $0x100] sm:$0xff]  ;;  %v434_v57 = vld [vmem:[%s8906_s26 + $0x108] sm:$0xff]  ;;  %v435_v58 = vld [vmem:[%s8906_s26 + $0x110] sm:$0xff] }
  0x38   : > { %8044 = vmatprep.subr.bf16.mxu0 %v8043_v15  ;;  %v436_v59 = vld [vmem:[%s8906_s26 + $0x118] sm:$0xff]  ;;  %v437_v60 = vld [vmem:[%s8906_s26 + $0x120] sm:$0xff]  ;;  %v438_v61 = vld [vmem:[%s8906_s26 + $0x128] sm:$0xff] }
  0x39   : > { %v439_v62 = vld [vmem:[%s8906_s26 + $0x130] sm:$0xff]  ;;  %v440_v63 = vld [vmem:[%s8906_s26 + $0x138] sm:$0xff]  ;;  %v441_v0 = vld [vmem:[%s8906_s26 + $0x140] sm:$0xff] }
  0x3a   : > { %v442_v1 = vld [vmem:[%s8906_s26 + $0x148] sm:$0xff]  ;;  %v443_v2 = vld [vmem:[%s8906_s26 + $0x150] sm:$0xff]  ;;  %v444_v3 = vld [vmem:[%s8906_s26 + $0x158] sm:$0xff] }
  0x3b   : > { %8046 = vmatpush3.bf16.msra.mxu0 %v8043_v15  ;;  %v445_v4 = vld [vmem:[%s8906_s26 + $0x160] sm:$0xff]  ;;  %v446_v5 = vld [vmem:[%s8906_s26 + $0x168] sm:$0xff]  ;;  %v447_v6 = vld [vmem:[%s8906_s26 + $0x170] sm:$0xff] }
  0x3c   : > { %8048 = vmatprep.subr.bf16.mxu0 %v8047_v18  ;;  %v448_v7 = vld [vmem:[%s8906_s26 + $0x178] sm:$0xff]  ;;  %v449_v8 = vld [vmem:[%s8906_s26 + $0x180] sm:$0xff]  ;;  %v450_v9 = vld [vmem:[%s8906_s26 + $0x188] sm:$0xff] }
  0x3d   : > { %v451_v10 = vld [vmem:[%s8906_s26 + $0x190] sm:$0xff]  ;;  %v452_v11 = vld [vmem:[%s8906_s26 + $0x198] sm:$0xff]  ;;  %v453_v12 = vld [vmem:[%s8906_s26 + $0x1a0] sm:$0xff] }
  0x3e   : > { %v454_v13 = vld [vmem:[%s8906_s26 + $0x1a8] sm:$0xff]  ;;  %v455_v14 = vld [vmem:[%s8906_s26 + $0x1b0] sm:$0xff]  ;;  %v456_v15 = vld [vmem:[%s8906_s26 + $0x1b8] sm:$0xff] }
  0x3f   : > { %8050 = vmatpush3.bf16.msra.mxu0 %v8047_v18  ;;  %v457_v16 = vld [vmem:[%s8906_s26 + $0x1c0] sm:$0xff]  ;;  %v458_v17 = vld [vmem:[%s8906_s26 + $0x1c8] sm:$0xff]  ;;  %v459_v18 = vld [vmem:[%s8906_s26 + $0x1d0] sm:$0xff] }
  0x40   : > { %8052 = vmatprep.subr.bf16.mxu0 %v8051_v21  ;;  %v460_v19 = vld [vmem:[%s8906_s26 + $0x1d8] sm:$0xff]  ;;  %v461_v20 = vld [vmem:[%s8906_s26 + $0x1e0] sm:$0xff]  ;;  %v463_v22 = vld [vmem:[%s8906_s26 + $0x1f0] sm:$0xff] }
  0x41   : > { %v464_v23 = vld [vmem:[%s8906_s26 + $0x1f8] sm:$0xff] }
  0x43   : > { %8054 = vmatpush3.bf16.msra.mxu0 %v8051_v21  ;;  %v462_v21 = vld [vmem:[%s8906_s26 + $0x1e8] sm:$0xff] }
  0x44   : > { %8056 = vmatprep.subr.bf16.mxu0 %v8055_v24 }
  0x47   : > { %8058 = vmatpush3.bf16.msra.mxu0 %v8055_v24  ;;  %v465_v24 = vld [vmem:[%s8906_s26 + $0x200] sm:$0xff] }
  0x4a   : > { %7846 = vmatmul.mubr.f32.vlgmr.msra.gmra.mrb[0].mxu0 %v402_v25  ;;  %v466_v25 = vld [vmem:[%s8906_s26 + $0x208] sm:$0xff] }
  0x4b   : > { %7848 = vmatprep.mubr.f32.mxu0 %v403_v26  ;;  %v467_v26 = vld [vmem:[%s8906_s26 + $0x210] sm:$0xff] }
  0x4e   : > { %7849 = vmatmul.mubr.f32.gmra.mrb[2].mxu0 %v404_v27  ;;  %v468_v27 = vld [vmem:[%s8906_s26 + $0x218] sm:$0xff] }
  0x4f   : > { %7851 = vmatprep.mubr.f32.mxu0 %v405_v28  ;;  %v469_v28 = vld [vmem:[%s8906_s26 + $0x220] sm:$0xff] }
  0x52   : > { %7852 = vmatmul.mubr.f32.gmra.mrb[4].mxu0 %v406_v29  ;;  %v470_v29 = vld [vmem:[%s8906_s26 + $0x228] sm:$0xff] }
  0x53   : > { %7854 = vmatprep.mubr.f32.mxu0 %v407_v30  ;;  %v471_v30 = vld [vmem:[%s8906_s26 + $0x230] sm:$0xff] }
  0x56   : > { %7855 = vmatmul.mubr.f32.gmra.mrb[6].mxu0 %v408_v31  ;;  %v472_v31 = vld [vmem:[%s8906_s26 + $0x238] sm:$0xff] }
  0x57   : > { %7857 = vmatprep.mubr.f32.mxu0 %v409_v32  ;;  %v473_v32 = vld [vmem:[%s8906_s26 + $0x240] sm:$0xff] }
  0x5a   : > { %7858 = vmatmul.mubr.f32.gmra.mrb[8].mxu0 %v410_v33  ;;  %v474_v33 = vld [vmem:[%s8906_s26 + $0x248] sm:$0xff] }
  0x5b   : > { %7860 = vmatprep.mubr.f32.mxu0 %v411_v34  ;;  %v475_v34 = vld [vmem:[%s8906_s26 + $0x250] sm:$0xff] }
  0x5e   : > { %7861 = vmatmul.mubr.f32.gmra.mrb[10].mxu0 %v412_v35  ;;  %v476_v35 = vld [vmem:[%s8906_s26 + $0x258] sm:$0xff] }
  0x5f   : > { %7863 = vmatprep.mubr.f32.mxu0 %v413_v36  ;;  %v477_v36 = vld [vmem:[%s8906_s26 + $0x260] sm:$0xff] }
  0x62   : > { %7864 = vmatmul.mubr.f32.gmra.mrb[12].mxu0 %v414_v37  ;;  %v478_v37 = vld [vmem:[%s8906_s26 + $0x268] sm:$0xff] }
  0x63   : > { %7866 = vmatprep.mubr.f32.mxu0 %v415_v38  ;;  %v479_v38 = vld [vmem:[%s8906_s26 + $0x270] sm:$0xff] }
  0x66   : > { %7867 = vmatmul.mubr.f32.gmra.mrb[14].mxu0 %v416_v39  ;;  %v480_v39 = vld [vmem:[%s8906_s26 + $0x278] sm:$0xff] }
  0x67   : > { %7869 = vmatprep.mubr.f32.mxu0 %v417_v40  ;;  %v481_v40 = vld [vmem:[%s8906_s26 + $0x280] sm:$0xff] }
  0x6a   : > { %7870 = vmatmul.mubr.f32.gmra.mrb[16].mxu0 %v418_v41  ;;  %v482_v41 = vld [vmem:[%s8906_s26 + $0x288] sm:$0xff] }
  0x6b   : > { %7872 = vmatprep.mubr.f32.mxu0 %v419_v42  ;;  %v483_v42 = vld [vmem:[%s8906_s26 + $0x290] sm:$0xff] }
  0x6e   : > { %7873 = vmatmul.mubr.f32.gmra.mrb[18].mxu0 %v420_v43  ;;  %v484_v43 = vld [vmem:[%s8906_s26 + $0x298] sm:$0xff] }
  0x6f   : > { %7875 = vmatprep.mubr.f32.mxu0 %v421_v44  ;;  %v485_v44 = vld [vmem:[%s8906_s26 + $0x2a0] sm:$0xff] }
  0x72   : > { %7876 = vmatmul.mubr.f32.gmra.mrb[20].mxu0 %v422_v45  ;;  %v486_v45 = vld [vmem:[%s8906_s26 + $0x2a8] sm:$0xff] }
  0x73   : > { %7878 = vmatprep.mubr.f32.mxu0 %v423_v46  ;;  %v487_v46 = vld [vmem:[%s8906_s26 + $0x2b0] sm:$0xff] }
  0x76   : > { %7879 = vmatmul.mubr.f32.gmra.mrb[22].mxu0 %v424_v47  ;;  %v488_v47 = vld [vmem:[%s8906_s26 + $0x2b8] sm:$0xff] }
  0x77   : > { %7881 = vmatprep.mubr.f32.mxu0 %v425_v48  ;;  %v489_v48 = vld [vmem:[%s8906_s26 + $0x2c0] sm:$0xff] }
  0x7a   : > { %7882 = vmatmul.mubr.f32.gmra.mrb[24].mxu0 %v426_v49  ;;  %v490_v49 = vld [vmem:[%s8906_s26 + $0x2c8] sm:$0xff] }
  0x7b   : > { %7884 = vmatprep.mubr.f32.mxu0 %v427_v50  ;;  %v491_v50 = vld [vmem:[%s8906_s26 + $0x2d0] sm:$0xff] }
  0x7e   : > { %7885 = vmatmul.mubr.f32.gmra.mrb[26].mxu0 %v428_v51  ;;  %v492_v51 = vld [vmem:[%s8906_s26 + $0x2d8] sm:$0xff] }
  0x7f   : > { %7887 = vmatprep.mubr.f32.mxu0 %v429_v52  ;;  %v493_v52 = vld [vmem:[%s8906_s26 + $0x2e0] sm:$0xff] }
  0x82   : > { %7888 = vmatmul.mubr.f32.gmra.mrb[28].mxu0 %v430_v53  ;;  %v494_v53 = vld [vmem:[%s8906_s26 + $0x2e8] sm:$0xff] }
  0x83   : > { %7890 = vmatprep.mubr.f32.mxu0 %v431_v54  ;;  %v495_v54 = vld [vmem:[%s8906_s26 + $0x2f0] sm:$0xff] }
  0x86   : > { %7891 = vmatmul.mubr.f32.gmra.mrb[30].mxu0 %v432_v55  ;;  %v496_v55 = vld [vmem:[%s8906_s26 + $0x2f8] sm:$0xff] }
  0x87   : > { %7893 = vmatprep.mubr.f32.mxu0 %v433_v56  ;;  %v497_v56 = vld [vmem:[%s8906_s26 + $0x300] sm:$0xff] }
  0x8a   : > { %7894 = vmatmul.mubr.f32.gmra.mrb[32].mxu0 %v434_v57  ;;  %v498_v57 = vld [vmem:[%s8906_s26 + $0x308] sm:$0xff]  ;;  %s11782_s26 = smov 80  }
  0x8b   : > { %7896 = vmatprep.mubr.f32.mxu0 %v435_v58 }
  0x8e   : > { %7897 = vmatmul.mubr.f32.gmra.mrb[34].mxu0 %v436_v59 }
  0x8f   : > { %7899 = vmatprep.mubr.f32.mxu0 %v437_v60 }
  0x92   : > { %7900 = vmatmul.mubr.f32.gmra.mrb[36].mxu0 %v438_v61 }
  0x93   : > { %7902 = vmatprep.mubr.f32.mxu0 %v439_v62 }
  0x96   : > { %7903 = vmatmul.mubr.f32.gmra.mrb[38].mxu0 %v440_v63 }
  0x97   : > { %7905 = vmatprep.mubr.f32.mxu0 %v441_v0 }
  0x9a   : > { %7906 = vmatmul.mubr.f32.gmra.mrb[40].mxu0 %v442_v1 }
  0x9b   : > { %7908 = vmatprep.mubr.f32.mxu0 %v443_v2 }
  0x9e   : > { %7909 = vmatmul.mubr.f32.gmra.mrb[42].mxu0 %v444_v3 }
  0x9f   : > { %7911 = vmatprep.mubr.f32.mxu0 %v445_v4 }
  0xa2   : > { %7912 = vmatmul.mubr.f32.gmra.mrb[44].mxu0 %v446_v5 }
  0xa3   : > { %7914 = vmatprep.mubr.f32.mxu0 %v447_v6 }
  0xa6   : > { %7915 = vmatmul.mubr.f32.gmra.mrb[46].mxu0 %v448_v7 }
  0xa7   : > { %7917 = vmatprep.mubr.f32.mxu0 %v449_v8 }
  0xaa   : > { %7918 = vmatmul.mubr.f32.gmra.mrb[48].mxu0 %v450_v9 }
  0xab   : > { %7920 = vmatprep.mubr.f32.mxu0 %v451_v10 }
  0xae   : > { %7921 = vmatmul.mubr.f32.gmra.mrb[50].mxu0 %v452_v11 }
  0xaf   : > { %7923 = vmatprep.mubr.f32.mxu0 %v453_v12 }
  0xb2   : > { %7924 = vmatmul.mubr.f32.gmra.mrb[52].mxu0 %v454_v13 }
  0xb3   : > { %7926 = vmatprep.mubr.f32.mxu0 %v455_v14 }
  0xb6   : > { %7927 = vmatmul.mubr.f32.gmra.mrb[54].mxu0 %v456_v15 }
  0xb7   : > { %7929 = vmatprep.mubr.f32.mxu0 %v457_v16 }
  0xba   : > { %7930 = vmatmul.mubr.f32.gmra.mrb[56].mxu0 %v458_v17 }
  0xbb   : > { %7932 = vmatprep.mubr.f32.mxu0 %v459_v18  ;;  %v9071_v18 = vld [vmem:[%s11843_s2] ss:$0 sm:$0xff]  ;;  %s11873_s2 = smov 72  }
  0xbe   : > { %7933 = vmatmul.mubr.f32.gmra.mrb[58].mxu0 %v460_v19 }
  0xbf   : > { %7935 = vmatprep.mubr.f32.mxu0 %v461_v20 }
  0xc2   : > { %7936 = vmatmul.mubr.f32.gmra.mrb[60].mxu0 %v462_v21 }
  0xc3   : > { %7938 = vmatprep.mubr.f32.mxu0 %v463_v22 }
  0xc6   : > { %7939 = vmatmul.mubr.f32.gmra.mrb[62].mxu0 %v464_v23 }
  0xc7   : > { %7941 = vmatprep.mubr.f32.mxu0 %v465_v24 }
  0xca   : > { %7942 = vmatmul.mubr.f32.gmra.mrb[64].mxu0 %v466_v25 }
  0xcb   : > { %7944 = vmatprep.mubr.f32.mxu0 %v467_v26 }
  0xce   : > { %7945 = vmatmul.mubr.f32.gmra.mrb[66].mxu0 %v468_v27 }
  0xcf   : > { %7947 = vmatprep.mubr.f32.mxu0 %v469_v28 }
  0xd2   : > { %7948 = vmatmul.mubr.f32.gmra.mrb[68].mxu0 %v470_v29 }
  0xd3   : > { %7950 = vmatprep.mubr.f32.mxu0 %v471_v30 }
  0xd6   : > { %7951 = vmatmul.mubr.f32.gmra.mrb[70].mxu0 %v472_v31 }
  0xd7   : > { %7953 = vmatprep.mubr.f32.mxu0 %v473_v32 }
  0xda   : > { %7954 = vmatmul.mubr.f32.gmra.mrb[72].mxu0 %v474_v33 }
  0xdb   : > { %7956 = vmatprep.mubr.f32.mxu0 %v475_v34 }
  0xde   : > { %7957 = vmatmul.mubr.f32.gmra.mrb[74].mxu0 %v476_v35 }
  0xdf   : > { %7959 = vmatprep.mubr.f32.mxu0 %v477_v36 }
  0xe2   : > { %7960 = vmatmul.mubr.f32.gmra.mrb[76].mxu0 %v478_v37 }
  0xe3   : > { %7962 = vmatprep.mubr.f32.mxu0 %v479_v38 }
  0xe6   : > { %7963 = vmatmul.mubr.f32.gmra.mrb[78].mxu0 %v480_v39 }
  0xe7   : > { %7965 = vmatprep.mubr.f32.mxu0 %v481_v40 }
  0xea   : > { %7966 = vmatmul.mubr.f32.gmra.mrb[80].mxu0 %v482_v41 }
  0xeb   : > { %7968 = vmatprep.mubr.f32.mxu0 %v483_v42 }
  0xee   : > { %7969 = vmatmul.mubr.f32.gmra.mrb[82].mxu0 %v484_v43 }
  0xef   : > { %7971 = vmatprep.mubr.f32.mxu0 %v485_v44 }
  0xf2   : > { %7972 = vmatmul.mubr.f32.gmra.mrb[84].mxu0 %v486_v45 }
  0xf3   : > { %7974 = vmatprep.mubr.f32.mxu0 %v487_v46 }
  0xf6   : > { %7975 = vmatmul.mubr.f32.gmra.mrb[86].mxu0 %v488_v47 }
  0xf7   : > { %7977 = vmatprep.mubr.f32.mxu0 %v489_v48 }
  0xfa   : > { %7978 = vmatmul.mubr.f32.gmra.mrb[88].mxu0 %v490_v49 }
  0xfb   : > { %7980 = vmatprep.mubr.f32.mxu0 %v491_v50 }
  0xfe   : > { %7981 = vmatmul.mubr.f32.gmra.mrb[90].mxu0 %v492_v51 }
  0xff   : > { %7983 = vmatprep.mubr.f32.mxu0 %v493_v52 }
 0x102   : > { %7984 = vmatmul.mubr.f32.gmra.mrb[92].mxu0 %v494_v53 }
 0x103   : > { %7986 = vmatprep.mubr.f32.mxu0 %v495_v54 }
 0x106   : > { %7987 = vmatmul.mubr.f32.gmra.mrb[94].mxu0 %v496_v55 }
 0x107   : > { %7989 = vmatprep.mubr.f32.mxu0 %v497_v56 }
 0x10a   : > { %7990 = vmatmul.mubr.f32.gmra.mrb[96].mxu0 %v498_v57 }
 0x11d   : > { %v7847_v58 = vpop.f32.mrb[0].mxu0 }
 0x11e   : > { %v571_v59 = vpop.f32.mrb[1].mxu0  ;;  %v577_v32 = vadd.f32 %v7847_v58, %v9071_v18 }
 0x11f   : > { %v572_v23 = vadd.f32 %v9071_v18, %v571_v59 }
 0x120   : > { %v1061_v46 = vmax.f32 %v577_v32, 0.0 }
 0x121   : > { %v7850_v60 = vpop.f32.mrb[2].mxu0  ;;  %v1060_v33 = vmax.f32 %v572_v23, 0.0 }
 0x122   : > { %v581_v61 = vpop.f32.mrb[3].mxu0  ;;  %v587_v43 = vadd.f32 %v7850_v60, %v9071_v18 }
 0x123   : > { %v582_v34 = vadd.f32 %v9071_v18, %v581_v61 }
 0x124   : > { %v1063_v59 = vmax.f32 %v587_v43, 0.0 }
 0x125   : > { %v9030_v62 = vpop.f32.mrb[4].mxu0  ;;  %v1062_v47 = vmax.f32 %v582_v34, 0.0 }
 0x126   : > { %v591_v63 = vpop.f32.mrb[5].mxu0 }
 0x127   : > { %v592_v48 = vadd.f32 %v9071_v18, %v591_v63  ;;  %v597_v63 = vadd.f32 %v9030_v62, %v9071_v18 }
 0x129   : > { %v9032_v0 = vpop.f32.mrb[6].mxu0  ;;  %v1065_v34 = vmax.f32 %v597_v63, 0.0 }
 0x12a   : > { %v9034_v1 = vpop.f32.mrb[7].mxu0  ;;  %v607_v62 = vadd.f32 %v9032_v0, %v9071_v18 }
 0x12d   : > { %v9036_v2 = vpop.f32.mrb[8].mxu0 }
 0x12e   : > { %v9038_v3 = vpop.f32.mrb[9].mxu0 }
 0x131   : > { %v9040_v4 = vpop.f32.mrb[10].mxu0 }
 0x132   : > { %v9042_v5 = vpop.f32.mrb[11].mxu0 }
 0x135   : > { %v9044_v6 = vpop.f32.mrb[12].mxu0 }
 0x136   : > { %v9046_v7 = vpop.f32.mrb[13].mxu0 }
 0x139   : > { %v9048_v8 = vpop.f32.mrb[14].mxu0 }
 0x13a   : > { %v9050_v9 = vpop.f32.mrb[15].mxu0 }
 0x13d   : > { %v9052_v10 = vpop.f32.mrb[16].mxu0 }
 0x13e   : > { %v9054_v11 = vpop.f32.mrb[17].mxu0 }
 0x141   : > { %v9056_v12 = vpop.f32.mrb[18].mxu0 }
 0x142   : > { %v9058_v13 = vpop.f32.mrb[19].mxu0 }
 0x145   : > { %v9060_v14 = vpop.f32.mrb[20].mxu0 }
 0x146   : > { %v9062_v15 = vpop.f32.mrb[21].mxu0 }
 0x149   : > { %v9064_v16 = vpop.f32.mrb[22].mxu0 }
 0x14a   : > { %v9066_v17 = vpop.f32.mrb[23].mxu0 }
 0x14d   : > { %v7883_v19 = vpop.f32.mrb[24].mxu0 }
 0x14e   : > { %v697_v20 = vadd.f32 %v7883_v19, %v9071_v18  ;;  %v691_v21 = vpop.f32.mrb[25].mxu0  ;;  %v1064_v19 = vmax.f32 %v592_v48, 0.0 }
 0x14f   : > { %v9075_v22 = vadd.f32 %v9071_v18, %v691_v21 }
 0x150   : > { %v1085_v24 = vmax.f32 %v697_v20, 0.0  ;;  %v602_v20 = vadd.f32 %v9071_v18, %v9034_v1 }
 0x151   : > { %v1084_v25 = vmax.f32 %v9075_v22, 0.0  ;;  %v7886_v26 = vpop.f32.mrb[26].mxu0 }
 0x152   : > { %v1185_v27 = vrot.slane %v1085_v24, 4  ;;  %v707_v28 = vadd.f32 %v7886_v26, %v9071_v18  ;;  %v701_v29 = vpop.f32.mrb[27].mxu0 }
 0x153   : > { %v1184_v30 = vrot.slane %v1084_v25, 4  ;;  %v702_v31 = vadd.f32 %v9071_v18, %v701_v29 }
 0x154   : > { %v1087_v35 = vmax.f32 %v707_v28, 0.0 }
 0x155   : > { %v1186_v36 = vsel %vm1183_vm0, %v1184_v30, %v1185_v27  ;;  %v1086_v37 = vmax.f32 %v702_v31, 0.0  ;;  %v7889_v38 = vpop.f32.mrb[28].mxu0 }
 0x156   : > { %v9086_v39 = vmax.f32 %v1060_v33, %v1186_v36  ;;  %v1189_v40 = vrot.slane %v1087_v35, 4  ;;  %v717_v41 = vadd.f32 %v7889_v38, %v9071_v18  ;;  %v711_v42 = vpop.f32.mrb[29].mxu0  ;;  %v1066_v35 = vmax.f32 %v602_v20, 0.0 }
 0x157   : > { %v1187_v44 = vrot.slane %v1086_v37, 4  ;;  %v712_v45 = vadd.f32 %v9071_v18, %v711_v42  ;;  %v612_v36 = vadd.f32 %v9071_v18, %v9038_v3  ;;  %v617_v3 = vadd.f32 %v9036_v2, %v9071_v18 }
 0x158   : > { %v1089_v49 = vmax.f32 %v717_v41, 0.0  ;;  %v627_v2 = vadd.f32 %v9040_v4, %v9071_v18 }
 0x159   : > { %v1188_v50 = vsel %vm1183_vm0, %v1185_v27, %v1187_v44  ;;  %v1190_v51 = vsel %vm1183_vm0, %v1187_v44, %v1189_v40  ;;  %v1088_v52 = vmax.f32 %v712_v45, 0.0  ;;  %v7892_v53 = vpop.f32.mrb[30].mxu0 }
 0x15a   : > { %v9094_v54 = vmax.f32 %v1061_v46, %v1188_v50  ;;  %v9096_v55 = vmax.f32 %v1062_v47, %v1190_v51  ;;  %v1193_v56 = vrot.slane %v1089_v49, 4  ;;  %v727_v57 = vadd.f32 %v7892_v53, %v9071_v18  ;;  %v721_v58 = vpop.f32.mrb[31].mxu0 }
 0x15b   : > { %v1191_v60 = vrot.slane %v1088_v52, 4  ;;  %v722_v61 = vadd.f32 %v9071_v18, %v721_v58  ;;  %v1067_v47 = vmax.f32 %v607_v62, 0.0  ;;  %v1068_v50 = vmax.f32 %v612_v36, 0.0 }
 0x15c   : > { %v1091_v21 = vmax.f32 %v727_v57, 0.0  ;;  %v622_v51 = vadd.f32 %v9071_v18, %v9042_v5 }
 0x15d   : > { %v1192_v23 = vsel %vm1183_vm0, %v1189_v40, %v1191_v60  ;;  %v1194_v24 = vsel %vm1183_vm0, %v1191_v60, %v1193_v56  ;;  %v1090_v26 = vmax.f32 %v722_v61, 0.0  ;;  %v7895_v27 = vpop.f32.mrb[32].mxu0 }
 0x15e   : > { %v9106_v28 = vmax.f32 %v1063_v59, %v1192_v23  ;;  %v9108_v29 = vmax.f32 %v1064_v19, %v1194_v24  ;;  %v1197_v30 = vrot.slane %v1091_v21, 4  ;;  %v737_v31 = vadd.f32 %v7895_v27, %v9071_v18  ;;  %v731_v32 = vpop.f32.mrb[33].mxu0 }
 0x15f   : > { %v1195_v33 = vrot.slane %v1090_v26, 4  ;;  %v732_v1 = vadd.f32 %v9071_v18, %v731_v32  ;;  %v1069_v21 = vmax.f32 %v617_v3, 0.0  ;;  %v1070_v23 = vmax.f32 %v622_v51, 0.0 }
 0x160   : > { %v1093_v37 = vmax.f32 %v737_v31, 0.0  ;;  %v632_v24 = vadd.f32 %v9071_v18, %v9046_v7  ;;  %v637_v7 = vadd.f32 %v9044_v6, %v9071_v18  ;;  %v647_v6 = vadd.f32 %v9048_v8, %v9071_v18 }
 0x161   : > { %v1196_v38 = vsel %vm1183_vm0, %v1193_v56, %v1195_v33  ;;  %v1198_v40 = vsel %vm1183_vm0, %v1195_v33, %v1197_v30  ;;  %v1092_v41 = vmax.f32 %v732_v1, 0.0  ;;  %v7898_v42 = vpop.f32.mrb[34].mxu0 }
 0x162   : > { %v9118_v43 = vmax.f32 %v1065_v34, %v1196_v38  ;;  %v9120_v44 = vmax.f32 %v1066_v35, %v1198_v40  ;;  %v1201_v0 = vrot.slane %v1093_v37, 4  ;;  %v747_v45 = vadd.f32 %v7898_v42, %v9071_v18  ;;  %v741_v46 = vpop.f32.mrb[35].mxu0 }
 0x163   : > { %v1199_v48 = vrot.slane %v1092_v41, 4  ;;  %v742_v49 = vadd.f32 %v9071_v18, %v741_v46  ;;  %v1071_v35 = vmax.f32 %v627_v2, 0.0  ;;  %v1072_v38 = vmax.f32 %v632_v24, 0.0 }
 0x164   : > { %v1095_v52 = vmax.f32 %v747_v45, 0.0  ;;  %v642_v40 = vadd.f32 %v9071_v18, %v9050_v9 }
 0x165   : > { %v1200_v53 = vsel %vm1183_vm0, %v1197_v30, %v1199_v48  ;;  %v1202_v56 = vsel %vm1183_vm0, %v1199_v48, %v1201_v0  ;;  %v1094_v57 = vmax.f32 %v742_v49, 0.0  ;;  %v7901_v58 = vpop.f32.mrb[36].mxu0 }
 0x166   : > { %v9130_v59 = vmax.f32 %v1067_v47, %v1200_v53  ;;  %v9132_v60 = vmax.f32 %v1068_v50, %v1202_v56  ;;  %v1205_v61 = vrot.slane %v1095_v52, 4  ;;  %v757_v63 = vadd.f32 %v7901_v58, %v9071_v18  ;;  %v751_v19 = vpop.f32.mrb[37].mxu0 }
 0x167   : > { %v1203_v20 = vrot.slane %v1094_v57, 4  ;;  %v752_v5 = vadd.f32 %v9071_v18, %v751_v19  ;;  %v1073_v52 = vmax.f32 %v637_v7, 0.0  ;;  %v1074_v53 = vmax.f32 %v642_v40, 0.0 }
 0x168   : > { %v1097_v26 = vmax.f32 %v757_v63, 0.0  ;;  %v652_v56 = vadd.f32 %v9071_v18, %v9054_v11  ;;  %v657_v11 = vadd.f32 %v9052_v10, %v9071_v18  ;;  %v667_v10 = vadd.f32 %v9056_v12, %v9071_v18 }
 0x169   : > { %v1204_v27 = vsel %vm1183_vm0, %v1201_v0, %v1203_v20  ;;  %v1206_v30 = vsel %vm1183_vm0, %v1203_v20, %v1205_v61  ;;  %v1096_v31 = vmax.f32 %v752_v5, 0.0  ;;  %v7904_v32 = vpop.f32.mrb[38].mxu0 }
 0x16a   : > { %v9142_v62 = vmax.f32 %v1069_v21, %v1204_v27  ;;  %v9144_v33 = vmax.f32 %v1070_v23, %v1206_v30  ;;  %v1209_v4 = vrot.slane %v1097_v26, 4  ;;  %v767_v1 = vadd.f32 %v7904_v32, %v9071_v18  ;;  %v761_v34 = vpop.f32.mrb[39].mxu0 }
 0x16b   : > { %v1207_v36 = vrot.slane %v1096_v31, 4  ;;  %v762_v37 = vadd.f32 %v9071_v18, %v761_v34  ;;  %v1075_v23 = vmax.f32 %v647_v6, 0.0  ;;  %v1076_v27 = vmax.f32 %v652_v56, 0.0 }
 0x16c   : > { %v1099_v41 = vmax.f32 %v767_v1, 0.0  ;;  %v662_v30 = vadd.f32 %v9071_v18, %v9058_v13 }
 0x16d   : > { %v1208_v42 = vsel %vm1183_vm0, %v1205_v61, %v1207_v36  ;;  %v1210_v0 = vsel %vm1183_vm0, %v1207_v36, %v1209_v4  ;;  %v1098_v45 = vmax.f32 %v762_v37, 0.0  ;;  %v7907_v46 = vpop.f32.mrb[40].mxu0 }
 0x16e   : > { %v9154_v47 = vmax.f32 %v1071_v35, %v1208_v42  ;;  %v9156_v48 = vmax.f32 %v1072_v38, %v1210_v0  ;;  %v1213_v49 = vrot.slane %v1099_v41, 4  ;;  %v777_v3 = vadd.f32 %v7907_v46, %v9071_v18  ;;  %v771_v50 = vpop.f32.mrb[41].mxu0 }
 0x16f   : > { %v1211_v51 = vrot.slane %v1098_v45, 4  ;;  %v772_v9 = vadd.f32 %v9071_v18, %v771_v50  ;;  %v1077_v41 = vmax.f32 %v657_v11, 0.0  ;;  %v1078_v42 = vmax.f32 %v662_v30, 0.0 }
 0x170   : > { %v1101_v57 = vmax.f32 %v777_v3, 0.0  ;;  %v672_v0 = vadd.f32 %v9071_v18, %v9062_v15  ;;  %v677_v15 = vadd.f32 %v9060_v14, %v9071_v18 }
 0x171   : > { %v1212_v58 = vsel %vm1183_vm0, %v1209_v4, %v1211_v51  ;;  %v1214_v61 = vsel %vm1183_vm0, %v1211_v51, %v1213_v49  ;;  %v1100_v63 = vmax.f32 %v772_v9, 0.0  ;;  %v7910_v19 = vpop.f32.mrb[42].mxu0 }
 0x172   : > { %v9166_v2 = vmax.f32 %v1073_v52, %v1212_v58  ;;  %v9168_v20 = vmax.f32 %v1074_v53, %v1214_v61  ;;  %v1217_v8 = vrot.slane %v1101_v57, 4  ;;  %v787_v5 = vadd.f32 %v7910_v19, %v9071_v18  ;;  %v781_v21 = vpop.f32.mrb[43].mxu0 }
 0x173   : > { %v1215_v24 = vrot.slane %v1100_v63, 4  ;;  %v782_v26 = vadd.f32 %v9071_v18, %v781_v21  ;;  %v1079_v53 = vmax.f32 %v667_v10, 0.0  ;;  %v1080_v58 = vmax.f32 %v672_v0, 0.0 }
 0x174   : > { %v1103_v31 = vmax.f32 %v787_v5, 0.0  ;;  %v682_v61 = vadd.f32 %v9071_v18, %v9066_v17  ;;  %v1081_v30 = vmax.f32 %v677_v15, 0.0  ;;  %v687_v17 = vadd.f32 %v9064_v16, %v9071_v18 }
 0x175   : > { %v1216_v32 = vsel %vm1183_vm0, %v1213_v49, %v1215_v24  ;;  %v1218_v4 = vsel %vm1183_vm0, %v1215_v24, %v1217_v8  ;;  %v1102_v1 = vmax.f32 %v782_v26, 0.0  ;;  %v7913_v34 = vpop.f32.mrb[44].mxu0 }
 0x176   : > { %v9178_v35 = vmax.f32 %v1075_v23, %v1216_v32  ;;  %v9180_v36 = vmax.f32 %v1076_v27, %v1218_v4  ;;  %v1221_v37 = vrot.slane %v1103_v31, 4  ;;  %v797_v7 = vadd.f32 %v7913_v34, %v9071_v18  ;;  %v791_v38 = vpop.f32.mrb[45].mxu0 }
 0x177   : > { %v1219_v40 = vrot.slane %v1102_v1, 4  ;;  %v792_v13 = vadd.f32 %v9071_v18, %v791_v38  ;;  %v1082_v31 = vmax.f32 %v682_v61, 0.0 }
 0x178   : > { %v1105_v45 = vmax.f32 %v797_v7, 0.0 }
 0x179   : > { %v1220_v46 = vsel %vm1183_vm0, %v1217_v8, %v1219_v40  ;;  %v1222_v49 = vsel %vm1183_vm0, %v1219_v40, %v1221_v37  ;;  %v1104_v3 = vmax.f32 %v792_v13, 0.0  ;;  %v7916_v50 = vpop.f32.mrb[46].mxu0  ;;  %v1083_v40 = vmax.f32 %v687_v17, 0.0 }
 0x17a   : > { %v9190_v6 = vmax.f32 %v1077_v41, %v1220_v46  ;;  %v9192_v51 = vmax.f32 %v1078_v42, %v1222_v49  ;;  %v1225_v12 = vrot.slane %v1105_v45, 4  ;;  %v807_v9 = vadd.f32 %v7916_v50, %v9071_v18  ;;  %v801_v52 = vpop.f32.mrb[47].mxu0 }
 0x17b   : > { %v1223_v56 = vrot.slane %v1104_v3, 4  ;;  %v802_v57 = vadd.f32 %v9071_v18, %v801_v52 }
 0x17c   : > { %v1107_v63 = vmax.f32 %v807_v9, 0.0 }
 0x17d   : > { %v1224_v19 = vsel %vm1183_vm0, %v1221_v37, %v1223_v56  ;;  %v1226_v8 = vsel %vm1183_vm0, %v1223_v56, %v1225_v12  ;;  %v1106_v5 = vmax.f32 %v802_v57, 0.0  ;;  %v7919_v21 = vpop.f32.mrb[48].mxu0 }
 0x17e   : > { %v9202_v23 = vmax.f32 %v1079_v53, %v1224_v19  ;;  %v9204_v24 = vmax.f32 %v1080_v58, %v1226_v8  ;;  %v1229_v26 = vrot.slane %v1107_v63, 4  ;;  %v811_v11 = vpop.f32.mrb[49].mxu0 }
 0x17f   : > { %v1227_v27 = vrot.slane %v1106_v5, 4  ;;  %v812_v14 = vadd.f32 %v9071_v18, %v811_v11 }
 0x180   : > { %11844 = vst [vmem:[#allocation14_spill] sm:$0xff] %v9202_v23  ;;  %11845 = vst [vmem:[#allocation15_spill] sm:$0xff] %v9204_v24 }
 0x181   : > { %v1228_v32 = vsel %vm1183_vm0, %v1225_v12, %v1227_v27  ;;  %v1230_v4 = vsel %vm1183_vm0, %v1227_v27, %v1229_v26  ;;  %v1108_v1 = vmax.f32 %v812_v14, 0.0  ;;  %v7922_v34 = vpop.f32.mrb[50].mxu0 }
 0x182   : > { %v9211_v37 = vmax.f32 %v1081_v30, %v1228_v32  ;;  %v9213_v7 = vmax.f32 %v1082_v31, %v1230_v4  ;;  %v821_v38 = vpop.f32.mrb[51].mxu0  ;;  %v817_v31 = vadd.f32 %v7919_v21, %v9071_v18 }
 0x183   : > { %v1231_v10 = vrot.slane %v1108_v1, 4  ;;  %v822_v32 = vadd.f32 %v9071_v18, %v821_v38  ;;  %v827_v1 = vadd.f32 %v7922_v34, %v9071_v18 }
 0x184   : > { %11846 = vst [vmem:[#allocation16_spill] sm:$0xff] %v9211_v37  ;;  %11847 = vst [vmem:[#allocation17_spill] sm:$0xff] %v9213_v7  ;;  %v1109_v34 = vmax.f32 %v817_v31, 0.0 }
 0x185   : > { %v1232_v13 = vsel %vm1183_vm0, %v1229_v26, %v1231_v10  ;;  %v9218_v41 = vmax.f32 %v1084_v25, %v1231_v10  ;;  %v7925_v16 = vpop.f32.mrb[52].mxu0  ;;  %v1111_v7 = vmax.f32 %v827_v1, 0.0 }
 0x186   : > { %v9220_v42 = vmax.f32 %v1083_v40, %v1232_v13  ;;  %v831_v0 = vpop.f32.mrb[53].mxu0  ;;  %v837_v30 = vadd.f32 %v7925_v16, %v9071_v18 }
 0x187   : > { %11848 = vst [vmem:[#allocation18_spill] sm:$0xff] %v9218_v41 }
 0x188   : > { %11849 = vst [vmem:[#allocation19_spill] sm:$0xff] %v9220_v42  ;;  %v1113_v23 = vmax.f32 %v837_v30, 0.0 }
 0x189   : > { %v9222_v45 = vpop.f32.mrb[54].mxu0 }
 0x18a   : > { %v841_v46 = vpop.f32.mrb[55].mxu0 }
 0x18b   : > { %v842_v31 = vadd.f32 %v9071_v18, %v841_v46 }
 0x18d   : > { %v9224_v49 = vpop.f32.mrb[56].mxu0 }
 0x18e   : > { %v9226_v3 = vpop.f32.mrb[57].mxu0 }
 0x191   : > { %v9228_v50 = vpop.f32.mrb[58].mxu0 }
 0x192   : > { %v9230_v12 = vpop.f32.mrb[59].mxu0 }
 0x195   : > { %v9232_v9 = vpop.f32.mrb[60].mxu0 }
 0x196   : > { %v9234_v22 = vpop.f32.mrb[61].mxu0 }
 0x199   : > { %v9236_v25 = vpop.f32.mrb[62].mxu0 }
 0x19a   : > { %v9238_v52 = vpop.f32.mrb[63].mxu0 }
 0x19d   : > { %v9240_v53 = vpop.f32.mrb[64].mxu0 }
 0x19e   : > { %v9242_v56 = vpop.f32.mrb[65].mxu0 }
 0x1a1   : > { %v9244_v57 = vpop.f32.mrb[66].mxu0 }
 0x1a2   : > { %v9246_v15 = vpop.f32.mrb[67].mxu0 }
 0x1a5   : > { %v9248_v58 = vpop.f32.mrb[68].mxu0 }
 0x1a6   : > { %v9250_v61 = vpop.f32.mrb[69].mxu0 }
 0x1a9   : > { %v9252_v63 = vpop.f32.mrb[70].mxu0 }
 0x1aa   : > { %v9254_v19 = vpop.f32.mrb[71].mxu0 }
 0x1ad   : > { %v7955_v8 = vpop.f32.mrb[72].mxu0 }
 0x1ae   : > { %v9256_v5 = vpop.f32.mrb[73].mxu0  ;;  %v9259_v26 = vadd.f32 %v7955_v8, %v9071_v18 }
 0x1b0   : > { %11850 = vst [vmem:[#allocation20_spill] sm:$0xff] %v9259_v26 }
 0x1b1   : > { %v7958_v11 = vpop.f32.mrb[74].mxu0 }
 0x1b2   : > { %v947_v27 = vadd.f32 %v7958_v11, %v9071_v18  ;;  %v941_v14 = vpop.f32.mrb[75].mxu0 }
 0x1b3   : > { %v942_v17 = vadd.f32 %v9071_v18, %v941_v14  ;;  %v11851_v14 = vmax.f32 %v9259_v26, 0.0 }
 0x1b4   : > { %v1135_v4 = vmax.f32 %v947_v27, 0.0  ;;  %v1110_v27 = vmax.f32 %v822_v32, 0.0 }
 0x1b5   : > { %v1134_v10 = vmax.f32 %v942_v17, 0.0  ;;  %v7961_v40 = vpop.f32.mrb[76].mxu0  ;;  %v1308_v42 = vrot.slane %v11851_v14, 4  ;;  %v832_v17 = vadd.f32 %v9071_v18, %v831_v0 }
 0x1b6   : > { %v1311_v13 = vrot.slane %v1135_v4, 4  ;;  %v957_v8 = vadd.f32 %v7961_v40, %v9071_v18  ;;  %v951_v11 = vpop.f32.mrb[77].mxu0 }
 0x1b7   : > { %v1309_v21 = vrot.slane %v1134_v10, 4  ;;  %v952_v38 = vadd.f32 %v9071_v18, %v951_v11  ;;  %v1112_v1 = vmax.f32 %v832_v17, 0.0 }
 0x1b8   : > { %v1137_v4 = vmax.f32 %v957_v8, 0.0 }
 0x1b9   : > { %v1310_v41 = vsel %vm1183_vm0, %v1308_v42, %v1309_v21  ;;  %v1312_v40 = vsel %vm1183_vm0, %v1309_v21, %v1311_v13  ;;  %v1136_v37 = vmax.f32 %v952_v38, 0.0  ;;  %v7964_v16 = vpop.f32.mrb[78].mxu0 }
 0x1ba   : > { %v1382_v24 = vmax.f32 %v1109_v34, %v1310_v41  ;;  %v1383_v26 = vmax.f32 %v1110_v27, %v1312_v40  ;;  %v1315_v14 = vrot.slane %v1137_v4, 4  ;;  %v967_v10 = vadd.f32 %v7964_v16, %v9071_v18  ;;  %v961_v11 = vpop.f32.mrb[79].mxu0 }
 0x1bb   : > { %v1313_v32 = vrot.slane %v1136_v37, 4  ;;  %v962_v0 = vadd.f32 %v9071_v18, %v961_v11  ;;  %v847_v41 = vadd.f32 %v9222_v45, %v9071_v18  ;;  %v1114_v27 = vmax.f32 %v842_v31, 0.0 }
 0x1bc   : > { %v1407_v42 = vmax.f32 %v9086_v39, %v1382_v24  ;;  %v1408_v8 = vmax.f32 %v9094_v54, %v1383_v26  ;;  %v1139_v21 = vmax.f32 %v967_v10, 0.0  ;;  %v9290_v45 = vadd.f32 %v9224_v49, %v9071_v18 }
 0x1bd   : > { %v1314_v38 = vsel %vm1183_vm0, %v1311_v13, %v1313_v32  ;;  %v1316_v30 = vsel %vm1183_vm0, %v1313_v32, %v1315_v14  ;;  %v1138_v34 = vmax.f32 %v962_v0, 0.0  ;;  %v7967_v46 = vpop.f32.mrb[80].mxu0  ;;  %v852_v4 = vadd.f32 %v9071_v18, %v9226_v3 }
 0x1be   : > { %1433 = vst.msk [vmem:[#allocation2] sm:$0xff] %vm1432_vm1, %v1407_v42  ;;  %v1384_v37 = vmax.f32 %v1111_v7, %v1314_v38  ;;  %v1385_v39 = vmax.f32 %v1112_v1, %v1316_v30  ;;  %v1319_v24 = vrot.slane %v1139_v21, 4  ;;  %v977_v54 = vadd.f32 %v7967_v46, %v9071_v18  ;;  %v971_v26 = vpop.f32.mrb[81].mxu0 }
 0x1bf   : > { %1435 = vst.msk [vmem:[#allocation2 + $0x8] sm:$0x3f] %vm1434_vm2, %v1408_v8  ;;  %v1317_v13 = vrot.slane %v1138_v34, 4  ;;  %v972_v17 = vadd.f32 %v9071_v18, %v971_v26  ;;  %v1115_v10 = vmax.f32 %v847_v41, 0.0  ;;  %v1117_v42 = vmax.f32 %v9290_v45, 0.0 }
 0x1c0   : > { %1438 = vst.msk [vmem:[#allocation2 + $0xa] sm:$0xc0] %vm1437_vm3, %v1408_v8  ;;  %v1409_v40 = vmax.f32 %v9096_v55, %v1384_v37  ;;  %v1410_v7 = vmax.f32 %v9106_v28, %v1385_v39  ;;  %v1141_v16 = vmax.f32 %v977_v54, 0.0  ;;  %v1116_v41 = vmax.f32 %v852_v4, 0.0 }
 0x1c1   : > { %v1318_v11 = vsel %vm1183_vm0, %v1315_v14, %v1317_v13  ;;  %v1320_v31 = vsel %vm1183_vm0, %v1317_v13, %v1319_v24  ;;  %v1140_v32 = vmax.f32 %v972_v17, 0.0  ;;  %v7970_v0 = vpop.f32.mrb[82].mxu0  ;;  %v862_v14 = vadd.f32 %v9071_v18, %v9230_v12 }
 0x1c2   : > { %1439 = vst.msk [vmem:[#allocation2 + $0x12] sm:$0xff] %vm1432_vm1, %v1409_v40  ;;  %v1386_v49 = vmax.f32 %v1113_v23, %v1318_v11  ;;  %v1387_v3 = vmax.f32 %v1114_v27, %v1320_v31  ;;  %v1323_v1 = vrot.slane %v1141_v16, 4  ;;  %v987_v55 = vadd.f32 %v7970_v0, %v9071_v18  ;;  %v981_v28 = vpop.f32.mrb[83].mxu0 }
 0x1c3   : > { %1441 = vst.msk [vmem:[#allocation2 + $0x1a] sm:$0xf] %vm1440_vm4, %v1410_v7  ;;  %v1321_v8 = vrot.slane %v1140_v32, 4  ;;  %v982_v21 = vadd.f32 %v9071_v18, %v981_v28  ;;  %v9311_v23 = vadd.f32 %v9228_v50, %v9071_v18  ;;  %v1118_v13 = vmax.f32 %v862_v14, 0.0 }
 0x1c4   : > { %1444 = vst.msk [vmem:[#allocation2 + $0x1c] sm:$0xf0] %vm1443_vm5, %v1410_v7  ;;  %v1411_v38 = vmax.f32 %v9108_v29, %v1386_v49  ;;  %v1412_v30 = vmax.f32 %v9118_v43, %v1387_v3  ;;  %v1143_v34 = vmax.f32 %v987_v55, 0.0  ;;  %v9323_v17 = vadd.f32 %v9232_v9, %v9071_v18 }
 0x1c5   : > { %v1322_v46 = vsel %vm1183_vm0, %v1319_v24, %v1321_v8  ;;  %v1324_v37 = vsel %vm1183_vm0, %v1321_v8, %v1323_v1  ;;  %v1142_v39 = vmax.f32 %v982_v21, 0.0  ;;  %v7973_v54 = vpop.f32.mrb[84].mxu0  ;;  %v1487_v24 = vld [vmem:[#allocation2] sm:$0xff]  ;;  %v872_v7 = vadd.f32 %v9071_v18, %v9234_v22 }
 0x1c6   : > { %v1771_v12 = vld [vmem:[#allocation2 + $0x3] sm:$0xff]  ;;  %1445 = vst.msk [vmem:[#allocation2 + $0x24] sm:$0xff] %vm1432_vm1, %v1411_v38  ;;  %v1388_v29 = vmax.f32 %v1115_v10, %v1322_v46  ;;  %v1389_v43 = vmax.f32 %v1116_v41, %v1324_v37  ;;  %v1327_v27 = vrot.slane %v1143_v34, 4  ;;  %v997_v50 = vadd.f32 %v7973_v54, %v9071_v18  ;;  %v991_v45 = vpop.f32.mrb[85].mxu0  ;;  %1507 = vst.msk [vmem:[#allocation3] sm:$0xff] %vm1432_vm1, %v1487_v24 }
 0x1c7   : > { %v1527_v26 = vld [vmem:[#allocation2 + $0x1] sm:$0xff]  ;;  %1447 = vst.msk [vmem:[#allocation2 + $0x2c] sm:$0x3] %vm1446_vm6, %v1412_v30  ;;  %1811 = vrot.lane.b32.xlu1 %v1771_v12, %s11766_s22  ;;  %v1325_v4 = vrot.slane %v1142_v39, 4  ;;  %v992_v40 = vadd.f32 %v9071_v18, %v991_v45  ;;  %v1119_v32 = vmax.f32 %v9311_v23, 0.0  ;;  %v1121_v21 = vmax.f32 %v9323_v17, 0.0 }
 0x1c8   : > { %1450 = vst.msk [vmem:[#allocation2 + $0x2e] sm:$0xfc] %vm1449_vm7, %v1412_v30  ;;  %1567 = vrot.lane.b32.xlu0 %v1527_v26, %s11770_s24  ;;  %v1413_v16 = vmax.f32 %v9120_v44, %v1388_v29  ;;  %v1414_v10 = vmax.f32 %v9130_v59, %v1389_v43  ;;  %v1145_v11 = vmax.f32 %v997_v50, 0.0  ;;  %v1488_v31 = vld [vmem:[#allocation2 + $0x8] sm:$0x3]  ;;  %v882_v41 = vadd.f32 %v9071_v18, %v9238_v52 }
 0x1c9   : > { %v1326_v0 = vsel %vm1183_vm0, %v1323_v1, %v1325_v4  ;;  %v1328_v9 = vsel %vm1183_vm0, %v1325_v4, %v1327_v27  ;;  %v1144_v49 = vmax.f32 %v992_v40, 0.0  ;;  %v7976_v3 = vpop.f32.mrb[86].mxu0  ;;  %v1893_v55 = vld [vmem:[#allocation2 + $0x4] sm:$0xff]  ;;  %v9334_v14 = vld [vmem:[#allocation2 + $0x10] sm:$0xff]  ;;  %1508 = vst.msk [vmem:[#allocation3 + $0x10] sm:$0x3] %vm1446_vm6, %v1488_v31  ;;  %v892_v17 = vadd.f32 %v9071_v18, %v9242_v56 }
 0x1ca   : > { %v1649_v28 = vld [vmem:[#allocation2 + $0x2] sm:$0xff]  ;;  %1451 = vst.msk [vmem:[#allocation2 + $0x36] sm:$0xff] %vm1432_vm1, %v1413_v16  ;;  %1453 = vst.msk [vmem:[#allocation2 + $0x40] sm:$0xff] %vm1432_vm1, %v1414_v10  ;;  %v1390_v44 = vmax.f32 %v1117_v42, %v1326_v0  ;;  %v1391_v59 = vmax.f32 %v1118_v13, %v1328_v9  ;;  %v1331_v22 = vrot.slane %v1145_v11, 4  ;;  %v1007_v8 = vadd.f32 %v7976_v3, %v9071_v18  ;;  %v1001_v1 = vpop.f32.mrb[87].mxu0 }
 0x1cb   : > { %1933 = vrot.lane.b32.xlu1 %v1893_v55, %s11786_s25  ;;  %1509 = vst.msk [vmem:[#allocation3 + $0x20] sm:$0xff] %vm1432_vm1, %v9334_v14  ;;  %v1329_v42 = vrot.slane %v1144_v49, 4  ;;  %v1002_v38 = vadd.f32 %v9071_v18, %v1001_v1  ;;  %v1120_v30 = vmax.f32 %v872_v7, 0.0  ;;  %v1528_v26 = vld [vmem:[#allocation2 + $0x9] sm:$0x3]  ;;  %v1122_v45 = vmax.f32 %v882_v41, 0.0 }
 0x1cc   : > { %1689 = vrot.lane.b32.xlu0 %v1649_v28, %s11768_s29  ;;  %v1415_v34 = vmax.f32 %v9132_v60, %v1390_v44  ;;  %v1416_v23 = vmax.f32 %v9142_v62, %v1391_v59  ;;  %v1147_v46 = vmax.f32 %v1007_v8, 0.0  ;;  %v1650_v29 = vld [vmem:[#allocation2 + $0xa] sm:$0x3]  ;;  %v9367_v16 = vadd.f32 %v9240_v53, %v9071_v18  ;;  %v1894_v0 = vld [vmem:[#allocation2 + $0xc] sm:$0x3] }
 0x1cd   : > { %v1330_v37 = vsel %vm1183_vm0, %v1327_v27, %v1329_v42  ;;  %v1332_v39 = vsel %vm1183_vm0, %v1329_v42, %v1331_v22  ;;  %v1146_v54 = vmax.f32 %v1002_v38, 0.0  ;;  %v7979_v12 = vpop.f32.mrb[88].mxu0  ;;  %v887_v27 = vadd.f32 %v9236_v25, %v9071_v18 }
 0x1ce   : > { %1454 = vst.msk [vmem:[#allocation2 + $0x48] sm:$0x3f] %vm1434_vm2, %v1415_v34  ;;  %v1392_v52 = vmax.f32 %v1119_v32, %v1330_v37  ;;  %v1393_v43 = vmax.f32 %v1120_v30, %v1332_v39  ;;  %v1335_v60 = vrot.slane %v1147_v46, 4  ;;  %v1017_v62 = vadd.f32 %v7979_v12, %v9071_v18  ;;  %v1011_v50 = vpop.f32.mrb[89].mxu0  ;;  %v1772_v32 = vld [vmem:[#allocation2 + $0xb] sm:$0x3] }
 0x1cf   : > { %1456 = vst.msk [vmem:[#allocation2 + $0x4a] sm:$0xc0] %vm1437_vm3, %v1415_v34  ;;  %1569 = vrot.lane.b32.xlu1 %v1528_v26, %s11770_s24  ;;  %v1333_v24 = vrot.slane %v1146_v54, 4  ;;  %v1012_v13 = vadd.f32 %v9071_v18, %v1011_v50  ;;  %v1123_v49 = vmax.f32 %v887_v27, 0.0  ;;  %v902_v3 = vadd.f32 %v9071_v18, %v9246_v15  ;;  %v2137_v34 = vld [vmem:[#allocation2 + $0x11] sm:$0xff] }
 0x1d0   : > { %1457 = vst.msk [vmem:[#allocation2 + $0x52] sm:$0xff] %vm1432_vm1, %v1416_v23  ;;  %1691 = vrot.lane.b32.xlu0 %v1650_v29, %s11768_s29  ;;  %v1417_v4 = vmax.f32 %v9144_v33, %v1392_v52  ;;  %v1418_v40 = vmax.f32 %v9154_v47, %v1393_v43  ;;  %v1149_v7 = vmax.f32 %v1017_v62, 0.0  ;;  %v1124_v59 = vmax.f32 %v892_v17, 0.0 }
 0x1d1   : > { %v1334_v10 = vsel %vm1183_vm0, %v1331_v22, %v1333_v24  ;;  %v1336_v25 = vsel %vm1183_vm0, %v1333_v24, %v1335_v60  ;;  %v1148_v11 = vmax.f32 %v1012_v13, 0.0  ;;  %v7982_v31 = vpop.f32.mrb[90].mxu0  ;;  %v9380_v44 = vld [vmem:[#allocation2 + $0x31] sm:$0xff]  ;;  %v1125_v41 = vmax.f32 %v9367_v16, 0.0 }
 0x1d2   : > { %1458 = vst.msk [vmem:[#allocation2 + $0x5a] sm:$0xf] %vm1440_vm4, %v1417_v4  ;;  %v1394_v33 = vmax.f32 %v1121_v21, %v1334_v10  ;;  %v1395_v47 = vmax.f32 %v1122_v45, %v1336_v25  ;;  %v1339_v56 = vrot.slane %v1149_v7, 4  ;;  %v1027_v53 = vadd.f32 %v7982_v31, %v9071_v18  ;;  %v1021_v9 = vpop.f32.mrb[91].mxu0  ;;  %v1491_v21 = vld [vmem:[#allocation2 + $0x20] sm:$0xff]  ;;  %v2259_v13 = vld [vmem:[#allocation2 + $0x12] sm:$0xff] }
 0x1d3   : > { %1460 = vst.msk [vmem:[#allocation2 + $0x5c] sm:$0xf0] %vm1443_vm5, %v1417_v4  ;;  %1813 = vrot.lane.b32.xlu1 %v1772_v32, %s11766_s22  ;;  %v1337_v55 = vrot.slane %v1148_v11, 4  ;;  %v1022_v28 = vadd.f32 %v9071_v18, %v1021_v9  ;;  %v907_v54 = vadd.f32 %v9244_v57, %v9071_v18  ;;  %v1126_v12 = vmax.f32 %v902_v3, 0.0 }
 0x1d4   : > { %1461 = vst.msk [vmem:[#allocation2 + $0x64] sm:$0xff] %vm1432_vm1, %v1418_v40  ;;  %1935 = vrot.lane.b32.xlu0 %v1894_v0, %s11786_s25  ;;  %v1419_v22 = vmax.f32 %v9156_v48, %v1394_v33  ;;  %v1420_v8 = vmax.f32 %v9166_v2, %v1395_v47  ;;  %v1151_v1 = vmax.f32 %v1027_v53, 0.0  ;;  %3377 = vst.msk [vmem:[#allocation3 + $0x8] sm:$0xff] %vm1432_vm1, %v9380_v44  ;;  %v2381_v53 = vld [vmem:[#allocation2 + $0x13] sm:$0xff] }
 0x1d5   : > { %v1338_v42 = vsel %vm1183_vm0, %v1335_v60, %v1337_v55  ;;  %v1340_v15 = vsel %vm1183_vm0, %v1337_v55, %v1339_v56  ;;  %v1150_v38 = vmax.f32 %v1022_v28, 0.0  ;;  %v7985_v30 = vpop.f32.mrb[92].mxu0  ;;  %v9389_v23 = vld [vmem:[#allocation2 + $0x41] sm:$0xff]  ;;  %1511 = vst.msk [vmem:[#allocation3 + $0x40] sm:$0xff] %vm1432_vm1, %v1491_v21  ;;  %v912_v43 = vadd.f32 %v9071_v18, %v9250_v61 }
 0x1d6   : > { %1462 = vst.msk [vmem:[#allocation2 + $0x6c] sm:$0x3] %vm1446_vm6, %v1419_v22  ;;  %v1396_v48 = vmax.f32 %v1123_v49, %v1338_v42  ;;  %v1397_v2 = vmax.f32 %v1124_v59, %v1340_v15  ;;  %v1343_v46 = vrot.slane %v1151_v1, 4  ;;  %v1037_v37 = vadd.f32 %v7985_v30, %v9071_v18  ;;  %v1031_v39 = vpop.f32.mrb[93].mxu0  ;;  %v11852_v1 = vld [vmem:[#allocation14_spill] sm:$0xff]  ;;  %v2503_v30 = vld [vmem:[#allocation2 + $0x14] sm:$0xff] }
 0x1d7   : > { %1464 = vst.msk [vmem:[#allocation2 + $0x6e] sm:$0xfc] %vm1449_vm7, %v1419_v22  ;;  %2177 = vrot.lane.b32.xlu1 %v2137_v34, %s11792_s30  ;;  %v1341_v26 = vrot.slane %v1150_v38, 4  ;;  %v1032_v29 = vadd.f32 %v9071_v18, %v1031_v39  ;;  %v9404_v52 = vld [vmem:[#allocation2 + $0x51] sm:$0xff]  ;;  %v917_v57 = vadd.f32 %v9248_v58, %v9071_v18  ;;  %v1127_v58 = vmax.f32 %v907_v54, 0.0 }
 0x1d8   : > { %1465 = vst.msk [vmem:[#allocation2 + $0x76] sm:$0xff] %vm1432_vm1, %v1420_v8  ;;  %2055 = vrot.lane.b32.xlu0 %v9334_v14, %s11778_s12  ;;  %3379 = vst.msk [vmem:[#allocation3 + $0x28] sm:$0xff] %vm1432_vm1, %v9389_v23  ;;  %v1421_v60 = vmax.f32 %v9168_v20, %v1396_v48  ;;  %v1422_v62 = vmax.f32 %v9178_v35, %v1397_v2  ;;  %v1153_v14 = vmax.f32 %v1037_v37, 0.0  ;;  %v1128_v10 = vmax.f32 %v912_v43, 0.0  ;;  %v11853_v37 = vld [vmem:[#allocation15_spill] sm:$0xff]  ;;  %v11854_v54 = vld [vmem:[#allocation16_spill] sm:$0xff] }
 0x1d9   : > { %3381 = vst.msk [vmem:[#allocation3 + $0x48] sm:$0xff] %vm1432_vm1, %v9404_v52  ;;  %v1342_v50 = vsel %vm1183_vm0, %v1339_v56, %v1341_v26  ;;  %v1344_v27 = vsel %vm1183_vm0, %v1341_v26, %v1343_v46  ;;  %v1152_v45 = vmax.f32 %v1032_v29, 0.0  ;;  %v7988_v24 = vpop.f32.mrb[94].mxu0  ;;  %v922_v40 = vadd.f32 %v9071_v18, %v9254_v19  ;;  %v11855_v26 = vld [vmem:[#allocation20_spill] sm:$0xff] }
 0x1da   : > { %1467 = vst.msk [vmem:[#allocation2 + $0x80] sm:$0xff] %vm1432_vm1, %v1421_v60  ;;  %v1398_v20 = vmax.f32 %v1125_v41, %v1342_v50  ;;  %v1399_v35 = vmax.f32 %v1126_v12, %v1344_v27  ;;  %v1347_v61 = vrot.slane %v1153_v14, 4  ;;  %v1047_v17 = vadd.f32 %v7988_v24, %v9071_v18  ;;  %v1041_v4 = vpop.f32.mrb[95].mxu0  ;;  %v3358_v60 = vld [vmem:[#allocation2 + $0x39] sm:$0x3] }
 0x1db   : > { %1468 = vst.msk [vmem:[#allocation2 + $0x88] sm:$0x3f] %vm1434_vm2, %v1422_v62  ;;  %1571 = vrot.lane.b32.xlu1 %v2137_v34, %s11770_s24  ;;  %v1345_v7 = vrot.slane %v1152_v45, 4  ;;  %v1042_v16 = vadd.f32 %v9071_v18, %v1041_v4  ;;  %v1129_v32 = vmax.f32 %v917_v57, 0.0  ;;  %v927_v3 = vadd.f32 %v9252_v63, %v9071_v18  ;;  %v9444_v34 = vld [vmem:[#allocation2 + $0x61] sm:$0xff]  ;;  %s11788_s24 = smov 88  }
 0x1dc   : > { %1470 = vst.msk [vmem:[#allocation2 + $0x8a] sm:$0xc0] %vm1437_vm3, %v1422_v62  ;;  %2299 = vrot.lane.b32.xlu0 %v2259_v13, %s11776_s14  ;;  %v1423_v25 = vmax.f32 %v9180_v36, %v1398_v20  ;;  %v1424_v11 = vmax.f32 %v9190_v6, %v1399_v35  ;;  %v1155_v31 = vmax.f32 %v1047_v17, 0.0  ;;  %v1130_v55 = vmax.f32 %v922_v40, 0.0  ;;  %v1490_v62 = vld [vmem:[#allocation2 + $0x18] sm:$0x3] }
 0x1dd   : > { %v1346_v0 = vsel %vm1183_vm0, %v1343_v46, %v1345_v7  ;;  %v1348_v33 = vsel %vm1183_vm0, %v1345_v7, %v1347_v61  ;;  %v1154_v47 = vmax.f32 %v1042_v16, 0.0  ;;  %v7991_v56 = vpop.f32.mrb[96].mxu0  ;;  %v932_v22 = vadd.f32 %v9071_v18, %v9256_v5  ;;  %v1495_v5 = vld [vmem:[#allocation2 + $0x40] sm:$0xff]  ;;  %3383 = vst.msk [vmem:[#allocation3 + $0x68] sm:$0xff] %vm1432_vm1, %v9444_v34  ;;  %v2382_v50 = vld [vmem:[#allocation2 + $0x1b] sm:$0x3] }
 0x1de   : > { %1471 = vst.msk [vmem:[#allocation2 + $0x92] sm:$0xff] %vm1432_vm1, %v1423_v25  ;;  %v1400_v19 = vmax.f32 %v1127_v58, %v1346_v0  ;;  %v1401_v9 = vmax.f32 %v1128_v10, %v1348_v33  ;;  %v1351_v36 = vrot.slane %v1155_v31, 4  ;;  %v1057_v6 = vadd.f32 %v7991_v56, %v9071_v18  ;;  %v1051_v49 = vpop.f32.mrb[97].mxu0  ;;  %1515 = vst.msk [vmem:[#allocation3 + $0x80] sm:$0xff] %vm1432_vm1, %v1495_v5  ;;  %v2016_v27 = vld [vmem:[#allocation2 + $0x18] sm:$0x3] }
 0x1df   : > { %1472 = vst.msk [vmem:[#allocation2 + $0x9a] sm:$0xf] %vm1440_vm4, %v1424_v11  ;;  %1693 = vrot.lane.b32.xlu1 %v2259_v13, %s11768_s29  ;;  %v1349_v28 = vrot.slane %v1154_v47, 4  ;;  %v1052_v59 = vadd.f32 %v9071_v18, %v1051_v49  ;;  %v1131_v48 = vmax.f32 %v927_v3, 0.0  ;;  %v1132_v46 = vmax.f32 %v932_v22, 0.0  ;;  %v11857_v45 = vld [vmem:[#allocation18_spill] sm:$0xff] }
 0x1e0   : > { %1474 = vst.msk [vmem:[#allocation2 + $0x9c] sm:$0xf0] %vm1443_vm5, %v1424_v11  ;;  %2421 = vrot.lane.b32.xlu0 %v2381_v53, %s11774_s15  ;;  %v1425_v8 = vmax.f32 %v9192_v51, %v1400_v19  ;;  %v1426_v21 = vmax.f32 %v11852_v1, %v1401_v9  ;;  %v1157_v41 = vmax.f32 %v1057_v6, 0.0  ;;  %v11856_v29 = vmax.f32 %v11855_v26, 0.0  ;;  %v11858_v35 = vld [vmem:[#allocation17_spill] sm:$0xff]  ;;  %v11859_v17 = vld [vmem:[#allocation19_spill] sm:$0xff] }
 0x1e1   : > { %v1350_v42 = vsel %vm1183_vm0, %v1347_v61, %v1349_v28  ;;  %v1352_v15 = vsel %vm1183_vm0, %v1349_v28, %v1351_v36  ;;  %v1156_v38 = vmax.f32 %v1052_v59, 0.0  ;;  %3378 = vst.msk [vmem:[#allocation3 + $0x18] sm:$0x3] %vm1446_vm6, %v3358_v60  ;;  %1510 = vst.msk [vmem:[#allocation3 + $0x30] sm:$0x3] %vm1446_vm6, %v1490_v62  ;;  %v2017_v58 = vld [vmem:[#allocation2 + $0x20] sm:$0xff] }
 0x1e2   : > { %1475 = vst.msk [vmem:[#allocation2 + $0xa4] sm:$0xff] %vm1432_vm1, %v1425_v8  ;;  %v1402_v18 = vmax.f32 %v1129_v32, %v1350_v42  ;;  %v1403_v63 = vmax.f32 %v1130_v55, %v1352_v15  ;;  %v1355_v51 = vrot.slane %v1157_v41, 4  ;;  %v2138_v40 = vld [vmem:[#allocation2 + $0x19] sm:$0x3]  ;;  %v3360_v7 = vld [vmem:[#allocation2 + $0x49] sm:$0x3] }
 0x1e3   : > { %1476 = vst.msk [vmem:[#allocation2 + $0xac] sm:$0x3] %vm1446_vm6, %v1426_v21  ;;  %1815 = vrot.lane.b32.xlu1 %v2381_v53, %s11766_s22  ;;  %v1353_v2 = vrot.slane %v1156_v38, 4  ;;  %3380 = vst.msk [vmem:[#allocation3 + $0x38] sm:$0x3] %vm1446_vm6, %v3360_v7  ;;  %v4357_v25 = vld [vmem:[%s11756_s3] sm:$0xff] }
 0x1e4   : > { %1478 = vst.msk [vmem:[#allocation2 + $0xae] sm:$0xfc] %vm1449_vm7, %v1426_v21  ;;  %2543 = vrot.lane.b32.xlu0 %v2503_v30, %s11772_s13  ;;  %v1427_v39 = vmax.f32 %v11853_v37, %v1402_v18  ;;  %v1428_v12 = vmax.f32 %v11854_v54, %v1403_v63  ;;  %v1406_v43 = vmax.f32 %v11856_v29, %v1355_v51  ;;  %v2626_v16 = vld [vmem:[#allocation2 + $0x28] sm:$0x3]  ;;  %v2260_v10 = vld [vmem:[#allocation2 + $0x1a] sm:$0x3] }
 0x1e5   : > { %v1354_v14 = vsel %vm1183_vm0, %v1351_v36, %v1353_v2  ;;  %v1356_v57 = vsel %vm1183_vm0, %v1353_v2, %v1355_v51  ;;  %v4358_v11 = vld [vmem:[%s11756_s3 + $0x8] sm:$0xff]  ;;  %v8760_v31 = vmov 0.0|0.0   ;;  %v4359_v33 = vld [vmem:[%s11756_s3 + $0x10] sm:$0xff]  ;;  %v4360_v47 = vld [vmem:[%s11756_s3 + $0x18] sm:$0xff]  ;;  %s11860_s22 = smov 8   ;;  %s11790_s29 = smov 112  }
 0x1e6   : > { %1479 = vst.msk [vmem:[#allocation2 + $0xb6] sm:$0xff] %vm1432_vm1, %v1427_v39  ;;  %1481 = vst.msk [vmem:[#allocation2 + $0xc0] sm:$0xff] %vm1432_vm1, %v1428_v12  ;;  %v1431_v24 = vmax.f32 %v11857_v45, %v1406_v43  ;;  %v1404_v13 = vmax.f32 %v1131_v48, %v1354_v14  ;;  %v1405_v20 = vmax.f32 %v1132_v46, %v1356_v57  ;;  %8059 = vmatprep.subr.bf16.mxu1 %v8760_v31  ;;  %v9488_v0 = vld [vmem:[#allocation2 + $0x22] sm:$0xff]  ;;  %v1493_v56 = vld [vmem:[#allocation2 + $0x30] sm:$0xff]  ;;  %vm2115_vm0 = vcmask 392512  }
 0x1e7   : > { %2423 = vrot.lane.b32.xlu1 %v2382_v50, %s11774_s15  ;;  %v9485_v32 = vpack.c.bf16 %v4358_v11, %v4357_v25  ;;  %8243 = vmatprep.subr.bf16.mxu0 %v8760_v31  ;;  %v9502_v53 = vpack.c.bf16 %v4360_v47, %v4359_v33  ;;  %1513 = vst.msk [vmem:[#allocation3 + $0x60] sm:$0xff] %vm1432_vm1, %v1493_v56  ;;  %v1492_v19 = vld [vmem:[#allocation2 + $0x28] sm:$0x3]  ;;  %v2504_v36 = vld [vmem:[#allocation2 + $0x1c] sm:$0x3]  ;;  %v4361_v6 = vld [vmem:[%s11756_s3 + $0x20] sm:$0xff] }
 0x1e8   : > { %2057 = vrot.lane.b32.xlu0 %v2016_v27, %s11778_s12  ;;  %1486 = vst.msk [vmem:[#allocation2 + $0xda] sm:$0xf] %vm1440_vm4, %v1431_v24  ;;  %v1429_v61 = vmax.f32 %v11858_v35, %v1404_v13  ;;  %v1430_v4 = vmax.f32 %v11859_v17, %v1405_v20  ;;  %v9506_v9 = vld [vmem:[#allocation2 + $0x23] sm:$0xff]  ;;  %v4363_v28 = vld [vmem:[%s11756_s3 + $0x30] sm:$0xff]  ;;  %v4364_v59 = vld [vmem:[%s11756_s3 + $0x38] sm:$0xff]  ;;  %vm11807_vm4 = vcmask 654912  }
 0x1e9   : > { %8061 = vmatpush1.bf16.msra.mxu1 %v9485_v32  ;;  %8245 = vmatpush1.bf16.msra.mxu0 %v9485_v32  ;;  %1512 = vst.msk [vmem:[#allocation3 + $0x50] sm:$0x3] %vm1446_vm6, %v1492_v19  ;;  %v4362_v49 = vld [vmem:[%s11756_s3 + $0x28] sm:$0xff]  ;;  %v9538_v22 = vpack.c.bf16 %v4364_v59, %v4363_v28  ;;  %v9540_v8 = vld [vmem:[#allocation2 + $0x71] sm:$0xff]  ;;  %v4365_v38 = vld [vmem:[%s11756_s3 + $0x40] sm:$0xff]  ;;  %vm11802_vm5 = vcmask 386368  }
 0x1ea   : > { %1482 = vst.msk [vmem:[#allocation2 + $0xc8] sm:$0x3f] %vm1434_vm2, %v1429_v61  ;;  %8062 = vmatprep.subr.bf16.mxu1 %v8760_v31  ;;  %8246 = vmatprep.subr.bf16.mxu0 %v8760_v31  ;;  %v9521_v3 = vpack.c.bf16 %v4362_v49, %v4361_v6  ;;  %v9524_v55 = vld [vmem:[#allocation2 + $0x24] sm:$0xff]  ;;  %v1494_v21 = vld [vmem:[#allocation2 + $0x38] sm:$0x3]  ;;  %v1497_v15 = vld [vmem:[#allocation2 + $0x50] sm:$0xff] }
 0x1eb   : > { %1484 = vst.msk [vmem:[#allocation2 + $0xca] sm:$0xc0] %vm1437_vm3, %v1429_v61  ;;  %2059 = vrot.lane.b32.xlu1 %v2017_v58, %s11778_s12  ;;  %v9543_v1 = vld [vmem:[#allocation2 + $0x21] sm:$0xff]  ;;  %v9547_v41 = vld [vmem:[#allocation2 + $0x32] sm:$0xff]  ;;  %v3364_v26 = vld [vmem:[#allocation2 + $0x69] sm:$0x3] }
 0x1ec   : > { %1485 = vst.msk [vmem:[#allocation2 + $0xd2] sm:$0xff] %vm1432_vm1, %v1430_v4  ;;  %2179 = vrot.lane.b32.xlu0 %v2138_v40, %s11792_s30  ;;  %3385 = vst.msk [vmem:[#allocation3 + $0x88] sm:$0xff] %vm1432_vm1, %v9540_v8  ;;  %v1496_v42 = vld [vmem:[#allocation2 + $0x48] sm:$0x3]  ;;  %v9568_v63 = vld [vmem:[#allocation2 + $0x33] sm:$0xff]  ;;  %s11864_s12 = smov 96  }
 0x1ed   : > { %8064 = vmatpush1.bf16.msra.mxu1 %v9502_v53  ;;  %8248 = vmatpush1.bf16.msra.mxu0 %v9502_v53  ;;  %1514 = vst.msk [vmem:[#allocation3 + $0x70] sm:$0x3] %vm1446_vm6, %v1494_v21  ;;  %1516 = vst.msk [vmem:[#allocation3 + $0x90] sm:$0x3] %vm1446_vm6, %v1496_v42  ;;  %v9571_v51 = vld [vmem:[#allocation2 + $0x81] sm:$0xff]  ;;  %v4367_v5 = vld [vmem:[%s11756_s3 + $0x50] sm:$0xff] }
 0x1ee   : > { %8065 = vmatprep.subr.bf16.mxu1 %v8760_v31  ;;  %8249 = vmatprep.subr.bf16.mxu0 %v8760_v31  ;;  %1517 = vst.msk [vmem:[#allocation3 + $0xa0] sm:$0xff] %vm1432_vm1, %v1497_v15  ;;  %3387 = vst.msk [vmem:[#allocation3 + $0xa8] sm:$0xff] %vm1432_vm1, %v9571_v51  ;;  %v4368_v48 = vld [vmem:[%s11756_s3 + $0x58] sm:$0xff]  ;;  %v4369_v39 = vld [vmem:[%s11756_s3 + $0x60] sm:$0xff]  ;;  %v8765_v6 = vmov 0.0   ;;  %vm2359_vm2 = vcmask 523712  }
 0x1ef   : > { %2667 = vrot.lane.b32.xlu1 %v2626_v16, %s11782_s26  ;;  %v3362_v2 = vld [vmem:[#allocation2 + $0x59] sm:$0x3]  ;;  %v9590_v37 = vpack.c.bf16 %v4368_v48, %v4367_v5  ;;  %v4370_v54 = vld [vmem:[%s11756_s3 + $0x68] sm:$0xff]  ;;  %3384 = vst.msk [vmem:[#allocation3 + $0x78] sm:$0x3] %vm1446_vm6, %v3364_v26  ;;  %v9610_v29 = vld [vmem:[#allocation2 + $0x40] sm:$0xff] }
 0x1f0   : > { %2301 = vrot.lane.b32.xlu0 %v2260_v10, %s11776_s14  ;;  %v9588_v46 = vld [vmem:[#allocation2 + $0x34] sm:$0xff]  ;;  %3382 = vst.msk [vmem:[#allocation3 + $0x58] sm:$0x3] %vm1446_vm6, %v3362_v2  ;;  %v9604_v12 = vpack.c.bf16 %v4370_v54, %v4369_v39  ;;  %v4373_v57 = vld [vmem:[%s11756_s3 + $0x80] sm:$0xff]  ;;  %v4374_v50 = vld [vmem:[%s11756_s3 + $0x88] sm:$0xff]  ;;  %vm2481_vm3 = vcmask 589312  }
 0x1f1   : > { %8067 = vmatpush1.bf16.msra.mxu1 %v9521_v3  ;;  %8251 = vmatpush1.bf16.msra.mxu0 %v9521_v3  ;;  %v4371_v43 = vld [vmem:[%s11756_s3 + $0x70] sm:$0xff]  ;;  %v4372_v60 = vld [vmem:[%s11756_s3 + $0x78] sm:$0xff]  ;;  %v9638_v27 = vpack.c.bf16 %v4374_v50, %v4373_v57  ;;  %v2748_v24 = vld [vmem:[#allocation2 + $0x29] sm:$0x3]  ;;  %vm11797_vm7 = vcmask 517568  }
 0x1f2   : > { %8068 = vmatprep.subr.bf16.mxu1 %v8760_v31  ;;  %8252 = vmatprep.subr.bf16.mxu0 %v8760_v31  ;;  %v9623_v62 = vpack.c.bf16 %v4372_v60, %v4371_v43  ;;  %v3398_v14 = vld [vmem:[#allocation2 + $0x3a] sm:$0x3]  ;;  %v3638_v45 = vld [vmem:[#allocation2 + $0x3c] sm:$0x3]  ;;  %v4375_v13 = vld [vmem:[%s11756_s3 + $0x90] sm:$0xff] }
 0x1f3   : > { %2303 = vrot.lane.b32.xlu1 %v9488_v0, %s11776_s14  ;;  %v4376_v20 = vld [vmem:[%s11756_s3 + $0x98] sm:$0xff]  ;;  %v9658_v17 = vld [vmem:[#allocation2 + $0x30] sm:$0xff]  ;;  %v2870_v4 = vld [vmem:[#allocation2 + $0x2a] sm:$0x3]  ;;  %s11868_s14 = smov 112  }
 0x1f4   : > { %1937 = vrot.lane.b32.xlu0 %v2503_v30, %s11786_s25  ;;  %v4366_v30 = vld [vmem:[%s11756_s3 + $0x48] sm:$0xff]  ;;  %v9652_v35 = vpack.c.bf16 %v4376_v20, %v4375_v13  ;;  %v3366_v61 = vld [vmem:[#allocation2 + $0x79] sm:$0x3]  ;;  %v4379_v10 = vld [vmem:[%s11756_s3 + $0xb0] sm:$0xff] }
 0x1f5   : > { %8070 = vmatpush1.bf16.msra.mxu1 %v9538_v22  ;;  %8254 = vmatpush1.bf16.msra.mxu0 %v9538_v22  ;;  %v9565_v18 = vpack.c.bf16 %v4366_v30, %v4365_v38  ;;  %3386 = vst.msk [vmem:[#allocation3 + $0x98] sm:$0x3] %vm1446_vm6, %v3366_v61  ;;  %v4378_v40 = vld [vmem:[%s11756_s3 + $0xa8] sm:$0xff]  ;;  %v4380_v25 = vld [vmem:[%s11756_s3 + $0xb8] sm:$0xff]  ;;  %v9707_v49 = vld [vmem:[%s11756_s3 + $0xc0] sm:$0xff] }
 0x1f6   : > { %8071 = vmatprep.subr.bf16.mxu1 %v8760_v31  ;;  %8255 = vmatprep.subr.bf16.mxu0 %v8760_v31  ;;  %v2992_v16 = vld [vmem:[#allocation2 + $0x2b] sm:$0x3]  ;;  %v9684_v11 = vld [vmem:[#allocation2 + $0xa1] sm:$0xff]  ;;  %v9687_v33 = vpack.c.bf16 %v4380_v25, %v4379_v10  ;;  %v1498_v47 = vld [vmem:[#allocation2 + $0x58] sm:$0x3] }
 0x1f7   : > { %2425 = vrot.lane.b32.xlu1 %v9506_v9, %s11774_s15  ;;  %s11861_s15 = smov 16   ;;  %3391 = vst.msk [vmem:[#allocation3 + $0xe8] sm:$0xff] %vm1432_vm1, %v9684_v11  ;;  %v9695_v56 = vld [vmem:[#allocation2 + $0x42] sm:$0xff]  ;;  %v3114_v19 = vld [vmem:[#allocation2 + $0x2c] sm:$0x3]  ;;  %v1501_v59 = vld [vmem:[#allocation2 + $0x70] sm:$0xff] }
 0x1f8   : > { %2545 = vrot.lane.b32.xlu0 %v2504_v36, %s11772_s13  ;;  %1518 = vst.msk [vmem:[#allocation3 + $0xb0] sm:$0x3] %vm1446_vm6, %v1498_v47  ;;  %v3368_v36 = vld [vmem:[#allocation2 + $0x89] sm:$0x3]  ;;  %v1499_v21 = vld [vmem:[#allocation2 + $0x60] sm:$0xff]  ;;  %v9727_v38 = vld [vmem:[#allocation2 + $0x91] sm:$0xff] }
 0x1f9   : > { %8073 = vmatpush1.bf16.msra.mxu1 %v9565_v18  ;;  %8257 = vmatpush1.bf16.msra.mxu0 %v9565_v18  ;;  %3388 = vst.msk [vmem:[#allocation3 + $0xb8] sm:$0x3] %vm1446_vm6, %v3368_v36  ;;  %v9710_v28 = vld [vmem:[#allocation2 + $0x43] sm:$0xff]  ;;  %v3518_v15 = vld [vmem:[#allocation2 + $0x3b] sm:$0x3]  ;;  %v1505_v57 = vld [vmem:[#allocation2 + $0x90] sm:$0xff] }
 0x1fa   : > { %8074 = vmatprep.subr.bf16.mxu1 %v8760_v31  ;;  %8258 = vmatprep.subr.bf16.mxu0 %v8760_v31  ;;  %1521 = vst.msk [vmem:[#allocation3 + $0xe0] sm:$0xff] %vm1432_vm1, %v1501_v59  ;;  %1519 = vst.msk [vmem:[#allocation3 + $0xc0] sm:$0xff] %vm1432_vm1, %v1499_v21  ;;  %v9722_v42 = vld [vmem:[#allocation2 + $0x44] sm:$0xff]  ;;  %v3236_v30 = vld [vmem:[#allocation2 + $0x38] sm:$0x3] }
 0x1fb   : > { %2547 = vrot.lane.b32.xlu1 %v9524_v55, %s11772_s13  ;;  %s11780_s13 = smov 96   ;;  %3389 = vst.msk [vmem:[#allocation3 + $0xc8] sm:$0xff] %vm1432_vm1, %v9727_v38  ;;  %v1530_v5 = vld [vmem:[#allocation2 + $0x19] sm:$0x3]  ;;  %v1500_v2 = vld [vmem:[#allocation2 + $0x68] sm:$0x3] }
 0x1fc   : > { %2665 = vrot.lane.b32.xlu0 %v2017_v58, %s11782_s26  ;;  %s11784_s26 = smov 104   ;;  %v4377_v58 = vld [vmem:[%s11756_s3 + $0xa0] sm:$0xff]  ;;  %v1502_v48 = vld [vmem:[#allocation2 + $0x78] sm:$0x3]  ;;  %v1774_v39 = vld [vmem:[#allocation2 + $0x1b] sm:$0x3] }
 0x1fd   : > { %8076 = vmatpush1.bf16.msra.mxu1 %v9590_v37  ;;  %8260 = vmatpush1.bf16.msra.mxu0 %v9590_v37  ;;  %v9670_v7 = vpack.c.bf16 %v4378_v40, %v4377_v58  ;;  %1522 = vst.msk [vmem:[#allocation3 + $0xf0] sm:$0x3] %vm1446_vm6, %v1502_v48  ;;  %1520 = vst.msk [vmem:[#allocation3 + $0xd0] sm:$0x3] %vm1446_vm6, %v1500_v2  ;;  %v3372_v54 = vld [vmem:[#allocation2 + $0xa9] sm:$0x3] }
 0x1fe   : > { %8077 = vmatprep.subr.bf16.mxu1 %v8760_v31  ;;  %8261 = vmatprep.subr.bf16.mxu0 %v8760_v31  ;;  %v3370_v26 = vld [vmem:[#allocation2 + $0x99] sm:$0x3]  ;;  %3392 = vst.msk [vmem:[#allocation3 + $0xf8] sm:$0x3] %vm1446_vm6, %v3372_v54  ;;  %v9744_v43 = vld [vmem:[#allocation2 + $0xc1] sm:$0xff]  ;;  %v3373_v20 = vld [vmem:[#allocation2 + $0xb1] sm:$0xff] }
 0x1ff   : > { %3437 = vrot.lane.b32.xlu1 %v9547_v41, %s11860_s22  ;;  %3390 = vst.msk [vmem:[#allocation3 + $0xd8] sm:$0x3] %vm1446_vm6, %v3370_v26  ;;  %v1503_v50 = vld [vmem:[#allocation2 + $0x80] sm:$0xff]  ;;  %v1652_v13 = vld [vmem:[#allocation2 + $0x1a] sm:$0x3]  ;;  %v9767_v58 = vld [vmem:[#allocation2 + $0x50] sm:$0xff] }
 0x200   : > { %2787 = vrot.lane.b32.xlu0 %v9543_v1, %s11788_s24  ;;  %3395 = vst.msk [vmem:[#allocation3 + $0x128] sm:$0xff] %vm1432_vm1, %v9744_v43  ;;  %1525 = vst.msk [vmem:[#allocation3 + $0x120] sm:$0xff] %vm1432_vm1, %v1505_v57  ;;  %v3758_v40 = vld [vmem:[#allocation2 + $0x48] sm:$0x3]  ;;  %v3374_v21 = vld [vmem:[#allocation2 + $0xb9] sm:$0x3] }
 0x201   : > { %8079 = vmatpush1.bf16.msra.mxu1 %v9604_v12  ;;  %8263 = vmatpush1.bf16.msra.mxu0 %v9604_v12  ;;  %1523 = vst.msk [vmem:[#allocation3 + $0x100] sm:$0xff] %vm1432_vm1, %v1503_v50  ;;  %3393 = vst.msk [vmem:[#allocation3 + $0x108] sm:$0xff] %vm1432_vm1, %v3373_v20  ;;  %v2018_v25 = vld [vmem:[#allocation2 + $0x28] sm:$0x3]  ;;  %vm2237_vm1 = vcmask 458112  }
 0x202   : > { %8080 = vmatprep.subr.bf16.mxu1 %v8760_v31  ;;  %8264 = vmatprep.subr.bf16.mxu0 %v8760_v31  ;;  %v3878_v47 = vld [vmem:[#allocation2 + $0x49] sm:$0x3]  ;;  %3394 = vst.msk [vmem:[#allocation3 + $0x118] sm:$0x3] %vm1446_vm6, %v3374_v21  ;;  %v4118_v54 = vld [vmem:[#allocation2 + $0x4b] sm:$0x3] }
 0x203   : > { %3557 = vrot.lane.b32.xlu1 %v9568_v63, %s11861_s15  ;;  %v1504_v36 = vld [vmem:[#allocation2 + $0x88] sm:$0x3]  ;;  %v4238_v57 = vld [vmem:[#allocation2 + $0x4c] sm:$0x3] }
 0x204   : > { %2909 = vrot.lane.b32.xlu0 %v9488_v0, %s11780_s13  ;;  %s11862_s13 = smov 24   ;;  %v3376_v59 = vld [vmem:[#allocation2 + $0xc9] sm:$0x3]  ;;  %1524 = vst.msk [vmem:[#allocation3 + $0x110] sm:$0x3] %vm1446_vm6, %v1504_v36 }
 0x205   : > { %8082 = vmatpush1.bf16.msra.mxu1 %v9623_v62  ;;  %8266 = vmatpush1.bf16.msra.mxu0 %v9623_v62  ;;  %3396 = vst.msk [vmem:[#allocation3 + $0x138] sm:$0x3] %vm1446_vm6, %v3376_v59  ;;  %v2506_v59 = vld [vmem:[#allocation2 + $0x2c] sm:$0x3] }
 0x206   : > { %8083 = vmatprep.subr.bf16.mxu1 %v8760_v31  ;;  %8267 = vmatprep.subr.bf16.mxu0 %v8760_v31  ;;  %v3520_v21 = vld [vmem:[#allocation2 + $0x4b] sm:$0x3] }
 0x207   : > { %3677 = vrot.lane.b32.xlu1 %v9588_v46, %s11862_s13 }
 0x208   : > { %3031 = vrot.lane.b32.xlu0 %v9506_v9, %s11784_s26  ;;  %s11866_s26 = smov 104  }
 0x209   : > { %8085 = vmatpush1.bf16.msra.mxu1 %v9638_v27  ;;  %8269 = vmatpush1.bf16.msra.mxu0 %v9638_v27 }
 0x20a   : > { %8086 = vmatprep.subr.bf16.mxu1 %v8760_v31  ;;  %8270 = vmatprep.subr.bf16.mxu0 %v8760_v31 }
 0x20b   : > { %3797 = vrot.lane.b32.xlu1 %v9610_v29, %s11786_s25  ;;  %s11870_s25 = smov 64  }
 0x20c   : > { %3153 = vrot.lane.b32.xlu0 %v9524_v55, %s11790_s29  ;;  %s11865_s29 = smov 40  }
 0x20d   : > { %8088 = vmatpush1.bf16.msra.mxu1 %v9652_v35  ;;  %8272 = vmatpush1.bf16.msra.mxu0 %v9652_v35 }
 0x20e   : > { %8089 = vmatprep.subr.bf16.mxu1 %v8760_v31  ;;  %8273 = vmatprep.subr.bf16.mxu0 %v8760_v31 }
 0x20f   : > { %3439 = vrot.lane.b32.xlu1 %v3398_v14, %s11860_s22 }
 0x210   : > { %2181 = vrot.lane.b32.xlu0 %v9543_v1, %s11792_s30  ;;  %s11867_s30 = smov 48  }
 0x211   : > { %8091 = vmatpush1.bf16.msra.mxu1 %v9670_v7  ;;  %8275 = vmatpush1.bf16.msra.mxu0 %v9670_v7 }
 0x212   : > { %8092 = vmatprep.subr.bf16.mxu1 %v8760_v31  ;;  %8276 = vmatprep.subr.bf16.mxu0 %v8760_v31 }
 0x213   : > { %3679 = vrot.lane.b32.xlu1 %v3638_v45, %s11862_s13 }
 0x214   : > { %2789 = vrot.lane.b32.xlu0 %v2748_v24, %s11788_s24  ;;  %s11871_s24 = smov 88  }
 0x215   : > { %8094 = vmatpush1.bf16.msra.mxu1 %v9687_v33  ;;  %8278 = vmatpush1.bf16.msra.mxu0 %v9687_v33 }
 0x216   : > { %4448 = vmatprep.subr.mxu1 %v8765_v6  ;;  %5617 = vmatprep.subr.mxu0 %v8765_v6 }
 0x217   : > { %2669 = vrot.lane.b32.xlu1 %v9658_v17, %s11863_s16 }
 0x218   : > { %2911 = vrot.lane.b32.xlu0 %v2870_v4, %s11864_s12 }
 0x219   : > { %4449 = vmatpush1.msra.mxu1 %v9707_v49  ;;  %5618 = vmatpush1.msra.mxu0 %v9707_v49 }
 0x21a   : > { %8095 = vmatprep.subr.bf16.mxu1 %v8760_v31  ;;  %8279 = vmatprep.subr.bf16.mxu0 %v8760_v31 }
 0x21b   : > { %3917 = vrot.lane.b32.xlu1 %v9389_v23, %s11865_s29 }
 0x21c   : > { %3033 = vrot.lane.b32.xlu0 %v2992_v16, %s11866_s26 }
 0x21f   : > { %4037 = vrot.lane.b32.xlu1 %v9695_v56, %s11867_s30 }
 0x220   : > { %3155 = vrot.lane.b32.xlu0 %v3114_v19, %s11868_s14  ;;  %v1506_v19 = vld [vmem:[#allocation2 + $0x98] sm:$0x3] }
 0x221   : > { %1526 = vst.msk [vmem:[#allocation3 + $0x130] sm:$0x3] %vm1446_vm6, %v1506_v19  ;;  %vm11798_vm6 = vcmask 451968  }
 0x223   : > { %4157 = vrot.lane.b32.xlu1 %v9710_v28, %s11869_s0 }
 0x224   : > { %3275 = vrot.lane.b32.xlu0 %v9658_v17, %s11794_s1 }
 0x227   : > { %4277 = vrot.lane.b32.xlu1 %v9722_v42, %s11870_s25 }
 0x228   : > { %3559 = vrot.lane.b32.xlu0 %v3518_v15, %s11861_s15 }
 0x22b   : > { %2791 = vrot.lane.b32.xlu1 %v9380_v44, %s11871_s24 }
 0x22c   : > { %3277 = vrot.lane.b32.xlu0 %v3236_v30, %s11794_s1 }
 0x22f   : > { %1573 = vrot.lane.b32.xlu1 %v1530_v5, %s11860_s22  ;;  %v3998_v5 = vld [vmem:[#allocation2 + $0x4a] sm:$0x3] }
 0x230   : > { %2913 = vrot.lane.b32.xlu0 %v9547_v41, %s11864_s12 }
 0x233   : > { %1817 = vrot.lane.b32.xlu1 %v1774_v39, %s11862_s13  ;;  %v9788_v39 = vld [vmem:[#allocation2 + $0x52] sm:$0xff] }
 0x234   : > { %3035 = vrot.lane.b32.xlu0 %v9568_v63, %s11866_s26 }
 0x237   : > { %3441 = vrot.lane.b32.xlu1 %v9695_v56, %s11860_s22 }
 0x238   : > { %3157 = vrot.lane.b32.xlu0 %v9588_v46, %s11868_s14 }
 0x239   : > { %v1812_v60 = vpop.permute.xlu1 %1811 }
 0x23a   : > { %v1568_v14 = vpop.permute.xlu0 %1567 }
 0x23b   : > { %1628 = vst.msk [vmem:[#allocation3] sm:$0xff] %vm1627_vm8, %v1568_v14  ;;  %3561 = vrot.lane.b32.xlu1 %v9710_v28, %s11861_s15  ;;  %v9795_v14 = vld [vmem:[#allocation2 + $0x53] sm:$0xff] }
 0x23c   : > { %3279 = vrot.lane.b32.xlu0 %v9610_v29, %s11794_s1  ;;  %s11872_s1 = smov 32  }
 0x23d   : > { %v1934_v45 = vpop.permute.xlu1 %1933 }
 0x23e   : > { %v1690_v24 = vpop.permute.xlu0 %1689 }
 0x23f   : > { %1750 = vst.msk [vmem:[#allocation3] sm:$0xff] %vm11804_vm9, %v1690_v24  ;;  %3681 = vrot.lane.b32.xlu1 %v9722_v42, %s11862_s13  ;;  %v9802_v24 = vld [vmem:[#allocation2 + $0x54] sm:$0xff] }
 0x240   : > { %1872 = vst.msk [vmem:[#allocation3] sm:$0xff] %vm11806_vm10, %v1812_v60  ;;  %1695 = vrot.lane.b32.xlu0 %v1652_v13, %s11861_s15  ;;  %v1896_v13 = vld [vmem:[#allocation2 + $0x1c] sm:$0x3] }
 0x241   : > { %1994 = vst.msk [vmem:[#allocation3] sm:$0xff] %vm11805_vm11, %v1934_v45  ;;  %v1570_v61 = vpop.permute.xlu1 %1569 }
 0x242   : > { %v1692_v4 = vpop.permute.xlu0 %1691  ;;  %1630 = vst.msk [vmem:[#allocation3 + $0x10] sm:$0x3] %vm1629_vm12, %v1570_v61 }
 0x243   : > { %1752 = vst.msk [vmem:[#allocation3 + $0x10] sm:$0x3] %vm1751_vm13, %v1692_v4  ;;  %3801 = vrot.lane.b32.xlu1 %v9767_v58, %s11872_s1  ;;  %v2262_v4 = vld [vmem:[#allocation2 + $0x2a] sm:$0x3] }
 0x244   : > { %3799 = vrot.lane.b32.xlu0 %v3758_v40, %s11872_s1  ;;  %v2140_v40 = vld [vmem:[#allocation2 + $0x29] sm:$0x3] }
 0x245   : > { %v1814_v16 = vpop.permute.xlu1 %1813 }
 0x246   : > { %v1936_v10 = vpop.permute.xlu0 %1935  ;;  %1874 = vst.msk [vmem:[#allocation3 + $0x10] sm:$0x3] %vm1873_vm14, %v1814_v16 }
 0x247   : > { %1996 = vst.msk [vmem:[#allocation3 + $0x10] sm:$0x3] %vm11796_vm15, %v1936_v10  ;;  %2061 = vrot.lane.b32.xlu1 %v2018_v25, %s11865_s29  ;;  %v2384_v25 = vld [vmem:[#allocation2 + $0x2b] sm:$0x3]  ;;  %vm11799_vm15 = vcmask 583168  }
 0x248   : > { %3919 = vrot.lane.b32.xlu0 %v3878_v47, %s11865_s29  ;;  %v3400_v47 = vld [vmem:[#allocation2 + $0x4a] sm:$0x3] }
 0x249   : > { %v2178_v15 = vpop.permute.xlu1 %2177 }
 0x24a   : > { %v2056_v30 = vpop.permute.xlu0 %2055 }
 0x24b   : > { %2116 = vst.msk [vmem:[#allocation3] sm:$0xff] %vm2115_vm0, %v2056_v30  ;;  %3921 = vrot.lane.b32.xlu1 %v9404_v52, %s11865_s29 }
 0x24c   : > { %4039 = vrot.lane.b32.xlu0 %v3998_v5, %s11867_s30  ;;  %2238 = vst.msk [vmem:[#allocation3] sm:$0xff] %vm2237_vm1, %v2178_v15  ;;  %v2628_v5 = vld [vmem:[#allocation2 + $0x38] sm:$0x3] }
 0x24d   : > { %v1572_v48 = vpop.permute.xlu1 %1571 }
 0x24e   : > { %v2300_v2 = vpop.permute.xlu0 %2299  ;;  %1631 = vst.msk [vmem:[#allocation3 + $0x20] sm:$0xff] %vm1627_vm8, %v1572_v48  ;;  %v3640_v48 = vld [vmem:[#allocation2 + $0x4c] sm:$0x3] }
 0x24f   : > { %2360 = vst.msk [vmem:[#allocation3] sm:$0xff] %vm2359_vm2, %v2300_v2  ;;  %4041 = vrot.lane.b32.xlu1 %v9788_v39, %s11867_s30 }
 0x250   : > { %4159 = vrot.lane.b32.xlu0 %v4118_v54, %s11869_s0 }
 0x251   : > { %v1694_v26 = vpop.permute.xlu1 %1693 }
 0x252   : > { %v2422_v60 = vpop.permute.xlu0 %2421  ;;  %1753 = vst.msk [vmem:[#allocation3 + $0x20] sm:$0xff] %vm11804_vm9, %v1694_v26  ;;  %v2750_v26 = vld [vmem:[#allocation2 + $0x39] sm:$0x3] }
 0x253   : > { %2482 = vst.msk [vmem:[#allocation3] sm:$0xff] %vm2481_vm3, %v2422_v60  ;;  %4161 = vrot.lane.b32.xlu1 %v9795_v14, %s11869_s0  ;;  %v3760_v60 = vld [vmem:[#allocation2 + $0x58] sm:$0x3] }
 0x254   : > { %4279 = vrot.lane.b32.xlu0 %v4238_v57, %s11870_s25 }
 0x255   : > { %v1816_v50 = vpop.permute.xlu1 %1815 }
 0x256   : > { %v2544_v45 = vpop.permute.xlu0 %2543  ;;  %1875 = vst.msk [vmem:[#allocation3 + $0x20] sm:$0xff] %vm11806_vm10, %v1816_v50 }
 0x257   : > { %2604 = vst.msk [vmem:[#allocation3] sm:$0xff] %vm11807_vm4, %v2544_v45  ;;  %4281 = vrot.lane.b32.xlu1 %v9802_v24, %s11870_s25  ;;  %v2872_v45 = vld [vmem:[#allocation2 + $0x3a] sm:$0x3] }
 0x258   : > { %1939 = vrot.lane.b32.xlu0 %v1896_v13, %s11872_s1  ;;  %v3880_v13 = vld [vmem:[#allocation2 + $0x59] sm:$0x3] }
 0x259   : > { %v2424_v20 = vpop.permute.xlu1 %2423 }
 0x25a   : > { %v2058_v61 = vpop.permute.xlu0 %2057 }
 0x25b   : > { %2118 = vst.msk [vmem:[#allocation3 + $0x10] sm:$0x3] %vm11802_vm5, %v2058_v61  ;;  %2305 = vrot.lane.b32.xlu1 %v2262_v4, %s11869_s0  ;;  %v2994_v4 = vld [vmem:[#allocation2 + $0x3b] sm:$0x3]  ;;  %vm11812_vm5 = vcmask 917312  }
 0x25c   : > { %2183 = vrot.lane.b32.xlu0 %v2140_v40, %s11867_s30  ;;  %v4000_v40 = vld [vmem:[#allocation2 + $0x5a] sm:$0x3] }
 0x25d   : > { %v2060_v16 = vpop.permute.xlu1 %2059 }
 0x25e   : > { %v2180_v10 = vpop.permute.xlu0 %2179 }
 0x25f   : > { %2240 = vst.msk [vmem:[#allocation3 + $0x10] sm:$0x3] %vm11798_vm6, %v2180_v10  ;;  %2427 = vrot.lane.b32.xlu1 %v2384_v25, %s11870_s25  ;;  %vm11801_vm6 = vcmask 714368   ;;  %v3116_v25 = vld [vmem:[#allocation2 + $0x3c] sm:$0x3] }
 0x260   : > { %3443 = vrot.lane.b32.xlu0 %v3400_v47, %s11860_s22  ;;  %v4120_v47 = vld [vmem:[#allocation2 + $0x5b] sm:$0x3] }
 0x261   : > { %v2668_v19 = vpop.permute.xlu1 %2667 }
 0x262   : > { %v2302_v36 = vpop.permute.xlu0 %2301 }
 0x263   : > { %2362 = vst.msk [vmem:[#allocation3 + $0x10] sm:$0x3] %vm11797_vm7, %v2302_v36  ;;  %2549 = vrot.lane.b32.xlu1 %v2506_v59, %s11873_s2  ;;  %vm11800_vm7 = vcmask 648768   ;;  %v3238_v59 = vld [vmem:[#allocation2 + $0x48] sm:$0x3] }
 0x264   : > { %3563 = vrot.lane.b32.xlu0 %v3520_v21, %s11861_s15  ;;  %2484 = vst.msk [vmem:[#allocation3 + $0x10] sm:$0x3] %vm11799_vm15, %v2424_v20  ;;  %vm11808_vm15 = vcmask 720512   ;;  %v4240_v21 = vld [vmem:[#allocation2 + $0x5c] sm:$0x3] }
 0x265   : > { %v9817_v15 = vpop.permute.xlu1 %2303 }
 0x266   : > { %v1938_v30 = vpop.permute.xlu0 %1937 }
 0x267   : > { %1997 = vst.msk [vmem:[#allocation3 + $0x20] sm:$0xff] %vm11805_vm11, %v1938_v30  ;;  %2671 = vrot.lane.b32.xlu1 %v2628_v5, %s11863_s16 }
 0x268   : > { %2119 = vst.msk [vmem:[#allocation3 + $0x20] sm:$0xff] %vm2115_vm0, %v2060_v16  ;;  %3683 = vrot.lane.b32.xlu0 %v3640_v48, %s11862_s13 }
 0x269   : > { %v2426_v2 = vpop.permute.xlu1 %2425 }
 0x26a   : > { %v2546_v54 = vpop.permute.xlu0 %2545 }
 0x26b   : > { %2606 = vst.msk [vmem:[#allocation3 + $0x10] sm:$0x3] %vm11800_vm7, %v2546_v54  ;;  %2793 = vrot.lane.b32.xlu1 %v2750_v26, %s11871_s24  ;;  %vm2847_vm7 = vcmask 786112  }
 0x26c   : > { %3803 = vrot.lane.b32.xlu0 %v3760_v60, %s11872_s1  ;;  %2728 = vst.msk [vmem:[#allocation3 + $0x10] sm:$0x3] %vm11801_vm6, %v2668_v19  ;;  %vm2969_vm6 = vcmask 851712  }
 0x26d   : > { %v2548_v57 = vpop.permute.xlu1 %2547 }
 0x26e   : > { %v2666_v50 = vpop.permute.xlu0 %2665 }
 0x26f   : > { %2726 = vst.msk [vmem:[#allocation3] sm:$0xff] %vm11808_vm15, %v2666_v50  ;;  %2915 = vrot.lane.b32.xlu1 %v2872_v45, %s11864_s12 }
 0x270   : > { %3923 = vrot.lane.b32.xlu0 %v3880_v13, %s11865_s29 }
 0x271   : > { %v3438_v20 = vpop.permute.xlu1 %3437 }
 0x272   : > { %v2788_v61 = vpop.permute.xlu0 %2787  ;;  %3497 = vst.msk [vmem:[#allocation3 + $0x8] sm:$0xff] %vm1627_vm8, %v3438_v20 }
 0x273   : > { %2848 = vst.msk [vmem:[#allocation3] sm:$0xff] %vm2847_vm7, %v2788_v61  ;;  %3037 = vrot.lane.b32.xlu1 %v2994_v4, %s11866_s26 }
 0x274   : > { %4043 = vrot.lane.b32.xlu0 %v4000_v40, %s11867_s30 }
 0x275   : > { %v3558_v16 = vpop.permute.xlu1 %3557 }
 0x276   : > { %v2910_v10 = vpop.permute.xlu0 %2909  ;;  %3617 = vst.msk [vmem:[#allocation3 + $0x8] sm:$0xff] %vm11804_vm9, %v3558_v16  ;;  %vm11813_vm9 = vcmask 982912   ;;  %v1776_v16 = vld [vmem:[#allocation2 + $0x2b] sm:$0x3] }
 0x277   : > { %2970 = vst.msk [vmem:[#allocation3] sm:$0xff] %vm2969_vm6, %v2910_v10  ;;  %3159 = vrot.lane.b32.xlu1 %v3116_v25, %s11868_s14 }
 0x278   : > { %4163 = vrot.lane.b32.xlu0 %v4120_v47, %s11869_s0 }
 0x279   : > { %v3678_v19 = vpop.permute.xlu1 %3677 }
 0x27a   : > { %v3032_v36 = vpop.permute.xlu0 %3031  ;;  %3737 = vst.msk [vmem:[#allocation3 + $0x8] sm:$0xff] %vm11806_vm10, %v3678_v19  ;;  %vm11811_vm10 = vcmask 845568  }
 0x27b   : > { %3092 = vst.msk [vmem:[#allocation3] sm:$0xff] %vm11812_vm5, %v3032_v36  ;;  %3281 = vrot.lane.b32.xlu1 %v3238_v59, %s11874_s19 }
 0x27c   : > { %4283 = vrot.lane.b32.xlu0 %v4240_v21, %s11870_s25 }
 0x27d   : > { %v3798_v30 = vpop.permute.xlu1 %3797 }
 0x27e   : > { %v3154_v5 = vpop.permute.xlu0 %3153  ;;  %3857 = vst.msk [vmem:[#allocation3 + $0x8] sm:$0xff] %vm11805_vm11, %v3798_v30  ;;  %vm11815_vm11 = vcmask 779968   ;;  %v2386_v30 = vld [vmem:[#allocation2 + $0x3b] sm:$0x3] }
 0x27f   : > { %3214 = vst.msk [vmem:[#allocation3] sm:$0xff] %vm11813_vm9, %v3154_v5  ;;  %1697 = vrot.lane.b32.xlu1 %v9488_v0, %s11861_s15 }
 0x280   : > { %1575 = vrot.lane.b32.xlu0 %v9543_v1, %s11860_s22 }
 0x281   : > { %v3440_v48 = vpop.permute.xlu1 %3439 }
 0x282   : > { %v2182_v54 = vpop.permute.xlu0 %2181  ;;  %3498 = vst.msk [vmem:[#allocation3 + $0x18] sm:$0x3] %vm1629_vm12, %v3440_v48  ;;  %v1532_v48 = vld [vmem:[#allocation2 + $0x29] sm:$0x3] }
 0x283   : > { %2241 = vst.msk [vmem:[#allocation3 + $0x20] sm:$0xff] %vm2237_vm1, %v2182_v54  ;;  %1941 = vrot.lane.b32.xlu1 %v9524_v55, %s11872_s1 }
 0x284   : > { %2363 = vst.msk [vmem:[#allocation3 + $0x20] sm:$0xff] %vm2359_vm2, %v9817_v15  ;;  %1819 = vrot.lane.b32.xlu0 %v9506_v9, %s11862_s13 }
 0x285   : > { %2485 = vst.msk [vmem:[#allocation3 + $0x20] sm:$0xff] %vm2481_vm3, %v2426_v2  ;;  %v3680_v0 = vpop.permute.xlu1 %3679 }
 0x286   : > { %2607 = vst.msk [vmem:[#allocation3 + $0x20] sm:$0xff] %vm11807_vm4, %v2548_v57  ;;  %v2790_v1 = vpop.permute.xlu0 %2789  ;;  %vm11809_vm4 = vcmask 911168  }
 0x287   : > { %2850 = vst.msk [vmem:[#allocation3 + $0x10] sm:$0x3] %vm11815_vm11, %v2790_v1  ;;  %2185 = vrot.lane.b32.xlu1 %v9380_v44, %s11867_s30  ;;  %v2630_v1 = vld [vmem:[#allocation2 + $0x48] sm:$0x3] }
 0x288   : > { %2063 = vrot.lane.b32.xlu0 %v9658_v17, %s11865_s29 }
 0x289   : > { %v2670_v55 = vpop.permute.xlu1 %2669 }
 0x28a   : > { %v2912_v15 = vpop.permute.xlu0 %2911  ;;  %2729 = vst.msk [vmem:[#allocation3 + $0x20] sm:$0xff] %vm11808_vm15, %v2670_v55  ;;  %vm11810_vm15 = vcmask 976768   ;;  %v1654_v55 = vld [vmem:[#allocation2 + $0x2a] sm:$0x3] }
 0x28b   : > { %2972 = vst.msk [vmem:[#allocation3 + $0x10] sm:$0x3] %vm11811_vm10, %v2912_v15  ;;  %3445 = vrot.lane.b32.xlu1 %v9788_v39, %s11860_s22  ;;  %vm11816_vm10 = vcmask 588800  }
 0x28c   : > { %2307 = vrot.lane.b32.xlu0 %v9547_v41, %s11869_s0 }
 0x28d   : > { %v3918_v9 = vpop.permute.xlu1 %3917 }
 0x28e   : > { %v3034_v2 = vpop.permute.xlu0 %3033  ;;  %3977 = vst.msk [vmem:[#allocation3 + $0x8] sm:$0xff] %vm2115_vm0, %v3918_v9  ;;  %v2752_v9 = vld [vmem:[#allocation2 + $0x49] sm:$0x3] }
 0x28f   : > { %3094 = vst.msk [vmem:[#allocation3 + $0x10] sm:$0x3] %vm11809_vm4, %v3034_v2  ;;  %1583 = vrot.lane.b32.xlu1 %v9389_v23, %s11860_s22  ;;  %vm11814_vm4 = vcmask 1048512   ;;  %v1898_v2 = vld [vmem:[#allocation2 + $0x2c] sm:$0x3] }
 0x290   : > { %2429 = vrot.lane.b32.xlu0 %v9568_v63, %s11870_s25 }
 0x291   : > { %v4038_v17 = vpop.permute.xlu1 %4037 }
 0x292   : > { %v3156_v26 = vpop.permute.xlu0 %3155  ;;  %4097 = vst.msk [vmem:[#allocation3 + $0x8] sm:$0xff] %vm2237_vm1, %v4038_v17 }
 0x293   : > { %3216 = vst.msk [vmem:[#allocation3 + $0x10] sm:$0x3] %vm11810_vm15, %v3156_v26  ;;  %1827 = vrot.lane.b32.xlu1 %v9710_v28, %s11862_s13  ;;  %vm11825_vm15 = vcmask 1042368  }
 0x294   : > { %2551 = vrot.lane.b32.xlu0 %v9588_v46, %s11873_s2 }
 0x295   : > { %v4158_v60 = vpop.permute.xlu1 %4157 }
 0x296   : > { %v3276_v57 = vpop.permute.xlu0 %3275  ;;  %4217 = vst.msk [vmem:[#allocation3 + $0x8] sm:$0xff] %vm2359_vm2, %v4158_v60  ;;  %v2874_v60 = vld [vmem:[#allocation2 + $0x4a] sm:$0x3] }
 0x297   : > { %3336 = vst.msk [vmem:[#allocation3] sm:$0xff] %vm11814_vm4, %v3276_v57  ;;  %2071 = vrot.lane.b32.xlu1 %v9767_v58, %s11865_s29  ;;  %v2020_v57 = vld [vmem:[#allocation2 + $0x38] sm:$0x3] }
 0x298   : > { %2673 = vrot.lane.b32.xlu0 %v9610_v29, %s11863_s16 }
 0x299   : > { %v4278_v50 = vpop.permute.xlu1 %4277 }
 0x29a   : > { %v3560_v45 = vpop.permute.xlu0 %3559  ;;  %4337 = vst.msk [vmem:[#allocation3 + $0x8] sm:$0xff] %vm2481_vm3, %v4278_v50 }
 0x29b   : > { %3618 = vst.msk [vmem:[#allocation3 + $0x18] sm:$0x3] %vm1751_vm13, %v3560_v45  ;;  %2193 = vrot.lane.b32.xlu1 %v9404_v52, %s11867_s30 }
 0x29c   : > { %3738 = vst.msk [vmem:[#allocation3 + $0x18] sm:$0x3] %vm1873_vm14, %v3680_v0  ;;  %2795 = vrot.lane.b32.xlu0 %v9389_v23, %s11871_s24 }
 0x29d   : > { %v2792_v13 = vpop.permute.xlu1 %2791 }
 0x29e   : > { %v3278_v20 = vpop.permute.xlu0 %3277  ;;  %2851 = vst.msk [vmem:[#allocation3 + $0x20] sm:$0xff] %vm2847_vm7, %v2792_v13  ;;  %v4383_v10 = vld [vmem:[#allocation3] sm:$0xff]  ;;  %v2996_v13 = vld [vmem:[#allocation2 + $0x4b] sm:$0x3] }
 0x29f   : > { %3338 = vst.msk [vmem:[#allocation3 + $0x10] sm:$0x3] %vm11825_vm15, %v3278_v20  ;;  %2315 = vrot.lane.b32.xlu1 %v9788_v39, %s11869_s0  ;;  %v2142_v20 = vld [vmem:[#allocation2 + $0x39] sm:$0x3] }
 0x2a0   : > { %2917 = vrot.lane.b32.xlu0 %v9695_v56, %s11864_s12 }
 0x2a1   : > { %v1574_v61 = vpop.permute.xlu1 %1573  ;;  %v4384_v40 = vld [vmem:[#allocation3 + $0x8] sm:$0xff] }
 0x2a2   : > { %v2914_v4 = vpop.permute.xlu0 %2913  ;;  %1632 = vst.msk [vmem:[#allocation3 + $0x30] sm:$0x3] %vm1629_vm12, %v1574_v61  ;;  %7599 = vmatprep.mubr.msk.f32.mxu1 %vm11816_vm10, %v4384_v40  ;;  %v3118_v40 = vld [vmem:[#allocation2 + $0x4c] sm:$0x3] }
 0x2a3   : > { %2973 = vst.msk [vmem:[#allocation3 + $0x20] sm:$0xff] %vm2969_vm6, %v2914_v4  ;;  %1821 = vrot.lane.b32.xlu1 %v1776_v16, %s11862_s13  ;;  %4465 = vmatmul.mubr.f32.vlgmr.msra.gmra.mrb[0].mxu1 %v4383_v10  ;;  %v2264_v16 = vld [vmem:[#allocation2 + $0x3a] sm:$0x3] }
 0x2a4   : > { %3039 = vrot.lane.b32.xlu0 %v9710_v28, %s11866_s26  ;;  %8097 = vmatpush1.bf16.msra.mxu1 %v9485_v32 }
 0x2a5   : > { %v1818_v25 = vpop.permute.xlu1 %1817  ;;  %8098 = vmatprep.subr.bf16.mxu1 %v8760_v31 }
 0x2a6   : > { %v3036_v47 = vpop.permute.xlu0 %3035 }
 0x2a7   : > { %3095 = vst.msk [vmem:[#allocation3 + $0x20] sm:$0xff] %vm11812_vm5, %v3036_v47  ;;  %1579 = vrot.lane.b32.xlu1 %v9380_v44, %s11860_s22  ;;  %vm11875_vm5 = vcmask 195712  }
 0x2a8   : > { %3161 = vrot.lane.b32.xlu0 %v9722_v42, %s11868_s14  ;;  %8100 = vmatpush1.bf16.msra.mxu1 %v9502_v53 }
 0x2a9   : > { %v3442_v19 = vpop.permute.xlu1 %3441  ;;  %8101 = vmatprep.subr.bf16.mxu1 %v8760_v31 }
 0x2aa   : > { %v3158_v36 = vpop.permute.xlu0 %3157  ;;  %3499 = vst.msk [vmem:[#allocation3 + $0x28] sm:$0xff] %vm1627_vm8, %v3442_v19  ;;  %v3240_v19 = vld [vmem:[#allocation2 + $0x58] sm:$0x3] }
 0x2ab   : > { %3217 = vst.msk [vmem:[#allocation3 + $0x20] sm:$0xff] %vm11813_vm9, %v3158_v36  ;;  %1701 = vrot.lane.b32.xlu1 %v9547_v41, %s11861_s15  ;;  %vm11876_vm9 = vcmask 261312   ;;  %v4385_v36 = vld [vmem:[#allocation3 + $0x10] sm:$0x3] }
 0x2ac   : > { %3283 = vrot.lane.b32.xlu0 %v9767_v58, %s11874_s19  ;;  %8103 = vmatpush1.bf16.msra.mxu1 %v9521_v3 }
 0x2ad   : > { %v3562_v44 = vpop.permute.xlu1 %3561  ;;  %8104 = vmatprep.subr.bf16.mxu1 %v8760_v31 }
 0x2ae   : > { %v3280_v59 = vpop.permute.xlu0 %3279  ;;  %3619 = vst.msk [vmem:[#allocation3 + $0x28] sm:$0xff] %vm11875_vm5, %v3562_v44  ;;  %vm11877_vm5 = vcmask 326912  }
 0x2af   : > { %3339 = vst.msk [vmem:[#allocation3 + $0x20] sm:$0xff] %vm11814_vm4, %v3280_v59  ;;  %1823 = vrot.lane.b32.xlu1 %v9568_v63, %s11862_s13  ;;  %vm11878_vm4 = vcmask 320768  }
 0x2b0   : > { %1705 = vrot.lane.b32.xlu0 %v9695_v56, %s11861_s15  ;;  %8106 = vmatpush1.bf16.msra.mxu1 %v9538_v22 }
 0x2b1   : > { %v3682_v41 = vpop.permute.xlu1 %3681  ;;  %8107 = vmatprep.subr.bf16.mxu1 %v8760_v31 }
 0x2b2   : > { %v1696_v21 = vpop.permute.xlu0 %1695  ;;  %3739 = vst.msk [vmem:[#allocation3 + $0x28] sm:$0xff] %vm11876_vm9, %v3682_v41  ;;  %vm11879_vm9 = vcmask 386368  }
 0x2b3   : > { %1754 = vst.msk [vmem:[#allocation3 + $0x30] sm:$0x3] %vm1751_vm13, %v1696_v21  ;;  %2431 = vrot.lane.b32.xlu1 %v2386_v30, %s11870_s25  ;;  %v2508_v21 = vld [vmem:[#allocation2 + $0x3c] sm:$0x3] }
 0x2b4   : > { %1876 = vst.msk [vmem:[#allocation3 + $0x30] sm:$0x3] %vm1873_vm14, %v1818_v25  ;;  %1949 = vrot.lane.b32.xlu0 %v9722_v42, %s11872_s1  ;;  %8109 = vmatpush1.bf16.msra.mxu1 %v9565_v18 }
 0x2b5   : > { %v3802_v63 = vpop.permute.xlu1 %3801  ;;  %8110 = vmatprep.subr.bf16.mxu1 %v8760_v31 }
 0x2b6   : > { %v3800_v5 = vpop.permute.xlu0 %3799  ;;  %3859 = vst.msk [vmem:[#allocation3 + $0x28] sm:$0xff] %vm11877_vm5, %v3802_v63  ;;  %vm11881_vm5 = vcmask 517568  }
 0x2b7   : > { %3858 = vst.msk [vmem:[#allocation3 + $0x18] sm:$0x3] %vm11878_vm4, %v3800_v5  ;;  %2067 = vrot.lane.b32.xlu1 %v9610_v29, %s11865_s29  ;;  %vm11880_vm4 = vcmask 451968   ;;  %v1656_v5 = vld [vmem:[#allocation2 + $0x3a] sm:$0x3] }
 0x2b8   : > { %1577 = vrot.lane.b32.xlu0 %v1532_v48, %s11860_s22  ;;  %8112 = vmatpush1.bf16.msra.mxu1 %v9590_v37 }
 0x2b9   : > { %v2062_v54 = vpop.permute.xlu1 %2061  ;;  %8113 = vmatprep.subr.bf16.mxu1 %v8760_v31 }
 0x2ba   : > { %v3920_v0 = vpop.permute.xlu0 %3919 }
 0x2bb   : > { %3978 = vst.msk [vmem:[#allocation3 + $0x18] sm:$0x3] %vm11879_vm9, %v3920_v0  ;;  %2675 = vrot.lane.b32.xlu1 %v2630_v1, %s11863_s16  ;;  %vm11882_vm9 = vcmask 583168   ;;  %v2022_v1 = vld [vmem:[#allocation2 + $0x48] sm:$0x3] }
 0x2bc   : > { %1699 = vrot.lane.b32.xlu0 %v1654_v55, %s11861_s15  ;;  %8115 = vmatpush1.bf16.msra.mxu1 %v9604_v12 }
 0x2bd   : > { %v3922_v15 = vpop.permute.xlu1 %3921  ;;  %8116 = vmatprep.subr.bf16.mxu1 %v8760_v31 }
 0x2be   : > { %v4040_v29 = vpop.permute.xlu0 %4039  ;;  %3979 = vst.msk [vmem:[#allocation3 + $0x28] sm:$0xff] %vm2115_vm0, %v3922_v15  ;;  %v2144_v15 = vld [vmem:[#allocation2 + $0x49] sm:$0x3] }
 0x2bf   : > { %4098 = vst.msk [vmem:[#allocation3 + $0x18] sm:$0x3] %vm11880_vm4, %v4040_v29  ;;  %2797 = vrot.lane.b32.xlu1 %v2752_v9, %s11871_s24  ;;  %vm11883_vm4 = vcmask 320768   ;;  %v2266_v9 = vld [vmem:[#allocation2 + $0x4a] sm:$0x3] }
 0x2c0   : > { %1943 = vrot.lane.b32.xlu0 %v1898_v2, %s11872_s1  ;;  %8118 = vmatpush1.bf16.msra.mxu1 %v9623_v62 }
 0x2c1   : > { %v4042_v17 = vpop.permute.xlu1 %4041  ;;  %8119 = vmatprep.subr.bf16.mxu1 %v8760_v31 }
 0x2c2   : > { %v4160_v26 = vpop.permute.xlu0 %4159  ;;  %4099 = vst.msk [vmem:[#allocation3 + $0x28] sm:$0xff] %vm2237_vm1, %v4042_v17  ;;  %v1902_v17 = vld [vmem:[#allocation2 + $0x4c] sm:$0x3] }
 0x2c3   : > { %4218 = vst.msk [vmem:[#allocation3 + $0x18] sm:$0x3] %vm11881_vm5, %v4160_v26  ;;  %2919 = vrot.lane.b32.xlu1 %v2874_v60, %s11864_s12  ;;  %vm11884_vm5 = vcmask 386368   ;;  %v2024_v60 = vld [vmem:[#allocation2 + $0x58] sm:$0x3] }
 0x2c4   : > { %2065 = vrot.lane.b32.xlu0 %v2020_v57, %s11865_s29  ;;  %8121 = vmatpush1.bf16.msra.mxu1 %v9638_v27 }
 0x2c5   : > { %v4162_v50 = vpop.permute.xlu1 %4161  ;;  %8122 = vmatprep.subr.bf16.mxu1 %v8760_v31 }
 0x2c6   : > { %v4280_v45 = vpop.permute.xlu0 %4279  ;;  %4219 = vst.msk [vmem:[#allocation3 + $0x28] sm:$0xff] %vm2359_vm2, %v4162_v50 }
 0x2c7   : > { %4338 = vst.msk [vmem:[#allocation3 + $0x18] sm:$0x3] %vm11882_vm9, %v4280_v45  ;;  %3041 = vrot.lane.b32.xlu1 %v2996_v13, %s11866_s26  ;;  %vm11885_vm9 = vcmask 451968   ;;  %v1778_v45 = vld [vmem:[#allocation2 + $0x3b] sm:$0x3] }
 0x2c8   : > { %2187 = vrot.lane.b32.xlu0 %v2142_v20, %s11867_s30  ;;  %8124 = vmatpush1.bf16.msra.mxu1 %v9652_v35 }
 0x2c9   : > { %v4282_v61 = vpop.permute.xlu1 %4281  ;;  %8125 = vmatprep.subr.bf16.mxu1 %v8760_v31 }
 0x2ca   : > { %v1940_v4 = vpop.permute.xlu0 %1939  ;;  %4339 = vst.msk [vmem:[#allocation3 + $0x28] sm:$0xff] %vm2481_vm3, %v4282_v61 }
 0x2cb   : > { %1998 = vst.msk [vmem:[#allocation3 + $0x30] sm:$0x3] %vm11883_vm4, %v1940_v4  ;;  %3163 = vrot.lane.b32.xlu1 %v3118_v40, %s11868_s14  ;;  %vm11886_vm4 = vcmask 517568   ;;  %v1536_v4 = vld [vmem:[#allocation2 + $0x49] sm:$0x3] }
 0x2cc   : > { %2120 = vst.msk [vmem:[#allocation3 + $0x30] sm:$0x3] %vm11884_vm5, %v2062_v54  ;;  %2309 = vrot.lane.b32.xlu0 %v2264_v16, %s11869_s0  ;;  %8127 = vmatpush1.bf16.msra.mxu1 %v9670_v7  ;;  %vm11887_vm5 = vcmask 583168   ;;  %v10038_v16 = vld [vmem:[#allocation2 + $0x60] sm:$0xff] }
 0x2cd   : > { %v2306_v10 = vpop.permute.xlu1 %2305  ;;  %8128 = vmatprep.subr.bf16.mxu1 %v8760_v31 }
 0x2ce   : > { %v2184_v25 = vpop.permute.xlu0 %2183  ;;  %v4386_v47 = vld [vmem:[#allocation3 + $0x18] sm:$0x3] }
 0x2cf   : > { %2242 = vst.msk [vmem:[#allocation3 + $0x30] sm:$0x3] %vm11885_vm9, %v2184_v25  ;;  %7600 = vmatprep.mubr.msk.f32.mxu1 %vm11816_vm10, %v4386_v47  ;;  %3285 = vrot.lane.b32.xlu1 %v3240_v19, %s11874_s19  ;;  %vm11888_vm9 = vcmask 648768   ;;  %v1780_v19 = vld [vmem:[#allocation2 + $0x4b] sm:$0x3] }
 0x2d0   : > { %2364 = vst.msk [vmem:[#allocation3 + $0x30] sm:$0x3] %vm11886_vm4, %v2306_v10  ;;  %1945 = vrot.lane.b32.xlu0 %v9588_v46, %s11872_s1  ;;  %4470 = vmatmul.mubr.f32.gmra.mrb[2].mxu1 %v4385_v36  ;;  %v4476_v46 = vld [vmem:[#allocation3 + $0x20] sm:$0xff]  ;;  %vm11889_vm4 = vcmask 714368   ;;  %v1658_v10 = vld [vmem:[#allocation2 + $0x4a] sm:$0x3] }
 0x2d1   : > { %8130 = vmatpush1.bf16.msra.mxu1 %v9687_v33  ;;  %v2428_v44 = vpop.permute.xlu1 %2427  ;;  %v4477_v41 = vld [vmem:[#allocation3 + $0x28] sm:$0xff] }
 0x2d2   : > { %v3444_v59 = vpop.permute.xlu0 %3443  ;;  %2486 = vst.msk [vmem:[#allocation3 + $0x30] sm:$0x3] %vm11887_vm5, %v2428_v44  ;;  %4534 = vmatprep.subr.mxu1 %v8765_v6  ;;  %7601 = vmatprep.mubr.msk.f32.mxu1 %vm11816_vm10, %v4477_v41  ;;  %vm11890_vm5 = vcmask 320768   ;;  %v2388_v41 = vld [vmem:[#allocation2 + $0x4b] sm:$0x3] }
 0x2d3   : > { %3500 = vst.msk [vmem:[#allocation3 + $0x38] sm:$0x3] %vm1629_vm12, %v3444_v59  ;;  %2921 = vrot.lane.b32.xlu1 %v9788_v39, %s11864_s12  ;;  %v10051_v59 = vld [vmem:[#allocation2 + $0x62] sm:$0xff] }
 0x2d4   : > { %2553 = vrot.lane.b32.xlu0 %v2508_v21, %s11873_s2 }
 0x2d5   : > { %4535 = vmatpush1.msra.mxu1 %v9707_v49  ;;  %v2550_v30 = vpop.permute.xlu1 %2549  ;;  %v1900_v49 = vld [vmem:[#allocation2 + $0x3c] sm:$0x3] }
 0x2d6   : > { %v3564_v63 = vpop.permute.xlu0 %3563  ;;  %4551 = vmatmul.mubr.f32.vlgmr.msra.gmra.mrb[4].mxu1 %v4476_v46  ;;  %2608 = vst.msk [vmem:[#allocation3 + $0x30] sm:$0x3] %vm11888_vm9, %v2550_v30  ;;  %vm11891_vm9 = vcmask 845568   ;;  %v10057_v30 = vld [vmem:[#allocation2 + $0x63] sm:$0xff] }
 0x2d7   : > { %3620 = vst.msk [vmem:[#allocation3 + $0x38] sm:$0x3] %vm1751_vm13, %v3564_v63  ;;  %1703 = vrot.lane.b32.xlu1 %v1656_v5, %s11861_s15  ;;  %v1537_v63 = vld [vmem:[#allocation2 + $0x51] sm:$0xff] }
 0x2d8   : > { %2189 = vrot.lane.b32.xlu0 %v9389_v23, %s11867_s30 }
 0x2d9   : > { %v2672_v48 = vpop.permute.xlu1 %2671 }
 0x2da   : > { %v3684_v39 = vpop.permute.xlu0 %3683  ;;  %2730 = vst.msk [vmem:[#allocation3 + $0x30] sm:$0x3] %vm11889_vm4, %v2672_v48  ;;  %vm11892_vm4 = vcmask 386368  }
 0x2db   : > { %3740 = vst.msk [vmem:[#allocation3 + $0x38] sm:$0x3] %vm1873_vm14, %v3684_v39  ;;  %1947 = vrot.lane.b32.xlu1 %v1900_v49, %s11872_s1  ;;  %v10063_v39 = vld [vmem:[#allocation2 + $0x64] sm:$0xff]  ;;  %v2510_v49 = vld [vmem:[#allocation2 + $0x4c] sm:$0x3] }
 0x2dc   : > { %2311 = vrot.lane.b32.xlu0 %v9695_v56, %s11869_s0 }
 0x2dd   : > { %v2794_v54 = vpop.permute.xlu1 %2793 }
 0x2de   : > { %v3804_v0 = vpop.permute.xlu0 %3803  ;;  %2852 = vst.msk [vmem:[#allocation3 + $0x30] sm:$0x3] %vm11815_vm11, %v2794_v54  ;;  %vm11894_vm11 = vcmask 451968  }
 0x2df   : > { %3860 = vst.msk [vmem:[#allocation3 + $0x38] sm:$0x3] %vm11890_vm5, %v3804_v0  ;;  %2069 = vrot.lane.b32.xlu1 %v2022_v1, %s11865_s29  ;;  %vm11893_vm5 = vcmask 911168   ;;  %v1659_v1 = vld [vmem:[#allocation2 + $0x52] sm:$0xff] }
 0x2e0   : > { %2433 = vrot.lane.b32.xlu0 %v9710_v28, %s11870_s25 }
 0x2e1   : > { %v2916_v23 = vpop.permute.xlu1 %2915 }
 0x2e2   : > { %v3924_v55 = vpop.permute.xlu0 %3923  ;;  %2974 = vst.msk [vmem:[#allocation3 + $0x30] sm:$0x3] %vm11891_vm9, %v2916_v23  ;;  %vm11895_vm9 = vcmask 976768  }
 0x2e3   : > { %3980 = vst.msk [vmem:[#allocation3 + $0x38] sm:$0x3] %vm11892_vm4, %v3924_v55  ;;  %2191 = vrot.lane.b32.xlu1 %v2144_v15, %s11867_s30  ;;  %vm11896_vm4 = vcmask 517568   ;;  %v2632_v15 = vld [vmem:[#allocation2 + $0x58] sm:$0x3] }
 0x2e4   : > { %2555 = vrot.lane.b32.xlu0 %v9722_v42, %s11873_s2 }
 0x2e5   : > { %v3038_v56 = vpop.permute.xlu1 %3037 }
 0x2e6   : > { %v4044_v29 = vpop.permute.xlu0 %4043  ;;  %3096 = vst.msk [vmem:[#allocation3 + $0x30] sm:$0x3] %vm11893_vm5, %v3038_v56  ;;  %vm11898_vm5 = vcmask 195712  }
 0x2e7   : > { %4100 = vst.msk [vmem:[#allocation3 + $0x38] sm:$0x3] %vm11894_vm11, %v4044_v29  ;;  %2313 = vrot.lane.b32.xlu1 %v2266_v9, %s11869_s0  ;;  %vm11897_vm11 = vcmask 583168   ;;  %v10077_v9 = vld [vmem:[#allocation2 + $0x53] sm:$0xff] }
 0x2e8   : > { %2677 = vrot.lane.b32.xlu0 %v9767_v58, %s11863_s16  ;;  %v1534_v58 = vld [vmem:[#allocation2 + $0x39] sm:$0x3] }
 0x2e9   : > { %v3160_v28 = vpop.permute.xlu1 %3159 }
 0x2ea   : > { %v4164_v2 = vpop.permute.xlu0 %4163  ;;  %3218 = vst.msk [vmem:[#allocation3 + $0x30] sm:$0x3] %vm11895_vm9, %v3160_v28  ;;  %vm11899_vm9 = vcmask 261312  }
 0x2eb   : > { %4220 = vst.msk [vmem:[#allocation3 + $0x38] sm:$0x3] %vm11896_vm4, %v4164_v2  ;;  %1951 = vrot.lane.b32.xlu1 %v1902_v17, %s11872_s1  ;;  %vm11900_vm4 = vcmask 326912   ;;  %v3402_v2 = vld [vmem:[#allocation2 + $0x5a] sm:$0x3] }
 0x2ec   : > { %2799 = vrot.lane.b32.xlu0 %v9404_v52, %s11871_s24 }
 0x2ed   : > { %v3282_v42 = vpop.permute.xlu1 %3281 }
 0x2ee   : > { %v4284_v26 = vpop.permute.xlu0 %4283  ;;  %3340 = vst.msk [vmem:[#allocation3 + $0x30] sm:$0x3] %vm11825_vm15, %v3282_v42 }
 0x2ef   : > { %4340 = vst.msk [vmem:[#allocation3 + $0x38] sm:$0x3] %vm11897_vm11, %v4284_v26  ;;  %2073 = vrot.lane.b32.xlu1 %v2024_v60, %s11865_s29  ;;  %vm11901_vm11 = vcmask 654912   ;;  %v3522_v26 = vld [vmem:[#allocation2 + $0x5b] sm:$0x3] }
 0x2f0   : > { %1581 = vrot.lane.b32.xlu0 %v1534_v58, %s11860_s22 }
 0x2f1   : > { %v1698_v57 = vpop.permute.xlu1 %1697 }
 0x2f2   : > { %v1576_v50 = vpop.permute.xlu0 %1575 }
 0x2f3   : > { %1633 = vst.msk [vmem:[#allocation3 + $0x40] sm:$0xff] %vm1627_vm8, %v1576_v50  ;;  %3565 = vrot.lane.b32.xlu1 %v9795_v14, %s11861_s15 }
 0x2f4   : > { %1755 = vst.msk [vmem:[#allocation3 + $0x40] sm:$0xff] %vm11898_vm5, %v1698_v57  ;;  %1825 = vrot.lane.b32.xlu0 %v1778_v45, %s11862_s13  ;;  %vm11902_vm5 = vcmask 720512   ;;  %v3642_v57 = vld [vmem:[#allocation2 + $0x5c] sm:$0x3] }
 0x2f5   : > { %v1942_v52 = vpop.permute.xlu1 %1941  ;;  %v4478_v61 = vld [vmem:[#allocation3 + $0x30] sm:$0x3] }
 0x2f6   : > { %v1820_v13 = vpop.permute.xlu0 %1819  ;;  %v4479_v20 = vld [vmem:[#allocation3 + $0x38] sm:$0x3] }
 0x2f7   : > { %1877 = vst.msk [vmem:[#allocation3 + $0x40] sm:$0xff] %vm11899_vm9, %v1820_v13  ;;  %7602 = vmatprep.mubr.msk.f32.mxu1 %vm11816_vm10, %v4479_v20  ;;  %3685 = vrot.lane.b32.xlu1 %v9802_v24, %s11862_s13  ;;  %vm11903_vm9 = vcmask 917312  }
 0x2f8   : > { %1999 = vst.msk [vmem:[#allocation3 + $0x40] sm:$0xff] %vm11900_vm4, %v1942_v52  ;;  %1585 = vrot.lane.b32.xlu0 %v1536_v4, %s11860_s22  ;;  %4556 = vmatmul.mubr.f32.gmra.mrb[6].mxu1 %v4478_v61  ;;  %vm11904_vm4 = vcmask 982912   ;;  %v3762_v52 = vld [vmem:[#allocation2 + $0x68] sm:$0x3] }
 0x2f9   : > { %v2186_v14 = vpop.permute.xlu1 %2185  ;;  %4648 = vmatprep.mubr.f32.mxu1 %v8765_v6  ;;  %v3882_v61 = vld [vmem:[#allocation2 + $0x69] sm:$0x3] }
 0x2fa   : > { %v2064_v40 = vpop.permute.xlu0 %2063 }
 0x2fb   : > { %2121 = vst.msk [vmem:[#allocation3 + $0x40] sm:$0xff] %vm2115_vm0, %v2064_v40  ;;  %3805 = vrot.lane.b32.xlu1 %v10038_v16, %s11872_s1  ;;  %v4002_v40 = vld [vmem:[#allocation2 + $0x6a] sm:$0x3] }
 0x2fc   : > { %2243 = vst.msk [vmem:[#allocation3 + $0x40] sm:$0xff] %vm2237_vm1, %v2186_v14  ;;  %1707 = vrot.lane.b32.xlu0 %v1658_v10, %s11861_s15 }
 0x2fd   : > { %v3446_v25 = vpop.permute.xlu1 %3445 }
 0x2fe   : > { %v2308_v47 = vpop.permute.xlu0 %2307  ;;  %3501 = vst.msk [vmem:[#allocation3 + $0x48] sm:$0xff] %vm1627_vm8, %v3446_v25 }
 0x2ff   : > { %2365 = vst.msk [vmem:[#allocation3 + $0x40] sm:$0xff] %vm2359_vm2, %v2308_v47  ;;  %3925 = vrot.lane.b32.xlu1 %v9444_v34, %s11865_s29  ;;  %v3404_v47 = vld [vmem:[#allocation2 + $0x6a] sm:$0x3] }
 0x300   : > { %1829 = vrot.lane.b32.xlu0 %v1780_v19, %s11862_s13  ;;  %v4576_v19 = vld [vmem:[%s11758_s5 + $0x28] sm:$0xff] }
 0x301   : > { %v1584_v36 = vpop.permute.xlu1 %1583 }
 0x302   : > { %v2430_v44 = vpop.permute.xlu0 %2429  ;;  %1637 = vst.msk [vmem:[#allocation3 + $0x80] sm:$0xff] %vm1627_vm8, %v1584_v36  ;;  %v4578_v36 = vld [vmem:[%s11758_s5 + $0x38] sm:$0xff] }
 0x303   : > { %2487 = vst.msk [vmem:[#allocation3 + $0x40] sm:$0xff] %vm2481_vm3, %v2430_v44  ;;  %4045 = vrot.lane.b32.xlu1 %v10051_v59, %s11867_s30  ;;  %v4575_v44 = vld [vmem:[%s11758_s5 + $0x20] sm:$0xff] }
 0x304   : > { %2435 = vrot.lane.b32.xlu0 %v2388_v41, %s11870_s25 }
 0x305   : > { %v1828_v21 = vpop.permute.xlu1 %1827 }
 0x306   : > { %v2552_v46 = vpop.permute.xlu0 %2551 }
 0x307   : > { %2609 = vst.msk [vmem:[#allocation3 + $0x40] sm:$0xff] %vm11901_vm11, %v2552_v46  ;;  %4165 = vrot.lane.b32.xlu1 %v10057_v30, %s11869_s0  ;;  %vm11905_vm11 = vcmask 195712   ;;  %v8131_v46 = vpack.c.bf16 %v4578_v36, %v4576_v19 }
 0x308   : > { %1587 = vrot.lane.b32.xlu0 %v1537_v63, %s11860_s22  ;;  %v4577_v63 = vld [vmem:[%s11758_s5 + $0x30] sm:$0xff] }
 0x309   : > { %v2072_v5 = vpop.permute.xlu1 %2071  ;;  %8132 = vmatprep.subr.bf16.mxu1 %v8131_v46  ;;  %v3524_v46 = vld [vmem:[#allocation2 + $0x6b] sm:$0x3] }
 0x30a   : > { %v2674_v48 = vpop.permute.xlu0 %2673 }
 0x30b   : > { %2731 = vst.msk [vmem:[#allocation3 + $0x40] sm:$0xff] %vm11902_vm5, %v2674_v48  ;;  %4285 = vrot.lane.b32.xlu1 %v10063_v39, %s11870_s25  ;;  %vm11906_vm5 = vcmask 1048512   ;;  %v8133_v48 = vpack.c.bf16 %v4577_v63, %v4575_v44  ;;  %v4242_v44 = vld [vmem:[#allocation2 + $0x6c] sm:$0x3] }
 0x30c   : > { %2557 = vrot.lane.b32.xlu0 %v2510_v49, %s11873_s2  ;;  %v4572_v49 = vld [vmem:[%s11758_s5 + $0x8] sm:$0xff] }
 0x30d   : > { %v2194_v54 = vpop.permute.xlu1 %2193  ;;  %8134 = vmatpush1.bf16.msra.mxu1 %v8133_v48  ;;  %v3644_v48 = vld [vmem:[#allocation2 + $0x6c] sm:$0x3] }
 0x30e   : > { %v2796_v0 = vpop.permute.xlu0 %2795 }
 0x30f   : > { %2853 = vst.msk [vmem:[#allocation3 + $0x40] sm:$0xff] %vm2847_vm7, %v2796_v0  ;;  %2559 = vrot.lane.b32.xlu1 %v9802_v24, %s11873_s2 }
 0x310   : > { %1709 = vrot.lane.b32.xlu0 %v1659_v1, %s11861_s15 }
 0x311   : > { %v2316_v23 = vpop.permute.xlu1 %2315 }
 0x312   : > { %v2918_v55 = vpop.permute.xlu0 %2917 }
 0x313   : > { %2975 = vst.msk [vmem:[#allocation3 + $0x40] sm:$0xff] %vm2969_vm6, %v2918_v55  ;;  %2681 = vrot.lane.b32.xlu1 %v10038_v16, %s11863_s16  ;;  %v2754_v55 = vld [vmem:[#allocation2 + $0x59] sm:$0x3] }
 0x314   : > { %2679 = vrot.lane.b32.xlu0 %v2632_v15, %s11863_s16 }
 0x315   : > { %v1822_v56 = vpop.permute.xlu1 %1821 }
 0x316   : > { %v3040_v29 = vpop.permute.xlu0 %3039 }
 0x317   : > { %3097 = vst.msk [vmem:[#allocation3 + $0x40] sm:$0xff] %vm11903_vm9, %v3040_v29  ;;  %2803 = vrot.lane.b32.xlu1 %v9444_v34, %s11871_s24  ;;  %vm11907_vm9 = vcmask 261312   ;;  %v2146_v29 = vld [vmem:[#allocation2 + $0x59] sm:$0x3] }
 0x318   : > { %2437 = vrot.lane.b32.xlu0 %v10077_v9, %s11870_s25  ;;  %vm11909_vm10 = vmmov %vm11907_vm9 }
 0x319   : > { %v1580_v24 = vpop.permute.xlu1 %1579 }
 0x31a   : > { %v3162_v28 = vpop.permute.xlu0 %3161  ;;  %1635 = vst.msk [vmem:[#allocation3 + $0x60] sm:$0xff] %vm1627_vm8, %v1580_v24 }
 0x31b   : > { %3219 = vst.msk [vmem:[#allocation3 + $0x40] sm:$0xff] %vm11904_vm4, %v3162_v28  ;;  %2925 = vrot.lane.b32.xlu1 %v10051_v59, %s11864_s12  ;;  %vm11908_vm4 = vmmov %vm11905_vm11 }
 0x31c   : > { %3447 = vrot.lane.b32.xlu0 %v3402_v2, %s11860_s22  ;;  %v2268_v2 = vld [vmem:[#allocation2 + $0x5a] sm:$0x3] }
 0x31d   : > { %v1702_v17 = vpop.permute.xlu1 %1701 }
 0x31e   : > { %v3284_v42 = vpop.permute.xlu0 %3283  ;;  %1757 = vst.msk [vmem:[#allocation3 + $0x60] sm:$0xff] %vm11905_vm11, %v1702_v17  ;;  %vm11910_vm11 = vcmask 326912  }
 0x31f   : > { %3341 = vst.msk [vmem:[#allocation3 + $0x40] sm:$0xff] %vm11906_vm5, %v3284_v42  ;;  %3567 = vrot.lane.b32.xlu1 %v3522_v26, %s11861_s15  ;;  %vm11912_vm5 = vcmask 386368   ;;  %v2998_v26 = vld [vmem:[#allocation2 + $0x5b] sm:$0x3] }
 0x320   : > { %3047 = vrot.lane.b32.xlu0 %v10057_v30, %s11866_s26 }
 0x321   : > { %v1824_v60 = vpop.permute.xlu1 %1823 }
 0x322   : > { %v1706_v58 = vpop.permute.xlu0 %1705  ;;  %1879 = vst.msk [vmem:[#allocation3 + $0x60] sm:$0xff] %vm11907_vm9, %v1824_v60  ;;  %vm11913_vm9 = vcmask 451968  }
 0x323   : > { %1759 = vst.msk [vmem:[#allocation3 + $0x80] sm:$0xff] %vm11908_vm4, %v1706_v58  ;;  %3169 = vrot.lane.b32.xlu1 %v10063_v39, %s11868_s14  ;;  %vm11914_vm4 = vcmask 517568  }
 0x324   : > { %1881 = vst.msk [vmem:[#allocation3 + $0x80] sm:$0xff] %vm11909_vm10, %v1828_v21  ;;  %3687 = vrot.lane.b32.xlu0 %v3642_v57, %s11862_s13  ;;  %vm11911_vm10 = vcmask 320768   ;;  %v10162_v57 = vld [vmem:[#allocation2 + $0x72] sm:$0xff] }
 0x325   : > { %v2432_v50 = vpop.permute.xlu1 %2431 }
 0x326   : > { %v1950_v45 = vpop.permute.xlu0 %1949 }
 0x327   : > { %2003 = vst.msk [vmem:[#allocation3 + $0x80] sm:$0xff] %vm11910_vm11, %v1950_v45  ;;  %3807 = vrot.lane.b32.xlu1 %v3762_v52, %s11872_s1  ;;  %vm11915_vm11 = vcmask 583168   ;;  %v2512_v52 = vld [vmem:[#allocation2 + $0x5c] sm:$0x3] }
 0x328   : > { %2125 = vst.msk [vmem:[#allocation3 + $0x80] sm:$0xff] %vm2115_vm0, %v2072_v5  ;;  %3449 = vrot.lane.b32.xlu0 %v10051_v59, %s11860_s22  ;;  %v3119_v5 = vld [vmem:[#allocation2 + $0x54] sm:$0xff] }
 0x329   : > { %2247 = vst.msk [vmem:[#allocation3 + $0x80] sm:$0xff] %vm2237_vm1, %v2194_v54  ;;  %v2068_v13 = vpop.permute.xlu1 %2067  ;;  %v4574_v54 = vld [vmem:[%s11758_s5 + $0x18] sm:$0xff] }
 0x32a   : > { %2369 = vst.msk [vmem:[#allocation3 + $0x80] sm:$0xff] %vm2359_vm2, %v2316_v23  ;;  %v1578_v20 = vpop.permute.xlu0 %1577  ;;  %v8135_v0 = vpack.c.bf16 %v4574_v54, %v4572_v49 }
 0x32b   : > { %1634 = vst.msk [vmem:[#allocation3 + $0x50] sm:$0x3] %vm1629_vm12, %v1578_v20  ;;  %3927 = vrot.lane.b32.xlu1 %v3882_v61, %s11865_s29 }
 0x32c   : > { %3569 = vrot.lane.b32.xlu0 %v10057_v30, %s11861_s15  ;;  %8136 = vmatprep.subr.bf16.mxu1 %v8135_v0  ;;  %v3764_v0 = vld [vmem:[#allocation2 + $0x78] sm:$0x3] }
 0x32d   : > { %v2676_v4 = vpop.permute.xlu1 %2675 }
 0x32e   : > { %v1700_v14 = vpop.permute.xlu0 %1699 }
 0x32f   : > { %1756 = vst.msk [vmem:[#allocation3 + $0x50] sm:$0x3] %vm1751_vm13, %v1700_v14  ;;  %4047 = vrot.lane.b32.xlu1 %v4002_v40, %s11867_s30 }
 0x330   : > { %1878 = vst.msk [vmem:[#allocation3 + $0x50] sm:$0x3] %vm1873_vm14, %v1822_v56  ;;  %3689 = vrot.lane.b32.xlu0 %v10063_v39, %s11862_s13 }
 0x331   : > { %v2798_v10 = vpop.permute.xlu1 %2797 }
 0x332   : > { %v1944_v25 = vpop.permute.xlu0 %1943 }
 0x333   : > { %2000 = vst.msk [vmem:[#allocation3 + $0x50] sm:$0x3] %vm11911_vm10, %v1944_v25  ;;  %3043 = vrot.lane.b32.xlu1 %v10077_v9, %s11866_s26  ;;  %vm11916_vm10 = vcmask 326912  }
 0x334   : > { %3451 = vrot.lane.b32.xlu0 %v3404_v47, %s11860_s22 }
 0x335   : > { %v2920_v41 = vpop.permute.xlu1 %2919 }
 0x336   : > { %v2066_v21 = vpop.permute.xlu0 %2065 }
 0x337   : > { %2122 = vst.msk [vmem:[#allocation3 + $0x50] sm:$0x3] %vm11912_vm5, %v2066_v21  ;;  %3165 = vrot.lane.b32.xlu1 %v3119_v5, %s11868_s14  ;;  %vm11917_vm5 = vcmask 648768  }
 0x338   : > { %1831 = vrot.lane.b32.xlu0 %v10077_v9, %s11862_s13  ;;  %v2390_v9 = vld [vmem:[#allocation2 + $0x5b] sm:$0x3] }
 0x339   : > { %v3042_v1 = vpop.permute.xlu1 %3041 }
 0x33a   : > { %v2188_v23 = vpop.permute.xlu0 %2187 }
 0x33b   : > { %2244 = vst.msk [vmem:[#allocation3 + $0x50] sm:$0x3] %vm11913_vm9, %v2188_v23  ;;  %3287 = vrot.lane.b32.xlu1 %v10038_v16, %s11874_s19  ;;  %vm11918_vm9 = vcmask 714368  }
 0x33c   : > { %2801 = vrot.lane.b32.xlu0 %v2754_v55, %s11871_s24 }
 0x33d   : > { %v3164_v15 = vpop.permute.xlu1 %3163 }
 0x33e   : > { %v2310_v56 = vpop.permute.xlu0 %2309 }
 0x33f   : > { %2366 = vst.msk [vmem:[#allocation3 + $0x50] sm:$0x3] %vm11914_vm4, %v2310_v56  ;;  %2195 = vrot.lane.b32.xlu1 %v2146_v29, %s11867_s30  ;;  %vm11919_vm4 = vcmask 779968   ;;  %v3526_v56 = vld [vmem:[#allocation2 + $0x7b] sm:$0x3] }
 0x340   : > { %2488 = vst.msk [vmem:[#allocation3 + $0x50] sm:$0x3] %vm11915_vm11, %v2432_v50  ;;  %2439 = vrot.lane.b32.xlu0 %v2390_v9, %s11870_s25  ;;  %vm11920_vm11 = vcmask 845568  }
 0x341   : > { %v3286_v24 = vpop.permute.xlu1 %3285 }
 0x342   : > { %v1946_v28 = vpop.permute.xlu0 %1945 }
 0x343   : > { %2001 = vst.msk [vmem:[#allocation3 + $0x60] sm:$0xff] %vm11916_vm10, %v1946_v28  ;;  %2317 = vrot.lane.b32.xlu1 %v2268_v2, %s11869_s0  ;;  %vm11921_vm10 = vcmask 911168   ;;  %v4124_v28 = vld [vmem:[#allocation2 + $0x7b] sm:$0x3] }
 0x344   : > { %2123 = vst.msk [vmem:[#allocation3 + $0x60] sm:$0xff] %vm2115_vm0, %v2068_v13  ;;  %2075 = vrot.lane.b32.xlu0 %v10038_v16, %s11865_s29  ;;  %v2876_v16 = vld [vmem:[#allocation2 + $0x5a] sm:$0x3] }
 0x345   : > { %v2922_v17 = vpop.permute.xlu1 %2921  ;;  %v10170_v13 = vld [vmem:[#allocation2 + $0x74] sm:$0xff] }
 0x346   : > { %v2554_v42 = vpop.permute.xlu0 %2553 }
 0x347   : > { %2610 = vst.msk [vmem:[#allocation3 + $0x50] sm:$0x3] %vm11917_vm5, %v2554_v42  ;;  %1953 = vrot.lane.b32.xlu1 %v3119_v5, %s11872_s1  ;;  %vm11922_vm5 = vcmask 976768   ;;  %v3646_v42 = vld [vmem:[#allocation2 + $0x7c] sm:$0x3] }
 0x348   : > { %2732 = vst.msk [vmem:[#allocation3 + $0x50] sm:$0x3] %vm11918_vm9, %v2676_v4  ;;  %3045 = vrot.lane.b32.xlu0 %v2998_v26, %s11866_s26  ;;  %v10176_v4 = vld [vmem:[#allocation2 + $0x70] sm:$0xff]  ;;  %vm11923_vm9 = vcmask 654912   ;;  %v10228_v26 = vld [vmem:[#allocation2 + $0x80] sm:$0xff] }
 0x349   : > { %2854 = vst.msk [vmem:[#allocation3 + $0x50] sm:$0x3] %vm11919_vm4, %v2798_v10  ;;  %v1704_v60 = vpop.permute.xlu1 %1703  ;;  %v10183_v10 = vld [vmem:[#allocation2 + $0x73] sm:$0xff]  ;;  %vm11924_vm4 = vcmask 720512  }
 0x34a   : > { %2976 = vst.msk [vmem:[#allocation3 + $0x50] sm:$0x3] %vm11920_vm11, %v2920_v41  ;;  %v2190_v58 = vpop.permute.xlu0 %2189  ;;  %vm11925_vm11 = vcmask 195712  }
 0x34b   : > { %3098 = vst.msk [vmem:[#allocation3 + $0x50] sm:$0x3] %vm11921_vm10, %v3042_v1  ;;  %2923 = vrot.lane.b32.xlu1 %v2876_v16, %s11864_s12  ;;  %vm11926_vm10 = vcmask 320768   ;;  %v3884_v1 = vld [vmem:[#allocation2 + $0x79] sm:$0x3] }
 0x34c   : > { %2245 = vst.msk [vmem:[#allocation3 + $0x60] sm:$0xff] %vm2237_vm1, %v2190_v58  ;;  %3453 = vrot.lane.b32.xlu0 %v10162_v57, %s11860_s22 }
 0x34d   : > { %3220 = vst.msk [vmem:[#allocation3 + $0x50] sm:$0x3] %vm11922_vm5, %v3164_v15  ;;  %v1948_v50 = vpop.permute.xlu1 %1947  ;;  %vm11927_vm5 = vcmask 386368   ;;  %v3406_v15 = vld [vmem:[#allocation2 + $0x7a] sm:$0x3] }
 0x34e   : > { %3342 = vst.msk [vmem:[#allocation3 + $0x50] sm:$0x3] %vm11825_vm15, %v3286_v24  ;;  %v2312_v45 = vpop.permute.xlu0 %2311  ;;  %vm11930_vm15 = vcmask 261312   ;;  %v4004_v24 = vld [vmem:[#allocation2 + $0x7a] sm:$0x3] }
 0x34f   : > { %2367 = vst.msk [vmem:[#allocation3 + $0x60] sm:$0xff] %vm2359_vm2, %v2312_v45  ;;  %2561 = vrot.lane.b32.xlu1 %v2512_v52, %s11873_s2  ;;  %v10237_v45 = vld [vmem:[#allocation2 + $0x82] sm:$0xff] }
 0x350   : > { %3693 = vrot.lane.b32.xlu0 %v10170_v13, %s11862_s13 }
 0x351   : > { %v2070_v20 = vpop.permute.xlu1 %2069 }
 0x352   : > { %v2434_v61 = vpop.permute.xlu0 %2433 }
 0x353   : > { %2489 = vst.msk [vmem:[#allocation3 + $0x60] sm:$0xff] %vm2481_vm3, %v2434_v61  ;;  %2197 = vrot.lane.b32.xlu1 %v9444_v34, %s11867_s30  ;;  %v4122_v34 = vld [vmem:[#allocation2 + $0x6b] sm:$0x3] }
 0x354   : > { %3291 = vrot.lane.b32.xlu0 %v10176_v4, %s11874_s19  ;;  %v10245_v61 = vld [vmem:[#allocation2 + $0x84] sm:$0xff] }
 0x355   : > { %v2192_v14 = vpop.permute.xlu1 %2191 }
 0x356   : > { %v2556_v40 = vpop.permute.xlu0 %2555 }
 0x357   : > { %2611 = vst.msk [vmem:[#allocation3 + $0x60] sm:$0xff] %vm11923_vm9, %v2556_v40  ;;  %3573 = vrot.lane.b32.xlu1 %v10183_v10, %s11861_s15  ;;  %vm11928_vm9 = vcmask 451968  }
 0x358   : > { %3809 = vrot.lane.b32.xlu0 %v10176_v4, %s11872_s1 }
 0x359   : > { %v2314_v25 = vpop.permute.xlu1 %2313 }
 0x35a   : > { %v2678_v47 = vpop.permute.xlu0 %2677 }
 0x35b   : > { %2733 = vst.msk [vmem:[#allocation3 + $0x60] sm:$0xff] %vm11924_vm4, %v2678_v47  ;;  %4167 = vrot.lane.b32.xlu1 %v4122_v34, %s11869_s0  ;;  %vm11929_vm4 = vcmask 517568   ;;  %v3120_v47 = vld [vmem:[#allocation2 + $0x5c] sm:$0x3]  ;;  %v2634_v34 = vld [vmem:[#allocation2 + $0x68] sm:$0x3] }
 0x35c   : > { %3929 = vrot.lane.b32.xlu0 %v9540_v8, %s11865_s29 }
 0x35d   : > { %v1952_v19 = vpop.permute.xlu1 %1951 }
 0x35e   : > { %v2800_v36 = vpop.permute.xlu0 %2799 }
 0x35f   : > { %2855 = vst.msk [vmem:[#allocation3 + $0x60] sm:$0xff] %vm2847_vm7, %v2800_v36  ;;  %4287 = vrot.lane.b32.xlu1 %v4242_v44, %s11870_s25  ;;  %v4244_v44 = vld [vmem:[#allocation2 + $0x7c] sm:$0x3] }
 0x360   : > { %2977 = vst.msk [vmem:[#allocation3 + $0x60] sm:$0xff] %vm2969_vm6, %v2922_v17  ;;  %4049 = vrot.lane.b32.xlu0 %v10162_v57, %s11867_s30 }
 0x361   : > { %v2074_v41 = vpop.permute.xlu1 %2073 }
 0x362   : > { %v1582_v21 = vpop.permute.xlu0 %1581 }
 0x363   : > { %1636 = vst.msk [vmem:[#allocation3 + $0x70] sm:$0x3] %vm1629_vm12, %v1582_v21  ;;  %3571 = vrot.lane.b32.xlu1 %v3524_v46, %s11861_s15 }
 0x364   : > { %1758 = vst.msk [vmem:[#allocation3 + $0x70] sm:$0x3] %vm1751_vm13, %v1704_v60  ;;  %4169 = vrot.lane.b32.xlu0 %v10183_v10, %s11869_s0 }
 0x365   : > { %v3566_v63 = vpop.permute.xlu1 %3565 }
 0x366   : > { %v1826_v5 = vpop.permute.xlu0 %1825  ;;  %3621 = vst.msk [vmem:[#allocation3 + $0x48] sm:$0xff] %vm11925_vm11, %v3566_v63  ;;  %vm11931_vm11 = vcmask 326912   ;;  %v2756_v63 = vld [vmem:[#allocation2 + $0x69] sm:$0x3] }
 0x367   : > { %1880 = vst.msk [vmem:[#allocation3 + $0x70] sm:$0x3] %vm1873_vm14, %v1826_v5  ;;  %3691 = vrot.lane.b32.xlu1 %v3644_v48, %s11862_s13 }
 0x368   : > { %2002 = vst.msk [vmem:[#allocation3 + $0x70] sm:$0x3] %vm11926_vm10, %v1948_v50  ;;  %4289 = vrot.lane.b32.xlu0 %v10170_v13, %s11870_s25 }
 0x369   : > { %2124 = vst.msk [vmem:[#allocation3 + $0x70] sm:$0x3] %vm11927_vm5, %v2070_v20  ;;  %v3686_v49 = vpop.permute.xlu1 %3685 }
 0x36a   : > { %2246 = vst.msk [vmem:[#allocation3 + $0x70] sm:$0x3] %vm11928_vm9, %v2192_v14  ;;  %v1586_v54 = vpop.permute.xlu0 %1585  ;;  %vm11935_vm9 = vcmask 648768   ;;  %v10247_v14 = vld [vmem:[#allocation2 + $0x83] sm:$0xff] }
 0x36b   : > { %2368 = vst.msk [vmem:[#allocation3 + $0x70] sm:$0x3] %vm11929_vm4, %v2314_v25  ;;  %3811 = vrot.lane.b32.xlu1 %v3764_v0, %s11872_s1  ;;  %vm11936_vm4 = vcmask 195712  }
 0x36c   : > { %3741 = vst.msk [vmem:[#allocation3 + $0x48] sm:$0xff] %vm11930_vm15, %v3686_v49  ;;  %3931 = vrot.lane.b32.xlu0 %v3884_v1, %s11865_s29  ;;  %vm11932_vm15 = vmmov %vm11926_vm10  ;;  %v3242_v49 = vld [vmem:[#allocation2 + $0x68] sm:$0x3] }
 0x36d   : > { %1638 = vst.msk [vmem:[#allocation3 + $0x90] sm:$0x3] %vm1629_vm12, %v1586_v54  ;;  %v3806_v23 = vpop.permute.xlu1 %3805  ;;  %vm11933_vm10 = vmmov %vm11927_vm5  ;;  %vm11934_vm5 = vcmask 583168  }
 0x36e   : > { %v1708_v55 = vpop.permute.xlu0 %1707  ;;  %3861 = vst.msk [vmem:[#allocation3 + $0x48] sm:$0xff] %vm11931_vm11, %v3806_v23  ;;  %vm11937_vm11 = vcmask 714368  }
 0x36f   : > { %1760 = vst.msk [vmem:[#allocation3 + $0x90] sm:$0x3] %vm1751_vm13, %v1708_v55  ;;  %3455 = vrot.lane.b32.xlu1 %v3406_v15, %s11860_s22  ;;  %v2878_v55 = vld [vmem:[#allocation2 + $0x6a] sm:$0x3] }
 0x370   : > { %3575 = vrot.lane.b32.xlu0 %v3526_v56, %s11861_s15 }
 0x371   : > { %v3926_v29 = vpop.permute.xlu1 %3925 }
 0x372   : > { %v1830_v9 = vpop.permute.xlu0 %1829  ;;  %3981 = vst.msk [vmem:[#allocation3 + $0x48] sm:$0xff] %vm2115_vm0, %v3926_v29 }
 0x373   : > { %1882 = vst.msk [vmem:[#allocation3 + $0x90] sm:$0x3] %vm1873_vm14, %v1830_v9  ;;  %4051 = vrot.lane.b32.xlu1 %v4004_v24, %s11867_s30  ;;  %v3000_v24 = vld [vmem:[#allocation2 + $0x6b] sm:$0x3] }
 0x374   : > { %2004 = vst.msk [vmem:[#allocation3 + $0x90] sm:$0x3] %vm11932_vm15, %v1952_v19  ;;  %4171 = vrot.lane.b32.xlu0 %v4124_v28, %s11869_s0  ;;  %vm11938_vm15 = vcmask 654912  }
 0x375   : > { %2126 = vst.msk [vmem:[#allocation3 + $0x90] sm:$0x3] %vm11933_vm10, %v2074_v41  ;;  %v4046_v2 = vpop.permute.xlu1 %4045  ;;  %v3766_v41 = vld [vmem:[#allocation2 + $0x88] sm:$0x3]  ;;  %vm11939_vm10 = vcmask 720512  }
 0x376   : > { %v2436_v17 = vpop.permute.xlu0 %2435  ;;  %4101 = vst.msk [vmem:[#allocation3 + $0x48] sm:$0xff] %vm2237_vm1, %v4046_v2  ;;  %v10230_v60 = vpop.f32.mrb[0].mxu1 }
 0x377   : > { %2490 = vst.msk [vmem:[#allocation3 + $0x70] sm:$0x3] %vm11934_vm5, %v2436_v17  ;;  %3695 = vrot.lane.b32.xlu1 %v3646_v42, %s11862_s13  ;;  %v4468_v58 = vpop.f32.mrb[1].mxu1  ;;  %vm11940_vm5 = vcmask 917312  }
 0x378   : > { %3813 = vrot.lane.b32.xlu0 %v10228_v26, %s11872_s1  ;;  %v10301_v58 = vld [vmem:[%s11757_s4] ss:$0 sm:$0xff] }
 0x379   : > { %v4166_v16 = vpop.permute.xlu1 %4165 }
 0x37a   : > { %v1588_v50 = vpop.permute.xlu0 %1587  ;;  %4221 = vst.msk [vmem:[#allocation3 + $0x48] sm:$0xff] %vm2359_vm2, %v4166_v16 }
 0x37b   : > { %1639 = vst.msk [vmem:[#allocation3 + $0xa0] sm:$0xff] %vm1627_vm8, %v1588_v50  ;;  %4053 = vrot.lane.b32.xlu1 %v10237_v45, %s11867_s30 }
 0x37c   : > { %3933 = vrot.lane.b32.xlu0 %v9571_v51, %s11865_s29 }
 0x37d   : > { %v4286_v52 = vpop.permute.xlu1 %4285 }
 0x37e   : > { %v2558_v20 = vpop.permute.xlu0 %2557  ;;  %4341 = vst.msk [vmem:[#allocation3 + $0x48] sm:$0xff] %vm2481_vm3, %v4286_v52  ;;  %v10305_v52 = vld [vmem:[#allocation2 + $0x90] sm:$0xff] }
 0x37f   : > { %2612 = vst.msk [vmem:[#allocation3 + $0x70] sm:$0x3] %vm11935_vm9, %v2558_v20  ;;  %4293 = vrot.lane.b32.xlu1 %v10245_v61, %s11870_s25  ;;  %vm11941_vm9 = vcmask 982912   ;;  %v3122_v20 = vld [vmem:[#allocation2 + $0x6c] sm:$0x3] }
 0x380   : > { %4173 = vrot.lane.b32.xlu0 %v10247_v14, %s11869_s0 }
 0x381   : > { %v2560_v40 = vpop.permute.xlu1 %2559 }
 0x382   : > { %v1710_v25 = vpop.permute.xlu0 %1709 }
 0x383   : > { %1761 = vst.msk [vmem:[#allocation3 + $0xa0] sm:$0xff] %vm11936_vm4, %v1710_v25  ;;  %3167 = vrot.lane.b32.xlu1 %v3120_v47, %s11868_s14  ;;  %vm11942_vm4 = vcmask 320768  }
 0x384   : > { %2683 = vrot.lane.b32.xlu0 %v2634_v34, %s11863_s16 }
 0x385   : > { %v2682_v19 = vpop.permute.xlu1 %2681 }
 0x386   : > { %v2680_v36 = vpop.permute.xlu0 %2679 }
 0x387   : > { %2734 = vst.msk [vmem:[#allocation3 + $0x70] sm:$0x3] %vm11937_vm11, %v2680_v36  ;;  %4291 = vrot.lane.b32.xlu1 %v4244_v44, %s11870_s25  ;;  %vm11943_vm11 = vcmask 386368   ;;  %v4246_v44 = vld [vmem:[#allocation2 + $0x8c] sm:$0x3] }
 0x388   : > { %3815 = vrot.lane.b32.xlu0 %v3766_v41, %s11872_s1 }
 0x389   : > { %v2804_v21 = vpop.permute.xlu1 %2803 }
 0x38a   : > { %v2438_v46 = vpop.permute.xlu0 %2437 }
 0x38b   : > { %2491 = vst.msk [vmem:[#allocation3 + $0x80] sm:$0xff] %vm2481_vm3, %v2438_v46  ;;  %2805 = vrot.lane.b32.xlu1 %v2756_v63, %s11871_s24 }
 0x38c   : > { %2613 = vst.msk [vmem:[#allocation3 + $0x80] sm:$0xff] %vm11938_vm15, %v2560_v40  ;;  %2319 = vrot.lane.b32.xlu0 %v10051_v59, %s11869_s0  ;;  %v3886_v59 = vld [vmem:[#allocation2 + $0x89] sm:$0x3]  ;;  %vm11944_vm15 = vcmask 195712   ;;  %v4467_v40 = vadd.f32 %v10301_v58, %v10230_v60 }
 0x38d   : > { %2735 = vst.msk [vmem:[#allocation3 + $0x80] sm:$0xff] %vm11939_vm10, %v2682_v19  ;;  %v2926_v5 = vpop.permute.xlu1 %2925  ;;  %vm11945_vm10 = vcmask 451968  }
 0x38e   : > { %2857 = vst.msk [vmem:[#allocation3 + $0x80] sm:$0xff] %vm2847_vm7, %v2804_v21  ;;  %v3448_v48 = vpop.permute.xlu0 %3447  ;;  %v4561_v41 = vmax.f32 %v4467_v40, 0.0  ;;  %v4809_v40 = vld [vmem:[%s11758_s5 + $0x68] sm:$0xff] }
 0x38f   : > { %2979 = vst.msk [vmem:[#allocation3 + $0x80] sm:$0xff] %vm2969_vm6, %v2926_v5  ;;  %3457 = vrot.lane.b32.xlu1 %v10237_v45, %s11860_s22  ;;  %v10319_v5 = vld [vmem:[#allocation2 + $0x91] sm:$0xff] }
 0x390   : > { %3502 = vst.msk [vmem:[#allocation3 + $0x58] sm:$0x3] %vm1629_vm12, %v3448_v48  ;;  %3289 = vrot.lane.b32.xlu0 %v3242_v49, %s11874_s19  ;;  %v3244_v48 = vld [vmem:[#allocation2 + $0x78] sm:$0x3] }
 0x391   : > { %v3568_v54 = vpop.permute.xlu1 %3567 }
 0x392   : > { %v3048_v0 = vpop.permute.xlu0 %3047  ;;  %3622 = vst.msk [vmem:[#allocation3 + $0x58] sm:$0x3] %vm1751_vm13, %v3568_v54  ;;  %v4571_v54 = vld [vmem:[%s11758_s5] sm:$0xff] }
 0x393   : > { %3101 = vst.msk [vmem:[#allocation3 + $0x80] sm:$0xff] %vm11940_vm5, %v3048_v0  ;;  %2441 = vrot.lane.b32.xlu1 %v10057_v30, %s11870_s25  ;;  %v4006_v30 = vld [vmem:[#allocation2 + $0x8a] sm:$0x3]  ;;  %vm11946_vm5 = vcmask 261312   ;;  %v4573_v0 = vld [vmem:[%s11758_s5 + $0x10] sm:$0xff] }
 0x394   : > { %3935 = vrot.lane.b32.xlu0 %v3886_v59, %s11865_s29 }
 0x395   : > { %v3170_v1 = vpop.permute.xlu1 %3169 }
 0x396   : > { %v3688_v23 = vpop.permute.xlu0 %3687  ;;  %3223 = vst.msk [vmem:[#allocation3 + $0x80] sm:$0xff] %vm11941_vm9, %v3170_v1  ;;  %vm11947_vm9 = vcmask 917312  }
 0x397   : > { %3742 = vst.msk [vmem:[#allocation3 + $0x58] sm:$0x3] %vm1873_vm14, %v3688_v23  ;;  %3577 = vrot.lane.b32.xlu1 %v10247_v14, %s11861_s15 }
 0x398   : > { %2927 = vrot.lane.b32.xlu0 %v2878_v55, %s11864_s12  ;;  %v10334_v55 = vld [vmem:[#allocation2 + $0x92] sm:$0xff] }
 0x399   : > { %v3808_v15 = vpop.permute.xlu1 %3807 }
 0x39a   : > { %v3450_v56 = vpop.permute.xlu0 %3449  ;;  %3862 = vst.msk [vmem:[#allocation3 + $0x58] sm:$0x3] %vm11942_vm4, %v3808_v15  ;;  %vm11948_vm4 = vcmask 982912   ;;  %v4729_v15 = vld [vmem:[%s11758_s5 + $0x48] sm:$0xff] }
 0x39b   : > { %3503 = vst.msk [vmem:[#allocation3 + $0x68] sm:$0xff] %vm1627_vm8, %v3450_v56  ;;  %2563 = vrot.lane.b32.xlu1 %v10063_v39, %s11873_s2  ;;  %v4126_v39 = vld [vmem:[#allocation2 + $0x8b] sm:$0x3]  ;;  %v4731_v56 = vld [vmem:[%s11758_s5 + $0x58] sm:$0xff] }
 0x39c   : > { %4055 = vrot.lane.b32.xlu0 %v4006_v30, %s11867_s30  ;;  %v8137_v30 = vpack.c.bf16 %v4573_v0, %v4571_v54  ;;  %v1660_v54 = vld [vmem:[#allocation2 + $0x5a] sm:$0x3] }
 0x39d   : > { %v3928_v29 = vpop.permute.xlu1 %3927 }
 0x39e   : > { %v3570_v9 = vpop.permute.xlu0 %3569  ;;  %3982 = vst.msk [vmem:[#allocation3 + $0x58] sm:$0x3] %vm11943_vm11, %v3928_v29  ;;  %vm11949_vm11 = vmmov %vm11946_vm5 }
 0x39f   : > { %3623 = vst.msk [vmem:[#allocation3 + $0x68] sm:$0xff] %vm11944_vm15, %v3570_v9  ;;  %3697 = vrot.lane.b32.xlu1 %v10245_v61, %s11862_s13  ;;  %vm11950_vm15 = vcmask 1048512  }
 0x3a0   : > { %3049 = vrot.lane.b32.xlu0 %v3000_v24, %s11866_s26  ;;  %v8139_v24 = vpack.c.bf16 %v4731_v56, %v4729_v15 }
 0x3a1   : > { %v4048_v28 = vpop.permute.xlu1 %4047 }
 0x3a2   : > { %v3690_v2 = vpop.permute.xlu0 %3689  ;;  %4102 = vst.msk [vmem:[#allocation3 + $0x58] sm:$0x3] %vm11945_vm10, %v4048_v28  ;;  %vm11951_vm10 = vcmask 779968  }
 0x3a3   : > { %3743 = vst.msk [vmem:[#allocation3 + $0x68] sm:$0xff] %vm11946_vm5, %v3690_v2  ;;  %v10293_v17 = vpop.f32.mrb[2].mxu1  ;;  %2685 = vrot.lane.b32.xlu1 %v10176_v4, %s11863_s16  ;;  %vm11952_vm5 = vcmask 451968   ;;  %v10349_v2 = vld [vmem:[#allocation2 + $0x93] sm:$0xff] }
 0x3a4   : > { %4175 = vrot.lane.b32.xlu0 %v4126_v39, %s11869_s0  ;;  %v4473_v42 = vpop.f32.mrb[3].mxu1  ;;  %v4728_v39 = vld [vmem:[%s11758_s5 + $0x40] sm:$0xff] }
 0x3a5   : > { %v3044_v16 = vpop.permute.xlu1 %3043  ;;  %v4730_v42 = vld [vmem:[%s11758_s5 + $0x50] sm:$0xff] }
 0x3a6   : > { %v3452_v50 = vpop.permute.xlu0 %3451  ;;  %3099 = vst.msk [vmem:[#allocation3 + $0x60] sm:$0xff] %vm11947_vm9, %v3044_v16  ;;  %vm4581_vm9 = vcmask 130048  }
 0x3a7   : > { %3504 = vst.msk [vmem:[#allocation3 + $0x78] sm:$0x3] %vm1629_vm12, %v3452_v50  ;;  %3817 = vrot.lane.b32.xlu1 %v10305_v52, %s11872_s1 }
 0x3a8   : > { %3171 = vrot.lane.b32.xlu0 %v3122_v20, %s11868_s14  ;;  %v10364_v20 = vld [vmem:[#allocation2 + $0x94] sm:$0xff] }
 0x3a9   : > { %v4552_v25 = vpop.f32.mrb[4].mxu1  ;;  %v3166_v47 = vpop.permute.xlu1 %3165 }
 0x3aa   : > { %v4553_v34 = vadd.f32 %v10301_v58, %v4552_v25  ;;  %v4554_v19 = vpop.f32.mrb[5].mxu1  ;;  %3221 = vst.msk [vmem:[#allocation3 + $0x60] sm:$0xff] %vm11948_vm4, %v3166_v47  ;;  %v1832_v36 = vpop.permute.xlu0 %1831  ;;  %vm11953_vm4 = vcmask 517568   ;;  %v4811_v25 = vld [vmem:[%s11758_s5 + $0x78] sm:$0xff]  ;;  %v8141_v47 = vpack.c.bf16 %v4730_v42, %v4728_v39  ;;  %v4472_v39 = vadd.f32 %v10301_v58, %v10293_v17 }
 0x3ab   : > { %1883 = vst.msk [vmem:[#allocation3 + $0xa0] sm:$0xff] %vm11949_vm11, %v1832_v36  ;;  %2807 = vrot.lane.b32.xlu1 %v9540_v8, %s11871_s24  ;;  %vm11954_vm11 = vcmask 583168   ;;  %v8143_v19 = vpack.c.bf16 %v4811_v25, %v4809_v40  ;;  %v2148_v40 = vld [vmem:[#allocation2 + $0x69] sm:$0x3] }
 0x3ac   : > { %4295 = vrot.lane.b32.xlu0 %v4246_v44, %s11870_s25  ;;  %v4563_v21 = vmax.f32 %v4553_v34, 0.0  ;;  %v1538_v44 = vld [vmem:[#allocation2 + $0x59] sm:$0x3] }
 0x3ad   : > { %v3288_v46 = vpop.permute.xlu1 %3287 }
 0x3ae   : > { %v4565_v60 = vmax.f32 %v4561_v41, %v4563_v21  ;;  %3343 = vst.msk [vmem:[#allocation3 + $0x60] sm:$0xff] %vm11950_vm15, %v3288_v46  ;;  %v2802_v63 = vpop.permute.xlu0 %2801  ;;  %vm11955_vm15 = vcmask 326912   ;;  %v4808_v41 = vld [vmem:[%s11758_s5 + $0x60] sm:$0xff]  ;;  %v4810_v21 = vld [vmem:[%s11758_s5 + $0x70] sm:$0xff] }
 0x3af   : > { %2856 = vst.msk [vmem:[#allocation3 + $0x70] sm:$0x3] %vm11951_vm10, %v2802_v63  ;;  %3937 = vrot.lane.b32.xlu1 %v10319_v5, %s11865_s29  ;;  %vm11956_vm10 = vcmask 845568   ;;  %v1782_v63 = vld [vmem:[#allocation2 + $0x5b] sm:$0x3]  ;;  %v8145_v0 = vpack.c.bf16 %v4810_v21, %v4808_v41 }
 0x3b0   : > { %3293 = vrot.lane.b32.xlu0 %v3244_v48, %s11874_s19  ;;  %v4568_v49 = vrot.slane %v4565_v60, 1  ;;  %v4893_v48 = vld [vmem:[%s11758_s5 + $0x88] sm:$0xff] }
 0x3b1   : > { %v2196_v59 = vpop.permute.xlu1 %2195  ;;  %v2392_v21 = vld [vmem:[#allocation2 + $0x6b] sm:$0x3] }
 0x3b2   : > { %v10331_v1 = vmax.f32 %v4565_v60, %v4568_v49  ;;  %2248 = vst.msk [vmem:[#allocation3 + $0x90] sm:$0x3] %vm11952_vm5, %v2196_v59  ;;  %v2440_v23 = vpop.permute.xlu0 %2439  ;;  %vm11957_vm5 = vcmask 911168   ;;  %v4895_v49 = vld [vmem:[%s11758_s5 + $0x98] sm:$0xff] }
 0x3b3   : > { %4057 = vrot.lane.b32.xlu1 %v10334_v55, %s11867_s30  ;;  %v8147_v15 = vpack.c.bf16 %v4895_v49, %v4893_v48  ;;  %v2514_v48 = vld [vmem:[#allocation2 + $0x6c] sm:$0x3] }
 0x3b4   : > { %2929 = vrot.lane.b32.xlu0 %v10162_v57, %s11864_s12  ;;  %v4580_v29 = vrot.slane %v10331_v1, 2  ;;  %v4732_v59 = vrot.slane %v10331_v1, 4  ;;  %v4812_v17 = vrot.slane %v10331_v1, 6  ;;  %v3528_v49 = vld [vmem:[#allocation2 + $0x8b] sm:$0x3] }
 0x3b5   : > { %v2318_v9 = vpop.permute.xlu1 %2317 }
 0x3b6   : > { %7603 = vmatmul.mubr.msk.f32.vlgmr.msra.gmra.mrb[8].mxu1 %vm4581_vm9, %v4580_v29  ;;  %2370 = vst.msk [vmem:[#allocation3 + $0x90] sm:$0x3] %vm11953_vm4, %v2318_v9  ;;  %v2076_v28 = vpop.permute.xlu0 %2075  ;;  %vm11958_vm4 = vcmask 648768   ;;  %v1904_v29 = vld [vmem:[#allocation2 + $0x5c] sm:$0x3]  ;;  %v4892_v9 = vld [vmem:[%s11758_s5 + $0x80] sm:$0xff] }
 0x3b7   : > { %2492 = vst.msk [vmem:[#allocation3 + $0x90] sm:$0x3] %vm11954_vm11, %v2440_v23  ;;  %8138 = vmatpush1.bf16.msra.mxu1 %v8137_v30  ;;  %4177 = vrot.lane.b32.xlu1 %v10349_v2, %s11869_s0  ;;  %v2026_v30 = vld [vmem:[#allocation2 + $0x68] sm:$0x3]  ;;  %vm11959_vm11 = vcmask 1048512  }
 0x3b8   : > { %3051 = vrot.lane.b32.xlu0 %v10183_v10, %s11866_s26  ;;  %4721 = vmatprep.mubr.f32.mxu1 %v8765_v6 }
 0x3b9   : > { %v1954_v16 = vpop.permute.xlu1 %1953  ;;  %8140 = vmatprep.subr.bf16.mxu1 %v8139_v24  ;;  %v4894_v24 = vld [vmem:[%s11758_s5 + $0x90] sm:$0xff] }
 0x3ba   : > { %2005 = vst.msk [vmem:[#allocation3 + $0xa0] sm:$0xff] %vm11955_vm15, %v1954_v16  ;;  %v3046_v50 = vpop.permute.xlu0 %3045  ;;  %vm11960_vm15 = vcmask 195712   ;;  %v2270_v16 = vld [vmem:[#allocation2 + $0x6a] sm:$0x3]  ;;  %v8149_v25 = vpack.c.bf16 %v4894_v24, %v4892_v9  ;;  %v2758_v9 = vld [vmem:[#allocation2 + $0x79] sm:$0x3] }
 0x3bb   : > { %2127 = vst.msk [vmem:[#allocation3 + $0xa0] sm:$0xff] %vm2115_vm0, %v2076_v28  ;;  %4297 = vrot.lane.b32.xlu1 %v10364_v20, %s11870_s25  ;;  %v3768_v24 = vld [vmem:[#allocation2 + $0x98] sm:$0x3] }
 0x3bc   : > { %3173 = vrot.lane.b32.xlu0 %v10170_v13, %s11868_s14 }
 0x3bd   : > { %v2924_v34 = vpop.permute.xlu1 %2923 }
 0x3be   : > { %7604 = vmatmul.mubr.msk.f32.vlgmr.msra.gmra.mrb[8].mxu1 %vm4581_vm9, %v10331_v1  ;;  %2978 = vst.msk [vmem:[#allocation3 + $0x70] sm:$0x3] %vm11956_vm10, %v2924_v34  ;;  %v3454_v36 = vpop.permute.xlu0 %3453  ;;  %vm11961_vm10 = vcmask 261312  }
 0x3bf   : > { %3100 = vst.msk [vmem:[#allocation3 + $0x70] sm:$0x3] %vm11957_vm5, %v3046_v50  ;;  %8142 = vmatpush1.bf16.msra.mxu1 %v8141_v47  ;;  %1589 = vrot.lane.b32.xlu1 %v1538_v44, %s11860_s22  ;;  %vm11962_vm5 = vcmask 326912  }
 0x3c0   : > { %3505 = vst.msk [vmem:[#allocation3 + $0x88] sm:$0xff] %vm1627_vm8, %v3454_v36  ;;  %3295 = vrot.lane.b32.xlu0 %v10228_v26, %s11874_s19  ;;  %4799 = vmatprep.mubr.f32.mxu1 %v8765_v6  ;;  %v4562_v36 = vmax.f32 %v4472_v39, 0.0 }
 0x3c1   : > { %v2562_v46 = vpop.permute.xlu1 %2561  ;;  %8144 = vmatprep.subr.bf16.mxu1 %v8143_v19 }
 0x3c2   : > { %2614 = vst.msk [vmem:[#allocation3 + $0x90] sm:$0x3] %vm11958_vm4, %v2562_v46  ;;  %v3694_v60 = vpop.permute.xlu0 %3693  ;;  %vm11963_vm4 = vcmask 517568  }
 0x3c3   : > { %1833 = vrot.lane.b32.xlu1 %v1782_v63, %s11862_s13 }
 0x3c4   : > { %1711 = vrot.lane.b32.xlu0 %v1660_v54, %s11861_s15 }
 0x3c5   : > { %v2198_v23 = vpop.permute.xlu1 %2197 }
 0x3c6   : > { %7605 = vmatmul.mubr.msk.f32.vlgmr.msra.gmra.mrb[8].mxu1 %vm4581_vm9, %v4732_v59  ;;  %2249 = vst.msk [vmem:[#allocation3 + $0xa0] sm:$0xff] %vm2237_vm1, %v2198_v23  ;;  %v3292_v56 = vpop.permute.xlu0 %3291  ;;  %v4974_v23 = vld [vmem:[#allocation3 + $0x48] sm:$0xff] }
 0x3c7   : > { %3345 = vst.msk [vmem:[#allocation3 + $0x80] sm:$0xff] %vm11959_vm11, %v3292_v56  ;;  %8146 = vmatpush1.bf16.msra.mxu1 %v8145_v0  ;;  %2077 = vrot.lane.b32.xlu1 %v2026_v30, %s11865_s29  ;;  %vm11964_vm11 = vcmask 583168   ;;  %v3648_v56 = vld [vmem:[#allocation2 + $0x8c] sm:$0x3] }
 0x3c8   : > { %1955 = vrot.lane.b32.xlu0 %v1904_v29, %s11872_s1  ;;  %4879 = vmatprep.mubr.f32.mxu1 %v8765_v6 }
 0x3c9   : > { %v3574_v28 = vpop.permute.xlu1 %3573  ;;  %8148 = vmatprep.subr.bf16.mxu1 %v8147_v15  ;;  %v2636_v15 = vld [vmem:[#allocation2 + $0x78] sm:$0x3] }
 0x3ca   : > { %3625 = vst.msk [vmem:[#allocation3 + $0x88] sm:$0xff] %vm11960_vm15, %v3574_v28  ;;  %v3810_v42 = vpop.permute.xlu0 %3809  ;;  %vm11965_vm15 = vcmask 588800  }
 0x3cb   : > { %3745 = vst.msk [vmem:[#allocation3 + $0x88] sm:$0xff] %vm11961_vm10, %v3694_v60  ;;  %v4557_v50 = vpop.f32.mrb[6].mxu1  ;;  %2321 = vrot.lane.b32.xlu1 %v2270_v16, %s11869_s0  ;;  %vm11966_vm10 = vcmask 320768   ;;  %v3888_v16 = vld [vmem:[#allocation2 + $0x99] sm:$0x3] }
 0x3cc   : > { %3863 = vst.msk [vmem:[#allocation3 + $0x68] sm:$0xff] %vm11962_vm5, %v3810_v42  ;;  %v4558_v47 = vadd.f32 %v10301_v58, %v4557_v50  ;;  %2199 = vrot.lane.b32.xlu0 %v2148_v40, %s11867_s30  ;;  %v4559_v34 = vpop.f32.mrb[7].mxu1  ;;  %v3408_v58 = vld [vmem:[#allocation2 + $0x8a] sm:$0x3]  ;;  %vm11967_vm5 = vcmask 386368  }
 0x3cd   : > { %v4168_v19 = vpop.permute.xlu1 %4167  ;;  %v2880_v42 = vld [vmem:[#allocation2 + $0x7a] sm:$0x3] }
 0x3ce   : > { %v4564_v44 = vmax.f32 %v4558_v47, 0.0  ;;  %7606 = vmatmul.mubr.msk.f32.vlgmr.msra.gmra.mrb[8].mxu1 %vm4581_vm9, %v4812_v17  ;;  %4222 = vst.msk [vmem:[#allocation3 + $0x58] sm:$0x3] %vm11963_vm4, %v4168_v19  ;;  %v3930_v41 = vpop.permute.xlu0 %3929  ;;  %v4008_v47 = vld [vmem:[#allocation2 + $0x9a] sm:$0x3]  ;;  %vm11968_vm4 = vcmask 451968  }
 0x3cf   : > { %3983 = vst.msk [vmem:[#allocation3 + $0x68] sm:$0xff] %vm2115_vm0, %v3930_v41  ;;  %8150 = vmatpush1.bf16.msra.mxu1 %v8149_v25  ;;  %2443 = vrot.lane.b32.xlu1 %v2392_v21, %s11870_s25  ;;  %v3002_v25 = vld [vmem:[#allocation2 + $0x7b] sm:$0x3]  ;;  %v3246_v21 = vld [vmem:[#allocation2 + $0x88] sm:$0x3] }
 0x3d0   : > { %v4566_v46 = vmax.f32 %v4562_v36, %v4564_v44  ;;  %3459 = vrot.lane.b32.xlu0 %v3408_v58, %s11860_s22  ;;  %4963 = vmatprep.mubr.f32.mxu1 %v8765_v6  ;;  %v3124_v19 = vld [vmem:[#allocation2 + $0x7c] sm:$0x3] }
 0x3d1   : > { %v4288_v1 = vpop.permute.xlu1 %4287  ;;  %8151 = vmatprep.subr.bf16.mxu1 %v8760_v31  ;;  %v4128_v36 = vld [vmem:[#allocation2 + $0x9b] sm:$0x3] }
 0x3d2   : > { %v4889_v60 = vrot.slane %v4566_v46, 1  ;;  %4342 = vst.msk [vmem:[#allocation3 + $0x58] sm:$0x3] %vm11964_vm11, %v4288_v1  ;;  %v4050_v63 = vpop.permute.xlu0 %4049  ;;  %vm11969_vm11 = vcmask 517568   ;;  %v4248_v58 = vld [vmem:[#allocation2 + $0x9c] sm:$0x3] }
 0x3d3   : > { %4103 = vst.msk [vmem:[#allocation3 + $0x68] sm:$0xff] %vm2237_vm1, %v4050_v63  ;;  %2565 = vrot.lane.b32.xlu1 %v2514_v48, %s11873_s2 }
 0x3d4   : > { %v4891_v54 = vmax.f32 %v4566_v46, %v4889_v60  ;;  %3579 = vrot.lane.b32.xlu0 %v3528_v49, %s11861_s15  ;;  %v1539_v60 = vld [vmem:[#allocation2 + $0x61] sm:$0xff] }
 0x3d5   : > { %v3572_v0 = vpop.permute.xlu1 %3571  ;;  %v1661_v49 = vld [vmem:[#allocation2 + $0x62] sm:$0xff] }
 0x3d6   : > { %3624 = vst.msk [vmem:[#allocation3 + $0x78] sm:$0x3] %vm1751_vm13, %v3572_v0  ;;  %v4170_v59 = vpop.permute.xlu0 %4169  ;;  %7607 = vmatmul.mubr.msk.f32.vlgmr.msra.gmra.mrb[8].mxu1 %vm4581_vm9, %v4891_v54 }
 0x3d7   : > { %4223 = vst.msk [vmem:[#allocation3 + $0x68] sm:$0xff] %vm2359_vm2, %v4170_v59  ;;  %8153 = vmatpush1.bf16.msra.mxu1 %v9485_v32  ;;  %7608 = vmatprep.mubr.msk.f32.mxu1 %vm11965_vm15, %v4974_v23  ;;  %vm11970_vm15 = vcmask 326912   ;;  %v1783_v59 = vld [vmem:[#allocation2 + $0x63] sm:$0xff] }
 0x3d8   : > { %2687 = vrot.lane.b32.xlu1 %v2636_v15, %s11863_s16  ;;  %3699 = vrot.lane.b32.xlu0 %v3648_v56, %s11862_s13  ;;  %v1905_v15 = vld [vmem:[#allocation2 + $0x64] sm:$0xff] }
 0x3d9   : > { %8154 = vmatprep.subr.bf16.mxu1 %v8760_v31  ;;  %v3692_v30 = vpop.permute.xlu1 %3691 }
 0x3da   : > { %3744 = vst.msk [vmem:[#allocation3 + $0x78] sm:$0x3] %vm1873_vm14, %v3692_v30  ;;  %v4290_v29 = vpop.permute.xlu0 %4289 }
 0x3db   : > { %4343 = vst.msk [vmem:[#allocation3 + $0x68] sm:$0xff] %vm2481_vm3, %v4290_v29  ;;  %8156 = vmatpush1.bf16.msra.mxu1 %v9502_v53 }
 0x3dc   : > { %2809 = vrot.lane.b32.xlu1 %v2758_v9, %s11871_s24  ;;  %3819 = vrot.lane.b32.xlu0 %v3768_v24, %s11872_s1 }
 0x3dd   : > { %8157 = vmatprep.subr.bf16.mxu1 %v8760_v31  ;;  %v3812_v28 = vpop.permute.xlu1 %3811 }
 0x3de   : > { %3864 = vst.msk [vmem:[#allocation3 + $0x78] sm:$0x3] %vm11966_vm10, %v3812_v28  ;;  %v3932_v39 = vpop.permute.xlu0 %3931  ;;  %vm11971_vm10 = vcmask 976768   ;;  %v10526_v28 = vld [vmem:[%s11756_s3 + $0xc0] sm:$0xff] }
 0x3df   : > { %3984 = vst.msk [vmem:[#allocation3 + $0x78] sm:$0x3] %vm11967_vm5, %v3932_v39  ;;  %8159 = vmatpush1.bf16.msra.mxu1 %v9521_v3  ;;  %vm11972_vm5 = vcmask 714368   ;;  %v4976_v39 = vld [vmem:[#allocation3 + $0x58] sm:$0x3] }
 0x3e0   : > { %2931 = vrot.lane.b32.xlu1 %v2880_v42, %s11864_s12  ;;  %3939 = vrot.lane.b32.xlu0 %v3888_v16, %s11865_s29 }
 0x3e1   : > { %8160 = vmatprep.subr.bf16.mxu1 %v8760_v31  ;;  %v3456_v50 = vpop.permute.xlu1 %3455 }
 0x3e2   : > { %3506 = vst.msk [vmem:[#allocation3 + $0x98] sm:$0x3] %vm1629_vm12, %v3456_v50  ;;  %v3576_v40 = vpop.permute.xlu0 %3575  ;;  %v4975_v50 = vld [vmem:[#allocation3 + $0x50] sm:$0x3] }
 0x3e3   : > { %3626 = vst.msk [vmem:[#allocation3 + $0x98] sm:$0x3] %vm1751_vm13, %v3576_v40  ;;  %8162 = vmatpush1.bf16.msra.mxu1 %v9538_v22  ;;  %v5060_v40 = vld [vmem:[#allocation3 + $0x68] sm:$0xff] }
 0x3e4   : > { %3053 = vrot.lane.b32.xlu1 %v3002_v25, %s11866_s26  ;;  %4059 = vrot.lane.b32.xlu0 %v4008_v47, %s11867_s30 }
 0x3e5   : > { %8163 = vmatprep.subr.bf16.mxu1 %v8760_v31  ;;  %v4052_v34 = vpop.permute.xlu1 %4051 }
 0x3e6   : > { %4104 = vst.msk [vmem:[#allocation3 + $0x78] sm:$0x3] %vm11968_vm4, %v4052_v34  ;;  %v4172_v17 = vpop.permute.xlu0 %4171  ;;  %vm11973_vm4 = vcmask 583168   ;;  %v2393_v34 = vld [vmem:[#allocation2 + $0x73] sm:$0xff] }
 0x3e7   : > { %4224 = vst.msk [vmem:[#allocation3 + $0x78] sm:$0x3] %vm11969_vm11, %v4172_v17  ;;  %8165 = vmatpush1.bf16.msra.mxu1 %v9565_v18  ;;  %vm11974_vm11 = vcmask 320768  }
 0x3e8   : > { %3175 = vrot.lane.b32.xlu1 %v3124_v19, %s11868_s14  ;;  %4179 = vrot.lane.b32.xlu0 %v4128_v36, %s11869_s0  ;;  %v10562_v36 = vld [vmem:[#allocation2 + $0xa3] sm:$0xff] }
 0x3e9   : > { %8166 = vmatprep.subr.bf16.mxu1 %v8760_v31  ;;  %v3696_v44 = vpop.permute.xlu1 %3695 }
 0x3ea   : > { %3746 = vst.msk [vmem:[#allocation3 + $0x98] sm:$0x3] %vm1873_vm14, %v3696_v44  ;;  %v3814_v41 = vpop.permute.xlu0 %3813 }
 0x3eb   : > { %3865 = vst.msk [vmem:[#allocation3 + $0x88] sm:$0xff] %vm11970_vm15, %v3814_v41  ;;  %8168 = vmatpush1.bf16.msra.mxu1 %v9590_v37  ;;  %vm11975_vm15 = vcmask 588800   ;;  %v2515_v41 = vld [vmem:[#allocation2 + $0x74] sm:$0xff] }
 0x3ec   : > { %3297 = vrot.lane.b32.xlu1 %v3246_v21, %s11874_s19  ;;  %4299 = vrot.lane.b32.xlu0 %v4248_v58, %s11870_s25 }
 0x3ed   : > { %8169 = vmatprep.subr.bf16.mxu1 %v8760_v31  ;;  %v4054_v46 = vpop.permute.xlu1 %4053 }
 0x3ee   : > { %v3934_v1 = vpop.permute.xlu0 %3933 }
 0x3ef   : > { %3985 = vst.msk [vmem:[#allocation3 + $0x88] sm:$0xff] %vm2115_vm0, %v3934_v1  ;;  %8171 = vmatpush1.bf16.msra.mxu1 %v9604_v12 }
 0x3f0   : > { %4105 = vst.msk [vmem:[#allocation3 + $0x88] sm:$0xff] %vm2237_vm1, %v4054_v46  ;;  %1595 = vrot.lane.b32.xlu1 %v9540_v8, %s11860_s22  ;;  %1591 = vrot.lane.b32.xlu0 %v1539_v60, %s11860_s22  ;;  %v10583_v46 = vld [vmem:[#allocation2 + $0xa4] sm:$0xff] }
 0x3f1   : > { %8172 = vmatprep.subr.bf16.mxu1 %v8760_v31  ;;  %v4294_v63 = vpop.permute.xlu1 %4293 }
 0x3f2   : > { %v4174_v48 = vpop.permute.xlu0 %4173 }
 0x3f3   : > { %4225 = vst.msk [vmem:[#allocation3 + $0x88] sm:$0xff] %vm2359_vm2, %v4174_v48  ;;  %8174 = vmatpush1.bf16.msra.mxu1 %v9623_v62  ;;  %v10605_v48 = vld [vmem:[#allocation2 + $0xb0] sm:$0xff] }
 0x3f4   : > { %4345 = vst.msk [vmem:[#allocation3 + $0x88] sm:$0xff] %vm2481_vm3, %v4294_v63  ;;  %1717 = vrot.lane.b32.xlu1 %v10162_v57, %s11861_s15  ;;  %1713 = vrot.lane.b32.xlu0 %v1661_v49, %s11861_s15  ;;  %v10607_v49 = vld [vmem:[#allocation2 + $0xa0] sm:$0xff] }
 0x3f5   : > { %8175 = vmatprep.subr.bf16.mxu1 %v8760_v31  ;;  %v3168_v54 = vpop.permute.xlu1 %3167 }
 0x3f6   : > { %3222 = vst.msk [vmem:[#allocation3 + $0x70] sm:$0x3] %vm11971_vm10, %v3168_v54  ;;  %v2684_v0 = vpop.permute.xlu0 %2683  ;;  %vm11976_vm10 = vcmask 779968  }
 0x3f7   : > { %2736 = vst.msk [vmem:[#allocation3 + $0x90] sm:$0x3] %vm11972_vm5, %v2684_v0  ;;  %8177 = vmatpush1.bf16.msra.mxu1 %v9638_v27  ;;  %vm11977_vm5 = vcmask 1042368   ;;  %v10620_v0 = vld [vmem:[#allocation2 + $0x81] sm:$0xff] }
 0x3f8   : > { %1839 = vrot.lane.b32.xlu1 %v10183_v10, %s11862_s13  ;;  %1835 = vrot.lane.b32.xlu0 %v1783_v59, %s11862_s13  ;;  %v5559_v10 = vld [vmem:[#allocation3 + $0x80] sm:$0xff] }
 0x3f9   : > { %8178 = vmatprep.subr.bf16.mxu1 %v8760_v31  ;;  %v4292_v57 = vpop.permute.xlu1 %4291 }
 0x3fa   : > { %4344 = vst.msk [vmem:[#allocation3 + $0x78] sm:$0x3] %vm11973_vm4, %v4292_v57  ;;  %v3816_v23 = vpop.permute.xlu0 %3815  ;;  %vm11978_vm4 = vcmask 386368  }
 0x3fb   : > { %3866 = vst.msk [vmem:[#allocation3 + $0x98] sm:$0x3] %vm11974_vm11, %v3816_v23  ;;  %8180 = vmatpush1.bf16.msra.mxu1 %v9652_v35  ;;  %v5560_v56 = vld [vmem:[#allocation3 + $0x88] sm:$0xff]  ;;  %vm11979_vm11 = vmmov %vm11975_vm15 }
 0x3fc   : > { %1961 = vrot.lane.b32.xlu1 %v10170_v13, %s11872_s1  ;;  %1957 = vrot.lane.b32.xlu0 %v1905_v15, %s11872_s1  ;;  %v10632_v15 = vld [vmem:[#allocation2 + $0xb1] sm:$0xff] }
 0x3fd   : > { %7617 = vmatprep.mubr.msk.f32.mxu0 %vm11975_vm15, %v5560_v56  ;;  %8181 = vmatprep.subr.bf16.mxu1 %v8760_v31  ;;  %v2806_v30 = vpop.permute.xlu1 %2805  ;;  %vm11980_vm15 = vcmask 195712  }
 0x3fe   : > { %5634 = vmatmul.mubr.f32.vlgmr.msra.gmra.mrb[98].mxu0 %v5559_v10  ;;  %2858 = vst.msk [vmem:[#allocation3 + $0x90] sm:$0x3] %vm11976_vm10, %v2806_v30  ;;  %v2320_v29 = vpop.permute.xlu0 %2319  ;;  %vm11981_vm10 = vcmask 845568   ;;  %v10644_v10 = vld [vmem:[#allocation2 + $0x82] sm:$0xff] }
 0x3ff   : > { %2371 = vst.msk [vmem:[#allocation3 + $0xa0] sm:$0xff] %vm2359_vm2, %v2320_v29  ;;  %8183 = vmatpush1.bf16.msra.mxu1 %v9670_v7  ;;  %8281 = vmatpush1.bf16.msra.mxu0 %v9485_v32 }
 0x400   : > { %2083 = vrot.lane.b32.xlu1 %v10228_v26, %s11865_s29  ;;  %2079 = vrot.lane.b32.xlu0 %v10176_v4, %s11865_s29 }
 0x401   : > { %8184 = vmatprep.subr.bf16.mxu1 %v8760_v31  ;;  %v3458_v13 = vpop.permute.xlu1 %3457  ;;  %8282 = vmatprep.subr.bf16.mxu0 %v8760_v31 }
 0x402   : > { %3507 = vst.msk [vmem:[#allocation3 + $0xa8] sm:$0xff] %vm1627_vm8, %v3458_v13  ;;  %v3290_v9 = vpop.permute.xlu0 %3289  ;;  %v10656_v13 = vld [vmem:[#allocation2 + $0xb2] sm:$0xff] }
 0x403   : > { %3344 = vst.msk [vmem:[#allocation3 + $0x70] sm:$0x3] %vm11977_vm5, %v3290_v9  ;;  %8186 = vmatpush1.bf16.msra.mxu1 %v9687_v33  ;;  %8284 = vmatpush1.bf16.msra.mxu0 %v9502_v53  ;;  %vm11982_vm5 = vmmov %vm11979_vm11 }
 0x404   : > { %2205 = vrot.lane.b32.xlu1 %v9571_v51, %s11867_s30  ;;  %2201 = vrot.lane.b32.xlu0 %v9540_v8, %s11867_s30  ;;  %v4973_v51 = vld [vmem:[#allocation3 + $0x40] sm:$0xff]  ;;  %v2271_v8 = vld [vmem:[#allocation2 + $0x72] sm:$0xff] }
 0x405   : > { %5031 = vmatprep.subr.mxu1 %v8765_v6  ;;  %v2442_v4 = vpop.permute.xlu1 %2441  ;;  %8285 = vmatprep.subr.bf16.mxu0 %v8760_v31 }
 0x406   : > { %2493 = vst.msk [vmem:[#allocation3 + $0xa0] sm:$0xff] %vm2481_vm3, %v2442_v4  ;;  %v3936_v24 = vpop.permute.xlu0 %3935 }
 0x407   : > { %3986 = vst.msk [vmem:[#allocation3 + $0x98] sm:$0x3] %vm11978_vm4, %v3936_v24  ;;  %5032 = vmatpush1.msra.mxu1 %v10526_v28  ;;  %8287 = vmatpush1.bf16.msra.mxu0 %v9521_v3  ;;  %vm11983_vm4 = vcmask 654912   ;;  %v10667_v24 = vld [vmem:[#allocation2 + $0x83] sm:$0xff] }
 0x408   : > { %5048 = vmatmul.mubr.f32.vlgmr.msra.gmra.mrb[10].mxu1 %v4973_v51  ;;  %8187 = vmatprep.subr.bf16.mxu1 %v8760_v31 }
 0x409   : > { %2327 = vrot.lane.b32.xlu1 %v10237_v45, %s11869_s0  ;;  %2323 = vrot.lane.b32.xlu0 %v2271_v8, %s11869_s0  ;;  %v3578_v42 = vpop.permute.xlu1 %3577  ;;  %v10540_v45 = vld [vmem:[#allocation2 + $0xa2] sm:$0xff] }
 0x40a   : > { %7609 = vmatprep.mubr.msk.f32.mxu1 %vm11979_vm11, %v4976_v39  ;;  %8189 = vmatpush1.bf16.msra.mxu1 %v9485_v32  ;;  %3627 = vst.msk [vmem:[#allocation3 + $0xa8] sm:$0xff] %vm11980_vm15, %v3578_v42  ;;  %v2928_v16 = vpop.permute.xlu0 %2927  ;;  %vm11984_vm11 = vcmask 451968   ;;  %vm11985_vm15 = vcmask 261312   ;;  %v5059_v8 = vld [vmem:[#allocation3 + $0x60] sm:$0xff] }
 0x40b   : > { %2980 = vst.msk [vmem:[#allocation3 + $0x90] sm:$0x3] %vm11981_vm10, %v2928_v16  ;;  %8190 = vmatprep.subr.bf16.mxu1 %v8760_v31  ;;  %8288 = vmatprep.subr.bf16.mxu0 %v8760_v31  ;;  %vm11986_vm10 = vcmask 911168   ;;  %v5062_v16 = vld [vmem:[#allocation3 + $0x78] sm:$0x3] }
 0x40c   : > { %5053 = vmatmul.mubr.f32.gmra.mrb[12].mxu1 %v4975_v50  ;;  %8290 = vmatpush1.bf16.msra.mxu0 %v9538_v22  ;;  %v10677_v50 = vld [vmem:[#allocation2 + $0xb3] sm:$0xff] }
 0x40d   : > { %3465 = vrot.lane.b32.xlu1 %v10540_v45, %s11860_s22  ;;  %3461 = vrot.lane.b32.xlu0 %v10334_v55, %s11860_s22  ;;  %v2564_v25 = vpop.permute.xlu1 %2563 }
 0x40e   : > { %8192 = vmatpush1.bf16.msra.mxu1 %v9502_v53  ;;  %7610 = vmatprep.mubr.msk.f32.mxu1 %vm11982_vm5, %v5060_v40  ;;  %2615 = vst.msk [vmem:[#allocation3 + $0xa0] sm:$0xff] %vm11983_vm4, %v2564_v25  ;;  %v4056_v47 = vpop.permute.xlu0 %4055  ;;  %vm11987_vm5 = vcmask 720512   ;;  %vm11988_vm4 = vcmask 517568   ;;  %v5061_v40 = vld [vmem:[#allocation3 + $0x70] sm:$0x3] }
 0x40f   : > { %4106 = vst.msk [vmem:[#allocation3 + $0x98] sm:$0x3] %vm11984_vm11, %v4056_v47  ;;  %8193 = vmatprep.subr.bf16.mxu1 %v8760_v31  ;;  %8291 = vmatprep.subr.bf16.mxu0 %v8760_v31  ;;  %vm11989_vm11 = vcmask 326912   ;;  %v10687_v47 = vld [vmem:[#allocation2 + $0x84] sm:$0xff] }
 0x410   : > { %8293 = vmatpush1.bf16.msra.mxu0 %v9565_v18 }
 0x411   : > { %2449 = vrot.lane.b32.xlu1 %v10247_v14, %s11870_s25  ;;  %2445 = vrot.lane.b32.xlu0 %v2393_v34, %s11870_s25  ;;  %v3698_v17 = vpop.permute.xlu1 %3697 }
 0x412   : > { %8195 = vmatpush1.bf16.msra.mxu1 %v9521_v3  ;;  %3747 = vst.msk [vmem:[#allocation3 + $0xa8] sm:$0xff] %vm11985_vm15, %v3698_v17  ;;  %v3050_v19 = vpop.permute.xlu0 %3049  ;;  %8294 = vmatprep.subr.bf16.mxu0 %v8760_v31  ;;  %vm11990_vm15 = vcmask 976768  }
 0x413   : > { %3102 = vst.msk [vmem:[#allocation3 + $0x90] sm:$0x3] %vm11986_vm10, %v3050_v19  ;;  %8196 = vmatprep.subr.bf16.mxu1 %v8760_v31  ;;  %vm11991_vm10 = vcmask 583168   ;;  %v10698_v19 = vld [vmem:[#allocation2 + $0xb4] sm:$0xff] }
 0x414   : > { %8296 = vmatpush1.bf16.msra.mxu0 %v9590_v37 }
 0x415   : > { %3585 = vrot.lane.b32.xlu1 %v10562_v36, %s11861_s15  ;;  %3581 = vrot.lane.b32.xlu0 %v10349_v2, %s11861_s15  ;;  %v2686_v14 = vpop.permute.xlu1 %2685 }
 0x416   : > { %8198 = vmatpush1.bf16.msra.mxu1 %v9538_v22  ;;  %2737 = vst.msk [vmem:[#allocation3 + $0xa0] sm:$0xff] %vm11987_vm5, %v2686_v14  ;;  %v4176_v44 = vpop.permute.xlu0 %4175  ;;  %8297 = vmatprep.subr.bf16.mxu0 %v8760_v31  ;;  %vm11992_vm5 = vcmask 1042368  }
 0x417   : > { %4226 = vst.msk [vmem:[#allocation3 + $0x98] sm:$0x3] %vm11988_vm4, %v4176_v44  ;;  %8199 = vmatprep.subr.bf16.mxu1 %v8760_v31  ;;  %vm11993_vm4 = vcmask 588800   ;;  %v10708_v44 = vld [vmem:[#allocation2 + $0x90] sm:$0xff] }
 0x418   : > { %8299 = vmatpush1.bf16.msra.mxu0 %v9604_v12 }
 0x419   : > { %2571 = vrot.lane.b32.xlu1 %v10245_v61, %s11873_s2  ;;  %2567 = vrot.lane.b32.xlu0 %v2515_v41, %s11873_s2  ;;  %v3818_v21 = vpop.permute.xlu1 %3817 }
 0x41a   : > { %8201 = vmatpush1.bf16.msra.mxu1 %v9565_v18  ;;  %3867 = vst.msk [vmem:[#allocation3 + $0xa8] sm:$0xff] %vm11989_vm11, %v3818_v21  ;;  %v3172_v58 = vpop.permute.xlu0 %3171  ;;  %8300 = vmatprep.subr.bf16.mxu0 %v8760_v31  ;;  %vm11994_vm11 = vcmask 917312  }
 0x41b   : > { %3224 = vst.msk [vmem:[#allocation3 + $0x90] sm:$0x3] %vm11990_vm15, %v3172_v58  ;;  %8202 = vmatprep.subr.bf16.mxu1 %v8760_v31  ;;  %vm11995_vm15 = vcmask 982912   ;;  %v1542_v58 = vld [vmem:[#allocation2 + $0x79] sm:$0x3] }
 0x41c   : > { %8302 = vmatpush1.bf16.msra.mxu0 %v9623_v62 }
 0x41d   : > { %3705 = vrot.lane.b32.xlu1 %v10583_v46, %s11862_s13  ;;  %3701 = vrot.lane.b32.xlu0 %v10364_v20, %s11862_s13  ;;  %v2808_v61 = vpop.permute.xlu1 %2807 }
 0x41e   : > { %8204 = vmatpush1.bf16.msra.mxu1 %v9590_v37  ;;  %2859 = vst.msk [vmem:[#allocation3 + $0xa0] sm:$0xff] %vm2847_vm7, %v2808_v61  ;;  %v4296_v1 = vpop.permute.xlu0 %4295  ;;  %8303 = vmatprep.subr.bf16.mxu0 %v8760_v31  ;;  %v1540_v61 = vld [vmem:[#allocation2 + $0x69] sm:$0x3] }
 0x41f   : > { %4346 = vst.msk [vmem:[#allocation3 + $0x98] sm:$0x3] %vm11991_vm10, %v4296_v1  ;;  %8205 = vmatprep.subr.bf16.mxu1 %v8760_v31  ;;  %vm11996_vm10 = vcmask 1048512  }
 0x420   : > { %8305 = vmatpush1.bf16.msra.mxu0 %v9638_v27 }
 0x421   : > { %2693 = vrot.lane.b32.xlu1 %v10305_v52, %s11863_s16  ;;  %2689 = vrot.lane.b32.xlu0 %v10228_v26, %s11863_s16  ;;  %v3938_v60 = vpop.permute.xlu1 %3937 }
 0x422   : > { %8207 = vmatpush1.bf16.msra.mxu1 %v9604_v12  ;;  %3987 = vst.msk [vmem:[#allocation3 + $0xa8] sm:$0xff] %vm2115_vm0, %v3938_v60  ;;  %v3294_v63 = vpop.permute.xlu0 %3293  ;;  %8306 = vmatprep.subr.bf16.mxu0 %v8760_v31 }
 0x423   : > { %3346 = vst.msk [vmem:[#allocation3 + $0x90] sm:$0x3] %vm11992_vm5, %v3294_v63  ;;  %8208 = vmatprep.subr.bf16.mxu1 %v8760_v31  ;;  %vm11997_vm5 = vmmov %vm11993_vm4  ;;  %v1664_v63 = vld [vmem:[#allocation2 + $0x7a] sm:$0x3] }
 0x424   : > { %8308 = vmatpush1.bf16.msra.mxu0 %v9652_v35 }
 0x425   : > { %3825 = vrot.lane.b32.xlu1 %v10605_v48, %s11872_s1  ;;  %3821 = vrot.lane.b32.xlu0 %v10607_v49, %s11872_s1  ;;  %v4058_v26 = vpop.permute.xlu1 %4057 }
 0x426   : > { %8210 = vmatpush1.bf16.msra.mxu1 %v9623_v62  ;;  %4107 = vst.msk [vmem:[#allocation3 + $0xa8] sm:$0xff] %vm2237_vm1, %v4058_v26  ;;  %v2930_v52 = vpop.permute.xlu0 %2929  ;;  %v5562_v54 = vld [vmem:[#allocation3 + $0x98] sm:$0x3]  ;;  %8309 = vmatprep.subr.bf16.mxu0 %v8760_v31  ;;  %v1662_v26 = vld [vmem:[#allocation2 + $0x6a] sm:$0x3] }
 0x427   : > { %2981 = vst.msk [vmem:[#allocation3 + $0xa0] sm:$0xff] %vm2969_vm6, %v2930_v52  ;;  %8211 = vmatprep.subr.bf16.mxu1 %v8760_v31  ;;  %7618 = vmatprep.mubr.msk.f32.mxu0 %vm11993_vm4, %v5562_v54  ;;  %vm11998_vm4 = vcmask 320768  }
 0x428   : > { %8311 = vmatpush1.bf16.msra.mxu0 %v9670_v7 }
 0x429   : > { %2815 = vrot.lane.b32.xlu1 %v10319_v5, %s11871_s24  ;;  %2811 = vrot.lane.b32.xlu0 %v10620_v0, %s11871_s24  ;;  %v4178_v59 = vpop.permute.xlu1 %4177 }
 0x42a   : > { %8213 = vmatpush1.bf16.msra.mxu1 %v9638_v27  ;;  %4227 = vst.msk [vmem:[#allocation3 + $0xa8] sm:$0xff] %vm2359_vm2, %v4178_v59  ;;  %v3052_v57 = vpop.permute.xlu0 %3051  ;;  %v5561_v23 = vld [vmem:[#allocation3 + $0x90] sm:$0x3]  ;;  %8312 = vmatprep.subr.bf16.mxu0 %v8760_v31  ;;  %v1786_v59 = vld [vmem:[#allocation2 + $0x7b] sm:$0x3] }
 0x42b   : > { %3103 = vst.msk [vmem:[#allocation3 + $0xa0] sm:$0xff] %vm11994_vm11, %v3052_v57  ;;  %8214 = vmatprep.subr.bf16.mxu1 %v8760_v31  ;;  %5639 = vmatmul.mubr.f32.gmra.mrb[100].mxu0 %v5561_v23  ;;  %vm11999_vm11 = vcmask 386368   ;;  %v1784_v57 = vld [vmem:[#allocation2 + $0x6b] sm:$0x3] }
 0x42c   : > { %8314 = vmatpush1.bf16.msra.mxu0 %v9687_v33 }
 0x42d   : > { %3945 = vrot.lane.b32.xlu1 %v10632_v15, %s11865_s29  ;;  %3941 = vrot.lane.b32.xlu0 %v9684_v11, %s11865_s29  ;;  %v4298_v5 = vpop.permute.xlu1 %4297 }
 0x42e   : > { %8216 = vmatpush1.bf16.msra.mxu1 %v9652_v35  ;;  %4347 = vst.msk [vmem:[#allocation3 + $0xa8] sm:$0xff] %vm2481_vm3, %v4298_v5  ;;  %v3174_v56 = vpop.permute.xlu0 %3173  ;;  %5703 = vmatprep.subr.mxu0 %v8765_v6 }
 0x42f   : > { %3225 = vst.msk [vmem:[#allocation3 + $0xa0] sm:$0xff] %vm11995_vm15, %v3174_v56  ;;  %8217 = vmatprep.subr.bf16.mxu1 %v8760_v31  ;;  %vm12000_vm15 = vmmov %vm11997_vm5  ;;  %v1908_v56 = vld [vmem:[#allocation2 + $0x7c] sm:$0x3] }
 0x430   : > { %5704 = vmatpush1.msra.mxu0 %v10526_v28 }
 0x431   : > { %2937 = vrot.lane.b32.xlu1 %v10334_v55, %s11864_s12  ;;  %2933 = vrot.lane.b32.xlu0 %v10644_v10, %s11864_s12  ;;  %v1590_v30 = vpop.permute.xlu1 %1589 }
 0x432   : > { %8219 = vmatpush1.bf16.msra.mxu1 %v9670_v7  ;;  %1640 = vst.msk [vmem:[#allocation3 + $0xb0] sm:$0x3] %vm1629_vm12, %v1590_v30  ;;  %v3296_v29 = vpop.permute.xlu0 %3295  ;;  %8371 = vmatprep.subr.bf16.mxu0 %v8760_v31  ;;  %v1906_v30 = vld [vmem:[#allocation2 + $0x6c] sm:$0x3] }
 0x433   : > { %3347 = vst.msk [vmem:[#allocation3 + $0xa0] sm:$0xff] %vm11996_vm10, %v3296_v29  ;;  %8220 = vmatprep.subr.bf16.mxu1 %v8760_v31  ;;  %vm12001_vm10 = vcmask 451968  }
 0x435   : > { %4065 = vrot.lane.b32.xlu1 %v10656_v13, %s11867_s30  ;;  %4061 = vrot.lane.b32.xlu0 %v10540_v45, %s11867_s30  ;;  %v1834_v55 = vpop.permute.xlu1 %1833  ;;  %v5646_v9 = vld [vmem:[#allocation3 + $0xa8] sm:$0xff] }
 0x436   : > { %8222 = vmatpush1.bf16.msra.mxu1 %v9687_v33  ;;  %v1712_v4 = vpop.permute.xlu0 %1711  ;;  %7619 = vmatprep.mubr.msk.f32.mxu0 %vm11997_vm5, %v5646_v9  ;;  %vm12002_vm5 = vcmask 517568   ;;  %v2030_v9 = vld [vmem:[#allocation2 + $0x88] sm:$0x3] }
 0x437   : > { %1762 = vst.msk [vmem:[#allocation3 + $0xb0] sm:$0x3] %vm1751_vm13, %v1712_v4  ;;  %5117 = vmatprep.subr.mxu1 %v8765_v6  ;;  %v2028_v4 = vld [vmem:[#allocation2 + $0x78] sm:$0x3] }
 0x438   : > { %1884 = vst.msk [vmem:[#allocation3 + $0xb0] sm:$0x3] %vm1873_vm14, %v1834_v55 }
 0x439   : > { %3059 = vrot.lane.b32.xlu1 %v10349_v2, %s11866_s26  ;;  %3055 = vrot.lane.b32.xlu0 %v10667_v24, %s11866_s26  ;;  %v2078_v51 = vpop.permute.xlu1 %2077 }
 0x43a   : > { %5118 = vmatpush1.msra.mxu1 %v10526_v28  ;;  %v1956_v39 = vpop.permute.xlu0 %1955  ;;  %v5645_v42 = vld [vmem:[#allocation3 + $0xa0] sm:$0xff] }
 0x43b   : > { %5134 = vmatmul.mubr.f32.vlgmr.msra.gmra.mrb[14].mxu1 %v5059_v8  ;;  %2006 = vst.msk [vmem:[#allocation3 + $0xb0] sm:$0x3] %vm11998_vm4, %v1956_v39  ;;  %5720 = vmatmul.mubr.f32.vlgmr.msra.gmra.mrb[102].mxu0 %v5645_v42  ;;  %vm12003_vm4 = vcmask 583168   ;;  %v2152_v39 = vld [vmem:[#allocation2 + $0x89] sm:$0x3] }
 0x43c   : > { %2128 = vst.msk [vmem:[#allocation3 + $0xb0] sm:$0x3] %vm11999_vm11, %v2078_v51  ;;  %7611 = vmatprep.mubr.msk.f32.mxu1 %vm12000_vm15, %v5062_v16  ;;  %8373 = vmatpush1.bf16.msra.mxu0 %v9485_v32  ;;  %vm12004_vm11 = vcmask 648768   ;;  %vm12005_vm15 = vcmask 714368   ;;  %v2150_v42 = vld [vmem:[#allocation2 + $0x79] sm:$0x3] }
 0x43d   : > { %4185 = vrot.lane.b32.xlu1 %v10677_v50, %s11869_s0  ;;  %4181 = vrot.lane.b32.xlu0 %v10562_v36, %s11869_s0  ;;  %v2322_v2 = vpop.permute.xlu1 %2321 }
 0x43e   : > { %v2200_v25 = vpop.permute.xlu0 %2199  ;;  %8374 = vmatprep.subr.bf16.mxu0 %v8760_v31 }
 0x43f   : > { %5139 = vmatmul.mubr.f32.gmra.mrb[16].mxu1 %v5061_v40  ;;  %2250 = vst.msk [vmem:[#allocation3 + $0xb0] sm:$0x3] %vm12001_vm10, %v2200_v25  ;;  %vm12006_vm10 = vcmask 779968   ;;  %v2274_v40 = vld [vmem:[#allocation2 + $0x8a] sm:$0x3] }
 0x440   : > { %2372 = vst.msk [vmem:[#allocation3 + $0xb0] sm:$0x3] %vm12002_vm5, %v2322_v2  ;;  %8376 = vmatpush1.bf16.msra.mxu0 %v9502_v53  ;;  %5225 = vmatprep.mubr.f32.mxu1 %v8765_v6  ;;  %vm12007_vm5 = vcmask 320768   ;;  %v2272_v25 = vld [vmem:[#allocation2 + $0x7a] sm:$0x3] }
 0x441   : > { %3181 = vrot.lane.b32.xlu1 %v10364_v20, %s11868_s14  ;;  %3177 = vrot.lane.b32.xlu0 %v10687_v47, %s11868_s14  ;;  %v2444_v34 = vpop.permute.xlu1 %2443 }
 0x442   : > { %2494 = vst.msk [vmem:[#allocation3 + $0xb0] sm:$0x3] %vm12003_vm4, %v2444_v34  ;;  %v3460_v17 = vpop.permute.xlu0 %3459  ;;  %8377 = vmatprep.subr.bf16.mxu0 %v8760_v31  ;;  %vm12008_vm4 = vcmask 845568  }
 0x443   : > { %3508 = vst.msk [vmem:[#allocation3 + $0xb8] sm:$0x3] %vm1629_vm12, %v3460_v17 }
 0x444   : > { %8379 = vmatpush1.bf16.msra.mxu0 %v9521_v3 }
 0x445   : > { %4305 = vrot.lane.b32.xlu1 %v10698_v19, %s11870_s25  ;;  %4301 = vrot.lane.b32.xlu0 %v10583_v46, %s11870_s25  ;;  %v2566_v20 = vpop.permute.xlu1 %2565 }
 0x446   : > { %2616 = vst.msk [vmem:[#allocation3 + $0xb0] sm:$0x3] %vm12004_vm11, %v2566_v20  ;;  %v3580_v14 = vpop.permute.xlu0 %3579  ;;  %8380 = vmatprep.subr.bf16.mxu0 %v8760_v31  ;;  %vm12009_vm11 = vcmask 386368  }
 0x447   : > { %3628 = vst.msk [vmem:[#allocation3 + $0xb8] sm:$0x3] %vm1751_vm13, %v3580_v14 }
 0x448   : > { %8382 = vmatpush1.bf16.msra.mxu0 %v9538_v22 }
 0x449   : > { %3303 = vrot.lane.b32.xlu1 %v10607_v49, %s11874_s19  ;;  %3299 = vrot.lane.b32.xlu0 %v10708_v44, %s11874_s19 }
 0x44a   : > { %v2688_v41 = vpop.permute.xlu1 %2687  ;;  %v3700_v21 = vpop.permute.xlu0 %3699  ;;  %8383 = vmatprep.subr.bf16.mxu0 %v8760_v31 }
 0x44b   : > { %2738 = vst.msk [vmem:[#allocation3 + $0xb0] sm:$0x3] %vm12005_vm15, %v2688_v41  ;;  %vm12010_vm15 = vcmask 911168   ;;  %v3412_v41 = vld [vmem:[#allocation2 + $0xaa] sm:$0x3] }
 0x44c   : > { %3748 = vst.msk [vmem:[#allocation3 + $0xb8] sm:$0x3] %vm1873_vm14, %v3700_v21  ;;  %8385 = vmatpush1.bf16.msra.mxu0 %v9565_v18  ;;  %v3410_v21 = vld [vmem:[#allocation2 + $0x9a] sm:$0x3] }
 0x44d   : > { %1597 = vrot.lane.b32.xlu1 %v1542_v58, %s11860_s22  ;;  %1593 = vrot.lane.b32.xlu0 %v1540_v61, %s11860_s22 }
 0x44e   : > { %v2810_v1 = vpop.permute.xlu1 %2809  ;;  %v3820_v60 = vpop.permute.xlu0 %3819  ;;  %8386 = vmatprep.subr.bf16.mxu0 %v8760_v31 }
 0x44f   : > { %2860 = vst.msk [vmem:[#allocation3 + $0xb0] sm:$0x3] %vm12006_vm10, %v2810_v1  ;;  %vm12011_vm10 = vcmask 451968   ;;  %v2396_v1 = vld [vmem:[#allocation2 + $0x8b] sm:$0x3] }
 0x450   : > { %3868 = vst.msk [vmem:[#allocation3 + $0xb8] sm:$0x3] %vm12007_vm5, %v3820_v60  ;;  %8388 = vmatpush1.bf16.msra.mxu0 %v9590_v37  ;;  %vm12012_vm5 = vcmask 976768   ;;  %v2394_v60 = vld [vmem:[#allocation2 + $0x7b] sm:$0x3] }
 0x451   : > { %1719 = vrot.lane.b32.xlu1 %v1664_v63, %s11861_s15  ;;  %1715 = vrot.lane.b32.xlu0 %v1662_v26, %s11861_s15 }
 0x452   : > { %v2932_v52 = vpop.permute.xlu1 %2931  ;;  %v3940_v54 = vpop.permute.xlu0 %3939  ;;  %8389 = vmatprep.subr.bf16.mxu0 %v8760_v31 }
 0x453   : > { %2982 = vst.msk [vmem:[#allocation3 + $0xb0] sm:$0x3] %vm12008_vm4, %v2932_v52  ;;  %vm12013_vm4 = vcmask 517568   ;;  %v3532_v52 = vld [vmem:[#allocation2 + $0xab] sm:$0x3] }
 0x454   : > { %3988 = vst.msk [vmem:[#allocation3 + $0xb8] sm:$0x3] %vm12009_vm11, %v3940_v54  ;;  %8391 = vmatpush1.bf16.msra.mxu0 %v9604_v12  ;;  %vm12014_vm11 = vcmask 1042368   ;;  %v3530_v54 = vld [vmem:[#allocation2 + $0x9b] sm:$0x3] }
 0x455   : > { %1841 = vrot.lane.b32.xlu1 %v1786_v59, %s11862_s13  ;;  %1837 = vrot.lane.b32.xlu0 %v1784_v57, %s11862_s13 }
 0x456   : > { %v3054_v23 = vpop.permute.xlu1 %3053  ;;  %v4060_v5 = vpop.permute.xlu0 %4059  ;;  %8392 = vmatprep.subr.bf16.mxu0 %v8760_v31 }
 0x457   : > { %3104 = vst.msk [vmem:[#allocation3 + $0xb0] sm:$0x3] %vm12010_vm15, %v3054_v23  ;;  %vm12015_vm15 = vcmask 583168   ;;  %v2518_v23 = vld [vmem:[#allocation2 + $0x8c] sm:$0x3] }
 0x458   : > { %4108 = vst.msk [vmem:[#allocation3 + $0xb8] sm:$0x3] %vm12011_vm10, %v4060_v5  ;;  %8394 = vmatpush1.bf16.msra.mxu0 %v9623_v62  ;;  %vm12016_vm10 = vcmask 195712  }
 0x459   : > { %1963 = vrot.lane.b32.xlu1 %v1908_v56, %s11872_s1  ;;  %1959 = vrot.lane.b32.xlu0 %v1906_v30, %s11872_s1  ;;  %v3652_v30 = vld [vmem:[#allocation2 + $0xac] sm:$0x3] }
 0x45a   : > { %v3176_v29 = vpop.permute.xlu1 %3175  ;;  %v4180_v55 = vpop.permute.xlu0 %4179  ;;  %8395 = vmatprep.subr.bf16.mxu0 %v8760_v31 }
 0x45b   : > { %3226 = vst.msk [vmem:[#allocation3 + $0xb0] sm:$0x3] %vm12012_vm5, %v3176_v29  ;;  %vm12017_vm5 = vmmov %vm12016_vm10  ;;  %v3650_v29 = vld [vmem:[#allocation2 + $0x9c] sm:$0x3] }
 0x45c   : > { %4228 = vst.msk [vmem:[#allocation3 + $0xb8] sm:$0x3] %vm12013_vm4, %v4180_v55  ;;  %8397 = vmatpush1.bf16.msra.mxu0 %v9638_v27  ;;  %vm12018_vm4 = vcmask 588800  }
 0x45d   : > { %2085 = vrot.lane.b32.xlu1 %v2030_v9, %s11865_s29  ;;  %2081 = vrot.lane.b32.xlu0 %v2028_v4, %s11865_s29  ;;  %v2640_v4 = vld [vmem:[#allocation2 + $0x98] sm:$0x3] }
 0x45e   : > { %v3298_v51 = vpop.permute.xlu1 %3297  ;;  %v4300_v8 = vpop.permute.xlu0 %4299  ;;  %8398 = vmatprep.subr.bf16.mxu0 %v8760_v31 }
 0x45f   : > { %3348 = vst.msk [vmem:[#allocation3 + $0xb0] sm:$0x3] %vm12014_vm11, %v3298_v51  ;;  %vm12019_vm11 = vcmask 261312   ;;  %v2638_v51 = vld [vmem:[#allocation2 + $0x88] sm:$0x3] }
 0x460   : > { %4348 = vst.msk [vmem:[#allocation3 + $0xb8] sm:$0x3] %vm12015_vm15, %v4300_v8  ;;  %8400 = vmatpush1.bf16.msra.mxu0 %v9652_v35  ;;  %vm12020_vm15 = vmmov %vm12019_vm11 }
 0x461   : > { %2207 = vrot.lane.b32.xlu1 %v2152_v39, %s11867_s30  ;;  %2203 = vrot.lane.b32.xlu0 %v2150_v42, %s11867_s30  ;;  %v3772_v42 = vld [vmem:[#allocation2 + $0xb8] sm:$0x3] }
 0x462   : > { %v1596_v16 = vpop.permute.xlu1 %1595  ;;  %v1592_v2 = vpop.permute.xlu0 %1591  ;;  %8401 = vmatprep.subr.bf16.mxu0 %v8760_v31 }
 0x463   : > { %1643 = vst.msk [vmem:[#allocation3 + $0xe0] sm:$0xff] %vm1627_vm8, %v1596_v16  ;;  %1641 = vst.msk [vmem:[#allocation3 + $0xc0] sm:$0xff] %vm1627_vm8, %v1592_v2  ;;  %v3770_v16 = vld [vmem:[#allocation2 + $0xa8] sm:$0x3] }
 0x464   : > { %8403 = vmatpush1.bf16.msra.mxu0 %v9670_v7 }
 0x465   : > { %2329 = vrot.lane.b32.xlu1 %v2274_v40, %s11869_s0  ;;  %2325 = vrot.lane.b32.xlu0 %v2272_v25, %s11869_s0  ;;  %v2762_v25 = vld [vmem:[#allocation2 + $0x99] sm:$0x3] }
 0x466   : > { %v1718_v34 = vpop.permute.xlu1 %1717  ;;  %v1714_v17 = vpop.permute.xlu0 %1713  ;;  %v5647_v14 = vld [vmem:[#allocation3 + $0xb0] sm:$0x3]  ;;  %8404 = vmatprep.subr.bf16.mxu0 %v8760_v31 }
 0x467   : > { %v5648_v20 = vld [vmem:[#allocation3 + $0xb8] sm:$0x3]  ;;  %1765 = vst.msk [vmem:[#allocation3 + $0xe0] sm:$0xff] %vm12016_vm10, %v1718_v34  ;;  %vm12021_vm10 = vcmask 326912   ;;  %v2760_v34 = vld [vmem:[#allocation2 + $0x89] sm:$0x3] }
 0x468   : > { %1763 = vst.msk [vmem:[#allocation3 + $0xc0] sm:$0xff] %vm12017_vm5, %v1714_v17  ;;  %7620 = vmatprep.mubr.msk.f32.mxu0 %vm12018_vm4, %v5648_v20  ;;  %8406 = vmatpush1.bf16.msra.mxu0 %v9687_v33  ;;  %vm12022_vm5 = vmmov %vm12021_vm10  ;;  %vm12023_vm4 = vcmask 195712  }
 0x469   : > { %5725 = vmatmul.mubr.f32.gmra.mrb[104].mxu0 %v5647_v14  ;;  %3467 = vrot.lane.b32.xlu1 %v3412_v41, %s11860_s22  ;;  %v3892_v14 = vld [vmem:[#allocation2 + $0xb9] sm:$0x3]  ;;  %v3890_v41 = vld [vmem:[#allocation2 + $0xa9] sm:$0x3] }
 0x46a   : > { %3463 = vrot.lane.b32.xlu0 %v3410_v21, %s11860_s22  ;;  %v1840_v58 = vpop.permute.xlu1 %1839  ;;  %v1836_v61 = vpop.permute.xlu0 %1835  ;;  %6289 = vmatprep.subr.mxu0 %v8765_v6 }
 0x46b   : > { %1887 = vst.msk [vmem:[#allocation3 + $0xe0] sm:$0xff] %vm12019_vm11, %v1840_v58  ;;  %vm12024_vm11 = vmmov %vm12023_vm4 }
 0x46c   : > { %1885 = vst.msk [vmem:[#allocation3 + $0xc0] sm:$0xff] %vm12020_vm15, %v1836_v61  ;;  %6290 = vmatpush1.msra.mxu0 %v10526_v28  ;;  %v2516_v28 = vld [vmem:[#allocation2 + $0x7c] sm:$0x3]  ;;  %vm12025_vm15 = vcmask 654912   ;;  %v2884_v61 = vld [vmem:[#allocation2 + $0x9a] sm:$0x3] }
 0x46d   : > { %2451 = vrot.lane.b32.xlu1 %v2396_v1, %s11870_s25  ;;  %8427 = vmatprep.subr.bf16.mxu0 %v8760_v31  ;;  %v2882_v1 = vld [vmem:[#allocation2 + $0x8a] sm:$0x3] }
 0x46e   : > { %2447 = vrot.lane.b32.xlu0 %v2394_v60, %s11870_s25  ;;  %v1962_v63 = vpop.permute.xlu1 %1961  ;;  %v1958_v26 = vpop.permute.xlu0 %1957 }
 0x46f   : > { %2009 = vst.msk [vmem:[#allocation3 + $0xe0] sm:$0xff] %vm12021_vm10, %v1962_v63  ;;  %vm12026_vm10 = vmmov %vm12025_vm15 }
 0x470   : > { %2007 = vst.msk [vmem:[#allocation3 + $0xc0] sm:$0xff] %vm12022_vm5, %v1958_v26  ;;  %vm12027_vm5 = vcmask 261312   ;;  %v4012_v26 = vld [vmem:[#allocation2 + $0xba] sm:$0x3] }
 0x471   : > { %3587 = vrot.lane.b32.xlu1 %v3532_v52, %s11861_s15  ;;  %v4010_v52 = vld [vmem:[#allocation2 + $0xaa] sm:$0x3] }
 0x472   : > { %3583 = vrot.lane.b32.xlu0 %v3530_v54, %s11861_s15  ;;  %v2084_v59 = vpop.permute.xlu1 %2083  ;;  %v2080_v57 = vpop.permute.xlu0 %2079 }
 0x473   : > { %2131 = vst.msk [vmem:[#allocation3 + $0xe0] sm:$0xff] %vm2115_vm0, %v2084_v59  ;;  %2129 = vst.msk [vmem:[#allocation3 + $0xc0] sm:$0xff] %vm2115_vm0, %v2080_v57  ;;  %v3006_v57 = vld [vmem:[#allocation2 + $0x9b] sm:$0x3] }
 0x475   : > { %2573 = vrot.lane.b32.xlu1 %v2518_v23, %s11873_s2  ;;  %v3004_v23 = vld [vmem:[#allocation2 + $0x8b] sm:$0x3] }
 0x476   : > { %2569 = vrot.lane.b32.xlu0 %v2516_v28, %s11873_s2  ;;  %v2206_v5 = vpop.permute.xlu1 %2205  ;;  %v2202_v56 = vpop.permute.xlu0 %2201 }
 0x477   : > { %2253 = vst.msk [vmem:[#allocation3 + $0xe0] sm:$0xff] %vm2237_vm1, %v2206_v5  ;;  %2251 = vst.msk [vmem:[#allocation3 + $0xc0] sm:$0xff] %vm2237_vm1, %v2202_v56  ;;  %v5155_v56 = vld [vmem:[%s11758_s5 + $0xa8] sm:$0xff] }
 0x479   : > { %3707 = vrot.lane.b32.xlu1 %v3652_v30, %s11862_s13  ;;  %v5157_v30 = vld [vmem:[%s11758_s5 + $0xb8] sm:$0xff] }
 0x47a   : > { %3703 = vrot.lane.b32.xlu0 %v3650_v29, %s11862_s13  ;;  %v5154_v29 = vld [vmem:[%s11758_s5 + $0xa0] sm:$0xff] }
 0x47b   : > { %v2328_v55 = vpop.permute.xlu1 %2327  ;;  %v2324_v9 = vpop.permute.xlu0 %2323 }
 0x47c   : > { %2375 = vst.msk [vmem:[#allocation3 + $0xe0] sm:$0xff] %vm2359_vm2, %v2328_v55  ;;  %2373 = vst.msk [vmem:[#allocation3 + $0xc0] sm:$0xff] %vm2359_vm2, %v2324_v9  ;;  %v4132_v55 = vld [vmem:[#allocation2 + $0xbb] sm:$0x3]  ;;  %v4130_v9 = vld [vmem:[#allocation2 + $0xab] sm:$0x3] }
 0x47d   : > { %2695 = vrot.lane.b32.xlu1 %v2640_v4, %s11863_s16  ;;  %v8223_v4 = vpack.c.bf16 %v5157_v30, %v5155_v56 }
 0x47e   : > { %2691 = vrot.lane.b32.xlu0 %v2638_v51, %s11863_s16  ;;  %v5156_v51 = vld [vmem:[%s11758_s5 + $0xb0] sm:$0xff] }
 0x47f   : > { %v3466_v8 = vpop.permute.xlu1 %3465  ;;  %v3462_v39 = vpop.permute.xlu0 %3461  ;;  %8224 = vmatprep.subr.bf16.mxu1 %v8223_v4 }
 0x480   : > { %3511 = vst.msk [vmem:[#allocation3 + $0xe8] sm:$0xff] %vm1627_vm8, %v3466_v8  ;;  %3509 = vst.msk [vmem:[#allocation3 + $0xc8] sm:$0xff] %vm1627_vm8, %v3462_v39  ;;  %v8225_v8 = vpack.c.bf16 %v5156_v51, %v5154_v29 }
 0x481   : > { %3827 = vrot.lane.b32.xlu1 %v3772_v42, %s11872_s1 }
 0x482   : > { %3823 = vrot.lane.b32.xlu0 %v3770_v16, %s11872_s1  ;;  %8226 = vmatpush1.bf16.msra.mxu1 %v8225_v8  ;;  %v5235_v16 = vld [vmem:[%s11758_s5 + $0xc8] sm:$0xff] }
 0x483   : > { %v2450_v2 = vpop.permute.xlu1 %2449  ;;  %v2446_v40 = vpop.permute.xlu0 %2445 }
 0x484   : > { %2497 = vst.msk [vmem:[#allocation3 + $0xe0] sm:$0xff] %vm2481_vm3, %v2450_v2  ;;  %2495 = vst.msk [vmem:[#allocation3 + $0xc0] sm:$0xff] %vm2481_vm3, %v2446_v40  ;;  %v5237_v2 = vld [vmem:[%s11758_s5 + $0xd8] sm:$0xff] }
 0x485   : > { %2817 = vrot.lane.b32.xlu1 %v2762_v25, %s11871_s24  ;;  %v3128_v40 = vld [vmem:[#allocation2 + $0x9c] sm:$0x3]  ;;  %v3126_v25 = vld [vmem:[#allocation2 + $0x8c] sm:$0x3] }
 0x486   : > { %2813 = vrot.lane.b32.xlu0 %v2760_v34, %s11871_s24  ;;  %v8227_v34 = vpack.c.bf16 %v5237_v2, %v5235_v16 }
 0x487   : > { %v3586_v17 = vpop.permute.xlu1 %3585  ;;  %v3582_v20 = vpop.permute.xlu0 %3581 }
 0x488   : > { %3631 = vst.msk [vmem:[#allocation3 + $0xe8] sm:$0xff] %vm12023_vm4, %v3586_v17  ;;  %vm12028_vm4 = vmmov %vm12027_vm5  ;;  %8228 = vmatprep.subr.bf16.mxu1 %v8227_v34 }
 0x489   : > { %3629 = vst.msk [vmem:[#allocation3 + $0xc8] sm:$0xff] %vm12024_vm11, %v3582_v20  ;;  %3947 = vrot.lane.b32.xlu1 %v3892_v14, %s11865_s29  ;;  %vm12029_vm11 = vcmask 720512   ;;  %v4252_v14 = vld [vmem:[#allocation2 + $0xbc] sm:$0x3] }
 0x48a   : > { %3943 = vrot.lane.b32.xlu0 %v3890_v41, %s11865_s29  ;;  %v4250_v41 = vld [vmem:[#allocation2 + $0xac] sm:$0x3] }
 0x48b   : > { %v2572_v21 = vpop.permute.xlu1 %2571  ;;  %v2568_v58 = vpop.permute.xlu0 %2567 }
 0x48c   : > { %2619 = vst.msk [vmem:[#allocation3 + $0xe0] sm:$0xff] %vm12025_vm15, %v2572_v21  ;;  %vm12030_vm15 = vmmov %vm12029_vm11 }
 0x48d   : > { %2617 = vst.msk [vmem:[#allocation3 + $0xc0] sm:$0xff] %vm12026_vm10, %v2568_v58  ;;  %2939 = vrot.lane.b32.xlu1 %v2884_v61, %s11864_s12  ;;  %vm12031_vm10 = vcmask 326912   ;;  %v3250_v61 = vld [vmem:[#allocation2 + $0xa8] sm:$0x3] }
 0x48e   : > { %2935 = vrot.lane.b32.xlu0 %v2882_v1, %s11864_s12  ;;  %v3248_v1 = vld [vmem:[#allocation2 + $0x98] sm:$0x3] }
 0x48f   : > { %v3706_v60 = vpop.permute.xlu1 %3705  ;;  %v3702_v63 = vpop.permute.xlu0 %3701 }
 0x490   : > { %3751 = vst.msk [vmem:[#allocation3 + $0xe8] sm:$0xff] %vm12027_vm5, %v3706_v60  ;;  %vm12032_vm5 = vmmov %vm12031_vm10 }
 0x491   : > { %3749 = vst.msk [vmem:[#allocation3 + $0xc8] sm:$0xff] %vm12028_vm4, %v3702_v63  ;;  %4067 = vrot.lane.b32.xlu1 %v4012_v26, %s11867_s30  ;;  %vm12033_vm4 = vcmask 917312  }
 0x492   : > { %4063 = vrot.lane.b32.xlu0 %v4010_v52, %s11867_s30 }
 0x493   : > { %v2694_v54 = vpop.permute.xlu1 %2693  ;;  %v2690_v59 = vpop.permute.xlu0 %2689 }
 0x494   : > { %2741 = vst.msk [vmem:[#allocation3 + $0xe0] sm:$0xff] %vm12029_vm11, %v2694_v54  ;;  %vm12034_vm11 = vmmov %vm12033_vm4  ;;  %v1667_v54 = vld [vmem:[#allocation2 + $0x92] sm:$0xff] }
 0x495   : > { %2739 = vst.msk [vmem:[#allocation3 + $0xc0] sm:$0xff] %vm12030_vm15, %v2690_v59  ;;  %3061 = vrot.lane.b32.xlu1 %v3006_v57, %s11866_s26  ;;  %vm12035_vm15 = vcmask 982912  }
 0x496   : > { %3057 = vrot.lane.b32.xlu0 %v3004_v23, %s11866_s26  ;;  %v1789_v23 = vld [vmem:[#allocation2 + $0x93] sm:$0xff] }
 0x497   : > { %v3826_v28 = vpop.permute.xlu1 %3825  ;;  %v3822_v5 = vpop.permute.xlu0 %3821 }
 0x498   : > { %3871 = vst.msk [vmem:[#allocation3 + $0xe8] sm:$0xff] %vm12031_vm10, %v3826_v28  ;;  %vm12036_vm10 = vmmov %vm12035_vm15 }
 0x499   : > { %3869 = vst.msk [vmem:[#allocation3 + $0xc8] sm:$0xff] %vm12032_vm5, %v3822_v5  ;;  %4187 = vrot.lane.b32.xlu1 %v4132_v55, %s11869_s0  ;;  %v1911_v5 = vld [vmem:[#allocation2 + $0x94] sm:$0xff]  ;;  %vm12037_vm5 = vcmask 1048512  }
 0x49a   : > { %4183 = vrot.lane.b32.xlu0 %v4130_v9, %s11869_s0 }
 0x49b   : > { %v2816_v39 = vpop.permute.xlu1 %2815  ;;  %v2812_v42 = vpop.permute.xlu0 %2811 }
 0x49c   : > { %2863 = vst.msk [vmem:[#allocation3 + $0xe0] sm:$0xff] %vm2847_vm7, %v2816_v39  ;;  %2861 = vst.msk [vmem:[#allocation3 + $0xc0] sm:$0xff] %vm2847_vm7, %v2812_v42  ;;  %v10903_v42 = vld [vmem:[#allocation2 + $0xc3] sm:$0xff] }
 0x49d   : > { %3183 = vrot.lane.b32.xlu1 %v3128_v40, %s11868_s14 }
 0x49e   : > { %3179 = vrot.lane.b32.xlu0 %v3126_v25, %s11868_s14 }
 0x49f   : > { %v3946_v17 = vpop.permute.xlu1 %3945  ;;  %v3942_v20 = vpop.permute.xlu0 %3941 }
 0x4a0   : > { %3991 = vst.msk [vmem:[#allocation3 + $0xe8] sm:$0xff] %vm2115_vm0, %v3946_v17  ;;  %3989 = vst.msk [vmem:[#allocation3 + $0xc8] sm:$0xff] %vm2115_vm0, %v3942_v20  ;;  %v10922_v17 = vld [vmem:[#allocation2 + $0xc4] sm:$0xff] }
 0x4a1   : > { %4307 = vrot.lane.b32.xlu1 %v4252_v14, %s11870_s25 }
 0x4a2   : > { %4303 = vrot.lane.b32.xlu0 %v4250_v41, %s11870_s25 }
 0x4a3   : > { %v2938_v21 = vpop.permute.xlu1 %2937  ;;  %v2934_v58 = vpop.permute.xlu0 %2933 }
 0x4a4   : > { %2985 = vst.msk [vmem:[#allocation3 + $0xe0] sm:$0xff] %vm2969_vm6, %v2938_v21  ;;  %2983 = vst.msk [vmem:[#allocation3 + $0xc0] sm:$0xff] %vm2969_vm6, %v2934_v58  ;;  %v3775_v58 = vld [vmem:[#allocation2 + $0xd0] sm:$0xff] }
 0x4a5   : > { %3305 = vrot.lane.b32.xlu1 %v3250_v61, %s11874_s19  ;;  %v10942_v61 = vld [vmem:[#allocation2 + $0xc0] sm:$0xff] }
 0x4a6   : > { %3301 = vrot.lane.b32.xlu0 %v3248_v1, %s11874_s19 }
 0x4a7   : > { %v4066_v60 = vpop.permute.xlu1 %4065  ;;  %v4062_v63 = vpop.permute.xlu0 %4061 }
 0x4a8   : > { %4111 = vst.msk [vmem:[#allocation3 + $0xe8] sm:$0xff] %vm2237_vm1, %v4066_v60  ;;  %4109 = vst.msk [vmem:[#allocation3 + $0xc8] sm:$0xff] %vm2237_vm1, %v4062_v63 }
 0x4a9   : > { %1603 = vrot.lane.b32.xlu1 %v9727_v38, %s11860_s22 }
 0x4aa   : > { %1599 = vrot.lane.b32.xlu0 %v10620_v0, %s11860_s22 }
 0x4ab   : > { %v3060_v26 = vpop.permute.xlu1 %3059  ;;  %v3056_v52 = vpop.permute.xlu0 %3055 }
 0x4ac   : > { %3107 = vst.msk [vmem:[#allocation3 + $0xe0] sm:$0xff] %vm12033_vm4, %v3060_v26  ;;  %vm12038_vm4 = vmmov %vm12037_vm5 }
 0x4ad   : > { %3105 = vst.msk [vmem:[#allocation3 + $0xc0] sm:$0xff] %vm12034_vm11, %v3056_v52  ;;  %1725 = vrot.lane.b32.xlu1 %v1667_v54, %s11861_s15  ;;  %vm12039_vm11 = vcmask 588800  }
 0x4ae   : > { %1721 = vrot.lane.b32.xlu0 %v10644_v10, %s11861_s15 }
 0x4af   : > { %v4186_v59 = vpop.permute.xlu1 %4185  ;;  %v4182_v57 = vpop.permute.xlu0 %4181 }
 0x4b0   : > { %4231 = vst.msk [vmem:[#allocation3 + $0xe8] sm:$0xff] %vm2359_vm2, %v4186_v59  ;;  %4229 = vst.msk [vmem:[#allocation3 + $0xc8] sm:$0xff] %vm2359_vm2, %v4182_v57  ;;  %v2885_v59 = vld [vmem:[#allocation2 + $0xa2] sm:$0xff] }
 0x4b1   : > { %1847 = vrot.lane.b32.xlu1 %v1789_v23, %s11862_s13 }
 0x4b2   : > { %1843 = vrot.lane.b32.xlu0 %v10667_v24, %s11862_s13 }
 0x4b3   : > { %v3182_v0 = vpop.permute.xlu1 %3181  ;;  %v3178_v28 = vpop.permute.xlu0 %3177 }
 0x4b4   : > { %3229 = vst.msk [vmem:[#allocation3 + $0xe0] sm:$0xff] %vm12035_vm15, %v3182_v0  ;;  %vm12040_vm15 = vcmask 320768  }
 0x4b5   : > { %3227 = vst.msk [vmem:[#allocation3 + $0xc0] sm:$0xff] %vm12036_vm10, %v3178_v28  ;;  %1969 = vrot.lane.b32.xlu1 %v1911_v5, %s11872_s1  ;;  %vm12041_vm10 = vmmov %vm12040_vm15  ;;  %v3007_v28 = vld [vmem:[#allocation2 + $0xa3] sm:$0xff] }
 0x4b6   : > { %1965 = vrot.lane.b32.xlu0 %v10687_v47, %s11872_s1 }
 0x4b7   : > { %v4306_v10 = vpop.permute.xlu1 %4305  ;;  %v4302_v56 = vpop.permute.xlu0 %4301 }
 0x4b8   : > { %4351 = vst.msk [vmem:[#allocation3 + $0xe8] sm:$0xff] %vm2481_vm3, %v4306_v10  ;;  %4349 = vst.msk [vmem:[#allocation3 + $0xc8] sm:$0xff] %vm2481_vm3, %v4302_v56  ;;  %v4135_v56 = vld [vmem:[#allocation2 + $0xd3] sm:$0xff] }
 0x4b9   : > { %2091 = vrot.lane.b32.xlu1 %v10607_v49, %s11865_s29 }
 0x4ba   : > { %2087 = vrot.lane.b32.xlu0 %v10708_v44, %s11865_s29 }
 0x4bb   : > { %v3304_v24 = vpop.permute.xlu1 %3303  ;;  %v3300_v30 = vpop.permute.xlu0 %3299 }
 0x4bc   : > { %3351 = vst.msk [vmem:[#allocation3 + $0xe0] sm:$0xff] %vm12037_vm5, %v3304_v24  ;;  %vm12042_vm5 = vcmask 386368  }
 0x4bd   : > { %3349 = vst.msk [vmem:[#allocation3 + $0xc0] sm:$0xff] %vm12038_vm4, %v3300_v30  ;;  %2213 = vrot.lane.b32.xlu1 %v9684_v11, %s11867_s30  ;;  %vm12043_vm4 = vmmov %vm12042_vm5 }
 0x4be   : > { %2209 = vrot.lane.b32.xlu0 %v9727_v38, %s11867_s30  ;;  %v10886_v38 = vld [vmem:[#allocation2 + $0xc2] sm:$0xff] }
 0x4bf   : > { %v1598_v47 = vpop.permute.xlu1 %1597  ;;  %v1594_v29 = vpop.permute.xlu0 %1593  ;;  %v6232_v55 = vld [vmem:[#allocation3 + $0xe8] sm:$0xff] }
 0x4c0   : > { %1644 = vst.msk [vmem:[#allocation3 + $0xf0] sm:$0x3] %vm1629_vm12, %v1598_v47  ;;  %1642 = vst.msk [vmem:[#allocation3 + $0xd0] sm:$0x3] %vm1629_vm12, %v1594_v29  ;;  %7628 = vmatprep.mubr.msk.f32.mxu0 %vm12039_vm11, %v6232_v55  ;;  %vm12044_vm11 = vcmask 451968   ;;  %v3129_v47 = vld [vmem:[#allocation2 + $0xa4] sm:$0xff] }
 0x4c1   : > { %2335 = vrot.lane.b32.xlu1 %v10540_v45, %s11869_s0 }
 0x4c2   : > { %2331 = vrot.lane.b32.xlu0 %v1667_v54, %s11869_s0  ;;  %v3895_v54 = vld [vmem:[#allocation2 + $0xd1] sm:$0xff] }
 0x4c3   : > { %v1720_v44 = vpop.permute.xlu1 %1719  ;;  %v1716_v9 = vpop.permute.xlu0 %1715  ;;  %v6231_v4 = vld [vmem:[#allocation3 + $0xe0] sm:$0xff] }
 0x4c4   : > { %1766 = vst.msk [vmem:[#allocation3 + $0xf0] sm:$0x3] %vm1751_vm13, %v1720_v44  ;;  %1764 = vst.msk [vmem:[#allocation3 + $0xd0] sm:$0x3] %vm1751_vm13, %v1716_v9  ;;  %6306 = vmatmul.mubr.f32.vlgmr.msra.gmra.mrb[106].mxu0 %v6231_v4  ;;  %v4255_v44 = vld [vmem:[#allocation2 + $0xd4] sm:$0xff] }
 0x4c5   : > { %3473 = vrot.lane.b32.xlu1 %v10886_v38, %s11860_s22  ;;  %8429 = vmatpush1.bf16.msra.mxu0 %v9485_v32 }
 0x4c6   : > { %3469 = vrot.lane.b32.xlu0 %v10656_v13, %s11860_s22  ;;  %8430 = vmatprep.subr.bf16.mxu0 %v8760_v31 }
 0x4c7   : > { %v1842_v45 = vpop.permute.xlu1 %1841  ;;  %v1838_v51 = vpop.permute.xlu0 %1837 }
 0x4c8   : > { %1888 = vst.msk [vmem:[#allocation3 + $0xf0] sm:$0x3] %vm1873_vm14, %v1842_v45  ;;  %1886 = vst.msk [vmem:[#allocation3 + $0xd0] sm:$0x3] %vm1873_vm14, %v1838_v51  ;;  %v3251_v45 = vld [vmem:[#allocation2 + $0xb0] sm:$0xff] }
 0x4c9   : > { %2457 = vrot.lane.b32.xlu1 %v10562_v36, %s11870_s25  ;;  %8432 = vmatpush1.bf16.msra.mxu0 %v9502_v53 }
 0x4ca   : > { %2453 = vrot.lane.b32.xlu0 %v1789_v23, %s11870_s25  ;;  %8433 = vmatprep.subr.bf16.mxu0 %v8760_v31  ;;  %v4015_v23 = vld [vmem:[#allocation2 + $0xd2] sm:$0xff] }
 0x4cb   : > { %v1964_v8 = vpop.permute.xlu1 %1963  ;;  %v1960_v39 = vpop.permute.xlu0 %1959 }
 0x4cc   : > { %2010 = vst.msk [vmem:[#allocation3 + $0xf0] sm:$0x3] %vm12040_vm15, %v1964_v8  ;;  %vm12045_vm15 = vmmov %vm12044_vm11 }
 0x4cd   : > { %2008 = vst.msk [vmem:[#allocation3 + $0xd0] sm:$0x3] %vm12041_vm10, %v1960_v39  ;;  %3593 = vrot.lane.b32.xlu1 %v10903_v42, %s11861_s15  ;;  %8435 = vmatpush1.bf16.msra.mxu0 %v9521_v3  ;;  %vm12046_vm10 = vcmask 517568   ;;  %v1546_v39 = vld [vmem:[#allocation2 + $0x99] sm:$0x3] }
 0x4ce   : > { %3589 = vrot.lane.b32.xlu0 %v10677_v50, %s11861_s15  ;;  %8436 = vmatprep.subr.bf16.mxu0 %v8760_v31 }
 0x4cf   : > { %v2086_v36 = vpop.permute.xlu1 %2085  ;;  %v2082_v16 = vpop.permute.xlu0 %2081 }
 0x4d0   : > { %2132 = vst.msk [vmem:[#allocation3 + $0xf0] sm:$0x3] %vm12042_vm5, %v2086_v36  ;;  %vm12047_vm5 = vmmov %vm12046_vm10 }
 0x4d1   : > { %2130 = vst.msk [vmem:[#allocation3 + $0xd0] sm:$0x3] %vm12043_vm4, %v2082_v16  ;;  %2579 = vrot.lane.b32.xlu1 %v10583_v46, %s11873_s2  ;;  %v10915_v2 = vpop.f32.mrb[98].mxu0  ;;  %8438 = vmatpush1.bf16.msra.mxu0 %v9538_v22  ;;  %vm12048_vm4 = vcmask 583168  }
 0x4d2   : > { %2575 = vrot.lane.b32.xlu0 %v1911_v5, %s11873_s2  ;;  %v5637_v40 = vpop.f32.mrb[99].mxu0  ;;  %8439 = vmatprep.subr.bf16.mxu0 %v8760_v31 }
 0x4d3   : > { %v2208_v25 = vpop.permute.xlu1 %2207  ;;  %v2204_v34 = vpop.permute.xlu0 %2203  ;;  %v1668_v40 = vld [vmem:[#allocation2 + $0x9a] sm:$0x3] }
 0x4d4   : > { %2254 = vst.msk [vmem:[#allocation3 + $0xf0] sm:$0x3] %vm12044_vm11, %v2208_v25  ;;  %vm12049_vm11 = vmmov %vm12048_vm4  ;;  %v1666_v25 = vld [vmem:[#allocation2 + $0x8a] sm:$0x3] }
 0x4d5   : > { %2252 = vst.msk [vmem:[#allocation3 + $0xd0] sm:$0x3] %vm12045_vm15, %v2204_v34  ;;  %3713 = vrot.lane.b32.xlu1 %v10922_v17, %s11862_s13  ;;  %8441 = vmatpush1.bf16.msra.mxu0 %v9565_v18  ;;  %vm12050_vm15 = vcmask 648768  }
 0x4d6   : > { %3709 = vrot.lane.b32.xlu0 %v10698_v19, %s11862_s13  ;;  %8442 = vmatprep.subr.bf16.mxu0 %v8760_v31 }
 0x4d7   : > { %v2330_v46 = vpop.permute.xlu1 %2329  ;;  %v2326_v20 = vpop.permute.xlu0 %2325 }
 0x4d8   : > { %2376 = vst.msk [vmem:[#allocation3 + $0xf0] sm:$0x3] %vm12046_vm10, %v2330_v46  ;;  %vm12051_vm10 = vmmov %vm12050_vm15  ;;  %v11026_v46 = vld [vmem:[%s11757_s4] ss:$0 sm:$0xff] }
 0x4d9   : > { %2374 = vst.msk [vmem:[#allocation3 + $0xd0] sm:$0x3] %vm12047_vm5, %v2326_v20  ;;  %2701 = vrot.lane.b32.xlu1 %v10605_v48, %s11863_s16  ;;  %8444 = vmatpush1.bf16.msra.mxu0 %v9590_v37  ;;  %vm12052_vm5 = vcmask 714368   ;;  %v5636_v20 = vadd.f32 %v11026_v46, %v10915_v2 }
 0x4da   : > { %2697 = vrot.lane.b32.xlu0 %v10607_v49, %s11863_s16  ;;  %8445 = vmatprep.subr.bf16.mxu0 %v8760_v31 }
 0x4db   : > { %v3468_v14 = vpop.permute.xlu1 %3467  ;;  %v10940_v21 = vpop.f32.mrb[10].mxu1 }
 0x4dc   : > { %v3464_v41 = vpop.permute.xlu0 %3463  ;;  %3512 = vst.msk [vmem:[#allocation3 + $0xf8] sm:$0x3] %vm1629_vm12, %v3468_v14  ;;  %v5051_v1 = vpop.f32.mrb[11].mxu1  ;;  %v1790_v14 = vld [vmem:[#allocation2 + $0x9b] sm:$0x3] }
 0x4dd   : > { %3510 = vst.msk [vmem:[#allocation3 + $0xd8] sm:$0x3] %vm1629_vm12, %v3464_v41  ;;  %3833 = vrot.lane.b32.xlu1 %v3775_v58, %s11872_s1  ;;  %8447 = vmatpush1.bf16.msra.mxu0 %v9604_v12  ;;  %v1788_v41 = vld [vmem:[#allocation2 + $0x8b] sm:$0x3]  ;;  %v5050_v58 = vadd.f32 %v11026_v46, %v10940_v21 }
 0x4de   : > { %3829 = vrot.lane.b32.xlu0 %v10942_v61, %s11872_s1  ;;  %8448 = vmatprep.subr.bf16.mxu0 %v8760_v31 }
 0x4df   : > { %v2452_v48 = vpop.permute.xlu1 %2451  ;;  %v10951_v60 = vpop.f32.mrb[12].mxu1  ;;  %v5144_v21 = vmax.f32 %v5050_v58, 0.0  ;;  %v5397_v58 = vld [vmem:[%s11758_s5 + $0x118] sm:$0xff] }
 0x4e0   : > { %v2448_v49 = vpop.permute.xlu0 %2447  ;;  %2498 = vst.msk [vmem:[#allocation3 + $0xf0] sm:$0x3] %vm12048_vm4, %v2452_v48  ;;  %v5056_v63 = vpop.f32.mrb[13].mxu1  ;;  %vm12053_vm4 = vmmov %vm12052_vm5 }
 0x4e1   : > { %2496 = vst.msk [vmem:[#allocation3 + $0xd0] sm:$0x3] %vm12049_vm11, %v2448_v49  ;;  %2823 = vrot.lane.b32.xlu1 %v10632_v15, %s11871_s24  ;;  %8450 = vmatpush1.bf16.msra.mxu0 %v9623_v62  ;;  %vm12054_vm11 = vcmask 320768  }
 0x4e2   : > { %2819 = vrot.lane.b32.xlu0 %v9684_v11, %s11871_s24  ;;  %8451 = vmatprep.subr.bf16.mxu0 %v8760_v31 }
 0x4e3   : > { %v3588_v26 = vpop.permute.xlu1 %3587 }
 0x4e4   : > { %v3584_v52 = vpop.permute.xlu0 %3583  ;;  %3632 = vst.msk [vmem:[#allocation3 + $0xf8] sm:$0x3] %vm1751_vm13, %v3588_v26  ;;  %v5730_v26 = vmax.f32 %v5636_v20, 0.0 }
 0x4e5   : > { %3630 = vst.msk [vmem:[#allocation3 + $0xd8] sm:$0x3] %vm1751_vm13, %v3584_v52  ;;  %3953 = vrot.lane.b32.xlu1 %v3895_v54, %s11865_s29  ;;  %8453 = vmatpush1.bf16.msra.mxu0 %v9638_v27 }
 0x4e6   : > { %3949 = vrot.lane.b32.xlu0 %v9744_v43, %s11865_s29  ;;  %8454 = vmatprep.subr.bf16.mxu0 %v8760_v31 }
 0x4e7   : > { %v2574_v15 = vpop.permute.xlu1 %2573 }
 0x4e8   : > { %v2570_v11 = vpop.permute.xlu0 %2569  ;;  %2620 = vst.msk [vmem:[#allocation3 + $0xf0] sm:$0x3] %vm12050_vm15, %v2574_v15  ;;  %vm12055_vm15 = vmmov %vm12054_vm11  ;;  %v1912_v15 = vld [vmem:[#allocation2 + $0x9c] sm:$0x3] }
 0x4e9   : > { %2618 = vst.msk [vmem:[#allocation3 + $0xd0] sm:$0x3] %vm12051_vm10, %v2570_v11  ;;  %2945 = vrot.lane.b32.xlu1 %v10656_v13, %s11864_s12  ;;  %8456 = vmatpush1.bf16.msra.mxu0 %v9652_v35  ;;  %vm12056_vm10 = vcmask 779968   ;;  %v1910_v11 = vld [vmem:[#allocation2 + $0x8c] sm:$0x3] }
 0x4ea   : > { %2941 = vrot.lane.b32.xlu0 %v2885_v59, %s11864_s12  ;;  %8457 = vmatprep.subr.bf16.mxu0 %v8760_v31  ;;  %v5055_v59 = vadd.f32 %v11026_v46, %v10951_v60  ;;  %v5234_v60 = vld [vmem:[%s11758_s5 + $0xc0] sm:$0xff] }
 0x4eb   : > { %v3708_v57 = vpop.permute.xlu1 %3707 }
 0x4ec   : > { %v3704_v43 = vpop.permute.xlu0 %3703  ;;  %3752 = vst.msk [vmem:[#allocation3 + $0xf8] sm:$0x3] %vm1873_vm14, %v3708_v57 }
 0x4ed   : > { %3750 = vst.msk [vmem:[#allocation3 + $0xd8] sm:$0x3] %vm1873_vm14, %v3704_v43  ;;  %4073 = vrot.lane.b32.xlu1 %v4015_v23, %s11867_s30  ;;  %8459 = vmatpush1.bf16.msra.mxu0 %v9670_v7 }
 0x4ee   : > { %4069 = vrot.lane.b32.xlu0 %v10886_v38, %s11867_s30  ;;  %8460 = vmatprep.subr.bf16.mxu0 %v8760_v31 }
 0x4ef   : > { %v2696_v13 = vpop.permute.xlu1 %2695 }
 0x4f0   : > { %v2692_v0 = vpop.permute.xlu0 %2691  ;;  %2742 = vst.msk [vmem:[#allocation3 + $0xf0] sm:$0x3] %vm12052_vm5, %v2696_v13  ;;  %vm12057_vm5 = vmmov %vm12056_vm10 }
 0x4f1   : > { %2740 = vst.msk [vmem:[#allocation3 + $0xd0] sm:$0x3] %vm12053_vm4, %v2692_v0  ;;  %3067 = vrot.lane.b32.xlu1 %v10677_v50, %s11866_s26  ;;  %8462 = vmatpush1.bf16.msra.mxu0 %v9687_v33  ;;  %v10995_v50 = vld [vmem:[%s11756_s3 + $0xc0] sm:$0xff]  ;;  %vm12058_vm4 = vcmask 386368  }
 0x4f2   : > { %3063 = vrot.lane.b32.xlu0 %v3007_v28, %s11866_s26  ;;  %6789 = vmatprep.subr.mxu0 %v8765_v6 }
 0x4f3   : > { %v3828_v5 = vpop.permute.xlu1 %3827 }
 0x4f4   : > { %v3824_v10 = vpop.permute.xlu0 %3823  ;;  %3872 = vst.msk [vmem:[#allocation3 + $0xf8] sm:$0x3] %vm12054_vm11, %v3828_v5  ;;  %vm12059_vm11 = vmmov %vm12058_vm4 }
 0x4f5   : > { %3870 = vst.msk [vmem:[#allocation3 + $0xd8] sm:$0x3] %vm12055_vm15, %v3824_v10  ;;  %4193 = vrot.lane.b32.xlu1 %v4135_v56, %s11869_s0  ;;  %6790 = vmatpush1.msra.mxu0 %v10995_v50  ;;  %vm12060_vm15 = vcmask 845568   ;;  %v2034_v56 = vld [vmem:[#allocation2 + $0xa8] sm:$0x3] }
 0x4f6   : > { %4189 = vrot.lane.b32.xlu0 %v10903_v42, %s11869_s0  ;;  %v1544_v42 = vld [vmem:[#allocation2 + $0x89] sm:$0x3] }
 0x4f7   : > { %v2818_v24 = vpop.permute.xlu1 %2817 }
 0x4f8   : > { %v2814_v30 = vpop.permute.xlu0 %2813  ;;  %2864 = vst.msk [vmem:[#allocation3 + $0xf0] sm:$0x3] %vm12056_vm10, %v2818_v24  ;;  %vm12061_vm10 = vmmov %vm12060_vm15  ;;  %v5236_v24 = vld [vmem:[%s11758_s5 + $0xd0] sm:$0xff] }
 0x4f9   : > { %2862 = vst.msk [vmem:[#allocation3 + $0xd0] sm:$0x3] %vm12057_vm5, %v2814_v30  ;;  %3189 = vrot.lane.b32.xlu1 %v10698_v19, %s11868_s14  ;;  %vm12062_vm5 = vcmask 451968  }
 0x4fa   : > { %3185 = vrot.lane.b32.xlu0 %v3129_v47, %s11868_s14  ;;  %v2032_v47 = vld [vmem:[#allocation2 + $0x98] sm:$0x3] }
 0x4fb   : > { %v3948_v29 = vpop.permute.xlu1 %3947 }
 0x4fc   : > { %v3944_v55 = vpop.permute.xlu0 %3943  ;;  %3992 = vst.msk [vmem:[#allocation3 + $0xf8] sm:$0x3] %vm12058_vm4, %v3948_v29  ;;  %vm12063_vm4 = vmmov %vm12062_vm5  ;;  %v5315_v29 = vld [vmem:[%s11758_s5 + $0xe8] sm:$0xff] }
 0x4fd   : > { %3990 = vst.msk [vmem:[#allocation3 + $0xd8] sm:$0x3] %vm12059_vm11, %v3944_v55  ;;  %4313 = vrot.lane.b32.xlu1 %v4255_v44, %s11870_s25  ;;  %vm12064_vm11 = vcmask 911168   ;;  %v5317_v55 = vld [vmem:[%s11758_s5 + $0xf8] sm:$0xff]  ;;  %v5145_v44 = vmax.f32 %v5055_v59, 0.0 }
 0x4fe   : > { %4309 = vrot.lane.b32.xlu0 %v10922_v17, %s11870_s25  ;;  %v11008_v9 = vpop.f32.mrb[100].mxu0 }
 0x4ff   : > { %v2940_v4 = vpop.permute.xlu1 %2939  ;;  %v5642_v19 = vpop.f32.mrb[101].mxu0 }
 0x500   : > { %v2936_v38 = vpop.permute.xlu0 %2935  ;;  %2986 = vst.msk [vmem:[#allocation3 + $0xf0] sm:$0x3] %vm12060_vm15, %v2940_v4  ;;  %vm12065_vm15 = vmmov %vm12064_vm11  ;;  %v8229_v19 = vpack.c.bf16 %v5236_v24, %v5234_v60  ;;  %v3536_v24 = vld [vmem:[#allocation2 + $0xcb] sm:$0x3] }
 0x501   : > { %2984 = vst.msk [vmem:[#allocation3 + $0xd0] sm:$0x3] %vm12061_vm10, %v2936_v38  ;;  %3311 = vrot.lane.b32.xlu1 %v10942_v61, %s11874_s19  ;;  %vm12066_vm10 = vcmask 517568  }
 0x502   : > { %3307 = vrot.lane.b32.xlu0 %v3251_v45, %s11874_s19 }
 0x503   : > { %v4068_v51 = vpop.permute.xlu1 %4067 }
 0x504   : > { %v4064_v8 = vpop.permute.xlu0 %4063  ;;  %4112 = vst.msk [vmem:[#allocation3 + $0xf8] sm:$0x3] %vm12062_vm5, %v4068_v51  ;;  %vm12067_vm5 = vmmov %vm12066_vm10 }
 0x505   : > { %4110 = vst.msk [vmem:[#allocation3 + $0xd8] sm:$0x3] %vm12063_vm4, %v4064_v8  ;;  %1605 = vrot.lane.b32.xlu1 %v1546_v39, %s11860_s22  ;;  %vm12068_vm4 = vcmask 976768   ;;  %v8231_v39 = vpack.c.bf16 %v5317_v55, %v5315_v29  ;;  %v5478_v29 = vld [vmem:[%s11758_s5 + $0x120] sm:$0xff]  ;;  %v5480_v55 = vld [vmem:[%s11758_s5 + $0x130] sm:$0xff] }
 0x506   : > { %1601 = vrot.lane.b32.xlu0 %v1544_v42, %s11860_s22 }
 0x507   : > { %v3062_v36 = vpop.permute.xlu1 %3061 }
 0x508   : > { %v3058_v16 = vpop.permute.xlu0 %3057  ;;  %3108 = vst.msk [vmem:[#allocation3 + $0xf0] sm:$0x3] %vm12064_vm11, %v3062_v36  ;;  %vm12069_vm11 = vmmov %vm12068_vm4  ;;  %v2156_v36 = vld [vmem:[#allocation2 + $0xa9] sm:$0x3] }
 0x509   : > { %3106 = vst.msk [vmem:[#allocation3 + $0xd0] sm:$0x3] %vm12065_vm15, %v3058_v16  ;;  %1727 = vrot.lane.b32.xlu1 %v1668_v40, %s11861_s15  ;;  %vm12070_vm15 = vcmask 583168   ;;  %v2154_v16 = vld [vmem:[#allocation2 + $0x99] sm:$0x3] }
 0x50a   : > { %1723 = vrot.lane.b32.xlu0 %v1666_v25, %s11861_s15 }
 0x50b   : > { %v4188_v34 = vpop.permute.xlu1 %4187 }
 0x50c   : > { %v4184_v17 = vpop.permute.xlu0 %4183  ;;  %4232 = vst.msk [vmem:[#allocation3 + $0xf8] sm:$0x3] %vm12066_vm10, %v4188_v34  ;;  %vm12071_vm10 = vmmov %vm12070_vm15  ;;  %v5314_v34 = vld [vmem:[%s11758_s5 + $0xe0] sm:$0xff] }
 0x50d   : > { %4230 = vst.msk [vmem:[#allocation3 + $0xd8] sm:$0x3] %vm12067_vm5, %v4184_v17  ;;  %1849 = vrot.lane.b32.xlu1 %v1790_v14, %s11862_s13  ;;  %vm12072_vm5 = vcmask 1042368   ;;  %v5316_v17 = vld [vmem:[%s11758_s5 + $0xf0] sm:$0xff]  ;;  %v2278_v14 = vld [vmem:[#allocation2 + $0xaa] sm:$0x3] }
 0x50e   : > { %1845 = vrot.lane.b32.xlu0 %v1788_v41, %s11862_s13  ;;  %v5135_v61 = vpop.f32.mrb[14].mxu1  ;;  %v5721_v1 = vpop.f32.mrb[102].mxu0  ;;  %v5395_v41 = vld [vmem:[%s11758_s5 + $0x108] sm:$0xff] }
 0x50f   : > { %v5136_v48 = vadd.f32 %v11026_v46, %v5135_v61  ;;  %v5137_v49 = vpop.f32.mrb[15].mxu1  ;;  %v3184_v63 = vpop.permute.xlu1 %3183  ;;  %v5722_v2 = vadd.f32 %v11026_v46, %v5721_v1  ;;  %v2276_v61 = vld [vmem:[#allocation2 + $0x9a] sm:$0x3]  ;;  %v8233_v1 = vpack.c.bf16 %v5316_v17, %v5314_v34  ;;  %v3654_v34 = vld [vmem:[#allocation2 + $0xbc] sm:$0x3] }
 0x510   : > { %3230 = vst.msk [vmem:[#allocation3 + $0xf0] sm:$0x3] %vm12068_vm4, %v3184_v63  ;;  %v3180_v52 = vpop.permute.xlu0 %3179  ;;  %v5723_v54 = vpop.f32.mrb[103].mxu0  ;;  %vm12073_vm4 = vmmov %vm12072_vm5 }
 0x511   : > { %v5146_v57 = vmax.f32 %v5136_v48, 0.0  ;;  %v5732_v43 = vmax.f32 %v5722_v2, 0.0  ;;  %3228 = vst.msk [vmem:[#allocation3 + $0xd0] sm:$0x3] %vm12069_vm11, %v3180_v52  ;;  %1971 = vrot.lane.b32.xlu1 %v1912_v15, %s11872_s1  ;;  %vm12074_vm11 = vcmask 588800   ;;  %v8235_v2 = vpack.c.bf16 %v5397_v58, %v5395_v41 }
 0x512   : > { %1967 = vrot.lane.b32.xlu0 %v1910_v11, %s11872_s1  ;;  %v5140_v23 = vpop.f32.mrb[16].mxu1  ;;  %v3416_v52 = vld [vmem:[#allocation2 + $0xca] sm:$0x3]  ;;  %v3414_v54 = vld [vmem:[#allocation2 + $0xba] sm:$0x3]  ;;  %v5394_v11 = vld [vmem:[%s11758_s5 + $0x100] sm:$0xff] }
 0x513   : > { %v5148_v13 = vmax.f32 %v5144_v21, %v5146_v57  ;;  %v11044_v0 = vmax.f32 %v5730_v26, %v5732_v43  ;;  %v5141_v28 = vadd.f32 %v11026_v46, %v5140_v23  ;;  %v5142_v5 = vpop.f32.mrb[17].mxu1  ;;  %v4308_v10 = vpop.permute.xlu1 %4307  ;;  %v5396_v21 = vld [vmem:[%s11758_s5 + $0x110] sm:$0xff]  ;;  %v2400_v57 = vld [vmem:[#allocation2 + $0xab] sm:$0x3]  ;;  %v5481_v23 = vld [vmem:[%s11758_s5 + $0x138] sm:$0xff] }
 0x514   : > { %4352 = vst.msk [vmem:[#allocation3 + $0xf8] sm:$0x3] %vm12070_vm15, %v4308_v10  ;;  %v4304_v30 = vpop.permute.xlu0 %4303  ;;  %vm12075_vm15 = vcmask 195712   ;;  %v5479_v43 = vld [vmem:[%s11758_s5 + $0x128] sm:$0xff]  ;;  %v2644_v58 = vld [vmem:[#allocation2 + $0xb8] sm:$0x3] }
 0x515   : > { %v5151_v4 = vrot.slane %v5148_v13, 1  ;;  %v5147_v38 = vmax.f32 %v5141_v28, 0.0  ;;  %4350 = vst.msk [vmem:[#allocation3 + $0xd8] sm:$0x3] %vm12071_vm10, %v4304_v30  ;;  %2093 = vrot.lane.b32.xlu1 %v2034_v56, %s11865_s29  ;;  %vm12076_vm10 = vmmov %vm12075_vm15  ;;  %v8237_v28 = vpack.c.bf16 %v5396_v21, %v5394_v11  ;;  %v8239_v56 = vpack.c.bf16 %v5481_v23, %v5479_v43  ;;  %v3534_v30 = vld [vmem:[#allocation2 + $0xbb] sm:$0x3] }
 0x516   : > { %2089 = vrot.lane.b32.xlu0 %v2032_v47, %s11865_s29  ;;  %v5641_v11 = vadd.f32 %v11026_v46, %v11008_v9  ;;  %v5822_v43 = vld [vmem:[%s11758_s5 + $0x170] sm:$0xff] }
 0x517   : > { %v11063_v45 = vmax.f32 %v5148_v13, %v5151_v4  ;;  %v11065_v51 = vmax.f32 %v5145_v44, %v5147_v38  ;;  %v3306_v8 = vpop.permute.xlu1 %3305  ;;  %v2398_v13 = vld [vmem:[#allocation2 + $0x9b] sm:$0x3]  ;;  %v2522_v4 = vld [vmem:[#allocation2 + $0xac] sm:$0x3] }
 0x518   : > { %3352 = vst.msk [vmem:[#allocation3 + $0xf0] sm:$0x3] %vm12072_vm5, %v3306_v8  ;;  %v3302_v42 = vpop.permute.xlu0 %3301  ;;  %vm12077_vm5 = vcmask 261312   ;;  %v5741_v38 = vld [vmem:[%s11758_s5 + $0x148] sm:$0xff]  ;;  %v2520_v8 = vld [vmem:[#allocation2 + $0x9c] sm:$0x3] }
 0x519   : > { %3350 = vst.msk [vmem:[#allocation3 + $0xd0] sm:$0x3] %vm12073_vm4, %v3302_v42  ;;  %7612 = vmatmul.mubr.msk.f32.vlgmr.msra.gmra.mrb[8].mxu1 %vm4581_vm9, %v11063_v45  ;;  %2215 = vrot.lane.b32.xlu1 %v2156_v36, %s11867_s30  ;;  %v5238_v49 = vrot.slane %v11063_v45, 2  ;;  %vm12078_vm4 = vmmov %vm12077_vm5  ;;  %v5318_v10 = vrot.slane %v11063_v45, 4  ;;  %v5398_v36 = vrot.slane %v11063_v45, 6  ;;  %v5475_v17 = vrot.slane %v11065_v51, 1 }
 0x51a   : > { %8230 = vmatpush1.bf16.msra.mxu1 %v8229_v19  ;;  %2211 = vrot.lane.b32.xlu0 %v2154_v16, %s11867_s30  ;;  %v5743_v19 = vld [vmem:[%s11758_s5 + $0x158] sm:$0xff]  ;;  %v5740_v45 = vld [vmem:[%s11758_s5 + $0x140] sm:$0xff] }
 0x51b   : > { %v1604_v40 = vpop.permute.xlu1 %1603  ;;  %v6234_v25 = vld [vmem:[#allocation3 + $0xf8] sm:$0x3]  ;;  %5305 = vmatprep.mubr.f32.mxu1 %v8765_v6  ;;  %8232 = vmatprep.subr.bf16.mxu1 %v8231_v39  ;;  %v8241_v39 = vpack.c.bf16 %v5480_v55, %v5478_v29  ;;  %v8315_v16 = vpack.c.bf16 %v5743_v19, %v5741_v38  ;;  %v3894_v19 = vld [vmem:[#allocation2 + $0xc9] sm:$0x3] }
 0x51c   : > { %1647 = vst.msk [vmem:[#allocation3 + $0x120] sm:$0xff] %vm1627_vm8, %v1604_v40  ;;  %v1600_v20 = vpop.permute.xlu0 %1599  ;;  %7629 = vmatprep.mubr.msk.f32.mxu0 %vm12074_vm11, %v6234_v25  ;;  %vm12079_vm11 = vcmask 326912   ;;  %v3656_v25 = vld [vmem:[#allocation2 + $0xcc] sm:$0x3]  ;;  %v3896_v38 = vld [vmem:[#allocation2 + $0xd9] sm:$0x3] }
 0x51d   : > { %1645 = vst.msk [vmem:[#allocation3 + $0x100] sm:$0xff] %vm1627_vm8, %v1600_v20  ;;  %2337 = vrot.lane.b32.xlu1 %v2278_v14, %s11869_s0  ;;  %v5742_v14 = vld [vmem:[%s11758_s5 + $0x150] sm:$0xff] }
 0x51e   : > { %2333 = vrot.lane.b32.xlu0 %v2276_v61, %s11869_s0  ;;  %v5821_v61 = vld [vmem:[%s11758_s5 + $0x168] sm:$0xff] }
 0x51f   : > { %v1726_v48 = vpop.permute.xlu1 %1725  ;;  %v6233_v63 = vld [vmem:[#allocation3 + $0xf0] sm:$0x3] }
 0x520   : > { %1769 = vst.msk [vmem:[#allocation3 + $0x120] sm:$0xff] %vm12075_vm15, %v1726_v48  ;;  %v1722_v26 = vpop.permute.xlu0 %1721  ;;  %6311 = vmatmul.mubr.f32.gmra.mrb[108].mxu0 %v6233_v63  ;;  %vm12080_vm15 = vmmov %vm12079_vm11  ;;  %v2642_v48 = vld [vmem:[#allocation2 + $0xa8] sm:$0x3]  ;;  %v5477_v63 = vmax.f32 %v11065_v51, %v5475_v17  ;;  %v5737_v51 = vrot.slane %v11044_v0, 1 }
 0x521   : > { %1767 = vst.msk [vmem:[#allocation3 + $0x100] sm:$0xff] %vm12076_vm10, %v1722_v26  ;;  %7613 = vmatmul.mubr.msk.f32.vlgmr.msra.gmra.mrb[8].mxu1 %vm4581_vm9, %v5238_v49  ;;  %3475 = vrot.lane.b32.xlu1 %v3416_v52, %s11860_s22  ;;  %v8317_v49 = vpack.c.bf16 %v5742_v14, %v5740_v45 }
 0x522   : > { %8234 = vmatpush1.bf16.msra.mxu1 %v8233_v1  ;;  %3471 = vrot.lane.b32.xlu0 %v3414_v54, %s11860_s22  ;;  %v5823_v1 = vld [vmem:[%s11758_s5 + $0x178] sm:$0xff] }
 0x523   : > { %v1848_v15 = vpop.permute.xlu1 %1847  ;;  %5385 = vmatprep.mubr.f32.mxu1 %v8765_v6  ;;  %8236 = vmatprep.subr.bf16.mxu1 %v8235_v2  ;;  %v8319_v26 = vpack.c.bf16 %v5823_v1, %v5821_v61  ;;  %v3776_v54 = vld [vmem:[#allocation2 + $0xd8] sm:$0x3]  ;;  %v5980_v1 = vld [vmem:[%s11758_s5 + $0x1a0] sm:$0xff] }
 0x524   : > { %1891 = vst.msk [vmem:[#allocation3 + $0x120] sm:$0xff] %vm12077_vm5, %v1848_v15  ;;  %v1844_v59 = vpop.permute.xlu0 %1843  ;;  %v3774_v15 = vld [vmem:[#allocation2 + $0xc8] sm:$0x3]  ;;  %vm12083_vm5 = vcmask 654912  }
 0x525   : > { %1889 = vst.msk [vmem:[#allocation3 + $0x100] sm:$0xff] %vm12078_vm4, %v1844_v59  ;;  %2459 = vrot.lane.b32.xlu1 %v2400_v57, %s11870_s25  ;;  %v5820_v57 = vld [vmem:[%s11758_s5 + $0x160] sm:$0xff]  ;;  %vm12084_vm4 = vmmov %vm12083_vm5 }
 0x526   : > { %2455 = vrot.lane.b32.xlu0 %v2398_v13, %s11870_s25  ;;  %v2766_v13 = vld [vmem:[#allocation2 + $0xb9] sm:$0x3] }
 0x527   : > { %v1970_v5 = vpop.permute.xlu1 %1969 }
 0x528   : > { %2013 = vst.msk [vmem:[#allocation3 + $0x120] sm:$0xff] %vm12079_vm11, %v1970_v5  ;;  %v1966_v60 = vpop.permute.xlu0 %1965  ;;  %v5901_v5 = vld [vmem:[%s11758_s5 + $0x188] sm:$0xff]  ;;  %vm12085_vm11 = vcmask 261312  }
 0x529   : > { %2011 = vst.msk [vmem:[#allocation3 + $0x100] sm:$0xff] %vm12080_vm15, %v1966_v60  ;;  %7614 = vmatmul.mubr.msk.f32.vlgmr.msra.gmra.mrb[8].mxu1 %vm4581_vm9, %v5318_v10  ;;  %3595 = vrot.lane.b32.xlu1 %v3536_v24, %s11861_s15  ;;  %v5903_v10 = vld [vmem:[%s11758_s5 + $0x198] sm:$0xff]  ;;  %v5731_v60 = vmax.f32 %v5641_v11, 0.0  ;;  %vm12086_vm15 = vmmov %vm12085_vm11 }
 0x52a   : > { %8238 = vmatpush1.bf16.msra.mxu1 %v8237_v28  ;;  %3591 = vrot.lane.b32.xlu0 %v3534_v30, %s11861_s15  ;;  %v8321_v30 = vpack.c.bf16 %v5822_v43, %v5820_v57  ;;  %v8323_v55 = vpack.c.bf16 %v5903_v10, %v5901_v5  ;;  %v4134_v57 = vld [vmem:[#allocation2 + $0xcb] sm:$0x3]  ;;  %s8690_s15 = sshll.u32 %s8768_s21, 4  ;;  %s8691_s15 = int_to_ptr.vmem [resolvable:$false] %s8690_s15 }
 0x52b   : > { %v2092_v47 = vpop.permute.xlu1 %2091  ;;  %5465 = vmatprep.mubr.f32.mxu1 %v8765_v6  ;;  %8240 = vmatprep.subr.bf16.mxu1 %v8239_v56  ;;  %v2764_v56 = vld [vmem:[#allocation2 + $0xa9] sm:$0x3]  ;;  %v3130_v5 = vld [vmem:[#allocation2 + $0xac] sm:$0x3] }
 0x52c   : > { %2135 = vst.msk [vmem:[#allocation3 + $0x120] sm:$0xff] %vm2115_vm0, %v2092_v47  ;;  %v2088_v44 = vpop.permute.xlu0 %2087  ;;  %v11189_v47 = vmax.f32 %v11044_v0, %v5737_v51 }
 0x52d   : > { %2133 = vst.msk [vmem:[#allocation3 + $0x100] sm:$0xff] %vm2115_vm0, %v2088_v44  ;;  %2581 = vrot.lane.b32.xlu1 %v2522_v4, %s11873_s2 }
 0x52e   : > { %2577 = vrot.lane.b32.xlu0 %v2520_v8, %s11873_s2  ;;  %v5900_v8 = vld [vmem:[%s11758_s5 + $0x180] sm:$0xff]  ;;  %v5904_v11 = vrot.slane %v11189_v47, 4 }
 0x52f   : > { %v2214_v42 = vpop.permute.xlu1 %2213 }
 0x530   : > { %2257 = vst.msk [vmem:[#allocation3 + $0x120] sm:$0xff] %vm2237_vm1, %v2214_v42  ;;  %v2210_v40 = vpop.permute.xlu0 %2209 }
 0x531   : > { %2255 = vst.msk [vmem:[#allocation3 + $0x100] sm:$0xff] %vm2237_vm1, %v2210_v40  ;;  %7615 = vmatmul.mubr.msk.f32.vlgmr.msra.gmra.mrb[8].mxu1 %vm4581_vm9, %v5398_v36  ;;  %3715 = vrot.lane.b32.xlu1 %v3656_v25, %s11862_s13  ;;  %v2888_v36 = vld [vmem:[#allocation2 + $0xba] sm:$0x3]  ;;  %v2886_v25 = vld [vmem:[#allocation2 + $0xaa] sm:$0x3] }
 0x532   : > { %8242 = vmatpush1.bf16.msra.mxu1 %v8241_v39  ;;  %3711 = vrot.lane.b32.xlu0 %v3654_v34, %s11862_s13  ;;  %v5902_v39 = vld [vmem:[%s11758_s5 + $0x190] sm:$0xff]  ;;  %v5983_v40 = vld [vmem:[%s11758_s5 + $0x1b8] sm:$0xff] }
 0x533   : > { %v2336_v20 = vpop.permute.xlu1 %2335  ;;  %5549 = vmatprep.mubr.f32.mxu1 %v8765_v6  ;;  %8316 = vmatprep.subr.bf16.mxu1 %v8315_v16  ;;  %v5981_v16 = vld [vmem:[%s11758_s5 + $0x1a8] sm:$0xff]  ;;  %v8325_v34 = vpack.c.bf16 %v5902_v39, %v5900_v8 }
 0x534   : > { %2379 = vst.msk [vmem:[#allocation3 + $0x120] sm:$0xff] %vm2359_vm2, %v2336_v20  ;;  %v2332_v41 = vpop.permute.xlu0 %2331  ;;  %v5824_v20 = vrot.slane %v11189_v47, 2  ;;  %v8327_v45 = vpack.c.bf16 %v5983_v40, %v5981_v16 }
 0x535   : > { %2377 = vst.msk [vmem:[#allocation3 + $0x100] sm:$0xff] %vm2359_vm2, %v2332_v41  ;;  %2703 = vrot.lane.b32.xlu1 %v2644_v58, %s11863_s16  ;;  %v4016_v41 = vld [vmem:[#allocation2 + $0xda] sm:$0x3]  ;;  %v4014_v58 = vld [vmem:[#allocation2 + $0xca] sm:$0x3] }
 0x536   : > { %2699 = vrot.lane.b32.xlu0 %v2642_v48, %s11863_s16  ;;  %v5982_v48 = vld [vmem:[%s11758_s5 + $0x1b0] sm:$0xff] }
 0x537   : > { %v3474_v2 = vpop.permute.xlu1 %3473 }
 0x538   : > { %3515 = vst.msk [vmem:[#allocation3 + $0x128] sm:$0xff] %vm1627_vm8, %v3474_v2  ;;  %v3470_v52 = vpop.permute.xlu0 %3469  ;;  %v6065_v2 = vld [vmem:[%s11758_s5 + $0x1c8] sm:$0xff] }
 0x539   : > { %3513 = vst.msk [vmem:[#allocation3 + $0x108] sm:$0xff] %vm1627_vm8, %v3470_v52  ;;  %7616 = vmatmul.mubr.msk.f32.vlgmr.msra.gmra.mrb[8].mxu1 %vm4581_vm9, %v5477_v63  ;;  %3835 = vrot.lane.b32.xlu1 %v3776_v54, %s11872_s1  ;;  %vm12081_vm8 = vmmov %vm12076_vm10  ;;  %v3010_v63 = vld [vmem:[#allocation2 + $0xbb] sm:$0x3]  ;;  %v3008_v52 = vld [vmem:[#allocation2 + $0xab] sm:$0x3]  ;;  %v8329_v54 = vpack.c.bf16 %v5982_v48, %v5980_v1 }
 0x53a   : > { %8318 = vmatpush1.bf16.msra.mxu1 %v8317_v49  ;;  %3831 = vrot.lane.b32.xlu0 %v3774_v15, %s11872_s1  ;;  %vm12082_vm10 = vmmov %vm12081_vm8  ;;  %s8692_s1 = scalar_lea.vmem %s8691_s15, 32 }
 0x53b   : > { %v2458_v21 = vpop.permute.xlu1 %2457  ;;  %5811 = vmatprep.mubr.f32.mxu1 %v8765_v6  ;;  %8320 = vmatprep.subr.bf16.mxu1 %v8319_v26  ;;  %v6067_v26 = vld [vmem:[%s11758_s5 + $0x1d8] sm:$0xff] }
 0x53c   : > { %v5726_v59 = vpop.f32.mrb[104].mxu0  ;;  %2501 = vst.msk [vmem:[#allocation3 + $0x120] sm:$0xff] %vm2481_vm3, %v2458_v21  ;;  %v2454_v9 = vpop.permute.xlu0 %2453  ;;  %v8331_v51 = vpack.c.bf16 %v6067_v26, %v6065_v2 }
 0x53d   : > { %v5727_v23 = vadd.f32 %v11026_v46, %v5726_v59  ;;  %v5728_v28 = vpop.f32.mrb[105].mxu0  ;;  %2499 = vst.msk [vmem:[#allocation3 + $0x100] sm:$0xff] %vm2481_vm3, %v2454_v9  ;;  %2825 = vrot.lane.b32.xlu1 %v2766_v13, %s11871_s24  ;;  %v4136_v59 = vld [vmem:[#allocation2 + $0xdb] sm:$0x3]  ;;  %v6064_v9 = vld [vmem:[%s11758_s5 + $0x1c0] sm:$0xff] }
 0x53e   : > { %2821 = vrot.lane.b32.xlu0 %v2764_v56, %s11871_s24  ;;  %v3132_v28 = vld [vmem:[#allocation2 + $0xbc] sm:$0x3] }
 0x53f   : > { %v5733_v24 = vmax.f32 %v5727_v23, 0.0  ;;  %v3594_v29 = vpop.permute.xlu1 %3593  ;;  %v6066_v23 = vld [vmem:[%s11758_s5 + $0x1d0] sm:$0xff] }
 0x540   : > { %3635 = vst.msk [vmem:[#allocation3 + $0x128] sm:$0xff] %vm12081_vm8, %v3594_v29  ;;  %v3590_v4 = vpop.permute.xlu0 %3589  ;;  %vm12087_vm8 = vcmask 720512   ;;  %v8333_v10 = vpack.c.bf16 %v6066_v23, %v6064_v9  ;;  %v4254_v29 = vld [vmem:[#allocation2 + $0xcc] sm:$0x3] }
 0x541   : > { %v11191_v44 = vmax.f32 %v5731_v60, %v5733_v24  ;;  %3633 = vst.msk [vmem:[#allocation3 + $0x108] sm:$0xff] %vm12082_vm10, %v3590_v4  ;;  %7621 = vmatmul.mubr.msk.f32.vlgmr.msra.gmra.mrb[8].mxu1 %vm4581_vm9, %v11189_v47  ;;  %3955 = vrot.lane.b32.xlu1 %v3896_v38, %s11865_s29  ;;  %vm12088_vm10 = vmmov %vm12087_vm8  ;;  %v5984_v60 = vrot.slane %v11189_v47, 6  ;;  %v3254_v38 = vld [vmem:[#allocation2 + $0xc8] sm:$0x3] }
 0x542   : > { %8322 = vmatpush1.bf16.msra.mxu1 %v8321_v30  ;;  %3951 = vrot.lane.b32.xlu0 %v3894_v19, %s11865_s29  ;;  %v4256_v30 = vld [vmem:[#allocation2 + $0xdc] sm:$0x3]  ;;  %v3252_v19 = vld [vmem:[#allocation2 + $0xb8] sm:$0x3] }
 0x543   : > { %v2580_v0 = vpop.permute.xlu1 %2579  ;;  %5891 = vmatprep.mubr.f32.mxu1 %v8765_v6  ;;  %8324 = vmatprep.subr.bf16.mxu1 %v8323_v55  ;;  %v6061_v55 = vrot.slane %v11191_v44, 1 }
 0x544   : > { %2623 = vst.msk [vmem:[#allocation3 + $0x120] sm:$0xff] %vm12083_vm5, %v2580_v0  ;;  %v2576_v42 = vpop.permute.xlu0 %2575  ;;  %vm12089_vm5 = vcmask 326912  }
 0x545   : > { %2621 = vst.msk [vmem:[#allocation3 + $0x100] sm:$0xff] %vm12084_vm4, %v2576_v42  ;;  %2947 = vrot.lane.b32.xlu1 %v2888_v36, %s11864_s12  ;;  %vm12090_vm4 = vmmov %vm12089_vm5  ;;  %v6063_v0 = vmax.f32 %v11191_v44, %v6061_v55  ;;  %v6146_v42 = vld [vmem:[#allocation3 + $0xc8] sm:$0xff] }
 0x546   : > { %2943 = vrot.lane.b32.xlu0 %v2886_v25, %s11864_s12  ;;  %s12140_s12 = sld [smem:[#allocation26_spill]] }
 0x547   : > { %v3714_v17 = vpop.permute.xlu1 %3713 }
 0x548   : > { %3755 = vst.msk [vmem:[#allocation3 + $0x128] sm:$0xff] %vm12085_vm11, %v3714_v17  ;;  %v3710_v14 = vpop.permute.xlu0 %3709 }
 0x549   : > { %3753 = vst.msk [vmem:[#allocation3 + $0x108] sm:$0xff] %vm12086_vm15, %v3710_v14  ;;  %7622 = vmatmul.mubr.msk.f32.vlgmr.msra.gmra.mrb[8].mxu1 %vm4581_vm9, %v5824_v20  ;;  %4075 = vrot.lane.b32.xlu1 %v4016_v41, %s11867_s30 }
 0x54a   : > { %8326 = vmatpush1.bf16.msra.mxu1 %v8325_v34  ;;  %4071 = vrot.lane.b32.xlu0 %v4014_v58, %s11867_s30 }
 0x54b   : > { %v2702_v61 = vpop.permute.xlu1 %2701  ;;  %5971 = vmatprep.mubr.f32.mxu1 %v8765_v6  ;;  %8328 = vmatprep.subr.bf16.mxu1 %v8327_v45 }
 0x54c   : > { %2745 = vst.msk [vmem:[#allocation3 + $0x120] sm:$0xff] %vm12087_vm8, %v2702_v61  ;;  %v2698_v49 = vpop.permute.xlu0 %2697  ;;  %vm12099_vm8 = vcmask 320768   ;;  %s11711_s16 = scalar_lea.hbm %s12140_s12, %s7644_s8 }
 0x54d   : > { %2743 = vst.msk [vmem:[#allocation3 + $0x100] sm:$0xff] %vm12088_vm10, %v2698_v49  ;;  %3069 = vrot.lane.b32.xlu1 %v3010_v63, %s11866_s26  ;;  %vm12100_vm10 = vmmov %vm12099_vm8 }
 0x54e   : > { %3065 = vrot.lane.b32.xlu0 %v3008_v52, %s11866_s26 }
 0x54f   : > { %v3834_v15 = vpop.permute.xlu1 %3833 }
 0x550   : > { %3875 = vst.msk [vmem:[#allocation3 + $0x128] sm:$0xff] %vm12089_vm5, %v3834_v15  ;;  %v3830_v21 = vpop.permute.xlu0 %3829  ;;  %vm12101_vm5 = vcmask 386368  }
 0x551   : > { %3873 = vst.msk [vmem:[#allocation3 + $0x108] sm:$0xff] %vm12090_vm4, %v3830_v21  ;;  %7623 = vmatmul.mubr.msk.f32.vlgmr.msra.gmra.mrb[8].mxu1 %vm4581_vm9, %v5904_v11  ;;  %4195 = vrot.lane.b32.xlu1 %v4136_v59, %s11869_s0  ;;  %vm12102_vm4 = vmmov %vm12101_vm5 }
 0x552   : > { %8330 = vmatpush1.bf16.msra.mxu1 %v8329_v54  ;;  %4191 = vrot.lane.b32.xlu0 %v4134_v57, %s11869_s0  ;;  %v6145_v57 = vld [vmem:[#allocation3 + $0xc0] sm:$0xff]  ;;  %s12137_s0 = sld [smem:[#allocation24_spill]] }
 0x553   : > { %v2824_v43 = vpop.permute.xlu1 %2823  ;;  %6051 = vmatprep.mubr.f32.mxu1 %v8765_v6  ;;  %8332 = vmatprep.subr.bf16.mxu1 %v8331_v51 }
 0x554   : > { %2867 = vst.msk [vmem:[#allocation3 + $0x120] sm:$0xff] %vm2847_vm7, %v2824_v43  ;;  %v2820_v13 = vpop.permute.xlu0 %2819  ;;  %v6148_v43 = vld [vmem:[#allocation3 + $0xd8] sm:$0x3] }
 0x555   : > { %2865 = vst.msk [vmem:[#allocation3 + $0x100] sm:$0xff] %vm2847_vm7, %v2820_v13  ;;  %3191 = vrot.lane.b32.xlu1 %v3132_v28, %s11868_s14  ;;  %v6147_v13 = vld [vmem:[#allocation3 + $0xd0] sm:$0x3] }
 0x556   : > { %3187 = vrot.lane.b32.xlu0 %v3130_v5, %s11868_s14  ;;  %s377_s14 = sand.u32 1, %s8740_s18  }
 0x557   : > { %v3954_v56 = vpop.permute.xlu1 %3953  ;;  %s378_s13 = scalar_lea.vmem [#allocation4], %s377_s14  ;;  %s7525_s27 = scalar_lea.sflag [#allocation5], %s377_s14 }
 0x558   : > { %3995 = vst.msk [vmem:[#allocation3 + $0x128] sm:$0xff] %vm2115_vm0, %v3954_v56  ;;  %v3950_v24 = vpop.permute.xlu0 %3949  ;;  %s7537_s10 = sshll.u32 %s378_s13, 4  ;;  %s11713_s10 = int_to_ptr.vmem [resolvable:$true] %s7537_s10 }
 0x559   : > { %3993 = vst.msk [vmem:[#allocation3 + $0x108] sm:$0xff] %vm2115_vm0, %v3950_v24  ;;  %7624 = vmatmul.mubr.msk.f32.vlgmr.msra.gmra.mrb[8].mxu1 %vm4581_vm9, %v5984_v60  ;;  %4315 = vrot.lane.b32.xlu1 %v4256_v30, %s11870_s25  ;;  %vm12091_vm0 = vcmask 588800   ;;  %s8686_s23 = scalar_lea.vmem %s11713_s10, 16  ;;  %p8693_p0 = scmp.lt.s32.totalorder %s11713_s10, %s8691_s15 }
 0x55a   : > { %8334 = vmatpush1.bf16.msra.mxu1 %v8333_v10  ;;  %4311 = vrot.lane.b32.xlu0 %v4254_v29, %s11870_s25  ;;  %p8687_p11 = scmp.ne.s32.totalorder %s11713_s10, %s8686_s23  ;;  %p8694_p1 = scmp.lt.s32.totalorder %s8692_s1, %s8686_s23 }
 0x55b   : > { %v2946_v4 = vpop.permute.xlu1 %2945  ;;  %6135 = vmatprep.mubr.f32.mxu1 %v8765_v6  ;;  %8335 = vmatprep.subr.bf16.mxu1 %v8760_v31 }
 0x55c   : > { %2989 = vst.msk [vmem:[#allocation3 + $0x120] sm:$0xff] %vm2969_vm6, %v2946_v4  ;;  %v2942_v47 = vpop.permute.xlu0 %2941  ;;  %p8688_p12 = pnand %p8687_p11, %p8867_p5  ;;  %p8695_p2 = por %p8694_p1, %p8693_p0 }
 0x55d   : > { %2987 = vst.msk [vmem:[#allocation3 + $0x100] sm:$0xff] %vm2969_vm6, %v2942_v47  ;;  %3313 = vrot.lane.b32.xlu1 %v3254_v38, %s11874_s19  ;;  %vm12092_vm6 = vcmask 917312  }
 0x55e   : > { %3309 = vrot.lane.b32.xlu0 %v3252_v19, %s11874_s19  ;;  %vm12093_vm7 = vmmov %vm12092_vm6  ;;  %p8689_p13 = pneg %p8688_p12 }
 0x55f   : > { %v4074_v8 = vpop.permute.xlu1 %4073 }
 0x560   : > { %4115 = vst.msk [vmem:[#allocation3 + $0x128] sm:$0xff] %vm2237_vm1, %v4074_v8  ;;  %v4070_v39 = vpop.permute.xlu0 %4069  ;;  %p8696_p3 = pnand %p8695_p2, %p8689_p13 }
 0x561   : > { %4113 = vst.msk [vmem:[#allocation3 + $0x108] sm:$0xff] %vm2237_vm1, %v4070_v39  ;;  %7625 = vmatmul.mubr.msk.f32.vlgmr.msra.gmra.mrb[8].mxu1 %vm4581_vm9, %v6063_v0  ;;  %vm12094_vm1 = vcmask 982912  }
 0x562   : > { %8337 = vmatpush1.bf16.msra.mxu1 %v9485_v32  ;;  %7626 = vmatprep.mubr.msk.f32.mxu1 %vm12091_vm0, %v6146_v42  ;;  %vm12095_vm11 = vmmov %vm12094_vm1 }
 0x563   : > { %v3068_v36 = vpop.permute.xlu1 %3067  ;;  %8338 = vmatprep.subr.bf16.mxu1 %v8760_v31 }
 0x564   : > { %3111 = vst.msk [vmem:[#allocation3 + $0x120] sm:$0xff] %vm12092_vm6, %v3068_v36  ;;  %v3064_v16 = vpop.permute.xlu0 %3063 }
 0x565   : > { %3109 = vst.msk [vmem:[#allocation3 + $0x100] sm:$0xff] %vm12093_vm7, %v3064_v16  ;;  %vm12105_vm7 = vcmask 517568  }
 0x566   : > { %8340 = vmatpush1.bf16.msra.mxu1 %v9502_v53 }
 0x567   : > { %v4194_v44 = vpop.permute.xlu1 %4193  ;;  %8341 = vmatprep.subr.bf16.mxu1 %v8760_v31 }
 0x568   : > { %4235 = vst.msk [vmem:[#allocation3 + $0x128] sm:$0xff] %vm2359_vm2, %v4194_v44  ;;  %v4190_v40 = vpop.permute.xlu0 %4189 }
 0x569   : > { %4233 = vst.msk [vmem:[#allocation3 + $0x108] sm:$0xff] %vm2359_vm2, %v4190_v40  ;;  %vm12096_vm2 = vcmask 1048512  }
 0x56a   : > { %8343 = vmatpush1.bf16.msra.mxu1 %v9521_v3  ;;  %vm12097_vm15 = vmmov %vm12096_vm2 }
 0x56b   : > { %v3190_v25 = vpop.permute.xlu1 %3189  ;;  %8344 = vmatprep.subr.bf16.mxu1 %v8760_v31 }
 0x56c   : > { %3233 = vst.msk [vmem:[#allocation3 + $0x120] sm:$0xff] %vm12094_vm1, %v3190_v25  ;;  %v3186_v34 = vpop.permute.xlu0 %3185  ;;  %vm12106_vm1 = vmmov %vm12105_vm7 }
 0x56d   : > { %3231 = vst.msk [vmem:[#allocation3 + $0x100] sm:$0xff] %vm12095_vm11, %v3186_v34 }
 0x56e   : > { %8346 = vmatpush1.bf16.msra.mxu1 %v9538_v22 }
 0x56f   : > { %v4314_v17 = vpop.permute.xlu1 %4313  ;;  %8347 = vmatprep.subr.bf16.mxu1 %v8760_v31 }
 0x570   : > { %4355 = vst.msk [vmem:[#allocation3 + $0x128] sm:$0xff] %vm2481_vm3, %v4314_v17  ;;  %v4310_v20 = vpop.permute.xlu0 %4309 }
 0x571   : > { %4353 = vst.msk [vmem:[#allocation3 + $0x108] sm:$0xff] %vm2481_vm3, %v4310_v20  ;;  %vm12098_vm3 = vmmov %vm12091_vm0  ;;  %vm12103_vm0 = vcmask 451968  }
 0x572   : > { %8349 = vmatpush1.bf16.msra.mxu1 %v9565_v18  ;;  %vm12104_vm6 = vmmov %vm12103_vm0 }
 0x573   : > { %v3312_v45 = vpop.permute.xlu1 %3311  ;;  %8350 = vmatprep.subr.bf16.mxu1 %v8760_v31  ;;  %vm12107_vm11 = vmmov %vm12098_vm3 }
 0x574   : > { %3355 = vst.msk [vmem:[#allocation3 + $0x120] sm:$0xff] %vm12096_vm2, %v3312_v45  ;;  %v3308_v14 = vpop.permute.xlu0 %3307  ;;  %vm12108_vm2 = vcmask 583168  }
 0x575   : > { %3353 = vst.msk [vmem:[#allocation3 + $0x100] sm:$0xff] %vm12097_vm15, %v3308_v14  ;;  %vm12109_vm15 = vmmov %vm12108_vm2 }
 0x576   : > { %8352 = vmatpush1.bf16.msra.mxu1 %v9590_v37 }
 0x577   : > { %v1606_v41 = vpop.permute.xlu1 %1605  ;;  %8353 = vmatprep.subr.bf16.mxu1 %v8760_v31 }
 0x578   : > { %1648 = vst.msk [vmem:[#allocation3 + $0x130] sm:$0x3] %vm1629_vm12, %v1606_v41  ;;  %v1602_v58 = vpop.permute.xlu0 %1601  ;;  %v6732_v61 = vld [vmem:[#allocation3 + $0x108] sm:$0xff] }
 0x579   : > { %1646 = vst.msk [vmem:[#allocation3 + $0x110] sm:$0x3] %vm1629_vm12, %v1602_v58  ;;  %7635 = vmatprep.mubr.msk.f32.mxu0 %vm12098_vm3, %v6732_v61 }
 0x57a   : > { %8355 = vmatpush1.bf16.msra.mxu1 %v9604_v12 }
 0x57b   : > { %v1728_v1 = vpop.permute.xlu1 %1727  ;;  %8356 = vmatprep.subr.bf16.mxu1 %v8760_v31 }
 0x57c   : > { %1770 = vst.msk [vmem:[#allocation3 + $0x130] sm:$0x3] %vm1751_vm13, %v1728_v1  ;;  %v1724_v48 = vpop.permute.xlu0 %1723  ;;  %v6731_v49 = vld [vmem:[#allocation3 + $0x100] sm:$0xff] }
 0x57d   : > { %1768 = vst.msk [vmem:[#allocation3 + $0x110] sm:$0x3] %vm1751_vm13, %v1724_v48  ;;  %6806 = vmatmul.mubr.f32.vlgmr.msra.gmra.mrb[110].mxu0 %v6731_v49 }
 0x57e   : > { %8358 = vmatpush1.bf16.msra.mxu1 %v9623_v62 }
 0x57f   : > { %v1850_v63 = vpop.permute.xlu1 %1849  ;;  %8359 = vmatprep.subr.bf16.mxu1 %v8760_v31 }
 0x580   : > { %1892 = vst.msk [vmem:[#allocation3 + $0x130] sm:$0x3] %vm1873_vm14, %v1850_v63  ;;  %v1846_v2 = vpop.permute.xlu0 %1845  ;;  %v6327_v63 = vld [vmem:[%s11758_s5 + $0x1e8] sm:$0xff] }
 0x581   : > { %1890 = vst.msk [vmem:[#allocation3 + $0x110] sm:$0x3] %vm1873_vm14, %v1846_v2  ;;  %v6329_v2 = vld [vmem:[%s11758_s5 + $0x1f8] sm:$0xff] }
 0x582   : > { %8361 = vmatpush1.bf16.msra.mxu1 %v9638_v27 }
 0x583   : > { %v1972_v26 = vpop.permute.xlu1 %1971  ;;  %8362 = vmatprep.subr.bf16.mxu1 %v8760_v31 }
 0x584   : > { %2014 = vst.msk [vmem:[#allocation3 + $0x130] sm:$0x3] %vm12099_vm8, %v1972_v26  ;;  %v1968_v52 = vpop.permute.xlu0 %1967  ;;  %vm12112_vm8 = vcmask 714368   ;;  %v6326_v26 = vld [vmem:[%s11758_s5 + $0x1e0] sm:$0xff] }
 0x585   : > { %2012 = vst.msk [vmem:[#allocation3 + $0x110] sm:$0x3] %vm12100_vm10, %v1968_v52  ;;  %vm12113_vm10 = vmmov %vm12112_vm8  ;;  %v8407_v52 = vpack.c.bf16 %v6329_v2, %v6327_v63  ;;  %v6652_v63 = vld [vmem:[%s11758_s5 + $0x270] sm:$0xff] }
 0x586   : > { %8364 = vmatpush1.bf16.msra.mxu1 %v9652_v35 }
 0x587   : > { %v2094_v54 = vpop.permute.xlu1 %2093  ;;  %8365 = vmatprep.subr.bf16.mxu1 %v8760_v31 }
 0x588   : > { %2136 = vst.msk [vmem:[#allocation3 + $0x130] sm:$0x3] %vm12101_vm5, %v2094_v54  ;;  %v2090_v15 = vpop.permute.xlu0 %2089  ;;  %v6328_v54 = vld [vmem:[%s11758_s5 + $0x1f0] sm:$0xff] }
 0x589   : > { %2134 = vst.msk [vmem:[#allocation3 + $0x110] sm:$0x3] %vm12102_vm4, %v2090_v15  ;;  %vm12116_vm4 = vcmask 779968   ;;  %v8409_v15 = vpack.c.bf16 %v6328_v54, %v6326_v26 }
 0x58a   : > { %8367 = vmatpush1.bf16.msra.mxu1 %v9670_v7 }
 0x58b   : > { %v2216_v11 = vpop.permute.xlu1 %2215  ;;  %8368 = vmatprep.subr.bf16.mxu1 %v8760_v31 }
 0x58c   : > { %2258 = vst.msk [vmem:[#allocation3 + $0x130] sm:$0x3] %vm12103_vm0, %v2216_v11  ;;  %v2212_v51 = vpop.permute.xlu0 %2211  ;;  %vm12117_vm0 = vmmov %vm12116_vm4 }
 0x58d   : > { %2256 = vst.msk [vmem:[#allocation3 + $0x110] sm:$0x3] %vm12104_vm6, %v2212_v51  ;;  %v6407_v51 = vld [vmem:[%s11758_s5 + $0x208] sm:$0xff] }
 0x58e   : > { %8370 = vmatpush1.bf16.msra.mxu1 %v9687_v33 }
 0x58f   : > { %v2338_v21 = vpop.permute.xlu1 %2337  ;;  %6203 = vmatprep.subr.mxu1 %v8765_v6 }
 0x590   : > { %2380 = vst.msk [vmem:[#allocation3 + $0x130] sm:$0x3] %vm12105_vm7, %v2338_v21  ;;  %v2334_v59 = vpop.permute.xlu0 %2333  ;;  %vm12120_vm7 = vcmask 845568   ;;  %v6409_v21 = vld [vmem:[%s11758_s5 + $0x218] sm:$0xff] }
 0x591   : > { %2378 = vst.msk [vmem:[#allocation3 + $0x110] sm:$0x3] %vm12106_vm1, %v2334_v59  ;;  %vm12121_vm1 = vmmov %vm12120_vm7 }
 0x592   : > { %6204 = vmatpush1.msra.mxu1 %v10995_v50 }
 0x593   : > { %6220 = vmatmul.mubr.f32.vlgmr.msra.gmra.mrb[18].mxu1 %v6145_v57  ;;  %v3476_v9 = vpop.permute.xlu1 %3475  ;;  %8408 = vmatprep.subr.bf16.mxu1 %v8407_v52  ;;  %v8411_v57 = vpack.c.bf16 %v6409_v21, %v6407_v51  ;;  %v6995_v51 = vld [vmem:[%s11758_s5 + $0x2b8] sm:$0xff] }
 0x594   : > { %7627 = vmatprep.mubr.msk.f32.mxu1 %vm12107_vm11, %v6148_v43  ;;  %3516 = vst.msk [vmem:[#allocation3 + $0x138] sm:$0x3] %vm1629_vm12, %v3476_v9  ;;  %v3472_v23 = vpop.permute.xlu0 %3471  ;;  %vm12122_vm11 = vcmask 451968   ;;  %8410 = vmatpush1.bf16.msra.mxu1 %v8409_v15  ;;  %v6818_v15 = vld [vmem:[#allocation3 + $0x128] sm:$0xff] }
 0x595   : > { %3514 = vst.msk [vmem:[#allocation3 + $0x118] sm:$0x3] %vm1629_vm12, %v3472_v23  ;;  %vm12110_vm12 = vcmask 648768   ;;  %8412 = vmatprep.subr.bf16.mxu1 %v8411_v57  ;;  %v7349_v57 = vld [vmem:[%s11760_s7 + $0x88] sm:$0xff] }
 0x596   : > { %vm12111_vm3 = vmmov %vm12110_vm12 }
 0x597   : > { %6225 = vmatmul.mubr.f32.gmra.mrb[20].mxu1 %v6147_v13  ;;  %v2460_v28 = vpop.permute.xlu1 %2459  ;;  %v11327_v5 = vpop.f32.mrb[106].mxu0 }
 0x598   : > { %2502 = vst.msk [vmem:[#allocation3 + $0x130] sm:$0x3] %vm12108_vm2, %v2460_v28  ;;  %v2456_v10 = vpop.permute.xlu0 %2455  ;;  %v6309_v50 = vpop.f32.mrb[107].mxu0  ;;  %6397 = vmatprep.mubr.f32.mxu1 %v8765_v6  ;;  %vm12123_vm2 = vmmov %vm12122_vm11  ;;  %v6308_v23 = vadd.f32 %v11026_v46, %v11327_v5  ;;  %v6408_v5 = vld [vmem:[%s11758_s5 + $0x210] sm:$0xff] }
 0x599   : > { %2500 = vst.msk [vmem:[#allocation3 + $0x110] sm:$0x3] %vm12109_vm15, %v2456_v10  ;;  %vm12124_vm15 = vcmask 911168  }
 0x59a   : > { %v6318_v50 = vmax.f32 %v6308_v23, 0.0 }
 0x59b   : > { %v3596_v56 = vpop.permute.xlu1 %3595 }
 0x59c   : > { %3636 = vst.msk [vmem:[#allocation3 + $0x138] sm:$0x3] %vm1751_vm13, %v3596_v56  ;;  %v3592_v60 = vpop.permute.xlu0 %3591 }
 0x59d   : > { %3634 = vst.msk [vmem:[#allocation3 + $0x118] sm:$0x3] %vm1751_vm13, %v3592_v60  ;;  %vm12114_vm13 = vcmask 320768  }
 0x59e   : > { %vm12115_vm5 = vmmov %vm12114_vm13 }
 0x59f   : > { %v2582_v24 = vpop.permute.xlu1 %2581 }
 0x5a0   : > { %2624 = vst.msk [vmem:[#allocation3 + $0x130] sm:$0x3] %vm12110_vm12, %v2582_v24  ;;  %v2578_v30 = vpop.permute.xlu0 %2577  ;;  %vm12125_vm12 = vmmov %vm12124_vm15 }
 0x5a1   : > { %2622 = vst.msk [vmem:[#allocation3 + $0x110] sm:$0x3] %vm12111_vm3, %v2578_v30  ;;  %vm12126_vm3 = vcmask 517568  }
 0x5a3   : > { %v3716_v29 = vpop.permute.xlu1 %3715 }
 0x5a4   : > { %3756 = vst.msk [vmem:[#allocation3 + $0x138] sm:$0x3] %vm1873_vm14, %v3716_v29  ;;  %v3712_v55 = vpop.permute.xlu0 %3711 }
 0x5a5   : > { %3754 = vst.msk [vmem:[#allocation3 + $0x118] sm:$0x3] %vm1873_vm14, %v3712_v55  ;;  %vm12118_vm14 = vcmask 386368  }
 0x5a6   : > { %vm12119_vm6 = vmmov %vm12118_vm14 }
 0x5a7   : > { %v2704_v4 = vpop.permute.xlu1 %2703 }
 0x5a8   : > { %2746 = vst.msk [vmem:[#allocation3 + $0x130] sm:$0x3] %vm12112_vm8, %v2704_v4  ;;  %v2700_v47 = vpop.permute.xlu0 %2699  ;;  %vm12127_vm8 = vmmov %vm12126_vm3  ;;  %v6406_v4 = vld [vmem:[%s11758_s5 + $0x200] sm:$0xff] }
 0x5a9   : > { %2744 = vst.msk [vmem:[#allocation3 + $0x110] sm:$0x3] %vm12113_vm10, %v2700_v47  ;;  %vm12128_vm10 = vcmask 976768   ;;  %v6487_v47 = vld [vmem:[%s11758_s5 + $0x228] sm:$0xff] }
 0x5ab   : > { %v3836_v38 = vpop.permute.xlu1 %3835 }
 0x5ac   : > { %3876 = vst.msk [vmem:[#allocation3 + $0x138] sm:$0x3] %vm12114_vm13, %v3836_v38  ;;  %v3832_v19 = vpop.permute.xlu0 %3831  ;;  %vm12129_vm13 = vmmov %vm12128_vm10  ;;  %v6489_v38 = vld [vmem:[%s11758_s5 + $0x238] sm:$0xff] }
 0x5ad   : > { %3874 = vst.msk [vmem:[#allocation3 + $0x118] sm:$0x3] %vm12115_vm5, %v3832_v19  ;;  %vm12130_vm5 = vcmask 583168  }
 0x5af   : > { %v2826_v0 = vpop.permute.xlu1 %2825 }
 0x5b0   : > { %2868 = vst.msk [vmem:[#allocation3 + $0x130] sm:$0x3] %vm12116_vm4, %v2826_v0  ;;  %v2822_v8 = vpop.permute.xlu0 %2821  ;;  %vm12131_vm4 = vmmov %vm12130_vm5 }
 0x5b1   : > { %2866 = vst.msk [vmem:[#allocation3 + $0x110] sm:$0x3] %vm12117_vm0, %v2822_v8  ;;  %vm12132_vm0 = vcmask 1042368   ;;  %v8413_v8 = vpack.c.bf16 %v6408_v5, %v6406_v4  ;;  %v7336_v5 = vld [vmem:[%s11760_s7 + $0x20] sm:$0xff] }
 0x5b3   : > { %v3956_v39 = vpop.permute.xlu1 %3955 }
 0x5b4   : > { %3996 = vst.msk [vmem:[#allocation3 + $0x138] sm:$0x3] %vm12118_vm14, %v3956_v39  ;;  %v3952_v42 = vpop.permute.xlu0 %3951  ;;  %vm12133_vm14 = vmmov %vm12132_vm0 }
 0x5b5   : > { %3994 = vst.msk [vmem:[#allocation3 + $0x118] sm:$0x3] %vm12119_vm6, %v3952_v42  ;;  %vm12134_vm6 = vcmask 588800  }
 0x5b7   : > { %v2948_v36 = vpop.permute.xlu1 %2947 }
 0x5b8   : > { %2990 = vst.msk [vmem:[#allocation3 + $0x130] sm:$0x3] %vm12120_vm7, %v2948_v36  ;;  %v2944_v16 = vpop.permute.xlu0 %2943  ;;  %v8415_v36 = vpack.c.bf16 %v6489_v38, %v6487_v47  ;;  %vm12135_vm7 = vmmov %vm12134_vm6  ;;  %v7337_v47 = vld [vmem:[%s11760_s7 + $0x28] sm:$0xff]  ;;  %v7354_v38 = vld [vmem:[%s11760_s7 + $0xb0] sm:$0xff] }
 0x5b9   : > { %2988 = vst.msk [vmem:[#allocation3 + $0x110] sm:$0x3] %vm12121_vm1, %v2944_v16  ;;  %v6486_v16 = vld [vmem:[%s11758_s5 + $0x220] sm:$0xff]  ;;  %vm12136_vm1 = vmmov %vm12134_vm6 }
 0x5bb   : > { %v4076_v44 = vpop.permute.xlu1 %4075 }
 0x5bc   : > { %4116 = vst.msk [vmem:[#allocation3 + $0x138] sm:$0x3] %vm12122_vm11, %v4076_v44  ;;  %v4072_v40 = vpop.permute.xlu0 %4071  ;;  %v6488_v44 = vld [vmem:[%s11758_s5 + $0x230] sm:$0xff] }
 0x5bd   : > { %4114 = vst.msk [vmem:[#allocation3 + $0x118] sm:$0x3] %vm12123_vm2, %v4072_v40  ;;  %v6567_v40 = vld [vmem:[%s11758_s5 + $0x248] sm:$0xff] }
 0x5bf   : > { %v3070_v25 = vpop.permute.xlu1 %3069 }
 0x5c0   : > { %3112 = vst.msk [vmem:[#allocation3 + $0x130] sm:$0x3] %vm12124_vm15, %v3070_v25  ;;  %v3066_v34 = vpop.permute.xlu0 %3065  ;;  %v6569_v25 = vld [vmem:[%s11758_s5 + $0x258] sm:$0xff] }
 0x5c1   : > { %3110 = vst.msk [vmem:[#allocation3 + $0x110] sm:$0x3] %vm12125_vm12, %v3066_v34  ;;  %v8417_v34 = vpack.c.bf16 %v6488_v44, %v6486_v16 }
 0x5c3   : > { %v4196_v17 = vpop.permute.xlu1 %4195 }
 0x5c4   : > { %4236 = vst.msk [vmem:[#allocation3 + $0x138] sm:$0x3] %vm12126_vm3, %v4196_v17  ;;  %v4192_v20 = vpop.permute.xlu0 %4191 }
 0x5c5   : > { %4234 = vst.msk [vmem:[#allocation3 + $0x118] sm:$0x3] %vm12127_vm8, %v4192_v20  ;;  %v8419_v20 = vpack.c.bf16 %v6569_v25, %v6567_v40  ;;  %v7340_v40 = vld [vmem:[%s11760_s7 + $0x40] sm:$0xff]  ;;  %v7341_v25 = vld [vmem:[%s11760_s7 + $0x48] sm:$0xff] }
 0x5c7   : > { %v3192_v45 = vpop.permute.xlu1 %3191 }
 0x5c8   : > { %3234 = vst.msk [vmem:[#allocation3 + $0x130] sm:$0x3] %vm12128_vm10, %v3192_v45  ;;  %v3188_v14 = vpop.permute.xlu0 %3187  ;;  %v6566_v45 = vld [vmem:[%s11758_s5 + $0x240] sm:$0xff] }
 0x5c9   : > { %3232 = vst.msk [vmem:[#allocation3 + $0x110] sm:$0x3] %vm12129_vm13, %v3188_v14  ;;  %v6568_v14 = vld [vmem:[%s11758_s5 + $0x250] sm:$0xff] }
 0x5cb   : > { %v4316_v41 = vpop.permute.xlu1 %4315 }
 0x5cc   : > { %4356 = vst.msk [vmem:[#allocation3 + $0x138] sm:$0x3] %vm12130_vm5, %v4316_v41  ;;  %v4312_v58 = vpop.permute.xlu0 %4311  ;;  %v6651_v41 = vld [vmem:[%s11758_s5 + $0x268] sm:$0xff] }
 0x5cd   : > { %4354 = vst.msk [vmem:[#allocation3 + $0x118] sm:$0x3] %vm12131_vm4, %v4312_v58  ;;  %v6653_v58 = vld [vmem:[%s11758_s5 + $0x278] sm:$0xff] }
 0x5cf   : > { %v3314_v61 = vpop.permute.xlu1 %3313 }
 0x5d0   : > { %3356 = vst.msk [vmem:[#allocation3 + $0x130] sm:$0x3] %vm12132_vm0, %v3314_v61  ;;  %v3310_v1 = vpop.permute.xlu0 %3309  ;;  %v8421_v61 = vpack.c.bf16 %v6568_v14, %v6566_v45  ;;  %v7342_v14 = vld [vmem:[%s11760_s7 + $0x50] sm:$0xff] }
 0x5d1   : > { %3354 = vst.msk [vmem:[#allocation3 + $0x110] sm:$0x3] %vm12133_vm14, %v3310_v1 }
 0x5d4   : > { %v6734_v48 = vld [vmem:[#allocation3 + $0x118] sm:$0x3] }
 0x5d5   : > { %7636 = vmatprep.mubr.msk.f32.mxu0 %vm12134_vm6, %v6734_v48  ;;  %v8423_v48 = vpack.c.bf16 %v6653_v58, %v6651_v41  ;;  %v7343_v41 = vld [vmem:[%s11760_s7 + $0x58] sm:$0xff]  ;;  %v7360_v58 = vld [vmem:[%s11760_s7 + $0xe0] sm:$0xff] }
 0x5d8   : > { %v6733_v49 = vld [vmem:[#allocation3 + $0x110] sm:$0x3] }
 0x5d9   : > { %6811 = vmatmul.mubr.f32.gmra.mrb[112].mxu0 %v6733_v49  ;;  %v6650_v49 = vld [vmem:[%s11758_s5 + $0x260] sm:$0xff] }
 0x5da   : > { %v8425_v2 = vpack.c.bf16 %v6652_v63, %v6650_v49  ;;  %v8685_v49 = vld [vmem:[%s11757_s4] ss:$0 sm:$0xff] }
 0x5f3   : > { %v6312_v11 = vpop.f32.mrb[108].mxu0 }
 0x5f4   : > { %v6314_v59 = vpop.f32.mrb[109].mxu0  ;;  %v6313_v56 = vadd.f32 %v11026_v46, %v6312_v11  ;;  %v6993_v11 = vld [vmem:[%s11758_s5 + $0x2a8] sm:$0xff] }
 0x5f5   : > { %v8503_v21 = vpack.c.bf16 %v6995_v51, %v6993_v11  ;;  %v7348_v59 = vld [vmem:[%s11760_s7 + $0x80] sm:$0xff] }
 0x5f6   : > { %v6319_v19 = vmax.f32 %v6313_v56, 0.0  ;;  %v8519_v23 = vpack.c.bf16 %v7349_v57, %v7348_v59  ;;  %v7072_v59 = vld [vmem:[%s11758_s5 + $0x2c0] sm:$0xff]  ;;  %v7074_v57 = vld [vmem:[%s11758_s5 + $0x2d0] sm:$0xff] }
 0x5f8   : > { %8520 = vmatprep.subr.bf16.mxu0 %v8519_v23  ;;  %v7155_v23 = vld [vmem:[%s11758_s5 + $0x2f8] sm:$0xff] }
 0x650   : > { %v11379_v43 = vpop.f32.mrb[110].mxu0 }
 0x651   : > { %v6809_v9 = vpop.f32.mrb[111].mxu0  ;;  %v6808_v63 = vadd.f32 %v8685_v49, %v11379_v43  ;;  %v7073_v43 = vld [vmem:[%s11758_s5 + $0x2c8] sm:$0xff] }
 0x652   : > { %v7332_v9 = vld [vmem:[%s11760_s7] sm:$0xff] }
 0x666   : > { %v6221_v13 = vpop.f32.mrb[18].mxu1 }
 0x667   : > { %v6222_v28 = vadd.f32 %v11026_v46, %v6221_v13  ;;  %v6223_v10 = vpop.f32.mrb[19].mxu1  ;;  %v7333_v13 = vld [vmem:[%s11760_s7 + $0x8] sm:$0xff] }
 0x668   : > { %v7351_v10 = vld [vmem:[%s11760_s7 + $0x98] sm:$0xff] }
 0x669   : > { %v6316_v60 = vmax.f32 %v6222_v28, 0.0  ;;  %v7350_v28 = vld [vmem:[%s11760_s7 + $0x90] sm:$0xff] }
 0x66a   : > { %v6226_v24 = vpop.f32.mrb[20].mxu1  ;;  %v8523_v56 = vpack.c.bf16 %v7351_v10, %v7350_v28 }
 0x66b   : > { %v6320_v30 = vmax.f32 %v6316_v60, %v6318_v50  ;;  %v6227_v29 = vadd.f32 %v11026_v46, %v6226_v24  ;;  %v6228_v55 = vpop.f32.mrb[21].mxu1  ;;  %v8521_v50 = vpack.c.bf16 %v7333_v13, %v7332_v9  ;;  %v7334_v60 = vld [vmem:[%s11760_s7 + $0x10] sm:$0xff]  ;;  %v7335_v24 = vld [vmem:[%s11760_s7 + $0x18] sm:$0xff]  ;;  %v7153_v9 = vld [vmem:[%s11758_s5 + $0x2e8] sm:$0xff]  ;;  %v8509_v13 = vpack.c.bf16 %v7074_v57, %v7072_v59 }
 0x66c   : > { %v8525_v55 = vpack.c.bf16 %v7335_v24, %v7334_v60  ;;  %v8511_v10 = vpack.c.bf16 %v7155_v23, %v7153_v9  ;;  %v7237_v60 = vld [vmem:[%s11758_s5 + $0x308] sm:$0xff]  ;;  %v7239_v24 = vld [vmem:[%s11758_s5 + $0x318] sm:$0xff]  ;;  %v7450_v59 = vld [vmem:[%s11762_s9 + $0x70] sm:$0xff] }
 0x66d   : > { %v6323_v0 = vrot.slane %v6320_v30, 1  ;;  %v6317_v46 = vmax.f32 %v6227_v29, 0.0  ;;  %v7353_v29 = vld [vmem:[%s11760_s7 + $0xa8] sm:$0xff]  ;;  %8522 = vmatpush3.bf16.msra.mxu0 %v8521_v50  ;;  %v7152_v50 = vld [vmem:[%s11758_s5 + $0x2e0] sm:$0xff]  ;;  %v7451_v9 = vld [vmem:[%s11762_s9 + $0x78] sm:$0xff] }
 0x66e   : > { %8524 = vmatprep.subr.bf16.mxu0 %v8523_v56  ;;  %v7154_v56 = vld [vmem:[%s11758_s5 + $0x2f0] sm:$0xff]  ;;  %v8573_v23 = vpack.c.bf16 %v7451_v9, %v7450_v59 }
 0x66f   : > { %v6325_v39 = vmax.f32 %v6320_v30, %v6323_v0  ;;  %v6321_v42 = vmax.f32 %v6317_v46, %v6319_v19  ;;  %v7352_v30 = vld [vmem:[%s11760_s7 + $0xa0] sm:$0xff]  ;;  %v7355_v19 = vld [vmem:[%s11760_s7 + $0xb8] sm:$0xff]  ;;  %v8529_v0 = vpack.c.bf16 %v7337_v47, %v7336_v5  ;;  %v7238_v5 = vld [vmem:[%s11758_s5 + $0x310] sm:$0xff] }
 0x670   : > { %v8527_v4 = vpack.c.bf16 %v7353_v29, %v7352_v30  ;;  %v8531_v46 = vpack.c.bf16 %v7355_v19, %v7354_v38  ;;  %v8513_v30 = vpack.c.bf16 %v7154_v56, %v7152_v50 }
 0x671   : > { %7630 = vmatmul.mubr.msk.f32.vlgmr.msra.gmra.mrb[8].mxu1 %vm4581_vm9, %v6325_v39  ;;  %v6410_v17 = vrot.slane %v6325_v39, 2  ;;  %v6490_v1 = vrot.slane %v6325_v39, 4  ;;  %v6570_v26 = vrot.slane %v6325_v39, 6  ;;  %v6647_v52 = vrot.slane %v6321_v42, 1  ;;  %8526 = vmatpush3.bf16.msra.mxu0 %v8525_v55  ;;  %v7339_v39 = vld [vmem:[%s11760_s7 + $0x38] sm:$0xff] }
 0x672   : > { %8414 = vmatpush1.bf16.msra.mxu1 %v8413_v8  ;;  %6477 = vmatprep.mubr.f32.mxu1 %v8765_v6  ;;  %v7338_v8 = vld [vmem:[%s11760_s7 + $0x30] sm:$0xff]  ;;  %v8515_v55 = vpack.c.bf16 %v7239_v24, %v7237_v60 }
 0x673   : > { %8416 = vmatprep.subr.bf16.mxu1 %v8415_v36  ;;  %v6649_v54 = vmax.f32 %v6321_v42, %v6647_v52  ;;  %8528 = vmatprep.subr.bf16.mxu0 %v8527_v4  ;;  %v7356_v42 = vld [vmem:[%s11760_s7 + $0xc0] sm:$0xff]  ;;  %v7357_v36 = vld [vmem:[%s11760_s7 + $0xc8] sm:$0xff]  ;;  %v8533_v16 = vpack.c.bf16 %v7339_v39, %v7338_v8 }
 0x674   : > { %v8535_v44 = vpack.c.bf16 %v7357_v36, %v7356_v42  ;;  %v7236_v4 = vld [vmem:[%s11758_s5 + $0x300] sm:$0xff]  ;;  %v7345_v8 = vld [vmem:[%s11760_s7 + $0x68] sm:$0xff]  ;;  %v7362_v42 = vld [vmem:[%s11760_s7 + $0xf0] sm:$0xff] }
 0x675   : > { %8530 = vmatpush3.bf16.msra.mxu0 %v8529_v0  ;;  %v8517_v47 = vpack.c.bf16 %v7238_v5, %v7236_v4  ;;  %v7363_v36 = vld [vmem:[%s11760_s7 + $0xf8] sm:$0xff] }
 0x676   : > { %8532 = vmatprep.subr.bf16.mxu0 %v8531_v46  ;;  %v7344_v46 = vld [vmem:[%s11760_s7 + $0x60] sm:$0xff] }
 0x677   : > { %v8545_v39 = vpack.c.bf16 %v7345_v8, %v7344_v46 }
 0x679   : > { %7631 = vmatmul.mubr.msk.f32.vlgmr.msra.gmra.mrb[8].mxu1 %vm4581_vm9, %v6410_v17  ;;  %v7359_v17 = vld [vmem:[%s11760_s7 + $0xd8] sm:$0xff]  ;;  %8534 = vmatpush3.bf16.msra.mxu0 %v8533_v16  ;;  %v7346_v16 = vld [vmem:[%s11760_s7 + $0x70] sm:$0xff] }
 0x67a   : > { %8418 = vmatpush1.bf16.msra.mxu1 %v8417_v34  ;;  %6557 = vmatprep.mubr.f32.mxu1 %v8765_v6  ;;  %v7358_v34 = vld [vmem:[%s11760_s7 + $0xd0] sm:$0xff] }
 0x67b   : > { %8420 = vmatprep.subr.bf16.mxu1 %v8419_v20  ;;  %v8537_v20 = vpack.c.bf16 %v7341_v25, %v7340_v40  ;;  %8536 = vmatprep.subr.bf16.mxu0 %v8535_v44  ;;  %v8539_v45 = vpack.c.bf16 %v7359_v17, %v7358_v34  ;;  %v8547_v44 = vpack.c.bf16 %v7363_v36, %v7362_v42  ;;  %v7347_v40 = vld [vmem:[%s11760_s7 + $0x78] sm:$0xff]  ;;  %v7318_v34 = vlaneseq }
 0x67c   : > { %v8549_v25 = vpack.c.bf16 %v7347_v40, %v7346_v16 }
 0x67d   : > { %8538 = vmatpush3.bf16.msra.mxu0 %v8537_v20  ;;  %v7319_v17 = vshrl.u32 %v7318_v34, 7 }
 0x67e   : > { %8540 = vmatprep.subr.bf16.mxu0 %v8539_v45  ;;  %v7316_v45 = vld [vmem:[%s11759_s6] sm:$0x3] }
 0x67f   : > { %v7320_v20 = vsub.s32 0, %v7319_v17 }
 0x681   : > { %7632 = vmatmul.mubr.msk.f32.vlgmr.msra.gmra.mrb[8].mxu1 %vm4581_vm9, %v6490_v1  ;;  %v8541_v1 = vpack.c.bf16 %v7343_v41, %v7342_v14  ;;  %v7324_v14 = vsub.s32 1, %v7319_v17  ;;  %v7321_v41 = vrot.slane %v7316_v45, %v7320_v20 }
 0x682   : > { %8422 = vmatpush1.bf16.msra.mxu1 %v8421_v61  ;;  %6637 = vmatprep.mubr.f32.mxu1 %v8765_v6  ;;  %v7361_v61 = vld [vmem:[%s11760_s7 + $0xe8] sm:$0xff] }
 0x683   : > { %8424 = vmatprep.subr.bf16.mxu1 %v8423_v48  ;;  %v8543_v48 = vpack.c.bf16 %v7361_v61, %v7360_v58  ;;  %8542 = vmatpush3.bf16.msra.mxu0 %v8541_v1  ;;  %v7325_v58 = vrot.slane %v7316_v45, %v7324_v14 }
 0x685   : > { %8544 = vmatprep.subr.bf16.mxu0 %v8543_v48 }
 0x687   : > { %8546 = vmatpush3.bf16.msra.mxu0 %v8545_v39 }
 0x688   : > { %8548 = vmatprep.subr.bf16.mxu0 %v8547_v44 }
 0x689   : > { %7633 = vmatmul.mubr.msk.f32.vlgmr.msra.gmra.mrb[8].mxu1 %vm4581_vm9, %v6570_v26 }
 0x68a   : > { %8426 = vmatpush1.bf16.msra.mxu1 %v8425_v2  ;;  %6721 = vmatprep.mubr.f32.mxu1 %v8765_v6 }
 0x68b   : > { %8463 = vmatprep.subr.bf16.mxu1 %v8760_v31  ;;  %8550 = vmatpush3.bf16.msra.mxu0 %v8549_v25 }
 0x68c   : > { %8551 = vmatprep.subr.bf16.mxu0 %v8760_v31 }
 0x691   : > { %7634 = vmatmul.mubr.msk.f32.vlgmr.msra.gmra.mrb[8].mxu1 %vm4581_vm9, %v6649_v54  ;;  %v6902_v54 = vmax.f32 %v6808_v63, 0.0  ;;  %v7437_v63 = vld [vmem:[%s11762_s9 + $0x8] sm:$0xff] }
 0x692   : > { %8465 = vmatpush1.bf16.msra.mxu1 %v9485_v32  ;;  %7637 = vmatprep.mubr.msk.f32.mxu1 %vm12135_vm7, %v6818_v15 }
 0x693   : > { %8466 = vmatprep.subr.bf16.mxu1 %v8760_v31 }
 0x696   : > { %8468 = vmatpush1.bf16.msra.mxu1 %v9502_v53 }
 0x697   : > { %8469 = vmatprep.subr.bf16.mxu1 %v8760_v31 }
 0x69a   : > { %8471 = vmatpush1.bf16.msra.mxu1 %v9521_v3  ;;  %v8684_v3 = vld [vmem:[%s11756_s3 + $0xc0] sm:$0xff] }
 0x69b   : > { %8472 = vmatprep.subr.bf16.mxu1 %v8760_v31 }
 0x69e   : > { %8474 = vmatpush1.bf16.msra.mxu1 %v9538_v22  ;;  %v6817_v22 = vld [vmem:[#allocation3 + $0x120] sm:$0xff] }
 0x69f   : > { %8475 = vmatprep.subr.bf16.mxu1 %v8760_v31 }
 0x6a2   : > { %8477 = vmatpush1.bf16.msra.mxu1 %v9565_v18  ;;  %v6820_v18 = vld [vmem:[#allocation3 + $0x138] sm:$0x3] }
 0x6a3   : > { %8478 = vmatprep.subr.bf16.mxu1 %v8760_v31 }
 0x6a6   : > { %8480 = vmatpush1.bf16.msra.mxu1 %v9590_v37  ;;  %v6819_v37 = vld [vmem:[#allocation3 + $0x130] sm:$0x3] }
 0x6a7   : > { %8481 = vmatprep.subr.bf16.mxu1 %v8760_v31 }
 0x6aa   : > { %8483 = vmatpush1.bf16.msra.mxu1 %v9604_v12  ;;  %v6913_v12 = vld [vmem:[%s11758_s5 + $0x288] sm:$0xff] }
 0x6ab   : > { %8484 = vmatprep.subr.bf16.mxu1 %v8760_v31 }
 0x6ac   : > { %v11453_v32 = vpop.f32.mrb[112].mxu0 }
 0x6ad   : > { %v6814_v53 = vpop.f32.mrb[113].mxu0  ;;  %v6813_v15 = vadd.f32 %v8685_v49, %v11453_v32  ;;  %v7075_v32 = vld [vmem:[%s11758_s5 + $0x2d8] sm:$0xff] }
 0x6ae   : > { %8486 = vmatpush1.bf16.msra.mxu1 %v9623_v62  ;;  %v6915_v62 = vld [vmem:[%s11758_s5 + $0x298] sm:$0xff] }
 0x6af   : > { %8487 = vmatprep.subr.bf16.mxu1 %v8760_v31 }
 0x6b2   : > { %8489 = vmatpush1.bf16.msra.mxu1 %v9638_v27  ;;  %v6912_v27 = vld [vmem:[%s11758_s5 + $0x280] sm:$0xff] }
 0x6b3   : > { %8490 = vmatprep.subr.bf16.mxu1 %v8760_v31 }
 0x6b6   : > { %8492 = vmatpush1.bf16.msra.mxu1 %v9652_v35  ;;  %v8499_v35 = vpack.c.bf16 %v6915_v62, %v6913_v12  ;;  %v6992_v12 = vld [vmem:[%s11758_s5 + $0x2a0] sm:$0xff]  ;;  %v6994_v62 = vld [vmem:[%s11758_s5 + $0x2b0] sm:$0xff] }
 0x6b7   : > { %8493 = vmatprep.subr.bf16.mxu1 %v8760_v31 }
 0x6ba   : > { %8495 = vmatpush1.bf16.msra.mxu1 %v9670_v7  ;;  %v6914_v7 = vld [vmem:[%s11758_s5 + $0x290] sm:$0xff] }
 0x6bb   : > { %8496 = vmatprep.subr.bf16.mxu1 %v8760_v31 }
 0x6be   : > { %8498 = vmatpush1.bf16.msra.mxu1 %v9687_v33  ;;  %v8501_v33 = vpack.c.bf16 %v6914_v7, %v6912_v27  ;;  %v6903_v27 = vmax.f32 %v6813_v15, 0.0  ;;  %v7438_v15 = vld [vmem:[%s11762_s9 + $0x10] sm:$0xff] }
 0x6bf   : > { %6875 = vmatprep.subr.mxu1 %v8765_v6 }
 0x6c2   : > { %6876 = vmatpush1.msra.mxu1 %v8684_v3 }
 0x6c3   : > { %6892 = vmatmul.mubr.f32.vlgmr.msra.gmra.mrb[22].mxu1 %v6817_v22  ;;  %8500 = vmatprep.subr.bf16.mxu1 %v8499_v35 }
 0x6c4   : > { %7638 = vmatprep.mubr.msk.f32.mxu1 %vm12136_vm1, %v6820_v18  ;;  %8502 = vmatpush1.bf16.msra.mxu1 %v8501_v33  ;;  %v8505_v33 = vpack.c.bf16 %v6994_v62, %v6992_v12  ;;  %v7442_v12 = vld [vmem:[%s11762_s9 + $0x30] sm:$0xff]  ;;  %v7443_v62 = vld [vmem:[%s11762_s9 + $0x38] sm:$0xff] }
 0x6c5   : > { %8504 = vmatprep.subr.bf16.mxu1 %v8503_v21  ;;  %v8507_v21 = vpack.c.bf16 %v7075_v32, %v7073_v43  ;;  %v8561_v43 = vpack.c.bf16 %v7443_v62, %v7442_v12  ;;  %v7444_v32 = vld [vmem:[%s11762_s9 + $0x40] sm:$0xff] }
 0x6c7   : > { %6897 = vmatmul.mubr.f32.gmra.mrb[24].mxu1 %v6819_v37 }
 0x6c8   : > { %6983 = vmatprep.mubr.f32.mxu1 %v8765_v6 }
 0x796   : > { %v6893_v2 = vpop.f32.mrb[22].mxu1 }
 0x797   : > { %v6894_v26 = vadd.f32 %v8685_v49, %v6893_v2  ;;  %v6895_v52 = vpop.f32.mrb[23].mxu1 }
 0x799   : > { %v6904_v53 = vmax.f32 %v6894_v26, 0.0 }
 0x79a   : > { %v6898_v3 = vpop.f32.mrb[24].mxu1 }
 0x79b   : > { %v6906_v22 = vmax.f32 %v6902_v54, %v6904_v53  ;;  %v6899_v18 = vadd.f32 %v8685_v49, %v6898_v3  ;;  %v6900_v37 = vpop.f32.mrb[25].mxu1  ;;  %v7436_v49 = vld [vmem:[%s11762_s9] sm:$0xff]  ;;  %v7439_v53 = vld [vmem:[%s11762_s9 + $0x18] sm:$0xff] }
 0x79c   : > { %v8552_v52 = vpack.c.bf16 %v7437_v63, %v7436_v49  ;;  %v8555_v3 = vpack.c.bf16 %v7439_v53, %v7438_v15 }
 0x79d   : > { %v6909_v35 = vrot.slane %v6906_v22, 1  ;;  %v6905_v7 = vmax.f32 %v6899_v18, 0.0  ;;  %v7441_v18 = vld [vmem:[%s11762_s9 + $0x28] sm:$0xff] }
 0x79f   : > { %v6911_v11 = vmax.f32 %v6906_v22, %v6909_v35  ;;  %v6907_v51 = vmax.f32 %v6903_v27, %v6905_v7  ;;  %v7440_v22 = vld [vmem:[%s11762_s9 + $0x20] sm:$0xff]  ;;  %v7445_v27 = vld [vmem:[%s11762_s9 + $0x48] sm:$0xff]  ;;  %v7446_v7 = vld [vmem:[%s11762_s9 + $0x50] sm:$0xff] }
 0x7a0   : > { %v8558_v37 = vpack.c.bf16 %v7441_v18, %v7440_v22  ;;  %v8564_v35 = vpack.c.bf16 %v7445_v27, %v7444_v32 }
 0x7a1   : > { %7639 = vmatmul.mubr.msk.f32.vlgmr.msra.gmra.mrb[8].mxu1 %vm4581_vm9, %v6911_v11  ;;  %v6996_v28 = vrot.slane %v6911_v11, 2  ;;  %v7076_v29 = vrot.slane %v6911_v11, 4  ;;  %v7156_v38 = vrot.slane %v6911_v11, 6  ;;  %v7233_v19 = vrot.slane %v6907_v51, 1 }
 0x7a2   : > { %8506 = vmatpush1.bf16.msra.mxu1 %v8505_v33  ;;  %7063 = vmatprep.mubr.f32.mxu1 %v8765_v6  ;;  %v7447_v33 = vld [vmem:[%s11762_s9 + $0x58] sm:$0xff] }
 0x7a3   : > { %8508 = vmatprep.subr.bf16.mxu1 %v8507_v21  ;;  %v7235_v0 = vmax.f32 %v6907_v51, %v7233_v19  ;;  %v8567_v11 = vpack.c.bf16 %v7447_v33, %v7446_v7  ;;  %v7448_v51 = vld [vmem:[%s11762_s9 + $0x60] sm:$0xff]  ;;  %v7449_v21 = vld [vmem:[%s11762_s9 + $0x68] sm:$0xff] }
 0x7a4   : > { %v8570_v57 = vpack.c.bf16 %v7449_v21, %v7448_v51 }
 0x7a9   : > { %7640 = vmatmul.mubr.msk.f32.vlgmr.msra.gmra.mrb[8].mxu1 %vm4581_vm9, %v6996_v28  ;;  %v7364_v28 = vld [vmem:[%s12137_s0] sm:$0x1] }
 0x7aa   : > { %8510 = vmatpush1.bf16.msra.mxu1 %v8509_v13  ;;  %7143 = vmatprep.mubr.f32.mxu1 %v8765_v6 }
 0x7ab   : > { %8512 = vmatprep.subr.bf16.mxu1 %v8511_v10 }
 0x7b1   : > { %7641 = vmatmul.mubr.msk.f32.vlgmr.msra.gmra.mrb[8].mxu1 %vm4581_vm9, %v7076_v29 }
 0x7b2   : > { %8514 = vmatpush1.bf16.msra.mxu1 %v8513_v30  ;;  %7223 = vmatprep.mubr.f32.mxu1 %v8765_v6 }
 0x7b3   : > { %8516 = vmatprep.subr.bf16.mxu1 %v8515_v55 }
 0x7b9   : > { %7642 = vmatmul.mubr.msk.f32.vlgmr.msra.gmra.mrb[8].mxu1 %vm4581_vm9, %v7156_v38 }
 0x7ba   : > { %8518 = vmatpush1.bf16.msra.mxu1 %v8517_v47  ;;  %7307 = vmatprep.mubr.f32.mxu1 %v8765_v6 }
 0x7c1   : > { %7643 = vmatmul.mubr.msk.f32.vlgmr.msra.gmra.mrb[8].mxu1 %vm4581_vm9, %v7235_v0  ;;  %vm8767_vm9 = vmmov 0  }
 0x894   : > { %v7309_v61 = vpop.f32.mrb[8].mxu1 }
 0x895   : > { %v7328_v1 = vadd.f32 %v7321_v41, %v7309_v61  ;;  %v7311_v48 = vpop.f32.mrb[9].mxu1 }
 0x896   : > { %v7329_v2 = vadd.f32 %v7325_v58, %v7311_v48 }
 0x897   : > { %v7330_v54 = vmax.f32 %v7328_v1, 0.0 }
 0x898   : > { %v7331_v26 = vmax.f32 %v7329_v2, 0.0 }
 0x89a   : > { %7429 = vmatprep.mubr.f32.mxu0 %v7331_v26 }
 0x89b   : > { %7430 = vmatmul.mubr.f32.vlgmr.msra.gmra.mrb[114].mxu0 %v7330_v54 }
 0x89c   : > { %8553 = vmatpush3.bf16.msra.mxu0 %v8552_v52  ;;  %8024 = vmatprep.mubr.msk.f32.mxu0 %vm8767_vm9, %v8765_v6  ;;  %v7452_v6 = vld [vmem:[%s12139_s20] sm:$0x1] }
 0x89d   : > { %8554 = vmatprep.subr.bf16.mxu0 %v8760_v31 }
 0x8a0   : > { %8556 = vmatpush3.bf16.msra.mxu0 %v8555_v3 }
 0x8a1   : > { %8557 = vmatprep.subr.bf16.mxu0 %v8760_v31 }
 0x8a4   : > { %8559 = vmatpush3.bf16.msra.mxu0 %v8558_v37 }
 0x8a5   : > { %8560 = vmatprep.subr.bf16.mxu0 %v8760_v31 }
 0x8a8   : > { %8562 = vmatpush3.bf16.msra.mxu0 %v8561_v43 }
 0x8a9   : > { %8563 = vmatprep.subr.bf16.mxu0 %v8760_v31 }
 0x8ac   : > { %8565 = vmatpush3.bf16.msra.mxu0 %v8564_v35 }
 0x8ad   : > { %8566 = vmatprep.subr.bf16.mxu0 %v8760_v31 }
 0x8b0   : > { %8568 = vmatpush3.bf16.msra.mxu0 %v8567_v11 }
 0x8b1   : > { %8569 = vmatprep.subr.bf16.mxu0 %v8760_v31 }
 0x8b4   : > { %8571 = vmatpush3.bf16.msra.mxu0 %v8570_v57 }
 0x8b5   : > { %8572 = vmatprep.subr.bf16.mxu0 %v8760_v31 }
 0x8b8   : > { %8574 = vmatpush3.bf16.msra.mxu0 %v8573_v23 }
 0x96e   : > { %v7793_v13 = vpop.f32.mrb[114].mxu0 }
 0x96f   : > { %v7794_v10 = vpop.f32.mrb[115].mxu0 }
 0x970   : > { %v7795_v50 = vadd.f32 %v7794_v10, %v7793_v13 }
 0x972   : > { %v7432_v56 = vadd.f32 %v7795_v50, %v7364_v28 }
 0x974   : > { %v7435_v60 = vmax.f32 %v7432_v56, 0.0 }
 0x976   : > { %8025 = vmatmul.mubr.f32.vlgmr.msra.gmra.mrb[116].mxu0 %v7435_v60 }
 0xa49   : > { %v7519_v31 = vpop.f32.mrb[116].mxu0 }
 0xa4a   : > { %v7520_v24 = vadd.f32 %v7519_v31, %v7452_v6  ;;  %v8026_v30 = vpop.f32.mrb[117].mxu0 }
 0xa4c   : > { %7523 = vst [vmem:[%s378_s13] sm:$0x1] %v7520_v24 }
 0xa4d   : > { %8699 = shalt.err (!%p8696_p3)
}
 0xa4e   : > { %s8700_s30 = scalar_lea.hbm %s11711_s16, 16  ;;  %s8704_s2 = scalar_lea.hbm %s12140_s12, 32 }
 0xa4f   : > { %p8701_p4 = scmp.ne.s32.totalorder %s11711_s16, %s8700_s30  ;;  %p8705_p9 = scmp.lt.u32.totalorder %s11711_s16, %s12140_s12 }
 0xa50   : > { %p8706_p10 = scmp.lt.u32.totalorder %s8704_s2, %s8700_s30  ;;  %p8708_p12 = scmp.lt.u32.totalorder %s8700_s30, %s11711_s16 }
 0xa51   : > { %p8702_p7 = pnand %p8701_p4, %p8867_p5 }
 0xa52   : > { %p8707_p11 = por %p8706_p10, %p8705_p9 }
 0xa53   : > { %p8703_p8 = pneg %p8702_p7 }
 0xa54   : > { %p8709_p13 = por %p8708_p12, %p8707_p11 }
 0xa56   : > { %p8710_p0 = pnand %p8709_p13, %p8703_p8 }
 0xa58   : > { %8713 = shalt.err (!%p8710_p0)
}
 0xa59   : > { %8624 = dma.vmem_to_hbm [thread:$0]  (%p8867_p5), %s11713_s10, 16, %s11711_s16, %s7525_s27  }
 0xa5a PF: > { %s12141_s0 = sld [smem:[#allocation9_spill]]  ;;  %s12142_s14 = sld [smem:[#allocation7_spill]] }
 0xa60   : > { %p8630_p1 = scmp.ge.s32.totalorder %s12141_s0, 2  ;;  %s7549_s17 = sand.u32 1, %s12142_s14  }
 0xa61   : > { %s7550_s20 = scalar_lea.sflag [#allocation5], %s7549_s17 }
 0xa62   : > { %p8627_p2 = pnand %p8630_p1, %p8871_p6 }
 0xa64   : > { %8731 = dma.done.wait (!%p8627_p2), %s7550_s20, 16  }
 0xa65   : > { %8733 = vsyncadd (!%p8627_p2), %s7550_s20, 4294967280  ;;  %s12144_s20 = sld [smem:[#allocation10_spill]]  ;;  %s12145_s8 = sld [smem:[#allocation8_spill]] }
 0xa66   : > { %s12146_s19 = sld [smem:[#allocation11_spill]]  ;;  %s12147_s17 = smov %s8740_s18 }
 0xa6b   : > { %p21_p3 = scmp.ge.s32.totalorder %s12144_s20, 4   ;;  %s12148_s18 = smov %s12145_s8 }
 0xa6d   :  { %23 = sbr.rel (!%p21_p3) target bundleno = 10 (0xa), region = 121 }
 0xa74   :  { %7554 = vsyncpa [#allocation5], 1 }
 0xa75   :  { %7556 = vsyncpa [#allocation5 + $0x1], 1 }

</bundles_post_ra>
